<compile_context>
chip_gen: v7x
topology: tpu7x:2x2x1
jax: 0.10.0
libtpu: 0.0.40
codegen_flags: <defaults>
</compile_context>

<pallas_src>
import jax
import jax.numpy as jnp
from jax import lax
from jax.experimental import pallas as pl
from jax.experimental.pallas import tpu as pltpu


# ----------------------------------------------------------------------------
# Fused Pallas kernel: whole network for one batch element per grid step
# ----------------------------------------------------------------------------
def _fused_cnn_kernel(x_ref,
                      w1a_ref, b1a_ref, w1b_ref, b1b_ref,
                      w2a_ref, b2a_ref, w2b_ref, b2b_ref,
                      w3a_ref, b3a_ref, w3b_ref, b3b_ref,
                      wbn_ref, bbn_ref,
                      wm1_ref, bm1_ref, wm2_ref, bm2_ref,
                      o_ref, pad_ref):
    f32 = jnp.float32

    def conv3x3_bn_relu(act, w_ref, b_ref):
        # act: (h, w, cin) VMEM value; w_ref: (3, 3, cin, cout); b_ref: (1, cout)
        h, w, cin = act.shape
        cout = w_ref.shape[-1]
        # 'same' padding via a zero-bordered scratch tile.
        pad_ref[0:h + 2, 0:w + 2, 0:cin] = jnp.zeros((h + 2, w + 2, cin), f32)
        pad_ref[1:h + 1, 1:w + 1, 0:cin] = act
        # in-kernel im2col: accumulate 9 shifted-tap GEMMs on the MXU.
        acc = jnp.zeros((h * w, cout), f32)
        for dy in range(3):
            for dx in range(3):
                tap = pad_ref[dy:dy + h, dx:dx + w, 0:cin]          # (h, w, cin)
                acc = acc + jnp.dot(tap.reshape(h * w, cin), w_ref[dy, dx],
                                    preferred_element_type=f32)
        y = jnp.maximum(acc + b_ref[...], 0.0)                       # folded BN + ReLU
        return y.reshape(h, w, cout)

    def maxpool2x2(y):
        # MaxPool2d(kernel=2, stride=2, ceil_mode=True).  Spatial dims here
        # (16 -> 8 -> 4) are always even, so ceil_mode never pads.
        # TODO(synk): ceil_mode padding for odd spatial sizes not implemented.
        h, w, c = y.shape
        t = y.reshape(h, w // 2, 2, c)
        t = jnp.max(t, axis=2)                                       # pool over W
        t = t.reshape(h // 2, 2, w // 2, c)
        t = jnp.max(t, axis=1)                                       # pool over H
        return t                                                     # (h//2, w//2, c)

    act = x_ref[0]                                                   # (H, W, Cin)
    act = conv3x3_bn_relu(act, w1a_ref, b1a_ref)
    act = conv3x3_bn_relu(act, w1b_ref, b1b_ref)
    act = maxpool2x2(act)
    act = conv3x3_bn_relu(act, w2a_ref, b2a_ref)
    act = conv3x3_bn_relu(act, w2b_ref, b2b_ref)
    act = maxpool2x2(act)
    act = conv3x3_bn_relu(act, w3a_ref, b3a_ref)
    act = conv3x3_bn_relu(act, w3b_ref, b3b_ref)
    act = maxpool2x2(act)                                            # (2, 2, 32)

    # Bottleneck 1x1 conv (ConvNormActivation: conv + folded BN + ReLU).
    h3, w3, c3 = act.shape
    flat = act.reshape(h3 * w3, c3)                                  # (4, 32)
    yb = jnp.maximum(jnp.dot(flat, wbn_ref[...], preferred_element_type=f32)
                     + bbn_ref[...], 0.0)                            # (4, out_ch)

    # Global average pool + TwoMLPHead, still in VMEM.
    gap = jnp.sum(yb, axis=0, keepdims=True) * (1.0 / float(h3 * w3))  # (1, out_ch)
    y = jnp.maximum(jnp.dot(gap, wm1_ref[...], preferred_element_type=f32)
                    + bm1_ref[...], 0.0)
    y = jnp.maximum(jnp.dot(y, wm2_ref[...], preferred_element_type=f32)
                    + bm2_ref[...], 0.0)
    o_ref[0] = y.astype(o_ref.dtype)                                 # (1, out_ch)


# ----------------------------------------------------------------------------
# Wrapper (only glue is the NCHW -> NHWC transpose)
# ----------------------------------------------------------------------------
def _cost_estimate(n, h, w, cin, out_ch):
    flops = 0
    bytes_accessed = n * h * w * cin * 4 + n * out_ch * 4
    hh, ww, ci = h, w, cin
    for sc in (8, 16, 32):
        for (kin, kout) in ((ci, sc), (sc, sc)):
            flops += 2 * n * hh * ww * 9 * kin * kout
            bytes_accessed += (9 * kin * kout + kout) * 4
        ci = sc
        hh //= 2
        ww //= 2
    flops += 2 * n * hh * ww * ci * out_ch            # bottleneck 1x1
    bytes_accessed += (ci * out_ch + out_ch) * 4
    flops += 2 * n * out_ch * out_ch * 2              # MLP head
    bytes_accessed += 2 * (out_ch * out_ch + out_ch) * 4
    return pl.CostEstimate(flops=int(flops), transcendentals=0,
                           bytes_accessed=int(bytes_accessed))


def lightweight_cnn_forward(x_nchw, params):
    x = jnp.transpose(x_nchw, (0, 2, 3, 1)).astype(jnp.float32)      # NCHW -> NHWC
    n, h, w, cin = x.shape
    convs = params["convs"]
    bn = params["bottleneck"]
    mlp = params["mlp"]
    out_ch = int(bn["w"].shape[-1])
    cmax = max(int(c["w"].shape[3]) for c in convs)                  # = 32

    args = [x]
    in_specs = [pl.BlockSpec((1, h, w, cin), lambda i: (i, 0, 0, 0))]
    for c in convs:
        cw, cb = c["w"], c["b"].reshape(1, -1)
        args += [cw, cb]
        in_specs += [pl.BlockSpec(cw.shape, lambda i: (0, 0, 0, 0)),
                     pl.BlockSpec(cb.shape, lambda i: (0, 0))]
    for a in (bn["w"], bn["b"].reshape(1, -1),
              mlp["w1"], mlp["b1"].reshape(1, -1),
              mlp["w2"], mlp["b2"].reshape(1, -1)):
        args.append(a)
        in_specs.append(pl.BlockSpec(a.shape, lambda i: (0, 0)))

    out = pl.pallas_call(
        _fused_cnn_kernel,
        out_shape=jax.ShapeDtypeStruct((n, 1, out_ch), jnp.float32),
        grid=(n,),
        in_specs=in_specs,
        out_specs=pl.BlockSpec((1, 1, out_ch), lambda i: (i, 0, 0)),
        scratch_shapes=[pltpu.VMEM((h + 2, w + 2, cmax), jnp.float32)],
        compiler_params=pltpu.CompilerParams(
            dimension_semantics=("parallel",),          # v7x: one image per TC
            vmem_limit_bytes=8 * 1024 * 1024),
        cost_estimate=_cost_estimate(n, h, w, cin, out_ch),
    )(*args)
    return out.reshape(n, out_ch)


# ----------------------------------------------------------------------------
# Parameters (deterministic synthetic init, BN folded into conv)
# ----------------------------------------------------------------------------
def init_params(key, in_channels, out_channels=4):
    eps = 1e-5
    channels = [in_channels, 8, 16, 32]
    keys = list(jax.random.split(key, 64))
    it = iter(keys)

    def conv_bn(cin, cout, k):
        w = 0.1 * jax.random.normal(next(it), (cout, cin, k, k), jnp.float32)
        gamma = 1.0 + 0.1 * jax.random.normal(next(it), (cout,), jnp.float32)
        beta = 0.1 * jax.random.normal(next(it), (cout,), jnp.float32)
        mean = 0.1 * jax.random.normal(next(it), (cout,), jnp.float32)
        var = 0.5 + jax.random.uniform(next(it), (cout,), jnp.float32)
        scale = gamma / jnp.sqrt(var + eps)
        w_f = w * scale[:, None, None, None]
        b_f = beta - mean * scale
        w_hwio = jnp.transpose(w_f, (2, 3, 1, 0))        # (k, k, cin, cout)
        return {"w": w_hwio, "b": b_f}

    convs = []
    for i in range(1, len(channels)):
        convs.append(conv_bn(channels[i - 1], channels[i], 3))
        convs.append(conv_bn(channels[i], channels[i], 3))

    bneck = conv_bn(channels[-1], out_channels, 1)
    bottleneck = {"w": bneck["w"].reshape(channels[-1], out_channels),
                  "b": bneck["b"]}

    mlp = {
        "w1": 0.2 * jax.random.normal(next(it), (out_channels, out_channels), jnp.float32),
        "b1": 0.1 * jax.random.normal(next(it), (out_channels,), jnp.float32),
        "w2": 0.2 * jax.random.normal(next(it), (out_channels, out_channels), jnp.float32),
        "b2": 0.1 * jax.random.normal(next(it), (out_channels,), jnp.float32),
    }
    return {"convs": convs, "bottleneck": bottleneck, "mlp": mlp}


# ----------------------------------------------------------------------------
# Pure-JAX reference
# ----------------------------------------------------------------------------
def reference_forward(x_nchw, params):
    x = jnp.transpose(x_nchw, (0, 2, 3, 1)).astype(jnp.float32)

    def conv_ref(x, w_hwio, b):
        y = lax.conv_general_dilated(
            x, w_hwio, window_strides=(1, 1), padding="SAME",
            dimension_numbers=("NHWC", "HWIO", "NHWC"))
        return jnp.maximum(y + b, 0.0)

    def pool_ref(x):
        return lax.reduce_window(x, -jnp.inf, lax.max,
                                 (1, 2, 2, 1), (1, 2, 2, 1), "VALID")

    convs = params["convs"]
    for i in range(3):
        x = conv_ref(x, convs[2 * i]["w"], convs[2 * i]["b"])
        x = conv_ref(x, convs[2 * i + 1]["w"], convs[2 * i + 1]["b"])
        x = pool_ref(x)
    bn = params["bottleneck"]
    cin, cout = bn["w"].shape
    x = conv_ref(x, bn["w"].reshape(1, 1, cin, cout), bn["b"])
    gap = jnp.mean(x, axis=(1, 2))
    mlp = params["mlp"]
    y = jnp.maximum(gap @ mlp["w1"] + mlp["b1"], 0.0)
    y = jnp.maximum(y @ mlp["w2"] + mlp["b2"], 0.0)
    return y


# ----------------------------------------------------------------------------
if __name__ == "__main__":
    N, Cin, H, W = 2, 4, 16, 16
    x = jax.random.normal(jax.random.PRNGKey(0), (N, Cin, H, W), jnp.float32)
    params = init_params(jax.random.PRNGKey(1), in_channels=Cin, out_channels=4)

    out = jax.block_until_ready(lightweight_cnn_forward(x, params))
    ref = jax.block_until_ready(reference_forward(x, params))

    assert out.shape == (N, 4), out.shape
    assert jnp.allclose(out, ref, atol=1e-3, rtol=1e-3), (out, ref)
    print("KERNEL_OK")
</pallas_src>

<mosaic_0001>
module attributes {stable_mosaic.version = 11 : i64} {
  func.func @_fused_cnn_kernel(%arg0: i32, %arg1: memref<1x16x16x4xf32, #tpu.memory_space<vmem>>, %arg2: memref<3x3x4x8xf32, #tpu.memory_space<vmem>>, %arg3: memref<1x8xf32, #tpu.memory_space<vmem>>, %arg4: memref<3x3x8x8xf32, #tpu.memory_space<vmem>>, %arg5: memref<1x8xf32, #tpu.memory_space<vmem>>, %arg6: memref<3x3x8x16xf32, #tpu.memory_space<vmem>>, %arg7: memref<1x16xf32, #tpu.memory_space<vmem>>, %arg8: memref<3x3x16x16xf32, #tpu.memory_space<vmem>>, %arg9: memref<1x16xf32, #tpu.memory_space<vmem>>, %arg10: memref<3x3x16x32xf32, #tpu.memory_space<vmem>>, %arg11: memref<1x32xf32, #tpu.memory_space<vmem>>, %arg12: memref<3x3x32x32xf32, #tpu.memory_space<vmem>>, %arg13: memref<1x32xf32, #tpu.memory_space<vmem>>, %arg14: memref<32x4xf32, #tpu.memory_space<vmem>>, %arg15: memref<1x4xf32, #tpu.memory_space<vmem>>, %arg16: memref<4x4xf32, #tpu.memory_space<vmem>>, %arg17: memref<1x4xf32, #tpu.memory_space<vmem>>, %arg18: memref<4x4xf32, #tpu.memory_space<vmem>>, %arg19: memref<1x4xf32, #tpu.memory_space<vmem>>, %arg20: memref<1x1x4xf32, #tpu.memory_space<vmem>>, %arg21: memref<18x18x32xf32, #tpu.memory_space<vmem>>) attributes {dimension_semantics = [#tpu.dimension_semantics<parallel>], iteration_bounds = array<i64: 2>, scalar_prefetch = 0 : i64, scratch_operands = 1 : i64, tpu.core_type = #tpu.core_type<tc>, window_params = [{transform_indices = @transform_0, window_bounds = array<i64: 1, 16, 16, 4>}, {pipeline_mode = #tpu.pipeline_mode<synchronous>, transform_indices = @transform_1, window_bounds = array<i64: 3, 3, 4, 8>}, {pipeline_mode = #tpu.pipeline_mode<synchronous>, transform_indices = @transform_2, window_bounds = array<i64: 1, 8>}, {pipeline_mode = #tpu.pipeline_mode<synchronous>, transform_indices = @transform_3, window_bounds = array<i64: 3, 3, 8, 8>}, {pipeline_mode = #tpu.pipeline_mode<synchronous>, transform_indices = @transform_4, window_bounds = array<i64: 1, 8>}, {pipeline_mode = #tpu.pipeline_mode<synchronous>, transform_indices = @transform_5, window_bounds = array<i64: 3, 3, 8, 16>}, {pipeline_mode = #tpu.pipeline_mode<synchronous>, transform_indices = @transform_6, window_bounds = array<i64: 1, 16>}, {pipeline_mode = #tpu.pipeline_mode<synchronous>, transform_indices = @transform_7, window_bounds = array<i64: 3, 3, 16, 16>}, {pipeline_mode = #tpu.pipeline_mode<synchronous>, transform_indices = @transform_8, window_bounds = array<i64: 1, 16>}, {pipeline_mode = #tpu.pipeline_mode<synchronous>, transform_indices = @transform_9, window_bounds = array<i64: 3, 3, 16, 32>}, {pipeline_mode = #tpu.pipeline_mode<synchronous>, transform_indices = @transform_10, window_bounds = array<i64: 1, 32>}, {pipeline_mode = #tpu.pipeline_mode<synchronous>, transform_indices = @transform_11, window_bounds = array<i64: 3, 3, 32, 32>}, {pipeline_mode = #tpu.pipeline_mode<synchronous>, transform_indices = @transform_12, window_bounds = array<i64: 1, 32>}, {pipeline_mode = #tpu.pipeline_mode<synchronous>, transform_indices = @transform_13, window_bounds = array<i64: 32, 4>}, {pipeline_mode = #tpu.pipeline_mode<synchronous>, transform_indices = @transform_14, window_bounds = array<i64: 1, 4>}, {pipeline_mode = #tpu.pipeline_mode<synchronous>, transform_indices = @transform_15, window_bounds = array<i64: 4, 4>}, {pipeline_mode = #tpu.pipeline_mode<synchronous>, transform_indices = @transform_16, window_bounds = array<i64: 1, 4>}, {pipeline_mode = #tpu.pipeline_mode<synchronous>, transform_indices = @transform_17, window_bounds = array<i64: 4, 4>}, {pipeline_mode = #tpu.pipeline_mode<synchronous>, transform_indices = @transform_18, window_bounds = array<i64: 1, 4>}, {transform_indices = @transform_19, window_bounds = array<i64: 1, 1, 4>}]} {
    %c0 = arith.constant 0 : index
    %c0_0 = arith.constant 0 : index
    %c0_1 = arith.constant 0 : index
    %c0_2 = arith.constant 0 : index
    %0 = vector.load %arg1[%c0, %c0_0, %c0_1, %c0_2] : memref<1x16x16x4xf32, #tpu.memory_space<vmem>>, vector<1x16x16x4xf32>
    %1 = vector.shape_cast %0 : vector<1x16x16x4xf32> to vector<16x16x4xf32>
    %cst = arith.constant 0.000000e+00 : f32
    %2 = vector.broadcast %cst : f32 to vector<18x18x4xf32>
    %c0_3 = arith.constant 0 : index
    %c0_4 = arith.constant 0 : index
    %c0_5 = arith.constant 0 : index
    %3 = vector.load %arg21[%c0_3, %c0_4, %c0_5] : memref<18x18x32xf32, #tpu.memory_space<vmem>>, vector<18x18x4xf32>
    tpu.vector_store %arg21[%c0_3, %c0_4, %c0_5], %2 {strides = array<i32>} : memref<18x18x32xf32, #tpu.memory_space<vmem>>, vector<18x18x4xf32>,
    %c1 = arith.constant 1 : index
    %c1_6 = arith.constant 1 : index
    %c0_7 = arith.constant 0 : index
    %4 = vector.load %arg21[%c1, %c1_6, %c0_7] : memref<18x18x32xf32, #tpu.memory_space<vmem>>, vector<16x16x4xf32>
    tpu.vector_store %arg21[%c1, %c1_6, %c0_7], %1 {strides = array<i32>} : memref<18x18x32xf32, #tpu.memory_space<vmem>>, vector<16x16x4xf32>,
    %cst_8 = arith.constant 0.000000e+00 : f32
    %5 = vector.broadcast %cst_8 : f32 to vector<256x8xf32>
    %c0_9 = arith.constant 0 : index
    %c0_10 = arith.constant 0 : index
    %c0_11 = arith.constant 0 : index
    %6 = vector.load %arg21[%c0_9, %c0_10, %c0_11] : memref<18x18x32xf32, #tpu.memory_space<vmem>>, vector<16x16x4xf32>
    %7 = vector.shape_cast %6 : vector<16x16x4xf32> to vector<256x4xf32>
    %c0_12 = arith.constant 0 : index
    %c0_13 = arith.constant 0 : index
    %c0_14 = arith.constant 0 : index
    %c0_15 = arith.constant 0 : index
    %8 = vector.load %arg2[%c0_12, %c0_13, %c0_14, %c0_15] : memref<3x3x4x8xf32, #tpu.memory_space<vmem>>, vector<1x1x4x8xf32>
    %9 = vector.shape_cast %8 : vector<1x1x4x8xf32> to vector<4x8xf32>
    %cst_16 = arith.constant dense<0.000000e+00> : vector<256x8xf32>
    %10 = tpu.matmul %7, %9, %cst_16 {dimension_numbers = #tpu.dot_dimension_numbers<[1], [0], [0], [1], [0, 0, 1, 1], [], []>} : vector<256x4xf32>, vector<4x8xf32>, vector<256x8xf32> -> vector<256x8xf32>
    %11 = arith.addf %5, %10 : vector<256x8xf32>
    %c0_17 = arith.constant 0 : index
    %c1_18 = arith.constant 1 : index
    %c0_19 = arith.constant 0 : index
    %12 = vector.load %arg21[%c0_17, %c1_18, %c0_19] : memref<18x18x32xf32, #tpu.memory_space<vmem>>, vector<16x16x4xf32>
    %13 = vector.shape_cast %12 : vector<16x16x4xf32> to vector<256x4xf32>
    %c0_20 = arith.constant 0 : index
    %c1_21 = arith.constant 1 : index
    %c0_22 = arith.constant 0 : index
    %c0_23 = arith.constant 0 : index
    %14 = vector.load %arg2[%c0_20, %c1_21, %c0_22, %c0_23] : memref<3x3x4x8xf32, #tpu.memory_space<vmem>>, vector<1x1x4x8xf32>
    %15 = vector.shape_cast %14 : vector<1x1x4x8xf32> to vector<4x8xf32>
    %cst_24 = arith.constant dense<0.000000e+00> : vector<256x8xf32>
    %16 = tpu.matmul %13, %15, %cst_24 {dimension_numbers = #tpu.dot_dimension_numbers<[1], [0], [0], [1], [0, 0, 1, 1], [], []>} : vector<256x4xf32>, vector<4x8xf32>, vector<256x8xf32> -> vector<256x8xf32>
    %17 = arith.addf %11, %16 : vector<256x8xf32>
    %c0_25 = arith.constant 0 : index
    %c2 = arith.constant 2 : index
    %c0_26 = arith.constant 0 : index
    %18 = vector.load %arg21[%c0_25, %c2, %c0_26] : memref<18x18x32xf32, #tpu.memory_space<vmem>>, vector<16x16x4xf32>
    %19 = vector.shape_cast %18 : vector<16x16x4xf32> to vector<256x4xf32>
    %c0_27 = arith.constant 0 : index
    %c2_28 = arith.constant 2 : index
    %c0_29 = arith.constant 0 : index
    %c0_30 = arith.constant 0 : index
    %20 = vector.load %arg2[%c0_27, %c2_28, %c0_29, %c0_30] : memref<3x3x4x8xf32, #tpu.memory_space<vmem>>, vector<1x1x4x8xf32>
    %21 = vector.shape_cast %20 : vector<1x1x4x8xf32> to vector<4x8xf32>
    %cst_31 = arith.constant dense<0.000000e+00> : vector<256x8xf32>
    %22 = tpu.matmul %19, %21, %cst_31 {dimension_numbers = #tpu.dot_dimension_numbers<[1], [0], [0], [1], [0, 0, 1, 1], [], []>} : vector<256x4xf32>, vector<4x8xf32>, vector<256x8xf32> -> vector<256x8xf32>
    %23 = arith.addf %17, %22 : vector<256x8xf32>
    %c1_32 = arith.constant 1 : index
    %c0_33 = arith.constant 0 : index
    %c0_34 = arith.constant 0 : index
    %24 = vector.load %arg21[%c1_32, %c0_33, %c0_34] : memref<18x18x32xf32, #tpu.memory_space<vmem>>, vector<16x16x4xf32>
    %25 = vector.shape_cast %24 : vector<16x16x4xf32> to vector<256x4xf32>
    %c1_35 = arith.constant 1 : index
    %c0_36 = arith.constant 0 : index
    %c0_37 = arith.constant 0 : index
    %c0_38 = arith.constant 0 : index
    %26 = vector.load %arg2[%c1_35, %c0_36, %c0_37, %c0_38] : memref<3x3x4x8xf32, #tpu.memory_space<vmem>>, vector<1x1x4x8xf32>
    %27 = vector.shape_cast %26 : vector<1x1x4x8xf32> to vector<4x8xf32>
    %cst_39 = arith.constant dense<0.000000e+00> : vector<256x8xf32>
    %28 = tpu.matmul %25, %27, %cst_39 {dimension_numbers = #tpu.dot_dimension_numbers<[1], [0], [0], [1], [0, 0, 1, 1], [], []>} : vector<256x4xf32>, vector<4x8xf32>, vector<256x8xf32> -> vector<256x8xf32>
    %29 = arith.addf %23, %28 : vector<256x8xf32>
    %c1_40 = arith.constant 1 : index
    %c1_41 = arith.constant 1 : index
    %c0_42 = arith.constant 0 : index
    %30 = vector.load %arg21[%c1_40, %c1_41, %c0_42] : memref<18x18x32xf32, #tpu.memory_space<vmem>>, vector<16x16x4xf32>
    %31 = vector.shape_cast %30 : vector<16x16x4xf32> to vector<256x4xf32>
    %c1_43 = arith.constant 1 : index
    %c1_44 = arith.constant 1 : index
    %c0_45 = arith.constant 0 : index
    %c0_46 = arith.constant 0 : index
    %32 = vector.load %arg2[%c1_43, %c1_44, %c0_45, %c0_46] : memref<3x3x4x8xf32, #tpu.memory_space<vmem>>, vector<1x1x4x8xf32>
    %33 = vector.shape_cast %32 : vector<1x1x4x8xf32> to vector<4x8xf32>
    %cst_47 = arith.constant dense<0.000000e+00> : vector<256x8xf32>
    %34 = tpu.matmul %31, %33, %cst_47 {dimension_numbers = #tpu.dot_dimension_numbers<[1], [0], [0], [1], [0, 0, 1, 1], [], []>} : vector<256x4xf32>, vector<4x8xf32>, vector<256x8xf32> -> vector<256x8xf32>
    %35 = arith.addf %29, %34 : vector<256x8xf32>
    %c1_48 = arith.constant 1 : index
    %c2_49 = arith.constant 2 : index
    %c0_50 = arith.constant 0 : index
    %36 = vector.load %arg21[%c1_48, %c2_49, %c0_50] : memref<18x18x32xf32, #tpu.memory_space<vmem>>, vector<16x16x4xf32>
    %37 = vector.shape_cast %36 : vector<16x16x4xf32> to vector<256x4xf32>
    %c1_51 = arith.constant 1 : index
    %c2_52 = arith.constant 2 : index
    %c0_53 = arith.constant 0 : index
    %c0_54 = arith.constant 0 : index
    %38 = vector.load %arg2[%c1_51, %c2_52, %c0_53, %c0_54] : memref<3x3x4x8xf32, #tpu.memory_space<vmem>>, vector<1x1x4x8xf32>
    %39 = vector.shape_cast %38 : vector<1x1x4x8xf32> to vector<4x8xf32>
    %cst_55 = arith.constant dense<0.000000e+00> : vector<256x8xf32>
    %40 = tpu.matmul %37, %39, %cst_55 {dimension_numbers = #tpu.dot_dimension_numbers<[1], [0], [0], [1], [0, 0, 1, 1], [], []>} : vector<256x4xf32>, vector<4x8xf32>, vector<256x8xf32> -> vector<256x8xf32>
    %41 = arith.addf %35, %40 : vector<256x8xf32>
    %c2_56 = arith.constant 2 : index
    %c0_57 = arith.constant 0 : index
    %c0_58 = arith.constant 0 : index
    %42 = vector.load %arg21[%c2_56, %c0_57, %c0_58] : memref<18x18x32xf32, #tpu.memory_space<vmem>>, vector<16x16x4xf32>
    %43 = vector.shape_cast %42 : vector<16x16x4xf32> to vector<256x4xf32>
    %c2_59 = arith.constant 2 : index
    %c0_60 = arith.constant 0 : index
    %c0_61 = arith.constant 0 : index
    %c0_62 = arith.constant 0 : index
    %44 = vector.load %arg2[%c2_59, %c0_60, %c0_61, %c0_62] : memref<3x3x4x8xf32, #tpu.memory_space<vmem>>, vector<1x1x4x8xf32>
    %45 = vector.shape_cast %44 : vector<1x1x4x8xf32> to vector<4x8xf32>
    %cst_63 = arith.constant dense<0.000000e+00> : vector<256x8xf32>
    %46 = tpu.matmul %43, %45, %cst_63 {dimension_numbers = #tpu.dot_dimension_numbers<[1], [0], [0], [1], [0, 0, 1, 1], [], []>} : vector<256x4xf32>, vector<4x8xf32>, vector<256x8xf32> -> vector<256x8xf32>
    %47 = arith.addf %41, %46 : vector<256x8xf32>
    %c2_64 = arith.constant 2 : index
    %c1_65 = arith.constant 1 : index
    %c0_66 = arith.constant 0 : index
    %48 = vector.load %arg21[%c2_64, %c1_65, %c0_66] : memref<18x18x32xf32, #tpu.memory_space<vmem>>, vector<16x16x4xf32>
    %49 = vector.shape_cast %48 : vector<16x16x4xf32> to vector<256x4xf32>
    %c2_67 = arith.constant 2 : index
    %c1_68 = arith.constant 1 : index
    %c0_69 = arith.constant 0 : index
    %c0_70 = arith.constant 0 : index
    %50 = vector.load %arg2[%c2_67, %c1_68, %c0_69, %c0_70] : memref<3x3x4x8xf32, #tpu.memory_space<vmem>>, vector<1x1x4x8xf32>
    %51 = vector.shape_cast %50 : vector<1x1x4x8xf32> to vector<4x8xf32>
    %cst_71 = arith.constant dense<0.000000e+00> : vector<256x8xf32>
    %52 = tpu.matmul %49, %51, %cst_71 {dimension_numbers = #tpu.dot_dimension_numbers<[1], [0], [0], [1], [0, 0, 1, 1], [], []>} : vector<256x4xf32>, vector<4x8xf32>, vector<256x8xf32> -> vector<256x8xf32>
    %53 = arith.addf %47, %52 : vector<256x8xf32>
    %c2_72 = arith.constant 2 : index
    %c2_73 = arith.constant 2 : index
    %c0_74 = arith.constant 0 : index
    %54 = vector.load %arg21[%c2_72, %c2_73, %c0_74] : memref<18x18x32xf32, #tpu.memory_space<vmem>>, vector<16x16x4xf32>
    %55 = vector.shape_cast %54 : vector<16x16x4xf32> to vector<256x4xf32>
    %c2_75 = arith.constant 2 : index
    %c2_76 = arith.constant 2 : index
    %c0_77 = arith.constant 0 : index
    %c0_78 = arith.constant 0 : index
    %56 = vector.load %arg2[%c2_75, %c2_76, %c0_77, %c0_78] : memref<3x3x4x8xf32, #tpu.memory_space<vmem>>, vector<1x1x4x8xf32>
    %57 = vector.shape_cast %56 : vector<1x1x4x8xf32> to vector<4x8xf32>
    %cst_79 = arith.constant dense<0.000000e+00> : vector<256x8xf32>
    %58 = tpu.matmul %55, %57, %cst_79 {dimension_numbers = #tpu.dot_dimension_numbers<[1], [0], [0], [1], [0, 0, 1, 1], [], []>} : vector<256x4xf32>, vector<4x8xf32>, vector<256x8xf32> -> vector<256x8xf32>
    %59 = arith.addf %53, %58 : vector<256x8xf32>
    %c0_80 = arith.constant 0 : index
    %c0_81 = arith.constant 0 : index
    %60 = vector.load %arg3[%c0_80, %c0_81] : memref<1x8xf32, #tpu.memory_space<vmem>>, vector<1x8xf32>
    %61 = vector.broadcast %60 : vector<1x8xf32> to vector<256x8xf32>
    %62 = arith.addf %59, %61 : vector<256x8xf32>
    %cst_82 = arith.constant 0.000000e+00 : f32
    %63 = vector.broadcast %cst_82 : f32 to vector<256x8xf32>
    %64 = arith.maximumf %62, %63 : vector<256x8xf32>
    %65 = vector.shape_cast %64 : vector<256x8xf32> to vector<16x16x8xf32>
    %cst_83 = arith.constant 0.000000e+00 : f32
    %66 = vector.broadcast %cst_83 : f32 to vector<18x18x8xf32>
    %c0_84 = arith.constant 0 : index
    %c0_85 = arith.constant 0 : index
    %c0_86 = arith.constant 0 : index
    %67 = vector.load %arg21[%c0_84, %c0_85, %c0_86] : memref<18x18x32xf32, #tpu.memory_space<vmem>>, vector<18x18x8xf32>
    tpu.vector_store %arg21[%c0_84, %c0_85, %c0_86], %66 {strides = array<i32>} : memref<18x18x32xf32, #tpu.memory_space<vmem>>, vector<18x18x8xf32>,
    %c1_87 = arith.constant 1 : index
    %c1_88 = arith.constant 1 : index
    %c0_89 = arith.constant 0 : index
    %68 = vector.load %arg21[%c1_87, %c1_88, %c0_89] : memref<18x18x32xf32, #tpu.memory_space<vmem>>, vector<16x16x8xf32>
    tpu.vector_store %arg21[%c1_87, %c1_88, %c0_89], %65 {strides = array<i32>} : memref<18x18x32xf32, #tpu.memory_space<vmem>>, vector<16x16x8xf32>,
    %cst_90 = arith.constant 0.000000e+00 : f32
    %69 = vector.broadcast %cst_90 : f32 to vector<256x8xf32>
    %c0_91 = arith.constant 0 : index
    %c0_92 = arith.constant 0 : index
    %c0_93 = arith.constant 0 : index
    %70 = vector.load %arg21[%c0_91, %c0_92, %c0_93] : memref<18x18x32xf32, #tpu.memory_space<vmem>>, vector<16x16x8xf32>
    %71 = vector.shape_cast %70 : vector<16x16x8xf32> to vector<256x8xf32>
    %c0_94 = arith.constant 0 : index
    %c0_95 = arith.constant 0 : index
    %c0_96 = arith.constant 0 : index
    %c0_97 = arith.constant 0 : index
    %72 = vector.load %arg4[%c0_94, %c0_95, %c0_96, %c0_97] : memref<3x3x8x8xf32, #tpu.memory_space<vmem>>, vector<1x1x8x8xf32>
    %73 = vector.shape_cast %72 : vector<1x1x8x8xf32> to vector<8x8xf32>
    %cst_98 = arith.constant dense<0.000000e+00> : vector<256x8xf32>
    %74 = tpu.matmul %71, %73, %cst_98 {dimension_numbers = #tpu.dot_dimension_numbers<[1], [0], [0], [1], [0, 0, 1, 1], [], []>} : vector<256x8xf32>, vector<8x8xf32>, vector<256x8xf32> -> vector<256x8xf32>
    %75 = arith.addf %69, %74 : vector<256x8xf32>
    %c0_99 = arith.constant 0 : index
    %c1_100 = arith.constant 1 : index
    %c0_101 = arith.constant 0 : index
    %76 = vector.load %arg21[%c0_99, %c1_100, %c0_101] : memref<18x18x32xf32, #tpu.memory_space<vmem>>, vector<16x16x8xf32>
    %77 = vector.shape_cast %76 : vector<16x16x8xf32> to vector<256x8xf32>
    %c0_102 = arith.constant 0 : index
    %c1_103 = arith.constant 1 : index
    %c0_104 = arith.constant 0 : index
    %c0_105 = arith.constant 0 : index
    %78 = vector.load %arg4[%c0_102, %c1_103, %c0_104, %c0_105] : memref<3x3x8x8xf32, #tpu.memory_space<vmem>>, vector<1x1x8x8xf32>
    %79 = vector.shape_cast %78 : vector<1x1x8x8xf32> to vector<8x8xf32>
    %cst_106 = arith.constant dense<0.000000e+00> : vector<256x8xf32>
    %80 = tpu.matmul %77, %79, %cst_106 {dimension_numbers = #tpu.dot_dimension_numbers<[1], [0], [0], [1], [0, 0, 1, 1], [], []>} : vector<256x8xf32>, vector<8x8xf32>, vector<256x8xf32> -> vector<256x8xf32>
    %81 = arith.addf %75, %80 : vector<256x8xf32>
    %c0_107 = arith.constant 0 : index
    %c2_108 = arith.constant 2 : index
    %c0_109 = arith.constant 0 : index
    %82 = vector.load %arg21[%c0_107, %c2_108, %c0_109] : memref<18x18x32xf32, #tpu.memory_space<vmem>>, vector<16x16x8xf32>
    %83 = vector.shape_cast %82 : vector<16x16x8xf32> to vector<256x8xf32>
    %c0_110 = arith.constant 0 : index
    %c2_111 = arith.constant 2 : index
    %c0_112 = arith.constant 0 : index
    %c0_113 = arith.constant 0 : index
    %84 = vector.load %arg4[%c0_110, %c2_111, %c0_112, %c0_113] : memref<3x3x8x8xf32, #tpu.memory_space<vmem>>, vector<1x1x8x8xf32>
    %85 = vector.shape_cast %84 : vector<1x1x8x8xf32> to vector<8x8xf32>
    %cst_114 = arith.constant dense<0.000000e+00> : vector<256x8xf32>
    %86 = tpu.matmul %83, %85, %cst_114 {dimension_numbers = #tpu.dot_dimension_numbers<[1], [0], [0], [1], [0, 0, 1, 1], [], []>} : vector<256x8xf32>, vector<8x8xf32>, vector<256x8xf32> -> vector<256x8xf32>
    %87 = arith.addf %81, %86 : vector<256x8xf32>
    %c1_115 = arith.constant 1 : index
    %c0_116 = arith.constant 0 : index
    %c0_117 = arith.constant 0 : index
    %88 = vector.load %arg21[%c1_115, %c0_116, %c0_117] : memref<18x18x32xf32, #tpu.memory_space<vmem>>, vector<16x16x8xf32>
    %89 = vector.shape_cast %88 : vector<16x16x8xf32> to vector<256x8xf32>
    %c1_118 = arith.constant 1 : index
    %c0_119 = arith.constant 0 : index
    %c0_120 = arith.constant 0 : index
    %c0_121 = arith.constant 0 : index
    %90 = vector.load %arg4[%c1_118, %c0_119, %c0_120, %c0_121] : memref<3x3x8x8xf32, #tpu.memory_space<vmem>>, vector<1x1x8x8xf32>
    %91 = vector.shape_cast %90 : vector<1x1x8x8xf32> to vector<8x8xf32>
    %cst_122 = arith.constant dense<0.000000e+00> : vector<256x8xf32>
    %92 = tpu.matmul %89, %91, %cst_122 {dimension_numbers = #tpu.dot_dimension_numbers<[1], [0], [0], [1], [0, 0, 1, 1], [], []>} : vector<256x8xf32>, vector<8x8xf32>, vector<256x8xf32> -> vector<256x8xf32>
    %93 = arith.addf %87, %92 : vector<256x8xf32>
    %c1_123 = arith.constant 1 : index
    %c1_124 = arith.constant 1 : index
    %c0_125 = arith.constant 0 : index
    %94 = vector.load %arg21[%c1_123, %c1_124, %c0_125] : memref<18x18x32xf32, #tpu.memory_space<vmem>>, vector<16x16x8xf32>
    %95 = vector.shape_cast %94 : vector<16x16x8xf32> to vector<256x8xf32>
    %c1_126 = arith.constant 1 : index
    %c1_127 = arith.constant 1 : index
    %c0_128 = arith.constant 0 : index
    %c0_129 = arith.constant 0 : index
    %96 = vector.load %arg4[%c1_126, %c1_127, %c0_128, %c0_129] : memref<3x3x8x8xf32, #tpu.memory_space<vmem>>, vector<1x1x8x8xf32>
    %97 = vector.shape_cast %96 : vector<1x1x8x8xf32> to vector<8x8xf32>
    %cst_130 = arith.constant dense<0.000000e+00> : vector<256x8xf32>
    %98 = tpu.matmul %95, %97, %cst_130 {dimension_numbers = #tpu.dot_dimension_numbers<[1], [0], [0], [1], [0, 0, 1, 1], [], []>} : vector<256x8xf32>, vector<8x8xf32>, vector<256x8xf32> -> vector<256x8xf32>
    %99 = arith.addf %93, %98 : vector<256x8xf32>
    %c1_131 = arith.constant 1 : index
    %c2_132 = arith.constant 2 : index
    %c0_133 = arith.constant 0 : index
    %100 = vector.load %arg21[%c1_131, %c2_132, %c0_133] : memref<18x18x32xf32, #tpu.memory_space<vmem>>, vector<16x16x8xf32>
    %101 = vector.shape_cast %100 : vector<16x16x8xf32> to vector<256x8xf32>
    %c1_134 = arith.constant 1 : index
    %c2_135 = arith.constant 2 : index
    %c0_136 = arith.constant 0 : index
    %c0_137 = arith.constant 0 : index
    %102 = vector.load %arg4[%c1_134, %c2_135, %c0_136, %c0_137] : memref<3x3x8x8xf32, #tpu.memory_space<vmem>>, vector<1x1x8x8xf32>
    %103 = vector.shape_cast %102 : vector<1x1x8x8xf32> to vector<8x8xf32>
    %cst_138 = arith.constant dense<0.000000e+00> : vector<256x8xf32>
    %104 = tpu.matmul %101, %103, %cst_138 {dimension_numbers = #tpu.dot_dimension_numbers<[1], [0], [0], [1], [0, 0, 1, 1], [], []>} : vector<256x8xf32>, vector<8x8xf32>, vector<256x8xf32> -> vector<256x8xf32>
    %105 = arith.addf %99, %104 : vector<256x8xf32>
    %c2_139 = arith.constant 2 : index
    %c0_140 = arith.constant 0 : index
    %c0_141 = arith.constant 0 : index
    %106 = vector.load %arg21[%c2_139, %c0_140, %c0_141] : memref<18x18x32xf32, #tpu.memory_space<vmem>>, vector<16x16x8xf32>
    %107 = vector.shape_cast %106 : vector<16x16x8xf32> to vector<256x8xf32>
    %c2_142 = arith.constant 2 : index
    %c0_143 = arith.constant 0 : index
    %c0_144 = arith.constant 0 : index
    %c0_145 = arith.constant 0 : index
    %108 = vector.load %arg4[%c2_142, %c0_143, %c0_144, %c0_145] : memref<3x3x8x8xf32, #tpu.memory_space<vmem>>, vector<1x1x8x8xf32>
    %109 = vector.shape_cast %108 : vector<1x1x8x8xf32> to vector<8x8xf32>
    %cst_146 = arith.constant dense<0.000000e+00> : vector<256x8xf32>
    %110 = tpu.matmul %107, %109, %cst_146 {dimension_numbers = #tpu.dot_dimension_numbers<[1], [0], [0], [1], [0, 0, 1, 1], [], []>} : vector<256x8xf32>, vector<8x8xf32>, vector<256x8xf32> -> vector<256x8xf32>
    %111 = arith.addf %105, %110 : vector<256x8xf32>
    %c2_147 = arith.constant 2 : index
    %c1_148 = arith.constant 1 : index
    %c0_149 = arith.constant 0 : index
    %112 = vector.load %arg21[%c2_147, %c1_148, %c0_149] : memref<18x18x32xf32, #tpu.memory_space<vmem>>, vector<16x16x8xf32>
    %113 = vector.shape_cast %112 : vector<16x16x8xf32> to vector<256x8xf32>
    %c2_150 = arith.constant 2 : index
    %c1_151 = arith.constant 1 : index
    %c0_152 = arith.constant 0 : index
    %c0_153 = arith.constant 0 : index
    %114 = vector.load %arg4[%c2_150, %c1_151, %c0_152, %c0_153] : memref<3x3x8x8xf32, #tpu.memory_space<vmem>>, vector<1x1x8x8xf32>
    %115 = vector.shape_cast %114 : vector<1x1x8x8xf32> to vector<8x8xf32>
    %cst_154 = arith.constant dense<0.000000e+00> : vector<256x8xf32>
    %116 = tpu.matmul %113, %115, %cst_154 {dimension_numbers = #tpu.dot_dimension_numbers<[1], [0], [0], [1], [0, 0, 1, 1], [], []>} : vector<256x8xf32>, vector<8x8xf32>, vector<256x8xf32> -> vector<256x8xf32>
    %117 = arith.addf %111, %116 : vector<256x8xf32>
    %c2_155 = arith.constant 2 : index
    %c2_156 = arith.constant 2 : index
    %c0_157 = arith.constant 0 : index
    %118 = vector.load %arg21[%c2_155, %c2_156, %c0_157] : memref<18x18x32xf32, #tpu.memory_space<vmem>>, vector<16x16x8xf32>
    %119 = vector.shape_cast %118 : vector<16x16x8xf32> to vector<256x8xf32>
    %c2_158 = arith.constant 2 : index
    %c2_159 = arith.constant 2 : index
    %c0_160 = arith.constant 0 : index
    %c0_161 = arith.constant 0 : index
    %120 = vector.load %arg4[%c2_158, %c2_159, %c0_160, %c0_161] : memref<3x3x8x8xf32, #tpu.memory_space<vmem>>, vector<1x1x8x8xf32>
    %121 = vector.shape_cast %120 : vector<1x1x8x8xf32> to vector<8x8xf32>
    %cst_162 = arith.constant dense<0.000000e+00> : vector<256x8xf32>
    %122 = tpu.matmul %119, %121, %cst_162 {dimension_numbers = #tpu.dot_dimension_numbers<[1], [0], [0], [1], [0, 0, 1, 1], [], []>} : vector<256x8xf32>, vector<8x8xf32>, vector<256x8xf32> -> vector<256x8xf32>
    %123 = arith.addf %117, %122 : vector<256x8xf32>
    %c0_163 = arith.constant 0 : index
    %c0_164 = arith.constant 0 : index
    %124 = vector.load %arg5[%c0_163, %c0_164] : memref<1x8xf32, #tpu.memory_space<vmem>>, vector<1x8xf32>
    %125 = vector.broadcast %124 : vector<1x8xf32> to vector<256x8xf32>
    %126 = arith.addf %123, %125 : vector<256x8xf32>
    %cst_165 = arith.constant 0.000000e+00 : f32
    %127 = vector.broadcast %cst_165 : f32 to vector<256x8xf32>
    %128 = arith.maximumf %126, %127 : vector<256x8xf32>
    %129 = vector.shape_cast %128 : vector<256x8xf32> to vector<16x16x8xf32>
    %130 = vector.shape_cast %129 : vector<16x16x8xf32> to vector<16x8x2x8xf32>
    %cst_166 = arith.constant dense<0xFF800000> : vector<16x8x8xf32>
    %131 = vector.multi_reduction <maximumf>, %130, %cst_166 [2] : vector<16x8x2x8xf32> to vector<16x8x8xf32>
    %132 = vector.shape_cast %131 : vector<16x8x8xf32> to vector<8x2x8x8xf32>
    %cst_167 = arith.constant dense<0xFF800000> : vector<8x8x8xf32>
    %133 = vector.multi_reduction <maximumf>, %132, %cst_167 [1] : vector<8x2x8x8xf32> to vector<8x8x8xf32>
    %cst_168 = arith.constant 0.000000e+00 : f32
    %134 = vector.broadcast %cst_168 : f32 to vector<10x10x8xf32>
    %c0_169 = arith.constant 0 : index
    %c0_170 = arith.constant 0 : index
    %c0_171 = arith.constant 0 : index
    %135 = vector.load %arg21[%c0_169, %c0_170, %c0_171] : memref<18x18x32xf32, #tpu.memory_space<vmem>>, vector<10x10x8xf32>
    tpu.vector_store %arg21[%c0_169, %c0_170, %c0_171], %134 {strides = array<i32>} : memref<18x18x32xf32, #tpu.memory_space<vmem>>, vector<10x10x8xf32>,
    %c1_172 = arith.constant 1 : index
    %c1_173 = arith.constant 1 : index
    %c0_174 = arith.constant 0 : index
    %136 = vector.load %arg21[%c1_172, %c1_173, %c0_174] : memref<18x18x32xf32, #tpu.memory_space<vmem>>, vector<8x8x8xf32>
    tpu.vector_store %arg21[%c1_172, %c1_173, %c0_174], %133 {strides = array<i32>} : memref<18x18x32xf32, #tpu.memory_space<vmem>>, vector<8x8x8xf32>,
    %cst_175 = arith.constant 0.000000e+00 : f32
    %137 = vector.broadcast %cst_175 : f32 to vector<64x16xf32>
    %c0_176 = arith.constant 0 : index
    %c0_177 = arith.constant 0 : index
    %c0_178 = arith.constant 0 : index
    %138 = vector.load %arg21[%c0_176, %c0_177, %c0_178] : memref<18x18x32xf32, #tpu.memory_space<vmem>>, vector<8x8x8xf32>
    %139 = vector.shape_cast %138 : vector<8x8x8xf32> to vector<64x8xf32>
    %c0_179 = arith.constant 0 : index
    %c0_180 = arith.constant 0 : index
    %c0_181 = arith.constant 0 : index
    %c0_182 = arith.constant 0 : index
    %140 = vector.load %arg6[%c0_179, %c0_180, %c0_181, %c0_182] : memref<3x3x8x16xf32, #tpu.memory_space<vmem>>, vector<1x1x8x16xf32>
    %141 = vector.shape_cast %140 : vector<1x1x8x16xf32> to vector<8x16xf32>
    %cst_183 = arith.constant dense<0.000000e+00> : vector<64x16xf32>
    %142 = tpu.matmul %139, %141, %cst_183 {dimension_numbers = #tpu.dot_dimension_numbers<[1], [0], [0], [1], [0, 0, 1, 1], [], []>} : vector<64x8xf32>, vector<8x16xf32>, vector<64x16xf32> -> vector<64x16xf32>
    %143 = arith.addf %137, %142 : vector<64x16xf32>
    %c0_184 = arith.constant 0 : index
    %c1_185 = arith.constant 1 : index
    %c0_186 = arith.constant 0 : index
    %144 = vector.load %arg21[%c0_184, %c1_185, %c0_186] : memref<18x18x32xf32, #tpu.memory_space<vmem>>, vector<8x8x8xf32>
    %145 = vector.shape_cast %144 : vector<8x8x8xf32> to vector<64x8xf32>
    %c0_187 = arith.constant 0 : index
    %c1_188 = arith.constant 1 : index
    %c0_189 = arith.constant 0 : index
    %c0_190 = arith.constant 0 : index
    %146 = vector.load %arg6[%c0_187, %c1_188, %c0_189, %c0_190] : memref<3x3x8x16xf32, #tpu.memory_space<vmem>>, vector<1x1x8x16xf32>
    %147 = vector.shape_cast %146 : vector<1x1x8x16xf32> to vector<8x16xf32>
    %cst_191 = arith.constant dense<0.000000e+00> : vector<64x16xf32>
    %148 = tpu.matmul %145, %147, %cst_191 {dimension_numbers = #tpu.dot_dimension_numbers<[1], [0], [0], [1], [0, 0, 1, 1], [], []>} : vector<64x8xf32>, vector<8x16xf32>, vector<64x16xf32> -> vector<64x16xf32>
    %149 = arith.addf %143, %148 : vector<64x16xf32>
    %c0_192 = arith.constant 0 : index
    %c2_193 = arith.constant 2 : index
    %c0_194 = arith.constant 0 : index
    %150 = vector.load %arg21[%c0_192, %c2_193, %c0_194] : memref<18x18x32xf32, #tpu.memory_space<vmem>>, vector<8x8x8xf32>
    %151 = vector.shape_cast %150 : vector<8x8x8xf32> to vector<64x8xf32>
    %c0_195 = arith.constant 0 : index
    %c2_196 = arith.constant 2 : index
    %c0_197 = arith.constant 0 : index
    %c0_198 = arith.constant 0 : index
    %152 = vector.load %arg6[%c0_195, %c2_196, %c0_197, %c0_198] : memref<3x3x8x16xf32, #tpu.memory_space<vmem>>, vector<1x1x8x16xf32>
    %153 = vector.shape_cast %152 : vector<1x1x8x16xf32> to vector<8x16xf32>
    %cst_199 = arith.constant dense<0.000000e+00> : vector<64x16xf32>
    %154 = tpu.matmul %151, %153, %cst_199 {dimension_numbers = #tpu.dot_dimension_numbers<[1], [0], [0], [1], [0, 0, 1, 1], [], []>} : vector<64x8xf32>, vector<8x16xf32>, vector<64x16xf32> -> vector<64x16xf32>
    %155 = arith.addf %149, %154 : vector<64x16xf32>
    %c1_200 = arith.constant 1 : index
    %c0_201 = arith.constant 0 : index
    %c0_202 = arith.constant 0 : index
    %156 = vector.load %arg21[%c1_200, %c0_201, %c0_202] : memref<18x18x32xf32, #tpu.memory_space<vmem>>, vector<8x8x8xf32>
    %157 = vector.shape_cast %156 : vector<8x8x8xf32> to vector<64x8xf32>
    %c1_203 = arith.constant 1 : index
    %c0_204 = arith.constant 0 : index
    %c0_205 = arith.constant 0 : index
    %c0_206 = arith.constant 0 : index
    %158 = vector.load %arg6[%c1_203, %c0_204, %c0_205, %c0_206] : memref<3x3x8x16xf32, #tpu.memory_space<vmem>>, vector<1x1x8x16xf32>
    %159 = vector.shape_cast %158 : vector<1x1x8x16xf32> to vector<8x16xf32>
    %cst_207 = arith.constant dense<0.000000e+00> : vector<64x16xf32>
    %160 = tpu.matmul %157, %159, %cst_207 {dimension_numbers = #tpu.dot_dimension_numbers<[1], [0], [0], [1], [0, 0, 1, 1], [], []>} : vector<64x8xf32>, vector<8x16xf32>, vector<64x16xf32> -> vector<64x16xf32>
    %161 = arith.addf %155, %160 : vector<64x16xf32>
    %c1_208 = arith.constant 1 : index
    %c1_209 = arith.constant 1 : index
    %c0_210 = arith.constant 0 : index
    %162 = vector.load %arg21[%c1_208, %c1_209, %c0_210] : memref<18x18x32xf32, #tpu.memory_space<vmem>>, vector<8x8x8xf32>
    %163 = vector.shape_cast %162 : vector<8x8x8xf32> to vector<64x8xf32>
    %c1_211 = arith.constant 1 : index
    %c1_212 = arith.constant 1 : index
    %c0_213 = arith.constant 0 : index
    %c0_214 = arith.constant 0 : index
    %164 = vector.load %arg6[%c1_211, %c1_212, %c0_213, %c0_214] : memref<3x3x8x16xf32, #tpu.memory_space<vmem>>, vector<1x1x8x16xf32>
    %165 = vector.shape_cast %164 : vector<1x1x8x16xf32> to vector<8x16xf32>
    %cst_215 = arith.constant dense<0.000000e+00> : vector<64x16xf32>
    %166 = tpu.matmul %163, %165, %cst_215 {dimension_numbers = #tpu.dot_dimension_numbers<[1], [0], [0], [1], [0, 0, 1, 1], [], []>} : vector<64x8xf32>, vector<8x16xf32>, vector<64x16xf32> -> vector<64x16xf32>
    %167 = arith.addf %161, %166 : vector<64x16xf32>
    %c1_216 = arith.constant 1 : index
    %c2_217 = arith.constant 2 : index
    %c0_218 = arith.constant 0 : index
    %168 = vector.load %arg21[%c1_216, %c2_217, %c0_218] : memref<18x18x32xf32, #tpu.memory_space<vmem>>, vector<8x8x8xf32>
    %169 = vector.shape_cast %168 : vector<8x8x8xf32> to vector<64x8xf32>
    %c1_219 = arith.constant 1 : index
    %c2_220 = arith.constant 2 : index
    %c0_221 = arith.constant 0 : index
    %c0_222 = arith.constant 0 : index
    %170 = vector.load %arg6[%c1_219, %c2_220, %c0_221, %c0_222] : memref<3x3x8x16xf32, #tpu.memory_space<vmem>>, vector<1x1x8x16xf32>
    %171 = vector.shape_cast %170 : vector<1x1x8x16xf32> to vector<8x16xf32>
    %cst_223 = arith.constant dense<0.000000e+00> : vector<64x16xf32>
    %172 = tpu.matmul %169, %171, %cst_223 {dimension_numbers = #tpu.dot_dimension_numbers<[1], [0], [0], [1], [0, 0, 1, 1], [], []>} : vector<64x8xf32>, vector<8x16xf32>, vector<64x16xf32> -> vector<64x16xf32>
    %173 = arith.addf %167, %172 : vector<64x16xf32>
    %c2_224 = arith.constant 2 : index
    %c0_225 = arith.constant 0 : index
    %c0_226 = arith.constant 0 : index
    %174 = vector.load %arg21[%c2_224, %c0_225, %c0_226] : memref<18x18x32xf32, #tpu.memory_space<vmem>>, vector<8x8x8xf32>
    %175 = vector.shape_cast %174 : vector<8x8x8xf32> to vector<64x8xf32>
    %c2_227 = arith.constant 2 : index
    %c0_228 = arith.constant 0 : index
    %c0_229 = arith.constant 0 : index
    %c0_230 = arith.constant 0 : index
    %176 = vector.load %arg6[%c2_227, %c0_228, %c0_229, %c0_230] : memref<3x3x8x16xf32, #tpu.memory_space<vmem>>, vector<1x1x8x16xf32>
    %177 = vector.shape_cast %176 : vector<1x1x8x16xf32> to vector<8x16xf32>
    %cst_231 = arith.constant dense<0.000000e+00> : vector<64x16xf32>
    %178 = tpu.matmul %175, %177, %cst_231 {dimension_numbers = #tpu.dot_dimension_numbers<[1], [0], [0], [1], [0, 0, 1, 1], [], []>} : vector<64x8xf32>, vector<8x16xf32>, vector<64x16xf32> -> vector<64x16xf32>
    %179 = arith.addf %173, %178 : vector<64x16xf32>
    %c2_232 = arith.constant 2 : index
    %c1_233 = arith.constant 1 : index
    %c0_234 = arith.constant 0 : index
    %180 = vector.load %arg21[%c2_232, %c1_233, %c0_234] : memref<18x18x32xf32, #tpu.memory_space<vmem>>, vector<8x8x8xf32>
    %181 = vector.shape_cast %180 : vector<8x8x8xf32> to vector<64x8xf32>
    %c2_235 = arith.constant 2 : index
    %c1_236 = arith.constant 1 : index
    %c0_237 = arith.constant 0 : index
    %c0_238 = arith.constant 0 : index
    %182 = vector.load %arg6[%c2_235, %c1_236, %c0_237, %c0_238] : memref<3x3x8x16xf32, #tpu.memory_space<vmem>>, vector<1x1x8x16xf32>
    %183 = vector.shape_cast %182 : vector<1x1x8x16xf32> to vector<8x16xf32>
    %cst_239 = arith.constant dense<0.000000e+00> : vector<64x16xf32>
    %184 = tpu.matmul %181, %183, %cst_239 {dimension_numbers = #tpu.dot_dimension_numbers<[1], [0], [0], [1], [0, 0, 1, 1], [], []>} : vector<64x8xf32>, vector<8x16xf32>, vector<64x16xf32> -> vector<64x16xf32>
    %185 = arith.addf %179, %184 : vector<64x16xf32>
    %c2_240 = arith.constant 2 : index
    %c2_241 = arith.constant 2 : index
    %c0_242 = arith.constant 0 : index
    %186 = vector.load %arg21[%c2_240, %c2_241, %c0_242] : memref<18x18x32xf32, #tpu.memory_space<vmem>>, vector<8x8x8xf32>
    %187 = vector.shape_cast %186 : vector<8x8x8xf32> to vector<64x8xf32>
    %c2_243 = arith.constant 2 : index
    %c2_244 = arith.constant 2 : index
    %c0_245 = arith.constant 0 : index
    %c0_246 = arith.constant 0 : index
    %188 = vector.load %arg6[%c2_243, %c2_244, %c0_245, %c0_246] : memref<3x3x8x16xf32, #tpu.memory_space<vmem>>, vector<1x1x8x16xf32>
    %189 = vector.shape_cast %188 : vector<1x1x8x16xf32> to vector<8x16xf32>
    %cst_247 = arith.constant dense<0.000000e+00> : vector<64x16xf32>
    %190 = tpu.matmul %187, %189, %cst_247 {dimension_numbers = #tpu.dot_dimension_numbers<[1], [0], [0], [1], [0, 0, 1, 1], [], []>} : vector<64x8xf32>, vector<8x16xf32>, vector<64x16xf32> -> vector<64x16xf32>
    %191 = arith.addf %185, %190 : vector<64x16xf32>
    %c0_248 = arith.constant 0 : index
    %c0_249 = arith.constant 0 : index
    %192 = vector.load %arg7[%c0_248, %c0_249] : memref<1x16xf32, #tpu.memory_space<vmem>>, vector<1x16xf32>
    %193 = vector.broadcast %192 : vector<1x16xf32> to vector<64x16xf32>
    %194 = arith.addf %191, %193 : vector<64x16xf32>
    %cst_250 = arith.constant 0.000000e+00 : f32
    %195 = vector.broadcast %cst_250 : f32 to vector<64x16xf32>
    %196 = arith.maximumf %194, %195 : vector<64x16xf32>
    %197 = vector.shape_cast %196 : vector<64x16xf32> to vector<8x8x16xf32>
    %cst_251 = arith.constant 0.000000e+00 : f32
    %198 = vector.broadcast %cst_251 : f32 to vector<10x10x16xf32>
    %c0_252 = arith.constant 0 : index
    %c0_253 = arith.constant 0 : index
    %c0_254 = arith.constant 0 : index
    %199 = vector.load %arg21[%c0_252, %c0_253, %c0_254] : memref<18x18x32xf32, #tpu.memory_space<vmem>>, vector<10x10x16xf32>
    tpu.vector_store %arg21[%c0_252, %c0_253, %c0_254], %198 {strides = array<i32>} : memref<18x18x32xf32, #tpu.memory_space<vmem>>, vector<10x10x16xf32>,
    %c1_255 = arith.constant 1 : index
    %c1_256 = arith.constant 1 : index
    %c0_257 = arith.constant 0 : index
    %200 = vector.load %arg21[%c1_255, %c1_256, %c0_257] : memref<18x18x32xf32, #tpu.memory_space<vmem>>, vector<8x8x16xf32>
    tpu.vector_store %arg21[%c1_255, %c1_256, %c0_257], %197 {strides = array<i32>} : memref<18x18x32xf32, #tpu.memory_space<vmem>>, vector<8x8x16xf32>,
    %cst_258 = arith.constant 0.000000e+00 : f32
    %201 = vector.broadcast %cst_258 : f32 to vector<64x16xf32>
    %c0_259 = arith.constant 0 : index
    %c0_260 = arith.constant 0 : index
    %c0_261 = arith.constant 0 : index
    %202 = vector.load %arg21[%c0_259, %c0_260, %c0_261] : memref<18x18x32xf32, #tpu.memory_space<vmem>>, vector<8x8x16xf32>
    %203 = vector.shape_cast %202 : vector<8x8x16xf32> to vector<64x16xf32>
    %c0_262 = arith.constant 0 : index
    %c0_263 = arith.constant 0 : index
    %c0_264 = arith.constant 0 : index
    %c0_265 = arith.constant 0 : index
    %204 = vector.load %arg8[%c0_262, %c0_263, %c0_264, %c0_265] : memref<3x3x16x16xf32, #tpu.memory_space<vmem>>, vector<1x1x16x16xf32>
    %205 = vector.shape_cast %204 : vector<1x1x16x16xf32> to vector<16x16xf32>
    %cst_266 = arith.constant dense<0.000000e+00> : vector<64x16xf32>
    %206 = tpu.matmul %203, %205, %cst_266 {dimension_numbers = #tpu.dot_dimension_numbers<[1], [0], [0], [1], [0, 0, 1, 1], [], []>} : vector<64x16xf32>, vector<16x16xf32>, vector<64x16xf32> -> vector<64x16xf32>
    %207 = arith.addf %201, %206 : vector<64x16xf32>
    %c0_267 = arith.constant 0 : index
    %c1_268 = arith.constant 1 : index
    %c0_269 = arith.constant 0 : index
    %208 = vector.load %arg21[%c0_267, %c1_268, %c0_269] : memref<18x18x32xf32, #tpu.memory_space<vmem>>, vector<8x8x16xf32>
    %209 = vector.shape_cast %208 : vector<8x8x16xf32> to vector<64x16xf32>
    %c0_270 = arith.constant 0 : index
    %c1_271 = arith.constant 1 : index
    %c0_272 = arith.constant 0 : index
    %c0_273 = arith.constant 0 : index
    %210 = vector.load %arg8[%c0_270, %c1_271, %c0_272, %c0_273] : memref<3x3x16x16xf32, #tpu.memory_space<vmem>>, vector<1x1x16x16xf32>
    %211 = vector.shape_cast %210 : vector<1x1x16x16xf32> to vector<16x16xf32>
    %cst_274 = arith.constant dense<0.000000e+00> : vector<64x16xf32>
    %212 = tpu.matmul %209, %211, %cst_274 {dimension_numbers = #tpu.dot_dimension_numbers<[1], [0], [0], [1], [0, 0, 1, 1], [], []>} : vector<64x16xf32>, vector<16x16xf32>, vector<64x16xf32> -> vector<64x16xf32>
    %213 = arith.addf %207, %212 : vector<64x16xf32>
    %c0_275 = arith.constant 0 : index
    %c2_276 = arith.constant 2 : index
    %c0_277 = arith.constant 0 : index
    %214 = vector.load %arg21[%c0_275, %c2_276, %c0_277] : memref<18x18x32xf32, #tpu.memory_space<vmem>>, vector<8x8x16xf32>
    %215 = vector.shape_cast %214 : vector<8x8x16xf32> to vector<64x16xf32>
    %c0_278 = arith.constant 0 : index
    %c2_279 = arith.constant 2 : index
    %c0_280 = arith.constant 0 : index
    %c0_281 = arith.constant 0 : index
    %216 = vector.load %arg8[%c0_278, %c2_279, %c0_280, %c0_281] : memref<3x3x16x16xf32, #tpu.memory_space<vmem>>, vector<1x1x16x16xf32>
    %217 = vector.shape_cast %216 : vector<1x1x16x16xf32> to vector<16x16xf32>
    %cst_282 = arith.constant dense<0.000000e+00> : vector<64x16xf32>
    %218 = tpu.matmul %215, %217, %cst_282 {dimension_numbers = #tpu.dot_dimension_numbers<[1], [0], [0], [1], [0, 0, 1, 1], [], []>} : vector<64x16xf32>, vector<16x16xf32>, vector<64x16xf32> -> vector<64x16xf32>
    %219 = arith.addf %213, %218 : vector<64x16xf32>
    %c1_283 = arith.constant 1 : index
    %c0_284 = arith.constant 0 : index
    %c0_285 = arith.constant 0 : index
    %220 = vector.load %arg21[%c1_283, %c0_284, %c0_285] : memref<18x18x32xf32, #tpu.memory_space<vmem>>, vector<8x8x16xf32>
    %221 = vector.shape_cast %220 : vector<8x8x16xf32> to vector<64x16xf32>
    %c1_286 = arith.constant 1 : index
    %c0_287 = arith.constant 0 : index
    %c0_288 = arith.constant 0 : index
    %c0_289 = arith.constant 0 : index
    %222 = vector.load %arg8[%c1_286, %c0_287, %c0_288, %c0_289] : memref<3x3x16x16xf32, #tpu.memory_space<vmem>>, vector<1x1x16x16xf32>
    %223 = vector.shape_cast %222 : vector<1x1x16x16xf32> to vector<16x16xf32>
    %cst_290 = arith.constant dense<0.000000e+00> : vector<64x16xf32>
    %224 = tpu.matmul %221, %223, %cst_290 {dimension_numbers = #tpu.dot_dimension_numbers<[1], [0], [0], [1], [0, 0, 1, 1], [], []>} : vector<64x16xf32>, vector<16x16xf32>, vector<64x16xf32> -> vector<64x16xf32>
    %225 = arith.addf %219, %224 : vector<64x16xf32>
    %c1_291 = arith.constant 1 : index
    %c1_292 = arith.constant 1 : index
    %c0_293 = arith.constant 0 : index
    %226 = vector.load %arg21[%c1_291, %c1_292, %c0_293] : memref<18x18x32xf32, #tpu.memory_space<vmem>>, vector<8x8x16xf32>
    %227 = vector.shape_cast %226 : vector<8x8x16xf32> to vector<64x16xf32>
    %c1_294 = arith.constant 1 : index
    %c1_295 = arith.constant 1 : index
    %c0_296 = arith.constant 0 : index
    %c0_297 = arith.constant 0 : index
    %228 = vector.load %arg8[%c1_294, %c1_295, %c0_296, %c0_297] : memref<3x3x16x16xf32, #tpu.memory_space<vmem>>, vector<1x1x16x16xf32>
    %229 = vector.shape_cast %228 : vector<1x1x16x16xf32> to vector<16x16xf32>
    %cst_298 = arith.constant dense<0.000000e+00> : vector<64x16xf32>
    %230 = tpu.matmul %227, %229, %cst_298 {dimension_numbers = #tpu.dot_dimension_numbers<[1], [0], [0], [1], [0, 0, 1, 1], [], []>} : vector<64x16xf32>, vector<16x16xf32>, vector<64x16xf32> -> vector<64x16xf32>
    %231 = arith.addf %225, %230 : vector<64x16xf32>
    %c1_299 = arith.constant 1 : index
    %c2_300 = arith.constant 2 : index
    %c0_301 = arith.constant 0 : index
    %232 = vector.load %arg21[%c1_299, %c2_300, %c0_301] : memref<18x18x32xf32, #tpu.memory_space<vmem>>, vector<8x8x16xf32>
    %233 = vector.shape_cast %232 : vector<8x8x16xf32> to vector<64x16xf32>
    %c1_302 = arith.constant 1 : index
    %c2_303 = arith.constant 2 : index
    %c0_304 = arith.constant 0 : index
    %c0_305 = arith.constant 0 : index
    %234 = vector.load %arg8[%c1_302, %c2_303, %c0_304, %c0_305] : memref<3x3x16x16xf32, #tpu.memory_space<vmem>>, vector<1x1x16x16xf32>
    %235 = vector.shape_cast %234 : vector<1x1x16x16xf32> to vector<16x16xf32>
    %cst_306 = arith.constant dense<0.000000e+00> : vector<64x16xf32>
    %236 = tpu.matmul %233, %235, %cst_306 {dimension_numbers = #tpu.dot_dimension_numbers<[1], [0], [0], [1], [0, 0, 1, 1], [], []>} : vector<64x16xf32>, vector<16x16xf32>, vector<64x16xf32> -> vector<64x16xf32>
    %237 = arith.addf %231, %236 : vector<64x16xf32>
    %c2_307 = arith.constant 2 : index
    %c0_308 = arith.constant 0 : index
    %c0_309 = arith.constant 0 : index
    %238 = vector.load %arg21[%c2_307, %c0_308, %c0_309] : memref<18x18x32xf32, #tpu.memory_space<vmem>>, vector<8x8x16xf32>
    %239 = vector.shape_cast %238 : vector<8x8x16xf32> to vector<64x16xf32>
    %c2_310 = arith.constant 2 : index
    %c0_311 = arith.constant 0 : index
    %c0_312 = arith.constant 0 : index
    %c0_313 = arith.constant 0 : index
    %240 = vector.load %arg8[%c2_310, %c0_311, %c0_312, %c0_313] : memref<3x3x16x16xf32, #tpu.memory_space<vmem>>, vector<1x1x16x16xf32>
    %241 = vector.shape_cast %240 : vector<1x1x16x16xf32> to vector<16x16xf32>
    %cst_314 = arith.constant dense<0.000000e+00> : vector<64x16xf32>
    %242 = tpu.matmul %239, %241, %cst_314 {dimension_numbers = #tpu.dot_dimension_numbers<[1], [0], [0], [1], [0, 0, 1, 1], [], []>} : vector<64x16xf32>, vector<16x16xf32>, vector<64x16xf32> -> vector<64x16xf32>
    %243 = arith.addf %237, %242 : vector<64x16xf32>
    %c2_315 = arith.constant 2 : index
    %c1_316 = arith.constant 1 : index
    %c0_317 = arith.constant 0 : index
    %244 = vector.load %arg21[%c2_315, %c1_316, %c0_317] : memref<18x18x32xf32, #tpu.memory_space<vmem>>, vector<8x8x16xf32>
    %245 = vector.shape_cast %244 : vector<8x8x16xf32> to vector<64x16xf32>
    %c2_318 = arith.constant 2 : index
    %c1_319 = arith.constant 1 : index
    %c0_320 = arith.constant 0 : index
    %c0_321 = arith.constant 0 : index
    %246 = vector.load %arg8[%c2_318, %c1_319, %c0_320, %c0_321] : memref<3x3x16x16xf32, #tpu.memory_space<vmem>>, vector<1x1x16x16xf32>
    %247 = vector.shape_cast %246 : vector<1x1x16x16xf32> to vector<16x16xf32>
    %cst_322 = arith.constant dense<0.000000e+00> : vector<64x16xf32>
    %248 = tpu.matmul %245, %247, %cst_322 {dimension_numbers = #tpu.dot_dimension_numbers<[1], [0], [0], [1], [0, 0, 1, 1], [], []>} : vector<64x16xf32>, vector<16x16xf32>, vector<64x16xf32> -> vector<64x16xf32>
    %249 = arith.addf %243, %248 : vector<64x16xf32>
    %c2_323 = arith.constant 2 : index
    %c2_324 = arith.constant 2 : index
    %c0_325 = arith.constant 0 : index
    %250 = vector.load %arg21[%c2_323, %c2_324, %c0_325] : memref<18x18x32xf32, #tpu.memory_space<vmem>>, vector<8x8x16xf32>
    %251 = vector.shape_cast %250 : vector<8x8x16xf32> to vector<64x16xf32>
    %c2_326 = arith.constant 2 : index
    %c2_327 = arith.constant 2 : index
    %c0_328 = arith.constant 0 : index
    %c0_329 = arith.constant 0 : index
    %252 = vector.load %arg8[%c2_326, %c2_327, %c0_328, %c0_329] : memref<3x3x16x16xf32, #tpu.memory_space<vmem>>, vector<1x1x16x16xf32>
    %253 = vector.shape_cast %252 : vector<1x1x16x16xf32> to vector<16x16xf32>
    %cst_330 = arith.constant dense<0.000000e+00> : vector<64x16xf32>
    %254 = tpu.matmul %251, %253, %cst_330 {dimension_numbers = #tpu.dot_dimension_numbers<[1], [0], [0], [1], [0, 0, 1, 1], [], []>} : vector<64x16xf32>, vector<16x16xf32>, vector<64x16xf32> -> vector<64x16xf32>
    %255 = arith.addf %249, %254 : vector<64x16xf32>
    %c0_331 = arith.constant 0 : index
    %c0_332 = arith.constant 0 : index
    %256 = vector.load %arg9[%c0_331, %c0_332] : memref<1x16xf32, #tpu.memory_space<vmem>>, vector<1x16xf32>
    %257 = vector.broadcast %256 : vector<1x16xf32> to vector<64x16xf32>
    %258 = arith.addf %255, %257 : vector<64x16xf32>
    %cst_333 = arith.constant 0.000000e+00 : f32
    %259 = vector.broadcast %cst_333 : f32 to vector<64x16xf32>
    %260 = arith.maximumf %258, %259 : vector<64x16xf32>
    %261 = vector.shape_cast %260 : vector<64x16xf32> to vector<8x8x16xf32>
    %262 = vector.shape_cast %261 : vector<8x8x16xf32> to vector<8x4x2x16xf32>
    %cst_334 = arith.constant dense<0xFF800000> : vector<8x4x16xf32>
    %263 = vector.multi_reduction <maximumf>, %262, %cst_334 [2] : vector<8x4x2x16xf32> to vector<8x4x16xf32>
    %264 = vector.shape_cast %263 : vector<8x4x16xf32> to vector<4x2x4x16xf32>
    %cst_335 = arith.constant dense<0xFF800000> : vector<4x4x16xf32>
    %265 = vector.multi_reduction <maximumf>, %264, %cst_335 [1] : vector<4x2x4x16xf32> to vector<4x4x16xf32>
    %cst_336 = arith.constant 0.000000e+00 : f32
    %266 = vector.broadcast %cst_336 : f32 to vector<6x6x16xf32>
    %c0_337 = arith.constant 0 : index
    %c0_338 = arith.constant 0 : index
    %c0_339 = arith.constant 0 : index
    %267 = vector.load %arg21[%c0_337, %c0_338, %c0_339] : memref<18x18x32xf32, #tpu.memory_space<vmem>>, vector<6x6x16xf32>
    tpu.vector_store %arg21[%c0_337, %c0_338, %c0_339], %266 {strides = array<i32>} : memref<18x18x32xf32, #tpu.memory_space<vmem>>, vector<6x6x16xf32>,
    %c1_340 = arith.constant 1 : index
    %c1_341 = arith.constant 1 : index
    %c0_342 = arith.constant 0 : index
    %268 = vector.load %arg21[%c1_340, %c1_341, %c0_342] : memref<18x18x32xf32, #tpu.memory_space<vmem>>, vector<4x4x16xf32>
    tpu.vector_store %arg21[%c1_340, %c1_341, %c0_342], %265 {strides = array<i32>} : memref<18x18x32xf32, #tpu.memory_space<vmem>>, vector<4x4x16xf32>,
    %cst_343 = arith.constant 0.000000e+00 : f32
    %269 = vector.broadcast %cst_343 : f32 to vector<16x32xf32>
    %c0_344 = arith.constant 0 : index
    %c0_345 = arith.constant 0 : index
    %c0_346 = arith.constant 0 : index
    %270 = vector.load %arg21[%c0_344, %c0_345, %c0_346] : memref<18x18x32xf32, #tpu.memory_space<vmem>>, vector<4x4x16xf32>
    %271 = vector.shape_cast %270 : vector<4x4x16xf32> to vector<16x16xf32>
    %c0_347 = arith.constant 0 : index
    %c0_348 = arith.constant 0 : index
    %c0_349 = arith.constant 0 : index
    %c0_350 = arith.constant 0 : index
    %272 = vector.load %arg10[%c0_347, %c0_348, %c0_349, %c0_350] : memref<3x3x16x32xf32, #tpu.memory_space<vmem>>, vector<1x1x16x32xf32>
    %273 = vector.shape_cast %272 : vector<1x1x16x32xf32> to vector<16x32xf32>
    %cst_351 = arith.constant dense<0.000000e+00> : vector<16x32xf32>
    %274 = tpu.matmul %271, %273, %cst_351 {dimension_numbers = #tpu.dot_dimension_numbers<[1], [0], [0], [1], [0, 0, 1, 1], [], []>} : vector<16x16xf32>, vector<16x32xf32>, vector<16x32xf32> -> vector<16x32xf32>
    %275 = arith.addf %269, %274 : vector<16x32xf32>
    %c0_352 = arith.constant 0 : index
    %c1_353 = arith.constant 1 : index
    %c0_354 = arith.constant 0 : index
    %276 = vector.load %arg21[%c0_352, %c1_353, %c0_354] : memref<18x18x32xf32, #tpu.memory_space<vmem>>, vector<4x4x16xf32>
    %277 = vector.shape_cast %276 : vector<4x4x16xf32> to vector<16x16xf32>
    %c0_355 = arith.constant 0 : index
    %c1_356 = arith.constant 1 : index
    %c0_357 = arith.constant 0 : index
    %c0_358 = arith.constant 0 : index
    %278 = vector.load %arg10[%c0_355, %c1_356, %c0_357, %c0_358] : memref<3x3x16x32xf32, #tpu.memory_space<vmem>>, vector<1x1x16x32xf32>
    %279 = vector.shape_cast %278 : vector<1x1x16x32xf32> to vector<16x32xf32>
    %cst_359 = arith.constant dense<0.000000e+00> : vector<16x32xf32>
    %280 = tpu.matmul %277, %279, %cst_359 {dimension_numbers = #tpu.dot_dimension_numbers<[1], [0], [0], [1], [0, 0, 1, 1], [], []>} : vector<16x16xf32>, vector<16x32xf32>, vector<16x32xf32> -> vector<16x32xf32>
    %281 = arith.addf %275, %280 : vector<16x32xf32>
    %c0_360 = arith.constant 0 : index
    %c2_361 = arith.constant 2 : index
    %c0_362 = arith.constant 0 : index
    %282 = vector.load %arg21[%c0_360, %c2_361, %c0_362] : memref<18x18x32xf32, #tpu.memory_space<vmem>>, vector<4x4x16xf32>
    %283 = vector.shape_cast %282 : vector<4x4x16xf32> to vector<16x16xf32>
    %c0_363 = arith.constant 0 : index
    %c2_364 = arith.constant 2 : index
    %c0_365 = arith.constant 0 : index
    %c0_366 = arith.constant 0 : index
    %284 = vector.load %arg10[%c0_363, %c2_364, %c0_365, %c0_366] : memref<3x3x16x32xf32, #tpu.memory_space<vmem>>, vector<1x1x16x32xf32>
    %285 = vector.shape_cast %284 : vector<1x1x16x32xf32> to vector<16x32xf32>
    %cst_367 = arith.constant dense<0.000000e+00> : vector<16x32xf32>
    %286 = tpu.matmul %283, %285, %cst_367 {dimension_numbers = #tpu.dot_dimension_numbers<[1], [0], [0], [1], [0, 0, 1, 1], [], []>} : vector<16x16xf32>, vector<16x32xf32>, vector<16x32xf32> -> vector<16x32xf32>
    %287 = arith.addf %281, %286 : vector<16x32xf32>
    %c1_368 = arith.constant 1 : index
    %c0_369 = arith.constant 0 : index
    %c0_370 = arith.constant 0 : index
    %288 = vector.load %arg21[%c1_368, %c0_369, %c0_370] : memref<18x18x32xf32, #tpu.memory_space<vmem>>, vector<4x4x16xf32>
    %289 = vector.shape_cast %288 : vector<4x4x16xf32> to vector<16x16xf32>
    %c1_371 = arith.constant 1 : index
    %c0_372 = arith.constant 0 : index
    %c0_373 = arith.constant 0 : index
    %c0_374 = arith.constant 0 : index
    %290 = vector.load %arg10[%c1_371, %c0_372, %c0_373, %c0_374] : memref<3x3x16x32xf32, #tpu.memory_space<vmem>>, vector<1x1x16x32xf32>
    %291 = vector.shape_cast %290 : vector<1x1x16x32xf32> to vector<16x32xf32>
    %cst_375 = arith.constant dense<0.000000e+00> : vector<16x32xf32>
    %292 = tpu.matmul %289, %291, %cst_375 {dimension_numbers = #tpu.dot_dimension_numbers<[1], [0], [0], [1], [0, 0, 1, 1], [], []>} : vector<16x16xf32>, vector<16x32xf32>, vector<16x32xf32> -> vector<16x32xf32>
    %293 = arith.addf %287, %292 : vector<16x32xf32>
    %c1_376 = arith.constant 1 : index
    %c1_377 = arith.constant 1 : index
    %c0_378 = arith.constant 0 : index
    %294 = vector.load %arg21[%c1_376, %c1_377, %c0_378] : memref<18x18x32xf32, #tpu.memory_space<vmem>>, vector<4x4x16xf32>
    %295 = vector.shape_cast %294 : vector<4x4x16xf32> to vector<16x16xf32>
    %c1_379 = arith.constant 1 : index
    %c1_380 = arith.constant 1 : index
    %c0_381 = arith.constant 0 : index
    %c0_382 = arith.constant 0 : index
    %296 = vector.load %arg10[%c1_379, %c1_380, %c0_381, %c0_382] : memref<3x3x16x32xf32, #tpu.memory_space<vmem>>, vector<1x1x16x32xf32>
    %297 = vector.shape_cast %296 : vector<1x1x16x32xf32> to vector<16x32xf32>
    %cst_383 = arith.constant dense<0.000000e+00> : vector<16x32xf32>
    %298 = tpu.matmul %295, %297, %cst_383 {dimension_numbers = #tpu.dot_dimension_numbers<[1], [0], [0], [1], [0, 0, 1, 1], [], []>} : vector<16x16xf32>, vector<16x32xf32>, vector<16x32xf32> -> vector<16x32xf32>
    %299 = arith.addf %293, %298 : vector<16x32xf32>
    %c1_384 = arith.constant 1 : index
    %c2_385 = arith.constant 2 : index
    %c0_386 = arith.constant 0 : index
    %300 = vector.load %arg21[%c1_384, %c2_385, %c0_386] : memref<18x18x32xf32, #tpu.memory_space<vmem>>, vector<4x4x16xf32>
    %301 = vector.shape_cast %300 : vector<4x4x16xf32> to vector<16x16xf32>
    %c1_387 = arith.constant 1 : index
    %c2_388 = arith.constant 2 : index
    %c0_389 = arith.constant 0 : index
    %c0_390 = arith.constant 0 : index
    %302 = vector.load %arg10[%c1_387, %c2_388, %c0_389, %c0_390] : memref<3x3x16x32xf32, #tpu.memory_space<vmem>>, vector<1x1x16x32xf32>
    %303 = vector.shape_cast %302 : vector<1x1x16x32xf32> to vector<16x32xf32>
    %cst_391 = arith.constant dense<0.000000e+00> : vector<16x32xf32>
    %304 = tpu.matmul %301, %303, %cst_391 {dimension_numbers = #tpu.dot_dimension_numbers<[1], [0], [0], [1], [0, 0, 1, 1], [], []>} : vector<16x16xf32>, vector<16x32xf32>, vector<16x32xf32> -> vector<16x32xf32>
    %305 = arith.addf %299, %304 : vector<16x32xf32>
    %c2_392 = arith.constant 2 : index
    %c0_393 = arith.constant 0 : index
    %c0_394 = arith.constant 0 : index
    %306 = vector.load %arg21[%c2_392, %c0_393, %c0_394] : memref<18x18x32xf32, #tpu.memory_space<vmem>>, vector<4x4x16xf32>
    %307 = vector.shape_cast %306 : vector<4x4x16xf32> to vector<16x16xf32>
    %c2_395 = arith.constant 2 : index
    %c0_396 = arith.constant 0 : index
    %c0_397 = arith.constant 0 : index
    %c0_398 = arith.constant 0 : index
    %308 = vector.load %arg10[%c2_395, %c0_396, %c0_397, %c0_398] : memref<3x3x16x32xf32, #tpu.memory_space<vmem>>, vector<1x1x16x32xf32>
    %309 = vector.shape_cast %308 : vector<1x1x16x32xf32> to vector<16x32xf32>
    %cst_399 = arith.constant dense<0.000000e+00> : vector<16x32xf32>
    %310 = tpu.matmul %307, %309, %cst_399 {dimension_numbers = #tpu.dot_dimension_numbers<[1], [0], [0], [1], [0, 0, 1, 1], [], []>} : vector<16x16xf32>, vector<16x32xf32>, vector<16x32xf32> -> vector<16x32xf32>
    %311 = arith.addf %305, %310 : vector<16x32xf32>
    %c2_400 = arith.constant 2 : index
    %c1_401 = arith.constant 1 : index
    %c0_402 = arith.constant 0 : index
    %312 = vector.load %arg21[%c2_400, %c1_401, %c0_402] : memref<18x18x32xf32, #tpu.memory_space<vmem>>, vector<4x4x16xf32>
    %313 = vector.shape_cast %312 : vector<4x4x16xf32> to vector<16x16xf32>
    %c2_403 = arith.constant 2 : index
    %c1_404 = arith.constant 1 : index
    %c0_405 = arith.constant 0 : index
    %c0_406 = arith.constant 0 : index
    %314 = vector.load %arg10[%c2_403, %c1_404, %c0_405, %c0_406] : memref<3x3x16x32xf32, #tpu.memory_space<vmem>>, vector<1x1x16x32xf32>
    %315 = vector.shape_cast %314 : vector<1x1x16x32xf32> to vector<16x32xf32>
    %cst_407 = arith.constant dense<0.000000e+00> : vector<16x32xf32>
    %316 = tpu.matmul %313, %315, %cst_407 {dimension_numbers = #tpu.dot_dimension_numbers<[1], [0], [0], [1], [0, 0, 1, 1], [], []>} : vector<16x16xf32>, vector<16x32xf32>, vector<16x32xf32> -> vector<16x32xf32>
    %317 = arith.addf %311, %316 : vector<16x32xf32>
    %c2_408 = arith.constant 2 : index
    %c2_409 = arith.constant 2 : index
    %c0_410 = arith.constant 0 : index
    %318 = vector.load %arg21[%c2_408, %c2_409, %c0_410] : memref<18x18x32xf32, #tpu.memory_space<vmem>>, vector<4x4x16xf32>
    %319 = vector.shape_cast %318 : vector<4x4x16xf32> to vector<16x16xf32>
    %c2_411 = arith.constant 2 : index
    %c2_412 = arith.constant 2 : index
    %c0_413 = arith.constant 0 : index
    %c0_414 = arith.constant 0 : index
    %320 = vector.load %arg10[%c2_411, %c2_412, %c0_413, %c0_414] : memref<3x3x16x32xf32, #tpu.memory_space<vmem>>, vector<1x1x16x32xf32>
    %321 = vector.shape_cast %320 : vector<1x1x16x32xf32> to vector<16x32xf32>
    %cst_415 = arith.constant dense<0.000000e+00> : vector<16x32xf32>
    %322 = tpu.matmul %319, %321, %cst_415 {dimension_numbers = #tpu.dot_dimension_numbers<[1], [0], [0], [1], [0, 0, 1, 1], [], []>} : vector<16x16xf32>, vector<16x32xf32>, vector<16x32xf32> -> vector<16x32xf32>
    %323 = arith.addf %317, %322 : vector<16x32xf32>
    %c0_416 = arith.constant 0 : index
    %c0_417 = arith.constant 0 : index
    %324 = vector.load %arg11[%c0_416, %c0_417] : memref<1x32xf32, #tpu.memory_space<vmem>>, vector<1x32xf32>
    %325 = vector.broadcast %324 : vector<1x32xf32> to vector<16x32xf32>
    %326 = arith.addf %323, %325 : vector<16x32xf32>
    %cst_418 = arith.constant 0.000000e+00 : f32
    %327 = vector.broadcast %cst_418 : f32 to vector<16x32xf32>
    %328 = arith.maximumf %326, %327 : vector<16x32xf32>
    %329 = vector.shape_cast %328 : vector<16x32xf32> to vector<4x4x32xf32>
    %cst_419 = arith.constant 0.000000e+00 : f32
    %330 = vector.broadcast %cst_419 : f32 to vector<6x6x32xf32>
    %c0_420 = arith.constant 0 : index
    %c0_421 = arith.constant 0 : index
    %c0_422 = arith.constant 0 : index
    %331 = vector.load %arg21[%c0_420, %c0_421, %c0_422] : memref<18x18x32xf32, #tpu.memory_space<vmem>>, vector<6x6x32xf32>
    tpu.vector_store %arg21[%c0_420, %c0_421, %c0_422], %330 {strides = array<i32>} : memref<18x18x32xf32, #tpu.memory_space<vmem>>, vector<6x6x32xf32>,
    %c1_423 = arith.constant 1 : index
    %c1_424 = arith.constant 1 : index
    %c0_425 = arith.constant 0 : index
    %332 = vector.load %arg21[%c1_423, %c1_424, %c0_425] : memref<18x18x32xf32, #tpu.memory_space<vmem>>, vector<4x4x32xf32>
    tpu.vector_store %arg21[%c1_423, %c1_424, %c0_425], %329 {strides = array<i32>} : memref<18x18x32xf32, #tpu.memory_space<vmem>>, vector<4x4x32xf32>,
    %cst_426 = arith.constant 0.000000e+00 : f32
    %333 = vector.broadcast %cst_426 : f32 to vector<16x32xf32>
    %c0_427 = arith.constant 0 : index
    %c0_428 = arith.constant 0 : index
    %c0_429 = arith.constant 0 : index
    %334 = vector.load %arg21[%c0_427, %c0_428, %c0_429] : memref<18x18x32xf32, #tpu.memory_space<vmem>>, vector<4x4x32xf32>
    %335 = vector.shape_cast %334 : vector<4x4x32xf32> to vector<16x32xf32>
    %c0_430 = arith.constant 0 : index
    %c0_431 = arith.constant 0 : index
    %c0_432 = arith.constant 0 : index
    %c0_433 = arith.constant 0 : index
    %336 = vector.load %arg12[%c0_430, %c0_431, %c0_432, %c0_433] : memref<3x3x32x32xf32, #tpu.memory_space<vmem>>, vector<1x1x32x32xf32>
    %337 = vector.shape_cast %336 : vector<1x1x32x32xf32> to vector<32x32xf32>
    %cst_434 = arith.constant dense<0.000000e+00> : vector<16x32xf32>
    %338 = tpu.matmul %335, %337, %cst_434 {dimension_numbers = #tpu.dot_dimension_numbers<[1], [0], [0], [1], [0, 0, 1, 1], [], []>} : vector<16x32xf32>, vector<32x32xf32>, vector<16x32xf32> -> vector<16x32xf32>
    %339 = arith.addf %333, %338 : vector<16x32xf32>
    %c0_435 = arith.constant 0 : index
    %c1_436 = arith.constant 1 : index
    %c0_437 = arith.constant 0 : index
    %340 = vector.load %arg21[%c0_435, %c1_436, %c0_437] : memref<18x18x32xf32, #tpu.memory_space<vmem>>, vector<4x4x32xf32>
    %341 = vector.shape_cast %340 : vector<4x4x32xf32> to vector<16x32xf32>
    %c0_438 = arith.constant 0 : index
    %c1_439 = arith.constant 1 : index
    %c0_440 = arith.constant 0 : index
    %c0_441 = arith.constant 0 : index
    %342 = vector.load %arg12[%c0_438, %c1_439, %c0_440, %c0_441] : memref<3x3x32x32xf32, #tpu.memory_space<vmem>>, vector<1x1x32x32xf32>
    %343 = vector.shape_cast %342 : vector<1x1x32x32xf32> to vector<32x32xf32>
    %cst_442 = arith.constant dense<0.000000e+00> : vector<16x32xf32>
    %344 = tpu.matmul %341, %343, %cst_442 {dimension_numbers = #tpu.dot_dimension_numbers<[1], [0], [0], [1], [0, 0, 1, 1], [], []>} : vector<16x32xf32>, vector<32x32xf32>, vector<16x32xf32> -> vector<16x32xf32>
    %345 = arith.addf %339, %344 : vector<16x32xf32>
    %c0_443 = arith.constant 0 : index
    %c2_444 = arith.constant 2 : index
    %c0_445 = arith.constant 0 : index
    %346 = vector.load %arg21[%c0_443, %c2_444, %c0_445] : memref<18x18x32xf32, #tpu.memory_space<vmem>>, vector<4x4x32xf32>
    %347 = vector.shape_cast %346 : vector<4x4x32xf32> to vector<16x32xf32>
    %c0_446 = arith.constant 0 : index
    %c2_447 = arith.constant 2 : index
    %c0_448 = arith.constant 0 : index
    %c0_449 = arith.constant 0 : index
    %348 = vector.load %arg12[%c0_446, %c2_447, %c0_448, %c0_449] : memref<3x3x32x32xf32, #tpu.memory_space<vmem>>, vector<1x1x32x32xf32>
    %349 = vector.shape_cast %348 : vector<1x1x32x32xf32> to vector<32x32xf32>
    %cst_450 = arith.constant dense<0.000000e+00> : vector<16x32xf32>
    %350 = tpu.matmul %347, %349, %cst_450 {dimension_numbers = #tpu.dot_dimension_numbers<[1], [0], [0], [1], [0, 0, 1, 1], [], []>} : vector<16x32xf32>, vector<32x32xf32>, vector<16x32xf32> -> vector<16x32xf32>
    %351 = arith.addf %345, %350 : vector<16x32xf32>
    %c1_451 = arith.constant 1 : index
    %c0_452 = arith.constant 0 : index
    %c0_453 = arith.constant 0 : index
    %352 = vector.load %arg21[%c1_451, %c0_452, %c0_453] : memref<18x18x32xf32, #tpu.memory_space<vmem>>, vector<4x4x32xf32>
    %353 = vector.shape_cast %352 : vector<4x4x32xf32> to vector<16x32xf32>
    %c1_454 = arith.constant 1 : index
    %c0_455 = arith.constant 0 : index
    %c0_456 = arith.constant 0 : index
    %c0_457 = arith.constant 0 : index
    %354 = vector.load %arg12[%c1_454, %c0_455, %c0_456, %c0_457] : memref<3x3x32x32xf32, #tpu.memory_space<vmem>>, vector<1x1x32x32xf32>
    %355 = vector.shape_cast %354 : vector<1x1x32x32xf32> to vector<32x32xf32>
    %cst_458 = arith.constant dense<0.000000e+00> : vector<16x32xf32>
    %356 = tpu.matmul %353, %355, %cst_458 {dimension_numbers = #tpu.dot_dimension_numbers<[1], [0], [0], [1], [0, 0, 1, 1], [], []>} : vector<16x32xf32>, vector<32x32xf32>, vector<16x32xf32> -> vector<16x32xf32>
    %357 = arith.addf %351, %356 : vector<16x32xf32>
    %c1_459 = arith.constant 1 : index
    %c1_460 = arith.constant 1 : index
    %c0_461 = arith.constant 0 : index
    %358 = vector.load %arg21[%c1_459, %c1_460, %c0_461] : memref<18x18x32xf32, #tpu.memory_space<vmem>>, vector<4x4x32xf32>
    %359 = vector.shape_cast %358 : vector<4x4x32xf32> to vector<16x32xf32>
    %c1_462 = arith.constant 1 : index
    %c1_463 = arith.constant 1 : index
    %c0_464 = arith.constant 0 : index
    %c0_465 = arith.constant 0 : index
    %360 = vector.load %arg12[%c1_462, %c1_463, %c0_464, %c0_465] : memref<3x3x32x32xf32, #tpu.memory_space<vmem>>, vector<1x1x32x32xf32>
    %361 = vector.shape_cast %360 : vector<1x1x32x32xf32> to vector<32x32xf32>
    %cst_466 = arith.constant dense<0.000000e+00> : vector<16x32xf32>
    %362 = tpu.matmul %359, %361, %cst_466 {dimension_numbers = #tpu.dot_dimension_numbers<[1], [0], [0], [1], [0, 0, 1, 1], [], []>} : vector<16x32xf32>, vector<32x32xf32>, vector<16x32xf32> -> vector<16x32xf32>
    %363 = arith.addf %357, %362 : vector<16x32xf32>
    %c1_467 = arith.constant 1 : index
    %c2_468 = arith.constant 2 : index
    %c0_469 = arith.constant 0 : index
    %364 = vector.load %arg21[%c1_467, %c2_468, %c0_469] : memref<18x18x32xf32, #tpu.memory_space<vmem>>, vector<4x4x32xf32>
    %365 = vector.shape_cast %364 : vector<4x4x32xf32> to vector<16x32xf32>
    %c1_470 = arith.constant 1 : index
    %c2_471 = arith.constant 2 : index
    %c0_472 = arith.constant 0 : index
    %c0_473 = arith.constant 0 : index
    %366 = vector.load %arg12[%c1_470, %c2_471, %c0_472, %c0_473] : memref<3x3x32x32xf32, #tpu.memory_space<vmem>>, vector<1x1x32x32xf32>
    %367 = vector.shape_cast %366 : vector<1x1x32x32xf32> to vector<32x32xf32>
    %cst_474 = arith.constant dense<0.000000e+00> : vector<16x32xf32>
    %368 = tpu.matmul %365, %367, %cst_474 {dimension_numbers = #tpu.dot_dimension_numbers<[1], [0], [0], [1], [0, 0, 1, 1], [], []>} : vector<16x32xf32>, vector<32x32xf32>, vector<16x32xf32> -> vector<16x32xf32>
    %369 = arith.addf %363, %368 : vector<16x32xf32>
    %c2_475 = arith.constant 2 : index
    %c0_476 = arith.constant 0 : index
    %c0_477 = arith.constant 0 : index
    %370 = vector.load %arg21[%c2_475, %c0_476, %c0_477] : memref<18x18x32xf32, #tpu.memory_space<vmem>>, vector<4x4x32xf32>
    %371 = vector.shape_cast %370 : vector<4x4x32xf32> to vector<16x32xf32>
    %c2_478 = arith.constant 2 : index
    %c0_479 = arith.constant 0 : index
    %c0_480 = arith.constant 0 : index
    %c0_481 = arith.constant 0 : index
    %372 = vector.load %arg12[%c2_478, %c0_479, %c0_480, %c0_481] : memref<3x3x32x32xf32, #tpu.memory_space<vmem>>, vector<1x1x32x32xf32>
    %373 = vector.shape_cast %372 : vector<1x1x32x32xf32> to vector<32x32xf32>
    %cst_482 = arith.constant dense<0.000000e+00> : vector<16x32xf32>
    %374 = tpu.matmul %371, %373, %cst_482 {dimension_numbers = #tpu.dot_dimension_numbers<[1], [0], [0], [1], [0, 0, 1, 1], [], []>} : vector<16x32xf32>, vector<32x32xf32>, vector<16x32xf32> -> vector<16x32xf32>
    %375 = arith.addf %369, %374 : vector<16x32xf32>
    %c2_483 = arith.constant 2 : index
    %c1_484 = arith.constant 1 : index
    %c0_485 = arith.constant 0 : index
    %376 = vector.load %arg21[%c2_483, %c1_484, %c0_485] : memref<18x18x32xf32, #tpu.memory_space<vmem>>, vector<4x4x32xf32>
    %377 = vector.shape_cast %376 : vector<4x4x32xf32> to vector<16x32xf32>
    %c2_486 = arith.constant 2 : index
    %c1_487 = arith.constant 1 : index
    %c0_488 = arith.constant 0 : index
    %c0_489 = arith.constant 0 : index
    %378 = vector.load %arg12[%c2_486, %c1_487, %c0_488, %c0_489] : memref<3x3x32x32xf32, #tpu.memory_space<vmem>>, vector<1x1x32x32xf32>
    %379 = vector.shape_cast %378 : vector<1x1x32x32xf32> to vector<32x32xf32>
    %cst_490 = arith.constant dense<0.000000e+00> : vector<16x32xf32>
    %380 = tpu.matmul %377, %379, %cst_490 {dimension_numbers = #tpu.dot_dimension_numbers<[1], [0], [0], [1], [0, 0, 1, 1], [], []>} : vector<16x32xf32>, vector<32x32xf32>, vector<16x32xf32> -> vector<16x32xf32>
    %381 = arith.addf %375, %380 : vector<16x32xf32>
    %c2_491 = arith.constant 2 : index
    %c2_492 = arith.constant 2 : index
    %c0_493 = arith.constant 0 : index
    %382 = vector.load %arg21[%c2_491, %c2_492, %c0_493] : memref<18x18x32xf32, #tpu.memory_space<vmem>>, vector<4x4x32xf32>
    %383 = vector.shape_cast %382 : vector<4x4x32xf32> to vector<16x32xf32>
    %c2_494 = arith.constant 2 : index
    %c2_495 = arith.constant 2 : index
    %c0_496 = arith.constant 0 : index
    %c0_497 = arith.constant 0 : index
    %384 = vector.load %arg12[%c2_494, %c2_495, %c0_496, %c0_497] : memref<3x3x32x32xf32, #tpu.memory_space<vmem>>, vector<1x1x32x32xf32>
    %385 = vector.shape_cast %384 : vector<1x1x32x32xf32> to vector<32x32xf32>
    %cst_498 = arith.constant dense<0.000000e+00> : vector<16x32xf32>
    %386 = tpu.matmul %383, %385, %cst_498 {dimension_numbers = #tpu.dot_dimension_numbers<[1], [0], [0], [1], [0, 0, 1, 1], [], []>} : vector<16x32xf32>, vector<32x32xf32>, vector<16x32xf32> -> vector<16x32xf32>
    %387 = arith.addf %381, %386 : vector<16x32xf32>
    %c0_499 = arith.constant 0 : index
    %c0_500 = arith.constant 0 : index
    %388 = vector.load %arg13[%c0_499, %c0_500] : memref<1x32xf32, #tpu.memory_space<vmem>>, vector<1x32xf32>
    %389 = vector.broadcast %388 : vector<1x32xf32> to vector<16x32xf32>
    %390 = arith.addf %387, %389 : vector<16x32xf32>
    %cst_501 = arith.constant 0.000000e+00 : f32
    %391 = vector.broadcast %cst_501 : f32 to vector<16x32xf32>
    %392 = arith.maximumf %390, %391 : vector<16x32xf32>
    %393 = vector.shape_cast %392 : vector<16x32xf32> to vector<4x4x32xf32>
    %394 = vector.shape_cast %393 : vector<4x4x32xf32> to vector<4x2x2x32xf32>
    %cst_502 = arith.constant dense<0xFF800000> : vector<4x2x32xf32>
    %395 = vector.multi_reduction <maximumf>, %394, %cst_502 [2] : vector<4x2x2x32xf32> to vector<4x2x32xf32>
    %396 = vector.shape_cast %395 : vector<4x2x32xf32> to vector<2x2x2x32xf32>
    %cst_503 = arith.constant dense<0xFF800000> : vector<2x2x32xf32>
    %397 = vector.multi_reduction <maximumf>, %396, %cst_503 [1] : vector<2x2x2x32xf32> to vector<2x2x32xf32>
    %398 = vector.shape_cast %397 : vector<2x2x32xf32> to vector<4x32xf32>
    %c0_504 = arith.constant 0 : index
    %c0_505 = arith.constant 0 : index
    %399 = vector.load %arg14[%c0_504, %c0_505] : memref<32x4xf32, #tpu.memory_space<vmem>>, vector<32x4xf32>
    %cst_506 = arith.constant dense<0.000000e+00> : vector<4x4xf32>
    %400 = tpu.matmul %398, %399, %cst_506 {dimension_numbers = #tpu.dot_dimension_numbers<[1], [0], [0], [1], [0, 0, 1, 1], [], []>} : vector<4x32xf32>, vector<32x4xf32>, vector<4x4xf32> -> vector<4x4xf32>
    %c0_507 = arith.constant 0 : index
    %c0_508 = arith.constant 0 : index
    %401 = vector.load %arg15[%c0_507, %c0_508] : memref<1x4xf32, #tpu.memory_space<vmem>>, vector<1x4xf32>
    %402 = vector.broadcast %401 : vector<1x4xf32> to vector<4x4xf32>
    %403 = arith.addf %400, %402 : vector<4x4xf32>
    %cst_509 = arith.constant 0.000000e+00 : f32
    %404 = vector.broadcast %cst_509 : f32 to vector<4x4xf32>
    %405 = arith.maximumf %403, %404 : vector<4x4xf32>
    %cst_510 = arith.constant dense<0.000000e+00> : vector<4xf32>
    %406 = vector.multi_reduction <add>, %405, %cst_510 [0] : vector<4x4xf32> to vector<4xf32>
    %407 = vector.shape_cast %406 : vector<4xf32> to vector<1x4xf32>
    %cst_511 = arith.constant 2.500000e-01 : f32
    %408 = vector.broadcast %cst_511 : f32 to vector<1x4xf32>
    %409 = arith.mulf %407, %408 : vector<1x4xf32>
    %c0_512 = arith.constant 0 : index
    %c0_513 = arith.constant 0 : index
    %410 = vector.load %arg16[%c0_512, %c0_513] : memref<4x4xf32, #tpu.memory_space<vmem>>, vector<4x4xf32>
    %cst_514 = arith.constant dense<0.000000e+00> : vector<1x4xf32>
    %411 = tpu.matmul %409, %410, %cst_514 {dimension_numbers = #tpu.dot_dimension_numbers<[1], [0], [0], [1], [0, 0, 1, 1], [], []>} : vector<1x4xf32>, vector<4x4xf32>, vector<1x4xf32> -> vector<1x4xf32>
    %c0_515 = arith.constant 0 : index
    %c0_516 = arith.constant 0 : index
    %412 = vector.load %arg17[%c0_515, %c0_516] : memref<1x4xf32, #tpu.memory_space<vmem>>, vector<1x4xf32>
    %413 = arith.addf %411, %412 : vector<1x4xf32>
    %cst_517 = arith.constant 0.000000e+00 : f32
    %414 = vector.broadcast %cst_517 : f32 to vector<1x4xf32>
    %415 = arith.maximumf %413, %414 : vector<1x4xf32>
    %c0_518 = arith.constant 0 : index
    %c0_519 = arith.constant 0 : index
    %416 = vector.load %arg18[%c0_518, %c0_519] : memref<4x4xf32, #tpu.memory_space<vmem>>, vector<4x4xf32>
    %cst_520 = arith.constant dense<0.000000e+00> : vector<1x4xf32>
    %417 = tpu.matmul %415, %416, %cst_520 {dimension_numbers = #tpu.dot_dimension_numbers<[1], [0], [0], [1], [0, 0, 1, 1], [], []>} : vector<1x4xf32>, vector<4x4xf32>, vector<1x4xf32> -> vector<1x4xf32>
    %c0_521 = arith.constant 0 : index
    %c0_522 = arith.constant 0 : index
    %418 = vector.load %arg19[%c0_521, %c0_522] : memref<1x4xf32, #tpu.memory_space<vmem>>, vector<1x4xf32>
    %419 = arith.addf %417, %418 : vector<1x4xf32>
    %cst_523 = arith.constant 0.000000e+00 : f32
    %420 = vector.broadcast %cst_523 : f32 to vector<1x4xf32>
    %421 = arith.maximumf %419, %420 : vector<1x4xf32>
    %c0_524 = arith.constant 0 : index
    %c0_525 = arith.constant 0 : index
    %c0_526 = arith.constant 0 : index
    %422 = vector.load %arg20[%c0_524, %c0_525, %c0_526] : memref<1x1x4xf32, #tpu.memory_space<vmem>>, vector<1x1x4xf32>
    %423 = vector.shape_cast %422 : vector<1x1x4xf32> to vector<1x4xf32>
    %424 = vector.shape_cast %421 : vector<1x4xf32> to vector<1x1x4xf32>
    tpu.vector_store %arg20[%c0_524, %c0_525, %c0_526], %424 {strides = array<i32>} : memref<1x1x4xf32, #tpu.memory_space<vmem>>, vector<1x1x4xf32>,
    return
  }
  func.func @transform_0(%arg0: i32) -> (i32, i32, i32, i32) {
    %c0_i32 = arith.constant 0 : i32
    %c0_i32_0 = arith.constant 0 : i32
    %c0_i32_1 = arith.constant 0 : i32
    %c0_i32_2 = arith.constant 0 : i32
    return %arg0, %c0_i32, %c0_i32_0, %c0_i32_1 : i32, i32, i32, i32
  }
  func.func @transform_1(%arg0: i32) -> (i32, i32, i32, i32) {
    %c0_i32 = arith.constant 0 : i32
    %c0_i32_0 = arith.constant 0 : i32
    %c0_i32_1 = arith.constant 0 : i32
    %c0_i32_2 = arith.constant 0 : i32
    %c0_i32_3 = arith.constant 0 : i32
    return %c0_i32, %c0_i32_0, %c0_i32_1, %c0_i32_2 : i32, i32, i32, i32
  }
  func.func @transform_2(%arg0: i32) -> (i32, i32) {
    %c0_i32 = arith.constant 0 : i32
    %c0_i32_0 = arith.constant 0 : i32
    %c0_i32_1 = arith.constant 0 : i32
    return %c0_i32, %c0_i32_0 : i32, i32
  }
  func.func @transform_3(%arg0: i32) -> (i32, i32, i32, i32) {
    %c0_i32 = arith.constant 0 : i32
    %c0_i32_0 = arith.constant 0 : i32
    %c0_i32_1 = arith.constant 0 : i32
    %c0_i32_2 = arith.constant 0 : i32
    %c0_i32_3 = arith.constant 0 : i32
    return %c0_i32, %c0_i32_0, %c0_i32_1, %c0_i32_2 : i32, i32, i32, i32
  }
  func.func @transform_4(%arg0: i32) -> (i32, i32) {
    %c0_i32 = arith.constant 0 : i32
    %c0_i32_0 = arith.constant 0 : i32
    %c0_i32_1 = arith.constant 0 : i32
    return %c0_i32, %c0_i32_0 : i32, i32
  }
  func.func @transform_5(%arg0: i32) -> (i32, i32, i32, i32) {
    %c0_i32 = arith.constant 0 : i32
    %c0_i32_0 = arith.constant 0 : i32
    %c0_i32_1 = arith.constant 0 : i32
    %c0_i32_2 = arith.constant 0 : i32
    %c0_i32_3 = arith.constant 0 : i32
    return %c0_i32, %c0_i32_0, %c0_i32_1, %c0_i32_2 : i32, i32, i32, i32
  }
  func.func @transform_6(%arg0: i32) -> (i32, i32) {
    %c0_i32 = arith.constant 0 : i32
    %c0_i32_0 = arith.constant 0 : i32
    %c0_i32_1 = arith.constant 0 : i32
    return %c0_i32, %c0_i32_0 : i32, i32
  }
  func.func @transform_7(%arg0: i32) -> (i32, i32, i32, i32) {
    %c0_i32 = arith.constant 0 : i32
    %c0_i32_0 = arith.constant 0 : i32
    %c0_i32_1 = arith.constant 0 : i32
    %c0_i32_2 = arith.constant 0 : i32
    %c0_i32_3 = arith.constant 0 : i32
    return %c0_i32, %c0_i32_0, %c0_i32_1, %c0_i32_2 : i32, i32, i32, i32
  }
  func.func @transform_8(%arg0: i32) -> (i32, i32) {
    %c0_i32 = arith.constant 0 : i32
    %c0_i32_0 = arith.constant 0 : i32
    %c0_i32_1 = arith.constant 0 : i32
    return %c0_i32, %c0_i32_0 : i32, i32
  }
  func.func @transform_9(%arg0: i32) -> (i32, i32, i32, i32) {
    %c0_i32 = arith.constant 0 : i32
    %c0_i32_0 = arith.constant 0 : i32
    %c0_i32_1 = arith.constant 0 : i32
    %c0_i32_2 = arith.constant 0 : i32
    %c0_i32_3 = arith.constant 0 : i32
    return %c0_i32, %c0_i32_0, %c0_i32_1, %c0_i32_2 : i32, i32, i32, i32
  }
  func.func @transform_10(%arg0: i32) -> (i32, i32) {
    %c0_i32 = arith.constant 0 : i32
    %c0_i32_0 = arith.constant 0 : i32
    %c0_i32_1 = arith.constant 0 : i32
    return %c0_i32, %c0_i32_0 : i32, i32
  }
  func.func @transform_11(%arg0: i32) -> (i32, i32, i32, i32) {
    %c0_i32 = arith.constant 0 : i32
    %c0_i32_0 = arith.constant 0 : i32
    %c0_i32_1 = arith.constant 0 : i32
    %c0_i32_2 = arith.constant 0 : i32
    %c0_i32_3 = arith.constant 0 : i32
    return %c0_i32, %c0_i32_0, %c0_i32_1, %c0_i32_2 : i32, i32, i32, i32
  }
  func.func @transform_12(%arg0: i32) -> (i32, i32) {
    %c0_i32 = arith.constant 0 : i32
    %c0_i32_0 = arith.constant 0 : i32
    %c0_i32_1 = arith.constant 0 : i32
    return %c0_i32, %c0_i32_0 : i32, i32
  }
  func.func @transform_13(%arg0: i32) -> (i32, i32) {
    %c0_i32 = arith.constant 0 : i32
    %c0_i32_0 = arith.constant 0 : i32
    %c0_i32_1 = arith.constant 0 : i32
    return %c0_i32, %c0_i32_0 : i32, i32
  }
  func.func @transform_14(%arg0: i32) -> (i32, i32) {
    %c0_i32 = arith.constant 0 : i32
    %c0_i32_0 = arith.constant 0 : i32
    %c0_i32_1 = arith.constant 0 : i32
    return %c0_i32, %c0_i32_0 : i32, i32
  }
  func.func @transform_15(%arg0: i32) -> (i32, i32) {
    %c0_i32 = arith.constant 0 : i32
    %c0_i32_0 = arith.constant 0 : i32
    %c0_i32_1 = arith.constant 0 : i32
    return %c0_i32, %c0_i32_0 : i32, i32
  }
  func.func @transform_16(%arg0: i32) -> (i32, i32) {
    %c0_i32 = arith.constant 0 : i32
    %c0_i32_0 = arith.constant 0 : i32
    %c0_i32_1 = arith.constant 0 : i32
    return %c0_i32, %c0_i32_0 : i32, i32
  }
  func.func @transform_17(%arg0: i32) -> (i32, i32) {
    %c0_i32 = arith.constant 0 : i32
    %c0_i32_0 = arith.constant 0 : i32
    %c0_i32_1 = arith.constant 0 : i32
    return %c0_i32, %c0_i32_0 : i32, i32
  }
  func.func @transform_18(%arg0: i32) -> (i32, i32) {
    %c0_i32 = arith.constant 0 : i32
    %c0_i32_0 = arith.constant 0 : i32
    %c0_i32_1 = arith.constant 0 : i32
    return %c0_i32, %c0_i32_0 : i32, i32
  }
  func.func @transform_19(%arg0: i32) -> (i32, i32, i32) {
    %c0_i32 = arith.constant 0 : i32
    %c0_i32_0 = arith.constant 0 : i32
    %c0_i32_1 = arith.constant 0 : i32
    return %arg0, %c0_i32, %c0_i32_0 : i32, i32, i32
  }
}

</mosaic_0001>

<bundles_post_ra>
// kernel: tpu_custom_call.1
= control target key start
LH: loop header
LB: loop body
LE: loop exit
PB: predicated region body
PF: predicated region fallthrough
CT: control target
= control target key end

     0   :  { %s23485_s0 = inlined_call_operand.vmem [shape: f32[2,16,16,4], index: 0, kind: input, shape index: {}]   ;;  %s23486_s1 = inlined_call_operand.hbm [shape: f32[3,3,4,8], index: 1, kind: input, shape index: {}]   ;;  %s23487_s2 = inlined_call_operand.vmem [shape: f32[1,8], index: 2, kind: input, shape index: {}]   ;;  %s23488_s3 = inlined_call_operand.vmem [shape: f32[3,3,8,8], index: 3, kind: input, shape index: {}]   ;;  %s23489_s4 = inlined_call_operand.vmem [shape: f32[1,8], index: 4, kind: input, shape index: {}]   ;;  %s23490_s5 = inlined_call_operand.hbm [shape: f32[3,3,8,16], index: 5, kind: input, shape index: {}]   ;;  %s23491_s6 = inlined_call_operand.vmem [shape: f32[1,16], index: 6, kind: input, shape index: {}]   ;;  %s23492_s7 = inlined_call_operand.vmem [shape: f32[3,3,16,16], index: 7, kind: input, shape index: {}]   ;;  %s23493_s8 = inlined_call_operand.vmem [shape: f32[1,16], index: 8, kind: input, shape index: {}]   ;;  %s23494_s9 = inlined_call_operand.vmem [shape: f32[3,3,16,32], index: 9, kind: input, shape index: {}]   ;;  %s23495_s10 = inlined_call_operand.vmem [shape: f32[1,32], index: 10, kind: input, shape index: {}]   ;;  %s23496_s11 = inlined_call_operand.vmem [shape: f32[3,3,32,32], index: 11, kind: input, shape index: {}]   ;;  %s23497_s12 = inlined_call_operand.vmem [shape: f32[1,32], index: 12, kind: input, shape index: {}]   ;;  %s23498_s13 = inlined_call_operand.vmem [shape: f32[32,4], index: 13, kind: input, shape index: {}]   ;;  %s23499_s14 = inlined_call_operand.vmem [shape: f32[1,4], index: 14, kind: input, shape index: {}]   ;;  %s23500_s15 = inlined_call_operand.vmem [shape: f32[4,4], index: 15, kind: input, shape index: {}]   ;;  %s23501_s16 = inlined_call_operand.vmem [shape: f32[1,4], index: 16, kind: input, shape index: {}]   ;;  %s23502_s17 = inlined_call_operand.vmem [shape: f32[4,4], index: 17, kind: input, shape index: {}]   ;;  %s23503_s18 = inlined_call_operand.vmem [shape: f32[1,4], index: 18, kind: input, shape index: {}]   ;;  %s23504_s19 = inlined_call_operand.hbm [shape: f32[2,1,4], index: 19, kind: output, shape index: {}]  }
   0x1   :  { %23645 = sst [smem:[#allocation69_spill]] %s23485_s0 }
   0x2   :  { %23646 = sst [smem:[#allocation70_spill]] %s23486_s1 }
   0x3   :  { %23647 = sst [smem:[#allocation71_spill]] %s23487_s2 }
   0x4   :  { %23648 = sst [smem:[#allocation72_spill]] %s23488_s3 }
   0x5   :  { %23649 = sst [smem:[#allocation73_spill]] %s23501_s16 }
   0x6   :  { %23650 = sst [smem:[#allocation74_spill]] %s23503_s18 }
   0x7   :  { %23651 = sst [smem:[#allocation75_spill]] %s23504_s19 }
   0x8   :  { %24 = vsyncpa [#allocation4], 0 }
   0x9   :  { %25 = vsyncpa [#allocation7], 0 }
   0xa   :  { %26 = vsyncpa [#allocation5], 0 }
   0xb   :  { %28 = vsyncpa [#allocation5 + $0x1], 0  ;;  %s19443_s0 = smov 0   ;;  %s19445_s30 = smov 0  }
   0xc   :  { %s19447_s20 = smov 0   ;;  %s19449_s21 = smov 0  }
   0xd LB: > { %23652 = sst [smem:[#allocation12_spill]] %s19318_s0  ;;  %s19464_s1 = sadd.s32 4294967295, %s19330_s21   ;;  %s19330_s21 = sphi %s19449_s21, %s23892_s21   ;;  %s19326_s20 = sphi %s19447_s20, %s23894_s20   ;;  %s19322_s30 = sphi %s19445_s30, %s23896_s30   ;;  %s19318_s0 = sphi %s19443_s0, %s23895_s0  }
   0xe   : > { %23653 = sst [smem:[#allocation13_spill]] %s19326_s20  ;;  %s15194_s22 = sadd.s32 4294967294, %s19330_s21  }
   0xf   : > { %23654 = sst [smem:[#allocation14_spill]] %s19330_s21  ;;  %s19468_s2 = sadd.s32 1, %s19330_s21  }
  0x10   : > { %23655 = sst [smem:[#allocation15_spill]] %s19468_s2  ;;  %s445_s23 = sadd.s32 1, %s19326_s20 }
  0x11   : > { %s442_s24 = ssub.s32 %s19330_s21, %s19468_s2  ;;  %p455_p0 = scmp.ne.s32.totalorder %s19326_s20, %s19322_s30 }
  0x12   : > { %p443_p1 = scmp.eq.s32.totalorder %s442_s24, 0  ;;  %p456_p2 = scmp.eq.s32.totalorder %s19464_s1, 1 }
  0x13   : > { %p461_p3 = scmp.ne.s32.totalorder %s19322_s30, %s19318_s0  ;;  %p462_p4 = scmp.eq.s32.totalorder %s15194_s22, 1 }
  0x14   : > { %s19479_s25 = scalar_select %p443_p1, %s19326_s20, %s445_s23  }
  0x15   : > { %p19481_p5 = por %p456_p2, %p455_p0  ;;  %p19485_p6 = por %p462_p4, %p461_p3 }
  0x16   : > { %23656 = sst [smem:[#allocation16_spill]] %s19479_s25  ;;  %p15195_p7 = scmp.ge.s32.totalorder %s19330_s21, 1 }
  0x17   : > { %s23657_s3 = scalar_select %p19481_p5, 1, 0 }
  0x18   : > { %s23659_s26 = scalar_select %p19485_p6, 1, 0 }
  0x19   : > { %23658 = sst [smem:[#allocation17_spill]] %s23657_s3  ;;  %p469_p8 = scmp.lt.s32.totalorder %s19330_s21, 3 }
  0x1a   : > { %23660 = sst [smem:[#allocation18_spill]] %s23659_s26  ;;  %p23514_p9 = scmp.eq.s32.totalorder %s19464_s1, 0 }
  0x1b   : > { %p19492_p10 = pnand %p15195_p7, %p469_p8  ;;  %s19332_s28 = smov [#allocation3]  }
  0x1c   : > { %s481_s29 = sshll.u32 %s19332_s28, 4  ;;  %s19333_s23 = smov [#allocation6]   ;;  %s482_s29 = int_to_ptr.vmem [resolvable:$true] %s481_s29 }
  0x1d   : > { %s23661_s27 = scalar_select %p19492_p10, 1, 0 }
  0x1e   : > { %p19108_p11 = pneg %p19492_p10  ;;  %s503_s24 = sshll.u32 %s19333_s23, 4  ;;  %s19504_s24 = int_to_ptr.vmem [resolvable:$true] %s503_s24 }
  0x1f   : > { %s23663_s2 = sld [smem:[#allocation70_spill]] }
  0x20   : > { %p19500_p12 = pnand %p23514_p9, %p19108_p11 }
  0x22   : > { %p19206_p0 = pneg %p19500_p12 }
  0x25   : > { %s19204_s26 = scalar_lea.hbm %s23663_s2, 576 }
  0x26   : > { %p19205_p13 = scmp.ne.s32.totalorder %s23663_s2, %s19204_s26  ;;  %p19211_p3 = scmp.lt.u32.totalorder %s19204_s26, %s23663_s2 }
  0x28   : > { %p19207_p1 = pnand %p19206_p0, %p19205_p13 }
  0x2a   : > { %p19208_p2 = pneg %p19207_p1 }
  0x2c   : > { %p19213_p4 = pnand %p19211_p3, %p19208_p2 }
  0x2e   : > { %19216 = shalt.err (!%p19213_p4)
}
  0x2f   : > { %s19217_s23 = scalar_lea.vmem %s482_s29, 576  ;;  %p19225_p9 = scmp.lt.s32.totalorder %s482_s29, %s482_s29 }
  0x30   : > { %p19218_p7 = scmp.ne.s32.totalorder %s482_s29, %s19217_s23  ;;  %p19226_p6 = scmp.lt.s32.totalorder %s19217_s23, %s19217_s23 }
  0x32   : > { %p19220_p8 = pnand %p19218_p7, %p19206_p0  ;;  %p19227_p5 = por %p19226_p6, %p19225_p9 }
  0x34   : > { %p19221_p11 = pneg %p19220_p8 }
  0x36   : > { %p19228_p10 = pnand %p19227_p5, %p19221_p11 }
  0x38   : > { %19231 = shalt.err (!%p19228_p10)
}
  0x39   : > { %s19334_s0 = smov 64   ;;  %s19335_s20 = smov 4  }
  0x3a   : > { %19111 = dma.hbm_to_vmem [thread:$0]  (!%p19500_p12), %s23663_s2, 576, %s482_s29, [#allocation4], %s19334_s0, %s19334_s0, %s19335_s20  }
  0x3b   : > { %s19232_s28 = scalar_lea.hbm %s23490_s5, 1152 }
  0x3c   : > { %p19233_p13 = scmp.ne.s32.totalorder %s23490_s5, %s19232_s28  ;;  %p19239_p9 = scmp.lt.u32.totalorder %s19232_s28, %s23490_s5 }
  0x3e   : > { %p19235_p5 = pnand %p19233_p13, %p19206_p0 }
  0x40   : > { %p19236_p6 = pneg %p19235_p5 }
  0x42   : > { %p19241_p10 = pnand %p19239_p9, %p19236_p6 }
  0x44   : > { %19244 = shalt.err (!%p19241_p10)
}
  0x45   : > { %s19245_s29 = scalar_lea.vmem %s19504_s24, 1152  ;;  %p19253_p4 = scmp.lt.s32.totalorder %s19504_s24, %s19504_s24 }
  0x46   : > { %p19246_p1 = scmp.ne.s32.totalorder %s19504_s24, %s19245_s29  ;;  %p19254_p7 = scmp.lt.s32.totalorder %s19245_s29, %s19245_s29 }
  0x48   : > { %p19248_p2 = pnand %p19246_p1, %p19206_p0  ;;  %p19255_p8 = por %p19254_p7, %p19253_p4 }
  0x4a   : > { %p19249_p3 = pneg %p19248_p2 }
  0x4c   : > { %p19256_p11 = pnand %p19255_p8, %p19249_p3 }
  0x4e   : > { %19259 = shalt.err (!%p19256_p11)
}
  0x4f   : > { %s19336_s16 = smov 128   ;;  %s19337_s18 = smov 8  }
  0x50   : > { %19114 = dma.hbm_to_vmem [thread:$0]  (!%p19500_p12), %s23490_s5, 1152, %s19504_s24, [#allocation7], %s19336_s16, %s19336_s16, %s19337_s18  }
  0x51   : > { %p23664_p13 = scmp.ne.s32.totalorder %s23661_s27, 0 }
  0x53   : > { %566 = sbr.rel (%p23664_p13) target bundleno = 3953 (0xf71), region = 96 }
  0x5a   : > { %p23665_p0 = scmp.eq.s32.totalorder %s19464_s1, 0 }
  0x5c   : > { %19305 = dma.done.wait (%p23665_p0), [#allocation4], 576   ;;  %p23666_p5 = pmov %p23665_p0 }
  0x5d   : > { %p23667_p6 = pmov %p23665_p0 }
  0x5e   : > { %19307 = vsyncadd (%p23666_p5), [#allocation4], 4294966720 }
  0x5f   : > { %19309 = dma.done.wait (%p23667_p6), [#allocation7], 1152   ;;  %p23668_p9 = pmov %p23665_p0 }
  0x60   : > { %vm662_vm0 = vcmask 31744   ;;  %vm665_vm1 = vcmask 25600   ;;  %v23549_v0 = vmov 0.0   ;;  %p625_p12 = scmp.lt.s32.totalorder %s19464_s1, 1  ;;  %vm914_vm2 = vcmask 1043456   ;;  %s23669_s19 = sld [smem:[#allocation69_spill]] }
  0x61   : > { %19311 = vsyncadd (%p23668_p9), [#allocation7], 4294966144  ;;  %663 = vst.msk [vmem:[#allocation2] sm:$0xff] %vm662_vm0, %v23549_v0  ;;  %v817_v1 = vld [vmem:[#allocation3 + $0x4] sm:$0xf]  ;;  %vm4269_vm3 = vcmask 64512  }
  0x62   : > { %664 = vst.msk [vmem:[#allocation2 + $0x8] sm:$0xff] %vm662_vm0, %v23549_v0  ;;  %667 = vst.msk [vmem:[#allocation2 + $0x18] sm:$0xff] %vm662_vm0, %v23549_v0  ;;  %s626_s27 = scalar_select %p625_p12, %s19464_s1, 1  ;;  %v783_v2 = vld [vmem:[#allocation3] sm:$0xf]  ;;  %16921 = vmatprep.subr.msk.mxu0 %vm914_vm2, %v817_v1  ;;  %vm4272_vm4 = vcmask 58368  }
  0x63   : > { %668 = vst.msk [vmem:[#allocation2 + $0x20] sm:$0xff] %vm662_vm0, %v23549_v0  ;;  %670 = vst.msk [vmem:[#allocation2 + $0x30] sm:$0xff] %vm662_vm0, %v23549_v0  ;;  %16922 = vmatpush3.msk.msra.mxu0 %vm914_vm2, %v817_v1  ;;  %v19784_v47 = vld [vmem:[#allocation3 + $0x8] sm:$0xf]  ;;  %s23766_s28 = sld [smem:[#allocation72_spill]]  ;;  %s23767_s3 = sld [smem:[#allocation71_spill]] }
  0x64   : > { %671 = vst.msk [vmem:[#allocation2 + $0x38] sm:$0xff] %vm662_vm0, %v23549_v0  ;;  %673 = vst.msk [vmem:[#allocation2 + $0x48] sm:$0xff] %vm662_vm0, %v23549_v0  ;;  %s16056_s22 = sshll.u32 %s626_s27, 8  ;;  %16971 = vmatprep.subr.msk.mxu0 %vm914_vm2, %v783_v2  ;;  %vm9722_vm5 = vcmask 1041409   ;;  %vm9724_vm6 = vcmask 1042434   ;;  %vm9726_vm7 = vcmask 1043459  }
  0x65   : > { %674 = vst.msk [vmem:[#allocation2 + $0x50] sm:$0xff] %vm662_vm0, %v23549_v0  ;;  %676 = vst.msk [vmem:[#allocation2 + $0x60] sm:$0xff] %vm662_vm0, %v23549_v0  ;;  %vm9728_vm8 = vcmask 1044484   ;;  %vm9730_vm9 = vcmask 1045509   ;;  %vm9732_vm10 = vcmask 1046534   ;;  %vm9734_vm11 = vcmask 1047559  }
  0x66   : > { %677 = vst.msk [vmem:[#allocation2 + $0x68] sm:$0xff] %vm662_vm0, %v23549_v0  ;;  %679 = vst.msk [vmem:[#allocation2 + $0x78] sm:$0xff] %vm662_vm0, %v23549_v0  ;;  %s19676_s21 = scalar_lea.vmem %s23669_s19, %s16056_s22  ;;  %vm11130_vm12 = vcmask 130048   ;;  %vm11132_vm13 = vcmask 123904   ;;  %vm12946_vm14 = vcmask 128000   ;;  %vm12985_vm15 = vcmask 125952  }
  0x67   : > { %680 = vst.msk [vmem:[#allocation2 + $0x80] sm:$0xff] %vm662_vm0, %v23549_v0  ;;  %682 = vst.msk [vmem:[#allocation2 + $0x90] sm:$0xff] %vm662_vm0, %v23549_v0  ;;  %v630_v3 = vld [vmem:[%s19676_s21] sm:$0xff]  ;;  %v631_v6 = vld [vmem:[%s19676_s21 + $0x8] sm:$0xff]  ;;  %s623_s25 = sand.u32 1, %s19322_s30   ;;  %s23884_s29 = sld [smem:[#allocation74_spill]] }
  0x68   : > { %683 = vst.msk [vmem:[#allocation2 + $0x98] sm:$0xff] %vm662_vm0, %v23549_v0  ;;  %685 = vst.msk [vmem:[#allocation2 + $0xa8] sm:$0xff] %vm662_vm0, %v23549_v0  ;;  %v632_v7 = vld [vmem:[%s19676_s21 + $0x10] sm:$0xff]  ;;  %v633_v8 = vld [vmem:[%s19676_s21 + $0x18] sm:$0xff]  ;;  %s23885_s16 = sld [smem:[#allocation17_spill]]  ;;  %s16053_s18 = sshll.u32 %s19464_s1, 4 }
  0x69   : > { %686 = vst.msk [vmem:[#allocation2 + $0xb0] sm:$0xff] %vm662_vm0, %v23549_v0  ;;  %688 = vst.msk [vmem:[#allocation2 + $0xc0] sm:$0xff] %vm662_vm0, %v23549_v0  ;;  %v784_v4 = vld [vmem:[#allocation2 + $0x1] sm:$0xff]  ;;  %v636_v11 = vld [vmem:[%s19676_s21 + $0x30] sm:$0xff]  ;;  %s23886_s24 = sld [smem:[#allocation75_spill]]  ;;  %s15105_s19 = scalar_lea.sflag [#allocation5], %s623_s25 }
  0x6a   : > { %689 = vst.msk [vmem:[#allocation2 + $0xc8] sm:$0xff] %vm662_vm0, %v23549_v0  ;;  %691 = vst.msk [vmem:[#allocation2 + $0xd8] sm:$0xff] %vm662_vm0, %v23549_v0  ;;  %16923 = vmatprep.mubr.msk.f32.mxu0 %vm662_vm0, %v784_v4  ;;  %v634_v9 = vld [vmem:[%s19676_s21 + $0x20] sm:$0xff]  ;;  %v635_v10 = vld [vmem:[%s19676_s21 + $0x28] sm:$0xff]  ;;  %s19342_s1 = smov [#allocation8]  }
  0x6b   : > { %692 = vst.msk [vmem:[#allocation2 + $0xe0] sm:$0xff] %vm662_vm0, %v23549_v0  ;;  %694 = vst.msk [vmem:[#allocation2 + $0xf0] sm:$0xff] %vm662_vm0, %v23549_v0  ;;  %v637_v12 = vld [vmem:[%s19676_s21 + $0x38] sm:$0xff]  ;;  %v638_v13 = vld [vmem:[%s19676_s21 + $0x40] sm:$0xff]  ;;  %s19264_s26 = sshll.u32 %s19342_s1, 4  ;;  %s19265_s26 = int_to_ptr.vmem [resolvable:$false] %s19264_s26 }
  0x6c   : > { %695 = vst.msk [vmem:[#allocation2 + $0xf8] sm:$0xff] %vm662_vm0, %v23549_v0  ;;  %697 = vst.msk [vmem:[#allocation2 + $0x108] sm:$0xff] %vm662_vm0, %v23549_v0  ;;  %v639_v14 = vld [vmem:[%s19676_s21 + $0x48] sm:$0xff]  ;;  %v640_v15 = vld [vmem:[%s19676_s21 + $0x50] sm:$0xff]  ;;  %s19266_s23 = scalar_lea.vmem %s19265_s26, 32 }
  0x6d   : > { %698 = vst.msk [vmem:[#allocation2 + $0x110] sm:$0xff] %vm662_vm0, %v23549_v0  ;;  %700 = vst.msk [vmem:[#allocation2 + $0x120] sm:$0xff] %vm662_vm0, %v23549_v0  ;;  %v641_v16 = vld [vmem:[%s19676_s21 + $0x58] sm:$0xff]  ;;  %v642_v17 = vld [vmem:[%s19676_s21 + $0x60] sm:$0xff] }
  0x6e   : > { %701 = vst.msk [vmem:[#allocation2 + $0x128] sm:$0xff] %vm662_vm0, %v23549_v0  ;;  %703 = vst.msk [vmem:[#allocation2 + $0x138] sm:$0xff] %vm662_vm0, %v23549_v0  ;;  %v643_v18 = vld [vmem:[%s19676_s21 + $0x68] sm:$0xff]  ;;  %v644_v19 = vld [vmem:[%s19676_s21 + $0x70] sm:$0xff]  ;;  %p23887_p1 = scmp.ne.s32.totalorder %s23885_s16, 0 }
  0x6f   : > { %704 = vst.msk [vmem:[#allocation2 + $0x140] sm:$0xff] %vm662_vm0, %v23549_v0  ;;  %706 = vst.msk [vmem:[#allocation2 + $0x150] sm:$0xff] %vm662_vm0, %v23549_v0  ;;  %v645_v20 = vld [vmem:[%s19676_s21 + $0x78] sm:$0xff]  ;;  %v646_v21 = vld [vmem:[%s19676_s21 + $0x80] sm:$0xff]  ;;  %s23443_s20 = scalar_lea.hbm %s23886_s24, %s16053_s18 }
  0x70   : > { %707 = vst.msk [vmem:[#allocation2 + $0x158] sm:$0xff] %vm662_vm0, %v23549_v0  ;;  %709 = vst.msk [vmem:[#allocation2 + $0x168] sm:$0xff] %vm662_vm0, %v23549_v0  ;;  %v647_v22 = vld [vmem:[%s19676_s21 + $0x88] sm:$0xff]  ;;  %v648_v23 = vld [vmem:[%s19676_s21 + $0x90] sm:$0xff] }
  0x71   : > { %710 = vst.msk [vmem:[#allocation2 + $0x170] sm:$0xff] %vm662_vm0, %v23549_v0  ;;  %712 = vst.msk [vmem:[#allocation2 + $0x180] sm:$0xff] %vm662_vm0, %v23549_v0  ;;  %v649_v24 = vld [vmem:[%s19676_s21 + $0x98] sm:$0xff]  ;;  %v650_v26 = vld [vmem:[%s19676_s21 + $0xa0] sm:$0xff] }
  0x72   : > { %713 = vst.msk [vmem:[#allocation2 + $0x188] sm:$0xff] %vm662_vm0, %v23549_v0  ;;  %715 = vst.msk [vmem:[#allocation2 + $0x198] sm:$0xff] %vm662_vm0, %v23549_v0  ;;  %v651_v27 = vld [vmem:[%s19676_s21 + $0xa8] sm:$0xff]  ;;  %v652_v29 = vld [vmem:[%s19676_s21 + $0xb0] sm:$0xff] }
  0x73   : > { %716 = vst.msk [vmem:[#allocation2 + $0x1a0] sm:$0xff] %vm662_vm0, %v23549_v0  ;;  %719 = vst.msk [vmem:[#allocation2 + $0x19] sm:$0xff] %vm662_vm0, %v630_v3  ;;  %v653_v37 = vld [vmem:[%s19676_s21 + $0xb8] sm:$0xff]  ;;  %v654_v38 = vld [vmem:[%s19676_s21 + $0xc0] sm:$0xff] }
  0x74   : > { %666 = vst.msk [vmem:[#allocation2 + $0x10] sm:$0x3] %vm665_vm1, %v23549_v0  ;;  %669 = vst.msk [vmem:[#allocation2 + $0x28] sm:$0x3] %vm665_vm1, %v23549_v0  ;;  %v655_v39 = vld [vmem:[%s19676_s21 + $0xc8] sm:$0xff]  ;;  %v656_v40 = vld [vmem:[%s19676_s21 + $0xd0] sm:$0xff] }
  0x75   : > { %672 = vst.msk [vmem:[#allocation2 + $0x40] sm:$0x3] %vm665_vm1, %v23549_v0  ;;  %675 = vst.msk [vmem:[#allocation2 + $0x58] sm:$0x3] %vm665_vm1, %v23549_v0  ;;  %v657_v41 = vld [vmem:[%s19676_s21 + $0xd8] sm:$0xff]  ;;  %v658_v42 = vld [vmem:[%s19676_s21 + $0xe0] sm:$0xff] }
  0x76   : > { %678 = vst.msk [vmem:[#allocation2 + $0x70] sm:$0x3] %vm665_vm1, %v23549_v0  ;;  %681 = vst.msk [vmem:[#allocation2 + $0x88] sm:$0x3] %vm665_vm1, %v23549_v0  ;;  %v659_v43 = vld [vmem:[%s19676_s21 + $0xe8] sm:$0xff]  ;;  %v19775_v44 = vld [vmem:[#allocation2] sm:$0xff] }
  0x77   : > { %684 = vst.msk [vmem:[#allocation2 + $0xa0] sm:$0x3] %vm665_vm1, %v23549_v0  ;;  %687 = vst.msk [vmem:[#allocation2 + $0xb8] sm:$0x3] %vm665_vm1, %v23549_v0  ;;  %v19777_v45 = vld [vmem:[#allocation2 + $0x2] sm:$0xff] }
  0x78   : > { %690 = vst.msk [vmem:[#allocation2 + $0xd0] sm:$0x3] %vm665_vm1, %v23549_v0  ;;  %693 = vst.msk [vmem:[#allocation2 + $0xe8] sm:$0x3] %vm665_vm1, %v23549_v0  ;;  %v19818_v56 = vld [vmem:[#allocation2 + $0x8] sm:$0xff] }
  0x79   : > { %696 = vst.msk [vmem:[#allocation2 + $0x100] sm:$0x3] %vm665_vm1, %v23549_v0  ;;  %699 = vst.msk [vmem:[#allocation2 + $0x118] sm:$0x3] %vm665_vm1, %v23549_v0 }
  0x7a   : > { %702 = vst.msk [vmem:[#allocation2 + $0x130] sm:$0x3] %vm665_vm1, %v23549_v0  ;;  %705 = vst.msk [vmem:[#allocation2 + $0x148] sm:$0x3] %vm665_vm1, %v23549_v0  ;;  %v19721_v25 = vld [vmem:[#allocation2 + $0x19] sm:$0xff] }
  0x7b   : > { %708 = vst.msk [vmem:[#allocation2 + $0x160] sm:$0x3] %vm665_vm1, %v23549_v0  ;;  %711 = vst.msk [vmem:[#allocation2 + $0x178] sm:$0x3] %vm665_vm1, %v23549_v0  ;;  %v785_v5 = vld [vmem:[#allocation2 + $0x9] sm:$0xff]  ;;  %v19786_v48 = vld [vmem:[#allocation2 + $0x18] sm:$0xff] }
  0x7c   : > { %714 = vst.msk [vmem:[#allocation2 + $0x190] sm:$0x3] %vm665_vm1, %v23549_v0  ;;  %717 = vst.msk [vmem:[#allocation2 + $0x1a8] sm:$0x3] %vm665_vm1, %v23549_v0  ;;  %16924 = vmatmul.mubr.msk.f32.vlgmr.msra.gmra.mrb[0].mxu0 %vm662_vm0, %v785_v5  ;;  %v19824_v58 = vld [vmem:[#allocation2 + $0xa] sm:$0xff]  ;;  %vm13848_vm1 = vcmask 259072  }
  0x7d   : > { %720 = vst.msk [vmem:[#allocation2 + $0x21] sm:$0xff] %vm662_vm0, %v631_v6  ;;  %721 = vst.msk [vmem:[#allocation2 + $0x31] sm:$0xff] %vm662_vm0, %v632_v7  ;;  %16972 = vmatpush3.msk.msra.mxu0 %vm914_vm2, %v783_v2  ;;  %16926 = vmatprep.mubr.msk.f32.mxu0 %vm662_vm0, %v19721_v25 }
  0x7e   : > { %722 = vst.msk [vmem:[#allocation2 + $0x39] sm:$0xff] %vm662_vm0, %v633_v8  ;;  %723 = vst.msk [vmem:[#allocation2 + $0x49] sm:$0xff] %vm662_vm0, %v634_v9  ;;  %17021 = vmatprep.subr.msk.mxu0 %vm914_vm2, %v19784_v47 }
  0x7f   : > { %724 = vst.msk [vmem:[#allocation2 + $0x51] sm:$0xff] %vm662_vm0, %v635_v10  ;;  %725 = vst.msk [vmem:[#allocation2 + $0x61] sm:$0xff] %vm662_vm0, %v636_v11 }
  0x80   : > { %726 = vst.msk [vmem:[#allocation2 + $0x69] sm:$0xff] %vm662_vm0, %v637_v12  ;;  %727 = vst.msk [vmem:[#allocation2 + $0x79] sm:$0xff] %vm662_vm0, %v638_v13 }
  0x81   : > { %728 = vst.msk [vmem:[#allocation2 + $0x81] sm:$0xff] %vm662_vm0, %v639_v14  ;;  %729 = vst.msk [vmem:[#allocation2 + $0x91] sm:$0xff] %vm662_vm0, %v640_v15 }
  0x82   : > { %730 = vst.msk [vmem:[#allocation2 + $0x99] sm:$0xff] %vm662_vm0, %v641_v16  ;;  %731 = vst.msk [vmem:[#allocation2 + $0xa9] sm:$0xff] %vm662_vm0, %v642_v17 }
  0x83   : > { %732 = vst.msk [vmem:[#allocation2 + $0xb1] sm:$0xff] %vm662_vm0, %v643_v18  ;;  %733 = vst.msk [vmem:[#allocation2 + $0xc1] sm:$0xff] %vm662_vm0, %v644_v19 }
  0x84   : > { %734 = vst.msk [vmem:[#allocation2 + $0xc9] sm:$0xff] %vm662_vm0, %v645_v20  ;;  %735 = vst.msk [vmem:[#allocation2 + $0xd9] sm:$0xff] %vm662_vm0, %v646_v21  ;;  %v19730_v28 = vld [vmem:[#allocation2 + $0x21] sm:$0xff]  ;;  %v19737_v30 = vld [vmem:[#allocation2 + $0x31] sm:$0xff] }
  0x85   : > { %736 = vst.msk [vmem:[#allocation2 + $0xe1] sm:$0xff] %vm662_vm0, %v647_v22  ;;  %737 = vst.msk [vmem:[#allocation2 + $0xf1] sm:$0xff] %vm662_vm0, %v648_v23  ;;  %16927 = vmatmul.mubr.msk.f32.gmra.mrb[2].mxu0 %vm662_vm0, %v19730_v28  ;;  %v19742_v31 = vld [vmem:[#allocation2 + $0x39] sm:$0xff]  ;;  %v19744_v32 = vld [vmem:[#allocation2 + $0x49] sm:$0xff] }
  0x86   : > { %738 = vst.msk [vmem:[#allocation2 + $0xf9] sm:$0xff] %vm662_vm0, %v649_v24  ;;  %739 = vst.msk [vmem:[#allocation2 + $0x109] sm:$0xff] %vm662_vm0, %v650_v26  ;;  %16929 = vmatprep.mubr.msk.f32.mxu0 %vm662_vm0, %v19737_v30  ;;  %v19750_v33 = vld [vmem:[#allocation2 + $0x51] sm:$0xff]  ;;  %v19752_v34 = vld [vmem:[#allocation2 + $0x61] sm:$0xff] }
  0x87   : > { %740 = vst.msk [vmem:[#allocation2 + $0x111] sm:$0xff] %vm662_vm0, %v651_v27  ;;  %741 = vst.msk [vmem:[#allocation2 + $0x121] sm:$0xff] %vm662_vm0, %v652_v29  ;;  %v19754_v35 = vld [vmem:[#allocation2 + $0x69] sm:$0xff]  ;;  %v19758_v36 = vld [vmem:[#allocation2 + $0x79] sm:$0xff] }
  0x88   : > { %23670 = vst [vmem:[#allocation19_spill] sm:$0xff] %v19754_v35  ;;  %23671 = vst [vmem:[#allocation20_spill] sm:$0xff] %v19758_v36  ;;  %v19779_v46 = vld [vmem:[#allocation2 + $0x1a] sm:$0xff]  ;;  %v19798_v50 = vld [vmem:[#allocation2 + $0x91] sm:$0xff] }
  0x89   : > { %16930 = vmatmul.mubr.msk.f32.gmra.mrb[4].mxu0 %vm662_vm0, %v19742_v31  ;;  %742 = vst.msk [vmem:[#allocation2 + $0x129] sm:$0xff] %vm662_vm0, %v653_v37  ;;  %743 = vst.msk [vmem:[#allocation2 + $0x139] sm:$0xff] %vm662_vm0, %v654_v38  ;;  %v19796_v49 = vld [vmem:[#allocation2 + $0x81] sm:$0xff]  ;;  %v19804_v51 = vld [vmem:[#allocation2 + $0x99] sm:$0xff] }
  0x8a   : > { %16932 = vmatprep.mubr.msk.f32.mxu0 %vm662_vm0, %v19744_v32  ;;  %744 = vst.msk [vmem:[#allocation2 + $0x141] sm:$0xff] %vm662_vm0, %v655_v39  ;;  %745 = vst.msk [vmem:[#allocation2 + $0x151] sm:$0xff] %vm662_vm0, %v656_v40  ;;  %v19806_v52 = vld [vmem:[#allocation2 + $0xa9] sm:$0xff]  ;;  %v19812_v53 = vld [vmem:[#allocation2 + $0xb1] sm:$0xff] }
  0x8b   : > { %746 = vst.msk [vmem:[#allocation2 + $0x159] sm:$0xff] %vm662_vm0, %v657_v41  ;;  %747 = vst.msk [vmem:[#allocation2 + $0x169] sm:$0xff] %vm662_vm0, %v658_v42  ;;  %v19814_v54 = vld [vmem:[#allocation2 + $0xc1] sm:$0xff]  ;;  %v19816_v55 = vld [vmem:[#allocation2 + $0xc9] sm:$0xff] }
  0x8c   : > { %748 = vst.msk [vmem:[#allocation2 + $0x171] sm:$0xff] %vm662_vm0, %v659_v43  ;;  %23672 = vst [vmem:[#allocation21_spill] sm:$0xff] %v19796_v49  ;;  %v19822_v57 = vld [vmem:[#allocation2 + $0x20] sm:$0xff]  ;;  %v19832_v61 = vld [vmem:[#allocation2 + $0xa8] sm:$0xff] }
  0x8d   : > { %16933 = vmatmul.mubr.msk.f32.gmra.mrb[6].mxu0 %vm662_vm0, %v19750_v33  ;;  %4270 = vst.msk [vmem:[#allocation2] sm:$0xff] %vm4269_vm3, %v23549_v0  ;;  %4274 = vst.msk [vmem:[#allocation2 + $0x18] sm:$0xff] %vm4269_vm3, %v23549_v0  ;;  %v19826_v59 = vld [vmem:[#allocation2 + $0x22] sm:$0xff]  ;;  %v19830_v60 = vld [vmem:[#allocation2 + $0xd9] sm:$0xff] }
  0x8e   : > { %16935 = vmatprep.mubr.msk.f32.mxu0 %vm662_vm0, %v19752_v34  ;;  %23673 = vst [vmem:[#allocation22_spill] sm:$0xff] %v19798_v50  ;;  %23674 = vst [vmem:[#allocation23_spill] sm:$0xff] %v19804_v51  ;;  %v19834_v62 = vld [vmem:[#allocation2 + $0xb0] sm:$0xff]  ;;  %v19844_v63 = vld [vmem:[#allocation2 + $0xc0] sm:$0xff] }
  0x8f   : > { %23675 = vst [vmem:[#allocation24_spill] sm:$0xff] %v19806_v52  ;;  %23676 = vst [vmem:[#allocation25_spill] sm:$0xff] %v19812_v53  ;;  %v19846_v1 = vld [vmem:[#allocation2 + $0xc8] sm:$0xff]  ;;  %v19848_v2 = vld [vmem:[#allocation2 + $0xd8] sm:$0xff] }
  0x90   : > { %23677 = vst [vmem:[#allocation26_spill] sm:$0xff] %v19814_v54  ;;  %23678 = vst [vmem:[#allocation27_spill] sm:$0xff] %v19816_v55  ;;  %v19850_v3 = vld [vmem:[#allocation2 + $0x9a] sm:$0xff]  ;;  %v19852_v4 = vld [vmem:[#allocation2 + $0xaa] sm:$0xff] }
  0x91   : > { %16936 = vmatmul.mubr.msk.f32.gmra.mrb[8].mxu0 %vm662_vm0, %v19754_v35  ;;  %23679 = vst [vmem:[#allocation28_spill] sm:$0xff] %v19826_v59  ;;  %23680 = vst [vmem:[#allocation29_spill] sm:$0xff] %v19830_v60  ;;  %v19854_v5 = vld [vmem:[#allocation2 + $0xb2] sm:$0xff]  ;;  %v19858_v6 = vld [vmem:[#allocation2 + $0xc2] sm:$0xff] }
  0x92   : > { %16938 = vmatprep.mubr.msk.f32.mxu0 %vm662_vm0, %v19758_v36  ;;  %4271 = vst.msk [vmem:[#allocation2 + $0x8] sm:$0xff] %vm4269_vm3, %v23549_v0  ;;  %4275 = vst.msk [vmem:[#allocation2 + $0x20] sm:$0xff] %vm4269_vm3, %v23549_v0  ;;  %v19860_v7 = vld [vmem:[#allocation2 + $0xca] sm:$0xff]  ;;  %v19862_v8 = vld [vmem:[#allocation2 + $0xda] sm:$0xff] }
  0x93   : > { %4273 = vst.msk [vmem:[#allocation2 + $0x10] sm:$0x3] %vm4272_vm4, %v23549_v0  ;;  %4276 = vst.msk [vmem:[#allocation2 + $0x28] sm:$0x3] %vm4272_vm4, %v23549_v0  ;;  %v19874_v9 = vld [vmem:[#allocation2 + $0xe1] sm:$0xff]  ;;  %v19888_v12 = vld [vmem:[#allocation2 + $0xf1] sm:$0xff] }
  0x94   : > { %23681 = vst [vmem:[#allocation30_spill] sm:$0xff] %v19860_v7  ;;  %4291 = vst.msk [vmem:[#allocation2 + $0xa0] sm:$0x3] %vm4272_vm4, %v23549_v0  ;;  %v19876_v10 = vld [vmem:[#allocation2 + $0xe0] sm:$0xff]  ;;  %v19896_v13 = vld [vmem:[#allocation2 + $0xf0] sm:$0xff] }
  0x95   : > { %16939 = vmatmul.mubr.msk.f32.gmra.mrb[10].mxu0 %vm662_vm0, %v19796_v49  ;;  %4292 = vst.msk [vmem:[#allocation2 + $0xa8] sm:$0xff] %vm4269_vm3, %v23549_v0  ;;  %4293 = vst.msk [vmem:[#allocation2 + $0xb0] sm:$0xff] %vm4269_vm3, %v23549_v0  ;;  %v19878_v11 = vld [vmem:[#allocation2 + $0xe2] sm:$0xff]  ;;  %v19898_v14 = vld [vmem:[#allocation2 + $0xf2] sm:$0xff] }
  0x96   : > { %16941 = vmatprep.mubr.msk.f32.mxu0 %vm662_vm0, %v19798_v50  ;;  %4294 = vst.msk [vmem:[#allocation2 + $0xb8] sm:$0x3] %vm4272_vm4, %v23549_v0  ;;  %23682 = vst [vmem:[#allocation31_spill] sm:$0xff] %v19874_v9  ;;  %v19902_v15 = vld [vmem:[#allocation2 + $0xf9] sm:$0xff]  ;;  %v19910_v18 = vld [vmem:[#allocation2 + $0x109] sm:$0xff] }
  0x97   : > { %4295 = vst.msk [vmem:[#allocation2 + $0xc0] sm:$0xff] %vm4269_vm3, %v23549_v0  ;;  %4296 = vst.msk [vmem:[#allocation2 + $0xc8] sm:$0xff] %vm4269_vm3, %v23549_v0  ;;  %v19904_v16 = vld [vmem:[#allocation2 + $0xf8] sm:$0xff]  ;;  %v19918_v19 = vld [vmem:[#allocation2 + $0x108] sm:$0xff] }
  0x98   : > { %4297 = vst.msk [vmem:[#allocation2 + $0xd0] sm:$0x3] %vm4272_vm4, %v23549_v0  ;;  %23683 = vst [vmem:[#allocation32_spill] sm:$0xff] %v19888_v12  ;;  %v19906_v17 = vld [vmem:[#allocation2 + $0xfa] sm:$0xff]  ;;  %v19920_v20 = vld [vmem:[#allocation2 + $0x10a] sm:$0xff] }
  0x99   : > { %16942 = vmatmul.mubr.msk.f32.gmra.mrb[12].mxu0 %vm662_vm0, %v19804_v51  ;;  %4298 = vst.msk [vmem:[#allocation2 + $0xd8] sm:$0xff] %vm4269_vm3, %v23549_v0  ;;  %4299 = vst.msk [vmem:[#allocation2 + $0xe0] sm:$0xff] %vm4269_vm3, %v23549_v0  ;;  %v19924_v21 = vld [vmem:[#allocation2 + $0x111] sm:$0xff]  ;;  %v19932_v24 = vld [vmem:[#allocation2 + $0x121] sm:$0xff] }
  0x9a   : > { %16944 = vmatprep.mubr.msk.f32.mxu0 %vm662_vm0, %v19806_v52  ;;  %4300 = vst.msk [vmem:[#allocation2 + $0xe8] sm:$0x3] %vm4272_vm4, %v23549_v0  ;;  %23684 = vst [vmem:[#allocation33_spill] sm:$0xff] %v19902_v15  ;;  %v19926_v22 = vld [vmem:[#allocation2 + $0x110] sm:$0xff]  ;;  %v19940_v26 = vld [vmem:[#allocation2 + $0x120] sm:$0xff] }
  0x9b   : > { %4301 = vst.msk [vmem:[#allocation2 + $0xf0] sm:$0xff] %vm4269_vm3, %v23549_v0  ;;  %23685 = vst [vmem:[#allocation34_spill] sm:$0xff] %v19910_v18  ;;  %v19928_v23 = vld [vmem:[#allocation2 + $0x112] sm:$0xff]  ;;  %v19942_v27 = vld [vmem:[#allocation2 + $0x122] sm:$0xff] }
  0x9c   : > { %4303 = vst.msk [vmem:[#allocation2 + $0x100] sm:$0x3] %vm4272_vm4, %v23549_v0  ;;  %23686 = vst [vmem:[#allocation35_spill] sm:$0xff] %v19924_v21  ;;  %v19946_v29 = vld [vmem:[#allocation2 + $0x129] sm:$0xff]  ;;  %v19954_v39 = vld [vmem:[#allocation2 + $0x139] sm:$0xff] }
  0x9d   : > { %16945 = vmatmul.mubr.msk.f32.gmra.mrb[14].mxu0 %vm662_vm0, %v19812_v53  ;;  %4302 = vst.msk [vmem:[#allocation2 + $0xf8] sm:$0xff] %vm4269_vm3, %v23549_v0  ;;  %4304 = vst.msk [vmem:[#allocation2 + $0x108] sm:$0xff] %vm4269_vm3, %v23549_v0  ;;  %v19948_v37 = vld [vmem:[#allocation2 + $0x128] sm:$0xff]  ;;  %v19962_v40 = vld [vmem:[#allocation2 + $0x138] sm:$0xff] }
  0x9e   : > { %16947 = vmatprep.mubr.msk.f32.mxu0 %vm662_vm0, %v19814_v54  ;;  %23687 = vst [vmem:[#allocation36_spill] sm:$0xff] %v19932_v24  ;;  %4306 = vst.msk [vmem:[#allocation2 + $0x118] sm:$0x3] %vm4272_vm4, %v23549_v0  ;;  %v19950_v38 = vld [vmem:[#allocation2 + $0x12a] sm:$0xff]  ;;  %v19964_v41 = vld [vmem:[#allocation2 + $0x13a] sm:$0xff] }
  0x9f   : > { %4305 = vst.msk [vmem:[#allocation2 + $0x110] sm:$0xff] %vm4269_vm3, %v23549_v0  ;;  %23688 = vst [vmem:[#allocation37_spill] sm:$0xff] %v19946_v29  ;;  %v19968_v42 = vld [vmem:[#allocation2 + $0x141] sm:$0xff]  ;;  %v20016_v54 = vld [vmem:[#allocation2 + $0x172] sm:$0xff] }
  0xa0   : > { %23689 = vst [vmem:[#allocation38_spill] sm:$0xff] %v19950_v38  ;;  %4307 = vst.msk [vmem:[#allocation2 + $0x120] sm:$0xff] %vm4269_vm3, %v23549_v0  ;;  %v19970_v43 = vld [vmem:[#allocation2 + $0x140] sm:$0xff]  ;;  %v20059_v53 = vld [vmem:[#allocation2 + $0x78] sm:$0xff] }
  0xa1   : > { %16948 = vmatmul.mubr.msk.f32.gmra.mrb[16].mxu0 %vm662_vm0, %v19816_v55  ;;  %23690 = vst [vmem:[#allocation39_spill] sm:$0xff] %v19954_v39  ;;  %4309 = vst.msk [vmem:[#allocation2 + $0x130] sm:$0x3] %vm4272_vm4, %v23549_v0  ;;  %v20014_v55 = vld [vmem:[#allocation2 + $0x170] sm:$0xff]  ;;  %v20065_v52 = vld [vmem:[#allocation2 + $0x80] sm:$0xff] }
  0xa2   : > { %16950 = vmatprep.mubr.msk.f32.mxu0 %vm662_vm0, %v19830_v60  ;;  %4308 = vst.msk [vmem:[#allocation2 + $0x128] sm:$0xff] %vm4269_vm3, %v23549_v0  ;;  %23691 = vst [vmem:[#allocation40_spill] sm:$0xff] %v19962_v40  ;;  %v20012_v60 = vld [vmem:[#allocation2 + $0x171] sm:$0xff] }
  0xa3   : > { %23692 = vst [vmem:[#allocation41_spill] sm:$0xff] %v19968_v42  ;;  %23693 = vst [vmem:[#allocation42_spill] sm:$0xff] %v19970_v43  ;;  %v20067_v51 = vld [vmem:[#allocation2 + $0x90] sm:$0xff]  ;;  %v20073_v50 = vld [vmem:[#allocation2 + $0x98] sm:$0xff] }
  0xa4   : > { %4310 = vst.msk [vmem:[#allocation2 + $0x138] sm:$0xff] %vm4269_vm3, %v23549_v0  ;;  %23700 = vst [vmem:[#allocation49_spill] sm:$0xff] %v20012_v60  ;;  %v660_v49 = vld [vmem:[%s19676_s21 + $0xf0] sm:$0xff]  ;;  %v661_v36 = vld [vmem:[%s19676_s21 + $0xf8] sm:$0xff]  ;;  %s23883_s21 = sld [smem:[#allocation73_spill]] }
  0xa5   : > { %16951 = vmatmul.mubr.msk.f32.gmra.mrb[18].mxu0 %vm662_vm0, %v19874_v9  ;;  %v19998_v9 = vld [vmem:[#allocation2 + $0x169] sm:$0xff]  ;;  %4318 = vst.msk [vmem:[#allocation2 + $0x178] sm:$0x3] %vm4272_vm4, %v23549_v0 }
  0xa6   : > { %16953 = vmatprep.mubr.msk.f32.mxu0 %vm662_vm0, %v19888_v12  ;;  %v19994_v12 = vld [vmem:[#allocation2 + $0x15a] sm:$0xff]  ;;  %23699 = vst [vmem:[#allocation48_spill] sm:$0xff] %v19998_v9  ;;  %749 = vst.msk [vmem:[#allocation2 + $0x181] sm:$0xff] %vm662_vm0, %v660_v49  ;;  %v20133_v35 = vld [vmem:[#allocation2 + $0x4a] sm:$0xff] }
  0xa7   : > { %750 = vst.msk [vmem:[#allocation2 + $0x189] sm:$0xff] %vm662_vm0, %v661_v36  ;;  %v2280_v49 = vld [vmem:[#allocation3 + $0x10] sm:$0xf]  ;;  %v20124_v36 = vld [vmem:[#allocation2 + $0x32] sm:$0xff]  ;;  %23703 = vst [vmem:[#allocation52_spill] sm:$0xff] %v20133_v35 }
  0xa8   : > { %23701 = vst [vmem:[#allocation50_spill] sm:$0xff] %v20124_v36 }
  0xa9   : > { %16954 = vmatmul.mubr.msk.f32.gmra.mrb[20].mxu0 %vm662_vm0, %v19902_v15  ;;  %v19992_v15 = vld [vmem:[#allocation2 + $0x158] sm:$0xff] }
  0xaa   : > { %16956 = vmatprep.mubr.msk.f32.mxu0 %vm662_vm0, %v19910_v18  ;;  %v19990_v18 = vld [vmem:[#allocation2 + $0x159] sm:$0xff]  ;;  %23698 = vst [vmem:[#allocation47_spill] sm:$0xff] %v19992_v15 }
  0xab   : > { %23697 = vst [vmem:[#allocation46_spill] sm:$0xff] %v19990_v18  ;;  %4315 = vst.msk [vmem:[#allocation2 + $0x160] sm:$0x3] %vm4272_vm4, %v23549_v0 }
  0xad   : > { %16957 = vmatmul.mubr.msk.f32.gmra.mrb[22].mxu0 %vm662_vm0, %v19924_v21  ;;  %v19976_v21 = vld [vmem:[#allocation2 + $0x151] sm:$0xff] }
  0xae   : > { %16959 = vmatprep.mubr.msk.f32.mxu0 %vm662_vm0, %v19932_v24  ;;  %v19972_v24 = vld [vmem:[#allocation2 + $0x142] sm:$0xff]  ;;  %23695 = vst [vmem:[#allocation44_spill] sm:$0xff] %v19976_v21 }
  0xaf   : > { %23694 = vst [vmem:[#allocation43_spill] sm:$0xff] %v19972_v24  ;;  %4312 = vst.msk [vmem:[#allocation2 + $0x148] sm:$0x3] %vm4272_vm4, %v23549_v0 }
  0xb0   : > { %4311 = vst.msk [vmem:[#allocation2 + $0x140] sm:$0xff] %vm4269_vm3, %v23549_v0 }
  0xb1   : > { %16960 = vmatmul.mubr.msk.f32.gmra.mrb[24].mxu0 %vm662_vm0, %v19946_v29  ;;  %v19986_v29 = vld [vmem:[#allocation2 + $0x152] sm:$0xff] }
  0xb2   : > { %16962 = vmatprep.mubr.msk.f32.mxu0 %vm662_vm0, %v19954_v39  ;;  %v19984_v39 = vld [vmem:[#allocation2 + $0x150] sm:$0xff]  ;;  %4314 = vst.msk [vmem:[#allocation2 + $0x158] sm:$0xff] %vm4269_vm3, %v23549_v0 }
  0xb3   : > { %23696 = vst [vmem:[#allocation45_spill] sm:$0xff] %v19984_v39  ;;  %4313 = vst.msk [vmem:[#allocation2 + $0x150] sm:$0xff] %vm4269_vm3, %v23549_v0 }
  0xb5   : > { %16963 = vmatmul.mubr.msk.f32.gmra.mrb[26].mxu0 %vm662_vm0, %v19968_v42  ;;  %v20008_v42 = vld [vmem:[#allocation2 + $0x16a] sm:$0xff] }
  0xb6   : > { %16965 = vmatprep.mubr.msk.f32.mxu0 %vm662_vm0, %v19976_v21  ;;  %v20006_v21 = vld [vmem:[#allocation2 + $0x168] sm:$0xff]  ;;  %4317 = vst.msk [vmem:[#allocation2 + $0x170] sm:$0xff] %vm4269_vm3, %v23549_v0 }
  0xb7   : > { %4316 = vst.msk [vmem:[#allocation2 + $0x168] sm:$0xff] %vm4269_vm3, %v23549_v0  ;;  %v20043_v0 = vld [vmem:[#allocation2 + $0x48] sm:$0xff] }
  0xb9   : > { %16966 = vmatmul.mubr.msk.f32.gmra.mrb[28].mxu0 %vm662_vm0, %v19990_v18  ;;  %v20034_v18 = vld [vmem:[#allocation2 + $0x30] sm:$0xff] }
  0xba   : > { %16968 = vmatprep.mubr.msk.f32.mxu0 %vm662_vm0, %v19998_v9  ;;  %v1890_v9 = vld [vmem:[#allocation3 + $0xc] sm:$0xf] }
  0xbd   : > { %16969 = vmatmul.mubr.msk.f32.gmra.mrb[30].mxu0 %vm662_vm0, %v20012_v60  ;;  %v20057_v60 = vld [vmem:[#allocation2 + $0x68] sm:$0xff] }
  0xbe   : > { %16973 = vmatprep.mubr.msk.f32.mxu0 %vm662_vm0, %v19775_v44  ;;  %v20041_v44 = vld [vmem:[#allocation2 + $0x38] sm:$0xff] }
  0xc1   : > { %16974 = vmatmul.mubr.msk.f32.vlgmr.msra.gmra.mrb[0].mxu0 %vm662_vm0, %v19818_v56  ;;  %v20051_v56 = vld [vmem:[#allocation2 + $0x60] sm:$0xff] }
  0xc2   : > { %17022 = vmatpush3.msk.msra.mxu0 %vm914_vm2, %v19784_v47  ;;  %16976 = vmatprep.mubr.msk.f32.mxu0 %vm662_vm0, %v19786_v48  ;;  %v20049_v47 = vld [vmem:[#allocation2 + $0x50] sm:$0xff] }
  0xc3   : > { %17071 = vmatprep.subr.msk.mxu0 %vm914_vm2, %v1890_v9 }
  0xc5   : > { %16977 = vmatmul.mubr.msk.f32.gmra.mrb[2].mxu0 %vm662_vm0, %v19822_v57 }
  0xc6   : > { %16979 = vmatprep.mubr.msk.f32.mxu0 %vm662_vm0, %v20034_v18 }
  0xc9   : > { %16980 = vmatmul.mubr.msk.f32.gmra.mrb[4].mxu0 %vm662_vm0, %v20041_v44 }
  0xca   : > { %16982 = vmatprep.mubr.msk.f32.mxu0 %vm662_vm0, %v20043_v0 }
  0xcd   : > { %16983 = vmatmul.mubr.msk.f32.gmra.mrb[6].mxu0 %vm662_vm0, %v20049_v47 }
  0xce   : > { %16985 = vmatprep.mubr.msk.f32.mxu0 %vm662_vm0, %v20051_v56 }
  0xd1   : > { %16986 = vmatmul.mubr.msk.f32.gmra.mrb[8].mxu0 %vm662_vm0, %v20057_v60 }
  0xd2   : > { %16988 = vmatprep.mubr.msk.f32.mxu0 %vm662_vm0, %v20059_v53 }
  0xd5   : > { %16989 = vmatmul.mubr.msk.f32.gmra.mrb[10].mxu0 %vm662_vm0, %v20065_v52 }
  0xd6   : > { %16991 = vmatprep.mubr.msk.f32.mxu0 %vm662_vm0, %v20067_v51 }
  0xd9   : > { %16992 = vmatmul.mubr.msk.f32.gmra.mrb[12].mxu0 %vm662_vm0, %v20073_v50 }
  0xda   : > { %16994 = vmatprep.mubr.msk.f32.mxu0 %vm662_vm0, %v19832_v61 }
  0xdd   : > { %16995 = vmatmul.mubr.msk.f32.gmra.mrb[14].mxu0 %vm662_vm0, %v19834_v62 }
  0xde   : > { %16997 = vmatprep.mubr.msk.f32.mxu0 %vm662_vm0, %v19844_v63 }
  0xe1   : > { %16998 = vmatmul.mubr.msk.f32.gmra.mrb[16].mxu0 %vm662_vm0, %v19846_v1 }
  0xe2   : > { %17000 = vmatprep.mubr.msk.f32.mxu0 %vm662_vm0, %v19848_v2 }
  0xe5   : > { %17001 = vmatmul.mubr.msk.f32.gmra.mrb[18].mxu0 %vm662_vm0, %v19876_v10 }
  0xe6   : > { %17003 = vmatprep.mubr.msk.f32.mxu0 %vm662_vm0, %v19896_v13 }
  0xe9   : > { %17004 = vmatmul.mubr.msk.f32.gmra.mrb[20].mxu0 %vm662_vm0, %v19904_v16 }
  0xea   : > { %17006 = vmatprep.mubr.msk.f32.mxu0 %vm662_vm0, %v19918_v19 }
  0xed   : > { %17007 = vmatmul.mubr.msk.f32.gmra.mrb[22].mxu0 %vm662_vm0, %v19926_v22 }
  0xee   : > { %17009 = vmatprep.mubr.msk.f32.mxu0 %vm662_vm0, %v19940_v26 }
  0xf1   : > { %17010 = vmatmul.mubr.msk.f32.gmra.mrb[24].mxu0 %vm662_vm0, %v19948_v37 }
  0xf2   : > { %17012 = vmatprep.mubr.msk.f32.mxu0 %vm662_vm0, %v19962_v40 }
  0xf5   : > { %17013 = vmatmul.mubr.msk.f32.gmra.mrb[26].mxu0 %vm662_vm0, %v19970_v43 }
  0xf6   : > { %17015 = vmatprep.mubr.msk.f32.mxu0 %vm662_vm0, %v19984_v39 }
  0xf9   : > { %17016 = vmatmul.mubr.msk.f32.gmra.mrb[28].mxu0 %vm662_vm0, %v19992_v15 }
  0xfa   : > { %17018 = vmatprep.mubr.msk.f32.mxu0 %vm662_vm0, %v20006_v21 }
  0xfd   : > { %17019 = vmatmul.mubr.msk.f32.gmra.mrb[30].mxu0 %vm662_vm0, %v20014_v55 }
  0xfe   : > { %17023 = vmatprep.mubr.msk.f32.mxu0 %vm662_vm0, %v19777_v45  ;;  %v20131_v45 = vld [vmem:[#allocation2 + $0x3a] sm:$0xff] }
  0xff   : > { %23702 = vst [vmem:[#allocation51_spill] sm:$0xff] %v20131_v45 }
 0x101   : > { %17024 = vmatmul.mubr.msk.f32.vlgmr.msra.gmra.mrb[0].mxu0 %vm662_vm0, %v19824_v58  ;;  %v20139_v58 = vld [vmem:[#allocation2 + $0x52] sm:$0xff] }
 0x102   : > { %17072 = vmatpush3.msk.msra.mxu0 %vm914_vm2, %v1890_v9  ;;  %17026 = vmatprep.mubr.msk.f32.mxu0 %vm662_vm0, %v19779_v46  ;;  %23704 = vst [vmem:[#allocation53_spill] sm:$0xff] %v20139_v58  ;;  %v20141_v9 = vld [vmem:[#allocation2 + $0x62] sm:$0xff] }
 0x103   : > { %17121 = vmatprep.subr.msk.mxu0 %vm914_vm2, %v2280_v49 }
 0x105   : > { %17027 = vmatmul.mubr.msk.f32.gmra.mrb[2].mxu0 %vm662_vm0, %v19826_v59  ;;  %v20149_v59 = vld [vmem:[#allocation2 + $0x7a] sm:$0xff] }
 0x106   : > { %17029 = vmatprep.mubr.msk.f32.mxu0 %vm662_vm0, %v20124_v36  ;;  %v20147_v36 = vld [vmem:[#allocation2 + $0x6a] sm:$0xff] }
 0x109   : > { %17030 = vmatmul.mubr.msk.f32.gmra.mrb[4].mxu0 %vm662_vm0, %v20131_v45  ;;  %v20157_v45 = vld [vmem:[#allocation2 + $0x92] sm:$0xff] }
 0x10a   : > { %17032 = vmatprep.mubr.msk.f32.mxu0 %vm662_vm0, %v20133_v35  ;;  %v20155_v35 = vld [vmem:[#allocation2 + $0x82] sm:$0xff] }
 0x10d   : > { %17033 = vmatmul.mubr.msk.f32.gmra.mrb[6].mxu0 %vm662_vm0, %v20139_v58 }
 0x10e   : > { %17035 = vmatprep.mubr.msk.f32.mxu0 %vm662_vm0, %v20141_v9 }
 0x111   : > { %17036 = vmatmul.mubr.msk.f32.gmra.mrb[8].mxu0 %vm662_vm0, %v20147_v36 }
 0x112   : > { %17038 = vmatprep.mubr.msk.f32.mxu0 %vm662_vm0, %v20149_v59 }
 0x115   : > { %17039 = vmatmul.mubr.msk.f32.gmra.mrb[10].mxu0 %vm662_vm0, %v20155_v35 }
 0x116   : > { %17041 = vmatprep.mubr.msk.f32.mxu0 %vm662_vm0, %v20157_v45 }
 0x119   : > { %17042 = vmatmul.mubr.msk.f32.gmra.mrb[12].mxu0 %vm662_vm0, %v19850_v3 }
 0x11a   : > { %17044 = vmatprep.mubr.msk.f32.mxu0 %vm662_vm0, %v19852_v4 }
 0x11d   : > { %17045 = vmatmul.mubr.msk.f32.gmra.mrb[14].mxu0 %vm662_vm0, %v19854_v5 }
 0x11e   : > { %17047 = vmatprep.mubr.msk.f32.mxu0 %vm662_vm0, %v19858_v6 }
 0x121   : > { %17048 = vmatmul.mubr.msk.f32.gmra.mrb[16].mxu0 %vm662_vm0, %v19860_v7 }
 0x122   : > { %17050 = vmatprep.mubr.msk.f32.mxu0 %vm662_vm0, %v19862_v8 }
 0x125   : > { %17051 = vmatmul.mubr.msk.f32.gmra.mrb[18].mxu0 %vm662_vm0, %v19878_v11 }
 0x126   : > { %17053 = vmatprep.mubr.msk.f32.mxu0 %vm662_vm0, %v19898_v14 }
 0x129   : > { %17054 = vmatmul.mubr.msk.f32.gmra.mrb[20].mxu0 %vm662_vm0, %v19906_v17 }
 0x12a   : > { %17056 = vmatprep.mubr.msk.f32.mxu0 %vm662_vm0, %v19920_v20 }
 0x12d   : > { %17057 = vmatmul.mubr.msk.f32.gmra.mrb[22].mxu0 %vm662_vm0, %v19928_v23 }
 0x12e   : > { %17059 = vmatprep.mubr.msk.f32.mxu0 %vm662_vm0, %v19942_v27 }
 0x131   : > { %17060 = vmatmul.mubr.msk.f32.gmra.mrb[24].mxu0 %vm662_vm0, %v19950_v38  ;;  %v2670_v38 = vld [vmem:[#allocation3 + $0x14] sm:$0xf] }
 0x132   : > { %17062 = vmatprep.mubr.msk.f32.mxu0 %vm662_vm0, %v19964_v41 }
 0x135   : > { %17063 = vmatmul.mubr.msk.f32.gmra.mrb[26].mxu0 %vm662_vm0, %v19972_v24 }
 0x136   : > { %17065 = vmatprep.mubr.msk.f32.mxu0 %vm662_vm0, %v19986_v29 }
 0x139   : > { %17066 = vmatmul.mubr.msk.f32.gmra.mrb[28].mxu0 %vm662_vm0, %v19994_v12 }
 0x13a   : > { %17068 = vmatprep.mubr.msk.f32.mxu0 %vm662_vm0, %v20008_v42 }
 0x13d   : > { %17069 = vmatmul.mubr.msk.f32.gmra.mrb[30].mxu0 %vm662_vm0, %v20016_v54 }
 0x13e   : > { %17073 = vmatprep.mubr.msk.f32.mxu0 %vm662_vm0, %v19786_v48  ;;  %v20261_v48 = vld [vmem:[#allocation2 + $0x180] sm:$0xff] }
 0x13f   : > { %23705 = vst [vmem:[#allocation54_spill] sm:$0xff] %v20261_v48 }
 0x141   : > { %17074 = vmatmul.mubr.msk.f32.vlgmr.msra.gmra.mrb[0].mxu0 %vm662_vm0, %v19822_v57  ;;  %v20265_v57 = vld [vmem:[#allocation2 + $0x181] sm:$0xff] }
 0x142   : > { %17122 = vmatpush3.msk.msra.mxu0 %vm914_vm2, %v2280_v49  ;;  %17076 = vmatprep.mubr.msk.f32.mxu0 %vm662_vm0, %v20034_v18  ;;  %23706 = vst [vmem:[#allocation55_spill] sm:$0xff] %v20265_v57  ;;  %v20267_v49 = vld [vmem:[#allocation2 + $0x182] sm:$0xff] }
 0x143   : > { %17171 = vmatprep.subr.msk.mxu0 %vm914_vm2, %v2670_v38 }
 0x145   : > { %17077 = vmatmul.mubr.msk.f32.gmra.mrb[2].mxu0 %vm662_vm0, %v20041_v44 }
 0x146   : > { %17079 = vmatprep.mubr.msk.f32.mxu0 %vm662_vm0, %v20043_v0 }
 0x149   : > { %17080 = vmatmul.mubr.msk.f32.gmra.mrb[4].mxu0 %vm662_vm0, %v20049_v47 }
 0x14a   : > { %17082 = vmatprep.mubr.msk.f32.mxu0 %vm662_vm0, %v20051_v56 }
 0x14d   : > { %17083 = vmatmul.mubr.msk.f32.gmra.mrb[6].mxu0 %vm662_vm0, %v20057_v60 }
 0x14e   : > { %17085 = vmatprep.mubr.msk.f32.mxu0 %vm662_vm0, %v20059_v53 }
 0x151   : > { %17086 = vmatmul.mubr.msk.f32.gmra.mrb[8].mxu0 %vm662_vm0, %v20065_v52 }
 0x152   : > { %17088 = vmatprep.mubr.msk.f32.mxu0 %vm662_vm0, %v20067_v51 }
 0x155   : > { %17089 = vmatmul.mubr.msk.f32.gmra.mrb[10].mxu0 %vm662_vm0, %v20073_v50 }
 0x156   : > { %17091 = vmatprep.mubr.msk.f32.mxu0 %vm662_vm0, %v19832_v61 }
 0x159   : > { %17092 = vmatmul.mubr.msk.f32.gmra.mrb[12].mxu0 %vm662_vm0, %v19834_v62 }
 0x15a   : > { %17094 = vmatprep.mubr.msk.f32.mxu0 %vm662_vm0, %v19844_v63 }
 0x15d   : > { %17095 = vmatmul.mubr.msk.f32.gmra.mrb[14].mxu0 %vm662_vm0, %v19846_v1 }
 0x15e   : > { %17097 = vmatprep.mubr.msk.f32.mxu0 %vm662_vm0, %v19848_v2 }
 0x161   : > { %17098 = vmatmul.mubr.msk.f32.gmra.mrb[16].mxu0 %vm662_vm0, %v19876_v10 }
 0x162   : > { %17100 = vmatprep.mubr.msk.f32.mxu0 %vm662_vm0, %v19896_v13 }
 0x165   : > { %17101 = vmatmul.mubr.msk.f32.gmra.mrb[18].mxu0 %vm662_vm0, %v19904_v16 }
 0x166   : > { %17103 = vmatprep.mubr.msk.f32.mxu0 %vm662_vm0, %v19918_v19 }
 0x169   : > { %17104 = vmatmul.mubr.msk.f32.gmra.mrb[20].mxu0 %vm662_vm0, %v19926_v22 }
 0x16a   : > { %17106 = vmatprep.mubr.msk.f32.mxu0 %vm662_vm0, %v19940_v26 }
 0x16d   : > { %17107 = vmatmul.mubr.msk.f32.gmra.mrb[22].mxu0 %vm662_vm0, %v19948_v37 }
 0x16e   : > { %17109 = vmatprep.mubr.msk.f32.mxu0 %vm662_vm0, %v19962_v40  ;;  %v23708_v40 = vmov 0.0  }
 0x16f   : > { %4319 = vst.msk [vmem:[#allocation2 + $0x180] sm:$0xff] %vm4269_vm3, %v23708_v40 }
 0x171   : > { %17110 = vmatmul.mubr.msk.f32.gmra.mrb[24].mxu0 %vm662_vm0, %v19970_v43  ;;  %v20271_v43 = vld [vmem:[#allocation2 + $0x188] sm:$0xff] }
 0x172   : > { %17112 = vmatprep.mubr.msk.f32.mxu0 %vm662_vm0, %v19984_v39  ;;  %v20273_v39 = vld [vmem:[#allocation2 + $0x189] sm:$0xff] }
 0x173   : > { %23707 = vst [vmem:[#allocation56_spill] sm:$0xff] %v20273_v39 }
 0x175   : > { %17113 = vmatmul.mubr.msk.f32.gmra.mrb[26].mxu0 %vm662_vm0, %v19992_v15  ;;  %v20275_v15 = vld [vmem:[#allocation2 + $0x18a] sm:$0xff] }
 0x176   : > { %17115 = vmatprep.mubr.msk.f32.mxu0 %vm662_vm0, %v20006_v21  ;;  %4321 = vst.msk [vmem:[#allocation2 + $0x190] sm:$0x3] %vm4272_vm4, %v23708_v40 }
 0x177   : > { %4320 = vst.msk [vmem:[#allocation2 + $0x188] sm:$0xff] %vm4269_vm3, %v23708_v40 }
 0x179   : > { %17116 = vmatmul.mubr.msk.f32.gmra.mrb[28].mxu0 %vm662_vm0, %v20014_v55 }
 0x17a   : > { %17118 = vmatprep.mubr.msk.f32.mxu0 %vm662_vm0, %v20261_v48  ;;  %v3061_v48 = vld [vmem:[#allocation3 + $0x18] sm:$0xf] }
 0x17d   : > { %17119 = vmatmul.mubr.msk.f32.gmra.mrb[30].mxu0 %vm662_vm0, %v20271_v43 }
 0x17e   : > { %17123 = vmatprep.mubr.msk.f32.mxu0 %vm662_vm0, %v19721_v25  ;;  %v23709_v25 = vld [vmem:[#allocation19_spill] sm:$0xff] }
 0x181   : > { %17124 = vmatmul.mubr.msk.f32.vlgmr.msra.gmra.mrb[0].mxu0 %vm662_vm0, %v19730_v28  ;;  %v23710_v28 = vld [vmem:[#allocation20_spill] sm:$0xff] }
 0x182   : > { %17172 = vmatpush3.msk.msra.mxu0 %vm914_vm2, %v2670_v38  ;;  %17126 = vmatprep.mubr.msk.f32.mxu0 %vm662_vm0, %v19737_v30  ;;  %v23711_v30 = vld [vmem:[#allocation21_spill] sm:$0xff]  ;;  %v23712_v38 = vld [vmem:[#allocation22_spill] sm:$0xff] }
 0x183   : > { %17221 = vmatprep.subr.msk.mxu0 %vm914_vm2, %v3061_v48 }
 0x185   : > { %17127 = vmatmul.mubr.msk.f32.gmra.mrb[2].mxu0 %vm662_vm0, %v19742_v31  ;;  %v23713_v31 = vld [vmem:[#allocation23_spill] sm:$0xff] }
 0x186   : > { %17129 = vmatprep.mubr.msk.f32.mxu0 %vm662_vm0, %v19744_v32  ;;  %v23714_v32 = vld [vmem:[#allocation24_spill] sm:$0xff] }
 0x189   : > { %17130 = vmatmul.mubr.msk.f32.gmra.mrb[4].mxu0 %vm662_vm0, %v19750_v33  ;;  %v23715_v33 = vld [vmem:[#allocation25_spill] sm:$0xff] }
 0x18a   : > { %17132 = vmatprep.mubr.msk.f32.mxu0 %vm662_vm0, %v19752_v34  ;;  %v23716_v34 = vld [vmem:[#allocation26_spill] sm:$0xff] }
 0x18d   : > { %17133 = vmatmul.mubr.msk.f32.gmra.mrb[6].mxu0 %vm662_vm0, %v23709_v25  ;;  %v23717_v25 = vld [vmem:[#allocation27_spill] sm:$0xff] }
 0x18e   : > { %17135 = vmatprep.mubr.msk.f32.mxu0 %vm662_vm0, %v23710_v28  ;;  %v23718_v28 = vld [vmem:[#allocation29_spill] sm:$0xff] }
 0x191   : > { %17136 = vmatmul.mubr.msk.f32.gmra.mrb[8].mxu0 %vm662_vm0, %v23711_v30  ;;  %v23719_v30 = vld [vmem:[#allocation31_spill] sm:$0xff] }
 0x192   : > { %17138 = vmatprep.mubr.msk.f32.mxu0 %vm662_vm0, %v23712_v38  ;;  %v23720_v38 = vld [vmem:[#allocation32_spill] sm:$0xff] }
 0x195   : > { %17139 = vmatmul.mubr.msk.f32.gmra.mrb[10].mxu0 %vm662_vm0, %v23713_v31  ;;  %v23721_v31 = vld [vmem:[#allocation33_spill] sm:$0xff] }
 0x196   : > { %17141 = vmatprep.mubr.msk.f32.mxu0 %vm662_vm0, %v23714_v32  ;;  %v23722_v32 = vld [vmem:[#allocation34_spill] sm:$0xff] }
 0x199   : > { %17142 = vmatmul.mubr.msk.f32.gmra.mrb[12].mxu0 %vm662_vm0, %v23715_v33  ;;  %v23723_v33 = vld [vmem:[#allocation35_spill] sm:$0xff] }
 0x19a   : > { %17144 = vmatprep.mubr.msk.f32.mxu0 %vm662_vm0, %v23716_v34  ;;  %v23724_v34 = vld [vmem:[#allocation36_spill] sm:$0xff] }
 0x19d   : > { %17145 = vmatmul.mubr.msk.f32.gmra.mrb[14].mxu0 %vm662_vm0, %v23717_v25  ;;  %v23725_v25 = vld [vmem:[#allocation37_spill] sm:$0xff] }
 0x19e   : > { %17147 = vmatprep.mubr.msk.f32.mxu0 %vm662_vm0, %v23718_v28  ;;  %v23726_v28 = vld [vmem:[#allocation39_spill] sm:$0xff] }
 0x1a1   : > { %17148 = vmatmul.mubr.msk.f32.gmra.mrb[16].mxu0 %vm662_vm0, %v23719_v30  ;;  %v23727_v30 = vld [vmem:[#allocation41_spill] sm:$0xff] }
 0x1a2   : > { %17150 = vmatprep.mubr.msk.f32.mxu0 %vm662_vm0, %v23720_v38  ;;  %v23728_v38 = vld [vmem:[#allocation44_spill] sm:$0xff] }
 0x1a5   : > { %17151 = vmatmul.mubr.msk.f32.gmra.mrb[18].mxu0 %vm662_vm0, %v23721_v31  ;;  %v23729_v31 = vld [vmem:[#allocation46_spill] sm:$0xff] }
 0x1a6   : > { %17153 = vmatprep.mubr.msk.f32.mxu0 %vm662_vm0, %v23722_v32  ;;  %v23730_v32 = vld [vmem:[#allocation48_spill] sm:$0xff] }
 0x1a9   : > { %17154 = vmatmul.mubr.msk.f32.gmra.mrb[20].mxu0 %vm662_vm0, %v23723_v33  ;;  %v23731_v33 = vld [vmem:[#allocation49_spill] sm:$0xff] }
 0x1aa   : > { %17156 = vmatprep.mubr.msk.f32.mxu0 %vm662_vm0, %v23724_v34 }
 0x1ad   : > { %17157 = vmatmul.mubr.msk.f32.gmra.mrb[22].mxu0 %vm662_vm0, %v23725_v25 }
 0x1ae   : > { %17159 = vmatprep.mubr.msk.f32.mxu0 %vm662_vm0, %v23726_v28  ;;  %v20351_v28 = vld [vmem:[#allocation2 + $0x31] sm:$0xff] }
 0x1af   : > { %4277 = vst.msk [vmem:[#allocation2 + $0x30] sm:$0xff] %vm4269_vm3, %v23708_v40 }
 0x1b1   : > { %17160 = vmatmul.mubr.msk.f32.gmra.mrb[24].mxu0 %vm662_vm0, %v23727_v30 }
 0x1b2   : > { %17162 = vmatprep.mubr.msk.f32.mxu0 %vm662_vm0, %v23728_v38  ;;  %v20387_v38 = vld [vmem:[#allocation2 + $0x69] sm:$0xff] }
 0x1b3   : > { %4285 = vst.msk [vmem:[#allocation2 + $0x70] sm:$0x3] %vm4272_vm4, %v23708_v40 }
 0x1b5   : > { %17163 = vmatmul.mubr.msk.f32.gmra.mrb[26].mxu0 %vm662_vm0, %v23729_v31  ;;  %v20357_v31 = vld [vmem:[#allocation2 + $0x39] sm:$0xff] }
 0x1b6   : > { %17165 = vmatprep.mubr.msk.f32.mxu0 %vm662_vm0, %v23730_v32  ;;  %4279 = vst.msk [vmem:[#allocation2 + $0x40] sm:$0x3] %vm4272_vm4, %v23708_v40  ;;  %v20370_v32 = vld [vmem:[#allocation2 + $0x51] sm:$0xff] }
 0x1b7   : > { %4278 = vst.msk [vmem:[#allocation2 + $0x38] sm:$0xff] %vm4269_vm3, %v23708_v40 }
 0x1b8   : > { %4282 = vst.msk [vmem:[#allocation2 + $0x58] sm:$0x3] %vm4272_vm4, %v23708_v40 }
 0x1b9   : > { %17166 = vmatmul.mubr.msk.f32.gmra.mrb[28].mxu0 %vm662_vm0, %v23731_v33  ;;  %v23732_v33 = vld [vmem:[#allocation28_spill] sm:$0xff] }
 0x1ba   : > { %17168 = vmatprep.mubr.msk.f32.mxu0 %vm662_vm0, %v20265_v57  ;;  %v3451_v57 = vld [vmem:[#allocation3 + $0x1c] sm:$0xf] }
 0x1bd   : > { %17169 = vmatmul.mubr.msk.f32.gmra.mrb[30].mxu0 %vm662_vm0, %v20273_v39  ;;  %v23733_v39 = vld [vmem:[#allocation50_spill] sm:$0xff] }
 0x1be   : > { %17173 = vmatprep.mubr.msk.f32.mxu0 %vm662_vm0, %v19779_v46  ;;  %v20368_v46 = vld [vmem:[#allocation2 + $0x49] sm:$0xff] }
 0x1bf   : > { %4280 = vst.msk [vmem:[#allocation2 + $0x48] sm:$0xff] %vm4269_vm3, %v23708_v40  ;;  %4281 = vst.msk [vmem:[#allocation2 + $0x50] sm:$0xff] %vm4269_vm3, %v23708_v40 }
 0x1c1   : > { %17174 = vmatmul.mubr.msk.f32.vlgmr.msra.gmra.mrb[0].mxu0 %vm662_vm0, %v23732_v33  ;;  %v23734_v33 = vld [vmem:[#allocation51_spill] sm:$0xff] }
 0x1c2   : > { %17222 = vmatpush3.msk.msra.mxu0 %vm914_vm2, %v3061_v48  ;;  %17176 = vmatprep.mubr.msk.f32.mxu0 %vm662_vm0, %v23733_v39  ;;  %v20381_v48 = vld [vmem:[#allocation2 + $0x61] sm:$0xff] }
 0x1c3   : > { %17271 = vmatprep.subr.msk.mxu0 %vm914_vm2, %v3451_v57  ;;  %v23735_v39 = vld [vmem:[#allocation52_spill] sm:$0xff]  ;;  %4283 = vst.msk [vmem:[#allocation2 + $0x60] sm:$0xff] %vm4269_vm3, %v23708_v40  ;;  %4284 = vst.msk [vmem:[#allocation2 + $0x68] sm:$0xff] %vm4269_vm3, %v23708_v40 }
 0x1c5   : > { %17177 = vmatmul.mubr.msk.f32.gmra.mrb[2].mxu0 %vm662_vm0, %v23734_v33  ;;  %v20395_v33 = vld [vmem:[#allocation2 + $0x79] sm:$0xff] }
 0x1c6   : > { %17179 = vmatprep.mubr.msk.f32.mxu0 %vm662_vm0, %v23735_v39  ;;  %v20399_v39 = vld [vmem:[#allocation2 + $0x81] sm:$0xff]  ;;  %4286 = vst.msk [vmem:[#allocation2 + $0x78] sm:$0xff] %vm4269_vm3, %v23708_v40 }
 0x1c7   : > { %4288 = vst.msk [vmem:[#allocation2 + $0x88] sm:$0x3] %vm4272_vm4, %v23708_v40 }
 0x1c8   : > { %4287 = vst.msk [vmem:[#allocation2 + $0x80] sm:$0xff] %vm4269_vm3, %v23708_v40 }
 0x1c9   : > { %17180 = vmatmul.mubr.msk.f32.gmra.mrb[4].mxu0 %vm662_vm0, %v20139_v58  ;;  %v20409_v58 = vld [vmem:[#allocation2 + $0x91] sm:$0xff] }
 0x1ca   : > { %17182 = vmatprep.mubr.msk.f32.mxu0 %vm662_vm0, %v20141_v9  ;;  %4289 = vst.msk [vmem:[#allocation2 + $0x90] sm:$0xff] %vm4269_vm3, %v23708_v40  ;;  %4290 = vst.msk [vmem:[#allocation2 + $0x98] sm:$0xff] %vm4269_vm3, %v23708_v40 }
 0x1cd   : > { %17183 = vmatmul.mubr.msk.f32.gmra.mrb[6].mxu0 %vm662_vm0, %v20147_v36 }
 0x1ce   : > { %17185 = vmatprep.mubr.msk.f32.mxu0 %vm662_vm0, %v20149_v59 }
 0x1d1   : > { %17186 = vmatmul.mubr.msk.f32.gmra.mrb[8].mxu0 %vm662_vm0, %v20155_v35 }
 0x1d2   : > { %17188 = vmatprep.mubr.msk.f32.mxu0 %vm662_vm0, %v20157_v45 }
 0x1d5   : > { %17189 = vmatmul.mubr.msk.f32.gmra.mrb[10].mxu0 %vm662_vm0, %v19850_v3 }
 0x1d6   : > { %17191 = vmatprep.mubr.msk.f32.mxu0 %vm662_vm0, %v19852_v4 }
 0x1d9   : > { %17192 = vmatmul.mubr.msk.f32.gmra.mrb[12].mxu0 %vm662_vm0, %v19854_v5 }
 0x1da   : > { %17194 = vmatprep.mubr.msk.f32.mxu0 %vm662_vm0, %v19858_v6 }
 0x1dd   : > { %17195 = vmatmul.mubr.msk.f32.gmra.mrb[14].mxu0 %vm662_vm0, %v19860_v7  ;;  %v23736_v7 = vld [vmem:[#allocation38_spill] sm:$0xff] }
 0x1de   : > { %17197 = vmatprep.mubr.msk.f32.mxu0 %vm662_vm0, %v19862_v8 }
 0x1e1   : > { %17198 = vmatmul.mubr.msk.f32.gmra.mrb[16].mxu0 %vm662_vm0, %v19878_v11 }
 0x1e2   : > { %17200 = vmatprep.mubr.msk.f32.mxu0 %vm662_vm0, %v19898_v14 }
 0x1e5   : > { %17201 = vmatmul.mubr.msk.f32.gmra.mrb[18].mxu0 %vm662_vm0, %v19906_v17 }
 0x1e6   : > { %17203 = vmatprep.mubr.msk.f32.mxu0 %vm662_vm0, %v19920_v20 }
 0x1e9   : > { %17204 = vmatmul.mubr.msk.f32.gmra.mrb[20].mxu0 %vm662_vm0, %v19928_v23 }
 0x1ea   : > { %17206 = vmatprep.mubr.msk.f32.mxu0 %vm662_vm0, %v19942_v27 }
 0x1ed   : > { %17207 = vmatmul.mubr.msk.f32.gmra.mrb[22].mxu0 %vm662_vm0, %v23736_v7 }
 0x1ee   : > { %17209 = vmatprep.mubr.msk.f32.mxu0 %vm662_vm0, %v19964_v41 }
 0x1f1   : > { %17210 = vmatmul.mubr.msk.f32.gmra.mrb[24].mxu0 %vm662_vm0, %v19972_v24  ;;  %v3841_v24 = vld [vmem:[#allocation3 + $0x20] sm:$0xf] }
 0x1f2   : > { %17212 = vmatprep.mubr.msk.f32.mxu0 %vm662_vm0, %v19986_v29 }
 0x1f5   : > { %17213 = vmatmul.mubr.msk.f32.gmra.mrb[26].mxu0 %vm662_vm0, %v19994_v12 }
 0x1f6   : > { %17215 = vmatprep.mubr.msk.f32.mxu0 %vm662_vm0, %v20008_v42 }
 0x1f9   : > { %17216 = vmatmul.mubr.msk.f32.gmra.mrb[28].mxu0 %vm662_vm0, %v20016_v54 }
 0x1fa   : > { %17218 = vmatprep.mubr.msk.f32.mxu0 %vm662_vm0, %v20267_v49 }
 0x1fd   : > { %17219 = vmatmul.mubr.msk.f32.gmra.mrb[30].mxu0 %vm662_vm0, %v20275_v15 }
 0x1fe   : > { %17223 = vmatprep.mubr.msk.f32.mxu0 %vm662_vm0, %v20034_v18  ;;  %v23746_v18 = vld [vmem:[#allocation27_spill] sm:$0xff] }
 0x201   : > { %17224 = vmatmul.mubr.msk.f32.vlgmr.msra.gmra.mrb[0].mxu0 %vm662_vm0, %v20041_v44  ;;  %v23755_v44 = vld [vmem:[#allocation46_spill] sm:$0xff] }
 0x202   : > { %17272 = vmatpush3.msk.msra.mxu0 %vm914_vm2, %v3451_v57  ;;  %17226 = vmatprep.mubr.msk.f32.mxu0 %vm662_vm0, %v20043_v0  ;;  %v23737_v0 = vld [vmem:[#allocation40_spill] sm:$0xff] }
 0x203   : > { %17321 = vmatprep.subr.msk.mxu0 %vm914_vm2, %v3841_v24  ;;  %v23759_v57 = vld [vmem:[#allocation56_spill] sm:$0xff] }
 0x205   : > { %17227 = vmatmul.mubr.msk.f32.gmra.mrb[2].mxu0 %vm662_vm0, %v20049_v47  ;;  %v23756_v47 = vld [vmem:[#allocation48_spill] sm:$0xff] }
 0x206   : > { %17229 = vmatprep.mubr.msk.f32.mxu0 %vm662_vm0, %v20051_v56  ;;  %v23757_v56 = vld [vmem:[#allocation49_spill] sm:$0xff] }
 0x209   : > { %17230 = vmatmul.mubr.msk.f32.gmra.mrb[4].mxu0 %vm662_vm0, %v20057_v60  ;;  %v3058_v60 = vld [vmem:[#allocation2 + $0x198] sm:$0xff] }
 0x20a   : > { %17232 = vmatprep.mubr.msk.f32.mxu0 %vm662_vm0, %v20059_v53  ;;  %v23741_v53 = vld [vmem:[#allocation54_spill] sm:$0xff] }
 0x20d   : > { %17233 = vmatmul.mubr.msk.f32.gmra.mrb[6].mxu0 %vm662_vm0, %v20065_v52  ;;  %v23740_v52 = vld [vmem:[#allocation47_spill] sm:$0xff] }
 0x20e   : > { %17235 = vmatprep.mubr.msk.f32.mxu0 %vm662_vm0, %v20067_v51  ;;  %v23739_v51 = vld [vmem:[#allocation45_spill] sm:$0xff] }
 0x211   : > { %17236 = vmatmul.mubr.msk.f32.gmra.mrb[8].mxu0 %vm662_vm0, %v20073_v50  ;;  %v23738_v50 = vld [vmem:[#allocation42_spill] sm:$0xff] }
 0x212   : > { %17238 = vmatprep.mubr.msk.f32.mxu0 %vm662_vm0, %v19832_v61  ;;  %v3448_v61 = vld [vmem:[#allocation2 + $0x199] sm:$0xff] }
 0x215   : > { %17239 = vmatmul.mubr.msk.f32.gmra.mrb[10].mxu0 %vm662_vm0, %v19834_v62  ;;  %v20525_v62 = vld [vmem:[#allocation2 + $0x19a] sm:$0xff] }
 0x216   : > { %17241 = vmatprep.mubr.msk.f32.mxu0 %vm662_vm0, %v19844_v63  ;;  %v3059_v63 = vld [vmem:[#allocation2 + $0x1a0] sm:$0xff]  ;;  %4322 = vst.msk [vmem:[#allocation2 + $0x198] sm:$0xff] %vm4269_vm3, %v23708_v40 }
 0x219   : > { %17242 = vmatmul.mubr.msk.f32.gmra.mrb[12].mxu0 %vm662_vm0, %v19846_v1  ;;  %v3449_v1 = vld [vmem:[#allocation2 + $0x1a1] sm:$0xff] }
 0x21a   : > { %17244 = vmatprep.mubr.msk.f32.mxu0 %vm662_vm0, %v19848_v2  ;;  %v20530_v2 = vld [vmem:[#allocation2 + $0x1a2] sm:$0xff] }
 0x21b   : > { %4323 = vst.msk [vmem:[#allocation2 + $0x1a0] sm:$0xff] %vm4269_vm3, %v23708_v40 }
 0x21c   : > { %4324 = vst.msk [vmem:[#allocation2 + $0x1a8] sm:$0x3] %vm4272_vm4, %v23708_v40 }
 0x21d   : > { %17245 = vmatmul.mubr.msk.f32.gmra.mrb[14].mxu0 %vm662_vm0, %v19876_v10  ;;  %v23743_v10 = vld [vmem:[#allocation24_spill] sm:$0xff] }
 0x21e   : > { %17247 = vmatprep.mubr.msk.f32.mxu0 %vm662_vm0, %v19896_v13  ;;  %v23744_v13 = vld [vmem:[#allocation25_spill] sm:$0xff] }
 0x221   : > { %17248 = vmatmul.mubr.msk.f32.gmra.mrb[16].mxu0 %vm662_vm0, %v19904_v16  ;;  %v23745_v16 = vld [vmem:[#allocation26_spill] sm:$0xff] }
 0x222   : > { %17250 = vmatprep.mubr.msk.f32.mxu0 %vm662_vm0, %v19918_v19  ;;  %v23747_v19 = vld [vmem:[#allocation29_spill] sm:$0xff] }
 0x225   : > { %17251 = vmatmul.mubr.msk.f32.gmra.mrb[18].mxu0 %vm662_vm0, %v19926_v22  ;;  %v23749_v22 = vld [vmem:[#allocation32_spill] sm:$0xff] }
 0x226   : > { %17253 = vmatprep.mubr.msk.f32.mxu0 %vm662_vm0, %v19940_v26  ;;  %v23751_v26 = vld [vmem:[#allocation34_spill] sm:$0xff] }
 0x229   : > { %17254 = vmatmul.mubr.msk.f32.gmra.mrb[20].mxu0 %vm662_vm0, %v19948_v37  ;;  %v23752_v37 = vld [vmem:[#allocation35_spill] sm:$0xff] }
 0x22a   : > { %17256 = vmatprep.mubr.msk.f32.mxu0 %vm662_vm0, %v23737_v0 }
 0x22d   : > { %17257 = vmatmul.mubr.msk.f32.gmra.mrb[22].mxu0 %vm662_vm0, %v23738_v50 }
 0x22e   : > { %17259 = vmatprep.mubr.msk.f32.mxu0 %vm662_vm0, %v23739_v51 }
 0x231   : > { %17260 = vmatmul.mubr.msk.f32.gmra.mrb[24].mxu0 %vm662_vm0, %v23740_v52 }
 0x232   : > { %17262 = vmatprep.mubr.msk.f32.mxu0 %vm662_vm0, %v20006_v21  ;;  %v23748_v21 = vld [vmem:[#allocation31_spill] sm:$0xff] }
 0x235   : > { %17263 = vmatmul.mubr.msk.f32.gmra.mrb[26].mxu0 %vm662_vm0, %v20014_v55  ;;  %v23742_v55 = vld [vmem:[#allocation23_spill] sm:$0xff] }
 0x236   : > { %17265 = vmatprep.mubr.msk.f32.mxu0 %vm662_vm0, %v23741_v53 }
 0x239   : > { %17266 = vmatmul.mubr.msk.f32.gmra.mrb[28].mxu0 %vm662_vm0, %v20271_v43  ;;  %v23754_v43 = vld [vmem:[#allocation44_spill] sm:$0xff] }
 0x23a   : > { %17268 = vmatprep.mubr.msk.f32.mxu0 %vm662_vm0, %v3058_v60 }
 0x23d   : > { %17269 = vmatmul.mubr.msk.f32.gmra.mrb[30].mxu0 %vm662_vm0, %v3059_v63 }
 0x23e   : > { %17273 = vmatprep.mubr.msk.f32.mxu0 %vm662_vm0, %v20351_v28 }
 0x241   : > { %17274 = vmatmul.mubr.msk.f32.vlgmr.msra.gmra.mrb[0].mxu0 %vm662_vm0, %v20357_v31  ;;  %v23760_v31 = vld [vmem:[#allocation50_spill] sm:$0xff] }
 0x242   : > { %17322 = vmatpush3.msk.msra.mxu0 %vm914_vm2, %v3841_v24  ;;  %17276 = vmatprep.mubr.msk.f32.mxu0 %vm662_vm0, %v20368_v46  ;;  %v23750_v24 = vld [vmem:[#allocation33_spill] sm:$0xff] }
 0x245   : > { %17277 = vmatmul.mubr.msk.f32.gmra.mrb[2].mxu0 %vm662_vm0, %v20370_v32  ;;  %v23761_v32 = vld [vmem:[#allocation51_spill] sm:$0xff] }
 0x246   : > { %17279 = vmatprep.mubr.msk.f32.mxu0 %vm662_vm0, %v20381_v48 }
 0x249   : > { %17280 = vmatmul.mubr.msk.f32.gmra.mrb[4].mxu0 %vm662_vm0, %v20387_v38 }
 0x24a   : > { %17282 = vmatprep.mubr.msk.f32.mxu0 %vm662_vm0, %v20395_v33 }
 0x24d   : > { %17283 = vmatmul.mubr.msk.f32.gmra.mrb[6].mxu0 %vm662_vm0, %v20399_v39  ;;  %v23753_v39 = vld [vmem:[#allocation39_spill] sm:$0xff] }
 0x24e   : > { %17285 = vmatprep.mubr.msk.f32.mxu0 %vm662_vm0, %v20409_v58  ;;  %v23758_v58 = vld [vmem:[#allocation55_spill] sm:$0xff] }
 0x251   : > { %17286 = vmatmul.mubr.msk.f32.gmra.mrb[8].mxu0 %vm662_vm0, %v23742_v55  ;;  %v20727_v55 = vld [vmem:[%s23766_s28 + $0x10] sm:$0xff] }
 0x252   : > { %17288 = vmatprep.mubr.msk.f32.mxu0 %vm662_vm0, %v23743_v10 }
 0x255   : > { %17289 = vmatmul.mubr.msk.f32.gmra.mrb[10].mxu0 %vm662_vm0, %v23744_v13 }
 0x256   : > { %17291 = vmatprep.mubr.msk.f32.mxu0 %vm662_vm0, %v23745_v16 }
 0x259   : > { %17292 = vmatmul.mubr.msk.f32.gmra.mrb[12].mxu0 %vm662_vm0, %v23746_v18 }
 0x25a   : > { %17294 = vmatprep.mubr.msk.f32.mxu0 %vm662_vm0, %v23747_v19 }
 0x25d   : > { %17295 = vmatmul.mubr.msk.f32.gmra.mrb[14].mxu0 %vm662_vm0, %v23748_v21 }
 0x25e   : > { %17297 = vmatprep.mubr.msk.f32.mxu0 %vm662_vm0, %v23749_v22 }
 0x261   : > { %17298 = vmatmul.mubr.msk.f32.gmra.mrb[16].mxu0 %vm662_vm0, %v23750_v24 }
 0x262   : > { %17300 = vmatprep.mubr.msk.f32.mxu0 %vm662_vm0, %v23751_v26 }
 0x265   : > { %17301 = vmatmul.mubr.msk.f32.gmra.mrb[18].mxu0 %vm662_vm0, %v23752_v37 }
 0x266   : > { %17303 = vmatprep.mubr.msk.f32.mxu0 %vm662_vm0, %v23724_v34  ;;  %v23762_v34 = vld [vmem:[#allocation52_spill] sm:$0xff] }
 0x269   : > { %17304 = vmatmul.mubr.msk.f32.gmra.mrb[20].mxu0 %vm662_vm0, %v23725_v25  ;;  %v23763_v25 = vld [vmem:[#allocation53_spill] sm:$0xff] }
 0x26a   : > { %17306 = vmatprep.mubr.msk.f32.mxu0 %vm662_vm0, %v23753_v39 }
 0x26d   : > { %17307 = vmatmul.mubr.msk.f32.gmra.mrb[22].mxu0 %vm662_vm0, %v23727_v30 }
 0x26e   : > { %17309 = vmatprep.mubr.msk.f32.mxu0 %vm662_vm0, %v23754_v43 }
 0x271   : > { %17310 = vmatmul.mubr.msk.f32.gmra.mrb[24].mxu0 %vm662_vm0, %v23755_v44 }
 0x272   : > { %17312 = vmatprep.mubr.msk.f32.mxu0 %vm662_vm0, %v23756_v47 }
 0x275   : > { %17313 = vmatmul.mubr.msk.f32.gmra.mrb[26].mxu0 %vm662_vm0, %v23757_v56 }
 0x276   : > { %17315 = vmatprep.mubr.msk.f32.mxu0 %vm662_vm0, %v23758_v58 }
 0x279   : > { %17316 = vmatmul.mubr.msk.f32.gmra.mrb[28].mxu0 %vm662_vm0, %v23759_v57 }
 0x27a   : > { %17318 = vmatprep.mubr.msk.f32.mxu0 %vm662_vm0, %v3448_v61 }
 0x27d   : > { %17319 = vmatmul.mubr.msk.f32.gmra.mrb[30].mxu0 %vm662_vm0, %v3449_v1 }
 0x27e   : > { %17323 = vmatprep.mubr.msk.f32.mxu0 %vm662_vm0, %v23760_v31 }
 0x281   : > { %17324 = vmatmul.mubr.msk.f32.vlgmr.msra.gmra.mrb[0].mxu0 %vm662_vm0, %v23761_v32 }
 0x282   : > { %17326 = vmatprep.mubr.msk.f32.mxu0 %vm662_vm0, %v23762_v34 }
 0x285   : > { %17327 = vmatmul.mubr.msk.f32.gmra.mrb[2].mxu0 %vm662_vm0, %v23763_v25 }
 0x286   : > { %17329 = vmatprep.mubr.msk.f32.mxu0 %vm662_vm0, %v20141_v9 }
 0x289   : > { %17330 = vmatmul.mubr.msk.f32.gmra.mrb[4].mxu0 %vm662_vm0, %v20147_v36  ;;  %v23764_v36 = vld [vmem:[#allocation30_spill] sm:$0xff] }
 0x28a   : > { %17332 = vmatprep.mubr.msk.f32.mxu0 %vm662_vm0, %v20149_v59  ;;  %v15502_v59 = vld [vmem:[%s23766_s28 + $0x8] sm:$0xff] }
 0x28b   : > { %17371 = vmatprep.subr.mxu0 %v15502_v59  ;;  %18424 = vmatprep.subr.mxu1 %v15502_v59 }
 0x28c   : > { %17372 = vmatpush3.msra.mxu0 %v15502_v59  ;;  %18425 = vmatpush3.msra.mxu1 %v15502_v59 }
 0x28d   : > { %17333 = vmatmul.mubr.msk.f32.gmra.mrb[6].mxu0 %vm662_vm0, %v20155_v35  ;;  %v23765_v35 = vld [vmem:[#allocation43_spill] sm:$0xff] }
 0x28e   : > { %17335 = vmatprep.mubr.msk.f32.mxu0 %vm662_vm0, %v20157_v45 }
 0x291   : > { %17336 = vmatmul.mubr.msk.f32.gmra.mrb[8].mxu0 %vm662_vm0, %v19850_v3  ;;  %v4390_v3 = vld [vmem:[#allocation2 + $0x1] sm:$0xff] }
 0x292   : > { %17338 = vmatprep.mubr.msk.f32.mxu0 %vm662_vm0, %v19852_v4  ;;  %v20672_v4 = vld [vmem:[%s23766_s28] sm:$0xff] }
 0x293   : > { %17421 = vmatprep.subr.mxu1 %v20672_v4 }
 0x295   : > { %17339 = vmatmul.mubr.msk.f32.gmra.mrb[10].mxu0 %vm662_vm0, %v19854_v5  ;;  %v20678_v5 = vld [vmem:[%s23767_s3] ss:$0 sm:$0xff]  ;;  %s624_s3 = scalar_lea.vmem [#allocation8], %s623_s25 }
 0x296   : > { %17341 = vmatprep.mubr.msk.f32.mxu0 %vm662_vm0, %v19858_v6  ;;  %s15117_s0 = sshll.u32 %s624_s3, 4  ;;  %s23445_s0 = int_to_ptr.vmem [resolvable:$true] %s15117_s0 }
 0x297   : > { %p19267_p4 = scmp.lt.s32.totalorder %s23445_s0, %s19265_s26 }
 0x299   : > { %17342 = vmatmul.mubr.msk.f32.gmra.mrb[12].mxu0 %vm662_vm0, %v23764_v36 }
 0x29a   : > { %17344 = vmatprep.mubr.msk.f32.mxu0 %vm662_vm0, %v19862_v8 }
 0x29d   : > { %17345 = vmatmul.mubr.msk.f32.gmra.mrb[14].mxu0 %vm662_vm0, %v19878_v11 }
 0x29e   : > { %17347 = vmatprep.mubr.msk.f32.mxu0 %vm662_vm0, %v19898_v14 }
 0x2a1   : > { %17348 = vmatmul.mubr.msk.f32.gmra.mrb[16].mxu0 %vm662_vm0, %v19906_v17 }
 0x2a2   : > { %17350 = vmatprep.mubr.msk.f32.mxu0 %vm662_vm0, %v19920_v20 }
 0x2a5   : > { %17351 = vmatmul.mubr.msk.f32.gmra.mrb[18].mxu0 %vm662_vm0, %v19928_v23 }
 0x2a6   : > { %17353 = vmatprep.mubr.msk.f32.mxu0 %vm662_vm0, %v19942_v27 }
 0x2a9   : > { %17354 = vmatmul.mubr.msk.f32.gmra.mrb[20].mxu0 %vm662_vm0, %v23736_v7 }
 0x2aa   : > { %17356 = vmatprep.mubr.msk.f32.mxu0 %vm662_vm0, %v19964_v41  ;;  %v20688_v41 = vld [vmem:[#allocation2 + $0x8] sm:$0xff] }
 0x2ad   : > { %17357 = vmatmul.mubr.msk.f32.gmra.mrb[22].mxu0 %vm662_vm0, %v23765_v35 }
 0x2ae   : > { %17359 = vmatprep.mubr.msk.f32.mxu0 %vm662_vm0, %v19986_v29  ;;  %v20686_v29 = vld [vmem:[#allocation2] sm:$0xff] }
 0x2b1   : > { %17360 = vmatmul.mubr.msk.f32.gmra.mrb[24].mxu0 %vm662_vm0, %v19994_v12 }
 0x2b2   : > { %17362 = vmatprep.mubr.msk.f32.mxu0 %vm662_vm0, %v20008_v42  ;;  %v20690_v42 = vld [vmem:[#allocation2 + $0x2] sm:$0xff] }
 0x2b3   : > { %9638 = vst.msk [vmem:[#allocation2] sm:$0xff] %vm4269_vm3, %v23708_v40 }
 0x2b5   : > { %17363 = vmatmul.mubr.msk.f32.gmra.mrb[26].mxu0 %vm662_vm0, %v20016_v54  ;;  %v4391_v54 = vld [vmem:[#allocation2 + $0x9] sm:$0xff] }
 0x2b6   : > { %17365 = vmatprep.mubr.msk.f32.mxu0 %vm662_vm0, %v20267_v49  ;;  %9639 = vst.msk [vmem:[#allocation2 + $0x8] sm:$0x3] %vm4272_vm4, %v23708_v40 }
 0x2b9   : > { %17366 = vmatmul.mubr.msk.f32.gmra.mrb[28].mxu0 %vm662_vm0, %v20275_v15 }
 0x2ba   : > { %17368 = vmatprep.mubr.msk.f32.mxu0 %vm662_vm0, %v20525_v62 }
 0x2bd   : > { %17369 = vmatmul.mubr.msk.f32.gmra.mrb[30].mxu0 %vm662_vm0, %v20530_v2 }
 0x2be   : > { %17373 = vmatprep.mubr.msk.f32.mxu0 %vm4269_vm3, %v4390_v3 }
 0x2c1   : > { %17374 = vmatmul.mubr.msk.f32.vlgmr.msra.gmra.mrb[32].mxu0 %vm4269_vm3, %v4391_v54 }
 0x354   : > { %v17325_v6 = vpop.f32.mrb[0].mxu0 }
 0x355   : > { %v4206_v7 = vadd.f32 %v17325_v6, %v20678_v5  ;;  %v4007_v8 = vpop.f32.mrb[1].mxu0 }
 0x356   : > { %v4205_v11 = vadd.f32 %v20678_v5, %v4007_v8 }
 0x357   : > { %v4238_v12 = vmax.f32 %v4206_v7, 0.0 }
 0x358   : > { %v4237_v14 = vmax.f32 %v4205_v11, 0.0  ;;  %v17328_v15 = vpop.f32.mrb[2].mxu0 }
 0x359   : > { %4326 = vst.msk [vmem:[#allocation2 + $0x21] sm:$0xff] %vm4269_vm3, %v4238_v12  ;;  %v4208_v17 = vadd.f32 %v17328_v15, %v20678_v5  ;;  %v4017_v20 = vpop.f32.mrb[3].mxu0 }
 0x35a   : > { %4325 = vst.msk [vmem:[#allocation2 + $0x19] sm:$0xff] %vm4269_vm3, %v4237_v14  ;;  %v4207_v23 = vadd.f32 %v20678_v5, %v4017_v20 }
 0x35b   : > { %v4240_v27 = vmax.f32 %v4208_v17, 0.0 }
 0x35c   : > { %v4239_v45 = vmax.f32 %v4207_v23, 0.0  ;;  %v17331_v9 = vpop.f32.mrb[4].mxu0 }
 0x35d   : > { %4328 = vst.msk [vmem:[#allocation2 + $0x39] sm:$0xff] %vm4269_vm3, %v4240_v27  ;;  %v4210_v49 = vadd.f32 %v17331_v9, %v20678_v5  ;;  %v4027_v28 = vpop.f32.mrb[5].mxu0 }
 0x35e   : > { %4327 = vst.msk [vmem:[#allocation2 + $0x31] sm:$0xff] %vm4269_vm3, %v4239_v45  ;;  %v4209_v30 = vadd.f32 %v20678_v5, %v4027_v28 }
 0x35f   : > { %v4242_v38 = vmax.f32 %v4210_v49, 0.0 }
 0x360   : > { %v4241_v46 = vmax.f32 %v4209_v30, 0.0  ;;  %v17334_v33 = vpop.f32.mrb[6].mxu0  ;;  %v20704_v51 = vld [vmem:[#allocation2 + $0x21] sm:$0xff] }
 0x361   : > { %4330 = vst.msk [vmem:[#allocation2 + $0x51] sm:$0xff] %vm4269_vm3, %v4242_v38  ;;  %v4212_v48 = vadd.f32 %v17334_v33, %v20678_v5  ;;  %v4037_v0 = vpop.f32.mrb[7].mxu0  ;;  %v20702_v50 = vld [vmem:[#allocation2 + $0x19] sm:$0xff] }
 0x362   : > { %4329 = vst.msk [vmem:[#allocation2 + $0x49] sm:$0xff] %vm4269_vm3, %v4241_v46  ;;  %v4211_v52 = vadd.f32 %v20678_v5, %v4037_v0  ;;  %17376 = vmatprep.mubr.msk.f32.mxu0 %vm4269_vm3, %v20702_v50  ;;  %v20710_v53 = vld [vmem:[#allocation2 + $0x18] sm:$0xff]  ;;  %v20712_v60 = vld [vmem:[#allocation2 + $0x20] sm:$0xff] }
 0x363   : > { %v20714_v61 = vld [vmem:[#allocation2 + $0x1a] sm:$0xff]  ;;  %v4244_v62 = vmax.f32 %v4212_v48, 0.0  ;;  %17377 = vmatmul.mubr.msk.f32.gmra.mrb[34].mxu0 %vm4269_vm3, %v20704_v51 }
 0x364   : > { %9640 = vst.msk [vmem:[#allocation2 + $0x18] sm:$0xff] %vm4269_vm3, %v23708_v40  ;;  %v4243_v63 = vmax.f32 %v4211_v52, 0.0  ;;  %v17337_v1 = vpop.f32.mrb[8].mxu0  ;;  %v20722_v2 = vld [vmem:[#allocation2 + $0x39] sm:$0xff] }
 0x365   : > { %9641 = vst.msk [vmem:[#allocation2 + $0x20] sm:$0x3] %vm4272_vm4, %v23708_v40  ;;  %v4214_v10 = vadd.f32 %v17337_v1, %v20678_v5  ;;  %v4047_v13 = vpop.f32.mrb[9].mxu0  ;;  %v20731_v16 = vld [vmem:[#allocation2 + $0x31] sm:$0xff]  ;;  %v20735_v19 = vld [vmem:[#allocation2 + $0x39] sm:$0xff] }
 0x366   : > { %4332 = vst.msk [vmem:[#allocation2 + $0x69] sm:$0xff] %vm4269_vm3, %v4244_v62  ;;  %v20733_v18 = vld [vmem:[#allocation2 + $0x30] sm:$0xff]  ;;  %23768 = vst [vmem:[#allocation19_spill] sm:$0xff] %v20735_v19  ;;  %v4213_v21 = vadd.f32 %v20678_v5, %v4047_v13  ;;  %17379 = vmatprep.mubr.msk.f32.mxu1 %vm4269_vm3, %v20731_v16  ;;  %v20741_v22 = vld [vmem:[#allocation2 + $0x38] sm:$0xff] }
 0x367   : > { %4331 = vst.msk [vmem:[#allocation2 + $0x61] sm:$0xff] %vm4269_vm3, %v4243_v63  ;;  %v20743_v24 = vld [vmem:[#allocation2 + $0x32] sm:$0xff]  ;;  %v4246_v37 = vmax.f32 %v4214_v10, 0.0  ;;  %17380 = vmatmul.mubr.msk.f32.vlgmr.msra.gmra.mrb[0].mxu1 %vm4269_vm3, %v20722_v2 }
 0x368   : > { %v20745_v26 = vld [vmem:[#allocation2 + $0x31] sm:$0xff]  ;;  %v4245_v39 = vmax.f32 %v4213_v21, 0.0  ;;  %17422 = vmatpush3.msra.mxu1 %v20672_v4  ;;  %v17340_v43 = vpop.f32.mrb[10].mxu0 }
 0x369   : > { %23769 = vst [vmem:[#allocation20_spill] sm:$0xff] %v20745_v26  ;;  %9642 = vst.msk [vmem:[#allocation2 + $0x30] sm:$0xff] %vm4269_vm3, %v23708_v40  ;;  %v20754_v44 = vld [vmem:[#allocation2 + $0x51] sm:$0xff]  ;;  %v4216_v47 = vadd.f32 %v17340_v43, %v20678_v5  ;;  %v4057_v56 = vpop.f32.mrb[11].mxu0  ;;  %v20758_v58 = vld [vmem:[#allocation2 + $0x49] sm:$0xff]  ;;  %17471 = vmatprep.subr.mxu1 %v20727_v55 }
 0x36a   : > { %9643 = vst.msk [vmem:[#allocation2 + $0x38] sm:$0x3] %vm4272_vm4, %v23708_v40  ;;  %v20761_v57 = vld [vmem:[#allocation2 + $0x48] sm:$0xff]  ;;  %v20763_v31 = vld [vmem:[#allocation2 + $0x51] sm:$0xff]  ;;  %v4215_v32 = vadd.f32 %v20678_v5, %v4057_v56  ;;  %17382 = vmatprep.mubr.msk.f32.mxu1 %vm4269_vm3, %v20758_v58 }
 0x36b   : > { %4334 = vst.msk [vmem:[#allocation2 + $0x81] sm:$0xff] %vm4269_vm3, %v4246_v37  ;;  %23770 = vst [vmem:[#allocation21_spill] sm:$0xff] %v20763_v31  ;;  %v20769_v34 = vld [vmem:[#allocation2 + $0x50] sm:$0xff]  ;;  %v4248_v35 = vmax.f32 %v4216_v47, 0.0  ;;  %17383 = vmatmul.mubr.msk.f32.gmra.mrb[2].mxu1 %vm4269_vm3, %v20754_v44 }
 0x36c   : > { %4333 = vst.msk [vmem:[#allocation2 + $0x79] sm:$0xff] %vm4269_vm3, %v4245_v39  ;;  %v20771_v25 = vld [vmem:[#allocation2 + $0x4a] sm:$0xff]  ;;  %v4247_v59 = vmax.f32 %v4215_v32, 0.0  ;;  %v17343_v3 = vpop.f32.mrb[12].mxu0 }
 0x36d   : > { %23771 = vst [vmem:[#allocation22_spill] sm:$0xff] %v20771_v25  ;;  %v20773_v36 = vld [vmem:[#allocation2 + $0x49] sm:$0xff]  ;;  %4336 = vst.msk [vmem:[#allocation2 + $0x99] sm:$0xff] %vm4269_vm3, %v4248_v35  ;;  %v4218_v4 = vadd.f32 %v17343_v3, %v20678_v5  ;;  %v4067_v6 = vpop.f32.mrb[13].mxu0 }
 0x36e   : > { %23772 = vst [vmem:[#allocation36_spill] sm:$0xff] %v20773_v36  ;;  %9644 = vst.msk [vmem:[#allocation2 + $0x48] sm:$0xff] %vm4269_vm3, %v23708_v40  ;;  %v20781_v54 = vld [vmem:[#allocation2 + $0x69] sm:$0xff]  ;;  %v20785_v7 = vld [vmem:[#allocation2 + $0x61] sm:$0xff]  ;;  %v4217_v12 = vadd.f32 %v20678_v5, %v4067_v6 }
 0x36f   : > { %9645 = vst.msk [vmem:[#allocation2 + $0x50] sm:$0x3] %vm4272_vm4, %v23708_v40  ;;  %v20787_v8 = vld [vmem:[#allocation2 + $0x60] sm:$0xff]  ;;  %v20789_v11 = vld [vmem:[#allocation2 + $0x69] sm:$0xff]  ;;  %17385 = vmatprep.mubr.msk.f32.mxu1 %vm4269_vm3, %v20785_v7  ;;  %v4250_v20 = vmax.f32 %v4218_v4, 0.0 }
 0x370   : > { %23773 = vst [vmem:[#allocation37_spill] sm:$0xff] %v20789_v11  ;;  %4335 = vst.msk [vmem:[#allocation2 + $0x91] sm:$0xff] %vm4269_vm3, %v4247_v59  ;;  %v20795_v14 = vld [vmem:[#allocation2 + $0x68] sm:$0xff]  ;;  %17386 = vmatmul.mubr.msk.f32.gmra.mrb[4].mxu1 %vm4269_vm3, %v20781_v54  ;;  %v4249_v23 = vmax.f32 %v4217_v12, 0.0  ;;  %v17346_v27 = vpop.f32.mrb[14].mxu0 }
 0x371   : > { %v20797_v15 = vld [vmem:[#allocation2 + $0x62] sm:$0xff]  ;;  %4338 = vst.msk [vmem:[#allocation2 + $0xb1] sm:$0xff] %vm4269_vm3, %v4250_v20  ;;  %v4220_v9 = vadd.f32 %v17346_v27, %v20678_v5  ;;  %v4077_v49 = vpop.f32.mrb[15].mxu0 }
 0x372   : > { %23774 = vst [vmem:[#allocation41_spill] sm:$0xff] %v20797_v15  ;;  %v20799_v17 = vld [vmem:[#allocation2 + $0x61] sm:$0xff]  ;;  %4337 = vst.msk [vmem:[#allocation2 + $0xa9] sm:$0xff] %vm4269_vm3, %v4249_v23  ;;  %v4219_v46 = vadd.f32 %v20678_v5, %v4077_v49 }
 0x373   : > { %23775 = vst [vmem:[#allocation28_spill] sm:$0xff] %v20799_v17  ;;  %9646 = vst.msk [vmem:[#allocation2 + $0x60] sm:$0xff] %vm4269_vm3, %v23708_v40  ;;  %v20807_v45 = vld [vmem:[#allocation2 + $0x81] sm:$0xff]  ;;  %v20811_v28 = vld [vmem:[#allocation2 + $0x79] sm:$0xff]  ;;  %v4252_v52 = vmax.f32 %v4220_v9, 0.0 }
 0x374   : > { %9647 = vst.msk [vmem:[#allocation2 + $0x68] sm:$0x3] %vm4272_vm4, %v23708_v40  ;;  %v20813_v30 = vld [vmem:[#allocation2 + $0x78] sm:$0xff]  ;;  %v20815_v38 = vld [vmem:[#allocation2 + $0x81] sm:$0xff]  ;;  %17388 = vmatprep.mubr.msk.f32.mxu1 %vm4269_vm3, %v20811_v28  ;;  %v4251_v62 = vmax.f32 %v4219_v46, 0.0  ;;  %v17349_v63 = vpop.f32.mrb[16].mxu0 }
 0x375   : > { %23776 = vst [vmem:[#allocation38_spill] sm:$0xff] %v20815_v38  ;;  %v20821_v33 = vld [vmem:[#allocation2 + $0x80] sm:$0xff]  ;;  %17389 = vmatmul.mubr.msk.f32.gmra.mrb[6].mxu1 %vm4269_vm3, %v20807_v45  ;;  %4340 = vst.msk [vmem:[#allocation2 + $0xc9] sm:$0xff] %vm4269_vm3, %v4252_v52  ;;  %v4222_v10 = vadd.f32 %v17349_v63, %v20678_v5  ;;  %v4087_v13 = vpop.f32.mrb[17].mxu0 }
 0x376   : > { %v20823_v48 = vld [vmem:[#allocation2 + $0x7a] sm:$0xff]  ;;  %4339 = vst.msk [vmem:[#allocation2 + $0xc1] sm:$0xff] %vm4269_vm3, %v4251_v62  ;;  %v4221_v43 = vadd.f32 %v20678_v5, %v4087_v13 }
 0x377   : > { %23777 = vst [vmem:[#allocation40_spill] sm:$0xff] %v20823_v48  ;;  %v20825_v0 = vld [vmem:[#allocation2 + $0x79] sm:$0xff]  ;;  %v20837_v21 = vld [vmem:[#allocation2 + $0x91] sm:$0xff]  ;;  %v4254_v35 = vmax.f32 %v4222_v10, 0.0 }
 0x378   : > { %23778 = vst [vmem:[#allocation42_spill] sm:$0xff] %v20825_v0  ;;  %9648 = vst.msk [vmem:[#allocation2 + $0x78] sm:$0xff] %vm4269_vm3, %v23708_v40  ;;  %v20833_v1 = vld [vmem:[#allocation2 + $0x99] sm:$0xff]  ;;  %v20839_v37 = vld [vmem:[#allocation2 + $0x90] sm:$0xff]  ;;  %17391 = vmatprep.mubr.msk.f32.mxu1 %vm4269_vm3, %v20837_v21  ;;  %v4253_v59 = vmax.f32 %v4221_v43, 0.0  ;;  %v17352_v3 = vpop.f32.mrb[18].mxu0 }
 0x379   : > { %9649 = vst.msk [vmem:[#allocation2 + $0x80] sm:$0x3] %vm4272_vm4, %v23708_v40  ;;  %v20841_v39 = vld [vmem:[#allocation2 + $0x99] sm:$0xff]  ;;  %v20851_v32 = vld [vmem:[#allocation2 + $0x91] sm:$0xff]  ;;  %17392 = vmatmul.mubr.msk.f32.gmra.mrb[8].mxu1 %vm4269_vm3, %v20833_v1  ;;  %v4224_v6 = vadd.f32 %v17352_v3, %v20678_v5  ;;  %v4097_v12 = vpop.f32.mrb[19].mxu0  ;;  %v20863_v20 = vld [vmem:[#allocation2 + $0xa9] sm:$0xff] }
 0x37a   : > { %23779 = vst [vmem:[#allocation45_spill] sm:$0xff] %v20841_v39  ;;  %v20847_v47 = vld [vmem:[#allocation2 + $0x98] sm:$0xff]  ;;  %23781 = vst [vmem:[#allocation54_spill] sm:$0xff] %v20851_v32  ;;  %v20865_v23 = vld [vmem:[#allocation2 + $0xa8] sm:$0xff]  ;;  %v4223_v9 = vadd.f32 %v20678_v5, %v4097_v12  ;;  %17394 = vmatprep.mubr.msk.f32.mxu1 %vm4269_vm3, %v20863_v20 }
 0x37b   : > { %v20849_v56 = vld [vmem:[#allocation2 + $0x92] sm:$0xff]  ;;  %4342 = vst.msk [vmem:[#allocation2 + $0xe1] sm:$0xff] %vm4269_vm3, %v4254_v35  ;;  %4341 = vst.msk [vmem:[#allocation2 + $0xd9] sm:$0xff] %vm4269_vm3, %v4253_v59  ;;  %v20875_v46 = vld [vmem:[#allocation2 + $0xaa] sm:$0xff]  ;;  %v4256_v62 = vmax.f32 %v4224_v6, 0.0 }
 0x37c   : > { %23780 = vst [vmem:[#allocation47_spill] sm:$0xff] %v20849_v56  ;;  %9650 = vst.msk [vmem:[#allocation2 + $0x90] sm:$0xff] %vm4269_vm3, %v23708_v40  ;;  %v20859_v4 = vld [vmem:[#allocation2 + $0xb1] sm:$0xff]  ;;  %v20877_v52 = vld [vmem:[#allocation2 + $0xa9] sm:$0xff]  ;;  %v4255_v63 = vmax.f32 %v4223_v9, 0.0  ;;  %v17355_v10 = vpop.f32.mrb[20].mxu0 }
 0x37d   : > { %9651 = vst.msk [vmem:[#allocation2 + $0x98] sm:$0x3] %vm4272_vm4, %v23708_v40  ;;  %v20867_v27 = vld [vmem:[#allocation2 + $0xb1] sm:$0xff]  ;;  %23783 = vst [vmem:[#allocation24_spill] sm:$0xff] %v20875_v46  ;;  %17395 = vmatmul.mubr.msk.f32.gmra.mrb[10].mxu1 %vm4269_vm3, %v20859_v4  ;;  %v4226_v13 = vadd.f32 %v17355_v10, %v20678_v5  ;;  %v4107_v43 = vpop.f32.mrb[21].mxu0  ;;  %v20887_v35 = vld [vmem:[#allocation2 + $0xc1] sm:$0xff] }
 0x37e   : > { %23782 = vst [vmem:[#allocation23_spill] sm:$0xff] %v20867_v27  ;;  %v20873_v49 = vld [vmem:[#allocation2 + $0xb0] sm:$0xff]  ;;  %23784 = vst [vmem:[#allocation25_spill] sm:$0xff] %v20877_v52  ;;  %v4225_v3 = vadd.f32 %v20678_v5, %v4107_v43  ;;  %17397 = vmatprep.mubr.msk.f32.mxu1 %vm4269_vm3, %v20887_v35  ;;  %v20895_v6 = vld [vmem:[#allocation2 + $0xc0] sm:$0xff] }
 0x37f   : > { %9652 = vst.msk [vmem:[#allocation2 + $0xa8] sm:$0xff] %vm4269_vm3, %v23708_v40  ;;  %4344 = vst.msk [vmem:[#allocation2 + $0xf9] sm:$0xff] %vm4269_vm3, %v4256_v62  ;;  %v20889_v59 = vld [vmem:[#allocation2 + $0xc9] sm:$0xff]  ;;  %v4258_v62 = vmax.f32 %v4226_v13, 0.0 }
 0x380   : > { %9653 = vst.msk [vmem:[#allocation2 + $0xb0] sm:$0x3] %vm4272_vm4, %v23708_v40  ;;  %v20897_v12 = vld [vmem:[#allocation2 + $0xc8] sm:$0xff]  ;;  %v17358_v10 = vpop.f32.mrb[22].mxu0 }
 0x381   : > { %4343 = vst.msk [vmem:[#allocation2 + $0xf1] sm:$0xff] %vm4269_vm3, %v4255_v63  ;;  %v20899_v9 = vld [vmem:[#allocation2 + $0xc2] sm:$0xff]  ;;  %17398 = vmatmul.mubr.msk.f32.gmra.mrb[12].mxu1 %vm4269_vm3, %v20889_v59  ;;  %v4257_v63 = vmax.f32 %v4225_v3, 0.0  ;;  %4346 = vst.msk [vmem:[#allocation2 + $0x111] sm:$0xff] %vm4269_vm3, %v4258_v62  ;;  %v4228_v43 = vadd.f32 %v17358_v10, %v20678_v5  ;;  %v4117_v27 = vpop.f32.mrb[23].mxu0 }
 0x382   : > { %23785 = vst [vmem:[#allocation26_spill] sm:$0xff] %v20899_v9  ;;  %9654 = vst.msk [vmem:[#allocation2 + $0xc0] sm:$0xff] %vm4269_vm3, %v23708_v40  ;;  %v20909_v52 = vld [vmem:[#allocation2 + $0xd9] sm:$0xff]  ;;  %v20911_v39 = vld [vmem:[#allocation2 + $0xe1] sm:$0xff]  ;;  %v4227_v13 = vadd.f32 %v20678_v5, %v4117_v27 }
 0x383   : > { %9655 = vst.msk [vmem:[#allocation2 + $0xc8] sm:$0x3] %vm4272_vm4, %v23708_v40  ;;  %17400 = vmatprep.mubr.msk.f32.mxu1 %vm4269_vm3, %v20909_v52  ;;  %v20917_v32 = vld [vmem:[#allocation2 + $0xd8] sm:$0xff]  ;;  %v20919_v3 = vld [vmem:[#allocation2 + $0xe0] sm:$0xff]  ;;  %v4260_v62 = vmax.f32 %v4228_v43, 0.0 }
 0x384   : > { %4345 = vst.msk [vmem:[#allocation2 + $0x109] sm:$0xff] %vm4269_vm3, %v4257_v63  ;;  %v20921_v38 = vld [vmem:[#allocation2 + $0xda] sm:$0xff]  ;;  %v4259_v27 = vmax.f32 %v4227_v13, 0.0  ;;  %v17361_v63 = vpop.f32.mrb[24].mxu0 }
 0x385   : > { %23786 = vst [vmem:[#allocation27_spill] sm:$0xff] %v20921_v38  ;;  %17401 = vmatmul.mubr.msk.f32.gmra.mrb[14].mxu1 %vm4269_vm3, %v20911_v39  ;;  %9656 = vst.msk [vmem:[#allocation2 + $0xd8] sm:$0xff] %vm4269_vm3, %v23708_v40  ;;  %v4230_v10 = vadd.f32 %v17361_v63, %v20678_v5  ;;  %v4127_v0 = vpop.f32.mrb[25].mxu0 }
 0x386   : > { %9657 = vst.msk [vmem:[#allocation2 + $0xe0] sm:$0x3] %vm4272_vm4, %v23708_v40  ;;  %v4229_v43 = vadd.f32 %v20678_v5, %v4127_v0  ;;  %v20937_v17 = vld [vmem:[#allocation2 + $0xf9] sm:$0xff] }
 0x387   : > { %4348 = vst.msk [vmem:[#allocation2 + $0x129] sm:$0xff] %vm4269_vm3, %v4260_v62  ;;  %4347 = vst.msk [vmem:[#allocation2 + $0x121] sm:$0xff] %vm4269_vm3, %v4259_v27  ;;  %v4262_v31 = vmax.f32 %v4230_v10, 0.0 }
 0x388   : > { %v20931_v11 = vld [vmem:[#allocation2 + $0xf1] sm:$0xff]  ;;  %v4261_v13 = vmax.f32 %v4229_v43, 0.0  ;;  %v17364_v62 = vpop.f32.mrb[26].mxu0 }
 0x389   : > { %17403 = vmatprep.mubr.msk.f32.mxu1 %vm4269_vm3, %v20931_v11  ;;  %4350 = vst.msk [vmem:[#allocation2 + $0x141] sm:$0xff] %vm4269_vm3, %v4262_v31  ;;  %v4232_v63 = vadd.f32 %v17364_v62, %v20678_v5  ;;  %v4137_v40 = vpop.f32.mrb[27].mxu0  ;;  %v20949_v27 = vld [vmem:[#allocation2 + $0x111] sm:$0xff] }
 0x38a   : > { %17404 = vmatmul.mubr.msk.f32.gmra.mrb[16].mxu1 %vm4269_vm3, %v20937_v17  ;;  %4349 = vst.msk [vmem:[#allocation2 + $0x139] sm:$0xff] %vm4269_vm3, %v4261_v13  ;;  %v4231_v0 = vadd.f32 %v20678_v5, %v4137_v40  ;;  %23788 = vst [vmem:[#allocation31_spill] sm:$0xff] %v20949_v27 }
 0x38b   : > { %v20943_v36 = vld [vmem:[#allocation2 + $0x109] sm:$0xff]  ;;  %v4264_v10 = vmax.f32 %v4232_v63, 0.0 }
 0x38c   : > { %23787 = vst [vmem:[#allocation29_spill] sm:$0xff] %v20943_v36  ;;  %17406 = vmatprep.mubr.msk.f32.mxu1 %vm4269_vm3, %v20943_v36  ;;  %v4263_v43 = vmax.f32 %v4231_v0, 0.0  ;;  %v17367_v31 = vpop.f32.mrb[28].mxu0 }
 0x38d   : > { %4352 = vst.msk [vmem:[#allocation2 + $0x159] sm:$0xff] %vm4269_vm3, %v4264_v10  ;;  %v4234_v62 = vadd.f32 %v17367_v31, %v20678_v5  ;;  %v4147_v19 = vpop.f32.mrb[29].mxu0 }
 0x38e   : > { %17407 = vmatmul.mubr.msk.f32.gmra.mrb[18].mxu1 %vm4269_vm3, %v20949_v27  ;;  %v20955_v26 = vld [vmem:[#allocation2 + $0x121] sm:$0xff]  ;;  %4351 = vst.msk [vmem:[#allocation2 + $0x151] sm:$0xff] %vm4269_vm3, %v4263_v43  ;;  %v4233_v40 = vadd.f32 %v20678_v5, %v4147_v19  ;;  %v20961_v13 = vld [vmem:[#allocation2 + $0x129] sm:$0xff] }
 0x38f   : > { %23789 = vst [vmem:[#allocation32_spill] sm:$0xff] %v20955_v26  ;;  %17409 = vmatprep.mubr.msk.f32.mxu1 %vm4269_vm3, %v20955_v26  ;;  %23790 = vst [vmem:[#allocation33_spill] sm:$0xff] %v20961_v13  ;;  %v4266_v63 = vmax.f32 %v4234_v62, 0.0  ;;  %v21099_v26 = vld [vmem:[#allocation2 + $0x22] sm:$0xff] }
 0x390   : > { %v4265_v0 = vmax.f32 %v4233_v40, 0.0  ;;  %v17370_v10 = vpop.f32.mrb[30].mxu0  ;;  %v20973_v43 = vld [vmem:[#allocation2 + $0x141] sm:$0xff] }
 0x391   : > { %4354 = vst.msk [vmem:[#allocation2 + $0x171] sm:$0xff] %vm4269_vm3, %v4266_v63  ;;  %v4236_v31 = vadd.f32 %v17370_v10, %v20678_v5  ;;  %v4157_v27 = vpop.f32.mrb[31].mxu0  ;;  %v20967_v36 = vld [vmem:[#allocation2 + $0x139] sm:$0xff]  ;;  %23792 = vst [vmem:[#allocation35_spill] sm:$0xff] %v20973_v43 }
 0x392   : > { %17410 = vmatmul.mubr.msk.f32.gmra.mrb[20].mxu1 %vm4269_vm3, %v20961_v13  ;;  %23791 = vst [vmem:[#allocation34_spill] sm:$0xff] %v20967_v36  ;;  %4353 = vst.msk [vmem:[#allocation2 + $0x169] sm:$0xff] %vm4269_vm3, %v4265_v0  ;;  %v4235_v19 = vadd.f32 %v20678_v5, %v4157_v27  ;;  %v15600_v10 = vld [vmem:[%s23766_s28 + $0x18] sm:$0xff]  ;;  %v15633_v13 = vld [vmem:[%s23766_s28 + $0x20] sm:$0xff] }
 0x393   : > { %17412 = vmatprep.mubr.msk.f32.mxu1 %vm4269_vm3, %v20967_v36  ;;  %v4268_v62 = vmax.f32 %v4236_v31, 0.0  ;;  %v21047_v31 = vld [vmem:[#allocation2 + $0xf8] sm:$0xff]  ;;  %v5067_v36 = vld [vmem:[#allocation2 + $0xa] sm:$0xff] }
 0x394   : > { %v4267_v40 = vmax.f32 %v4235_v19, 0.0  ;;  %v20983_v5 = vld [vmem:[#allocation2 + $0x159] sm:$0xff]  ;;  %v21051_v19 = vld [vmem:[#allocation2 + $0x108] sm:$0xff] }
 0x395   : > { %4356 = vst.msk [vmem:[#allocation2 + $0x189] sm:$0xff] %vm4269_vm3, %v4268_v62  ;;  %v20978_v63 = vld [vmem:[#allocation2 + $0x151] sm:$0xff]  ;;  %23794 = vst [vmem:[#allocation44_spill] sm:$0xff] %v20983_v5 }
 0x396   : > { %17413 = vmatmul.mubr.msk.f32.gmra.mrb[22].mxu1 %vm4269_vm3, %v20973_v43  ;;  %23793 = vst [vmem:[#allocation39_spill] sm:$0xff] %v20978_v63  ;;  %4355 = vst.msk [vmem:[#allocation2 + $0x181] sm:$0xff] %vm4269_vm3, %v4267_v40  ;;  %v21055_v62 = vld [vmem:[#allocation2 + $0x110] sm:$0xff]  ;;  %v21059_v40 = vld [vmem:[#allocation2 + $0x120] sm:$0xff] }
 0x397   : > { %17415 = vmatprep.mubr.msk.f32.mxu1 %vm4269_vm3, %v20978_v63 }
 0x398   : > { %v20991_v0 = vld [vmem:[#allocation2 + $0x171] sm:$0xff] }
 0x399   : > { %v20987_v27 = vld [vmem:[#allocation2 + $0x169] sm:$0xff]  ;;  %23796 = vst [vmem:[#allocation48_spill] sm:$0xff] %v20991_v0 }
 0x39a   : > { %17416 = vmatmul.mubr.msk.f32.gmra.mrb[24].mxu1 %vm4269_vm3, %v20983_v5  ;;  %23795 = vst [vmem:[#allocation46_spill] sm:$0xff] %v20987_v27  ;;  %v21079_v5 = vld [vmem:[#allocation2 + $0x158] sm:$0xff]  ;;  %v21083_v63 = vld [vmem:[#allocation2 + $0x168] sm:$0xff]  ;;  %v21087_v43 = vld [vmem:[#allocation2 + $0x170] sm:$0xff] }
 0x39b   : > { %17418 = vmatprep.mubr.msk.f32.mxu1 %vm4269_vm3, %v20987_v27  ;;  %v21075_v27 = vld [vmem:[#allocation2 + $0x150] sm:$0xff] }
 0x39e   : > { %17419 = vmatmul.mubr.msk.f32.gmra.mrb[26].mxu1 %vm4269_vm3, %v20991_v0  ;;  %v21071_v0 = vld [vmem:[#allocation2 + $0x140] sm:$0xff] }
 0x39f   : > { %17423 = vmatprep.mubr.msk.f32.mxu1 %vm4269_vm3, %v20686_v29  ;;  %v21023_v29 = vpop.f32.mrb[32].mxu0 }
 0x3a0   : > { %23797 = vst [vmem:[#allocation49_spill] sm:$0xff] %v21023_v29  ;;  %v21067_v29 = vld [vmem:[#allocation2 + $0x138] sm:$0xff] }
 0x3a2   : > { %17424 = vmatmul.mubr.msk.f32.vlgmr.msra.gmra.mrb[28].mxu1 %vm4269_vm3, %v20688_v41  ;;  %v21027_v41 = vpop.f32.mrb[33].mxu0 }
 0x3a3   : > { %17472 = vmatpush3.msra.mxu1 %v20727_v55  ;;  %17426 = vmatprep.mubr.msk.f32.mxu1 %vm4269_vm3, %v20710_v53  ;;  %23798 = vst [vmem:[#allocation55_spill] sm:$0xff] %v21027_v41  ;;  %v21043_v55 = vld [vmem:[#allocation2 + $0xf0] sm:$0xff]  ;;  %v21063_v41 = vld [vmem:[#allocation2 + $0x128] sm:$0xff] }
 0x3a4   : > { %17521 = vmatprep.subr.mxu1 %v15600_v10 }
 0x3a6   : > { %17427 = vmatmul.mubr.msk.f32.gmra.mrb[30].mxu1 %vm4269_vm3, %v20712_v60 }
 0x3a7   : > { %17429 = vmatprep.mubr.msk.f32.mxu1 %vm4269_vm3, %v20733_v18 }
 0x3aa   : > { %17430 = vmatmul.mubr.msk.f32.gmra.mrb[0].mxu1 %vm4269_vm3, %v20741_v22 }
 0x3ab   : > { %17432 = vmatprep.mubr.msk.f32.mxu1 %vm4269_vm3, %v20761_v57 }
 0x3ae   : > { %17433 = vmatmul.mubr.msk.f32.gmra.mrb[2].mxu1 %vm4269_vm3, %v20769_v34 }
 0x3af   : > { %17435 = vmatprep.mubr.msk.f32.mxu1 %vm4269_vm3, %v20787_v8 }
 0x3b2   : > { %17436 = vmatmul.mubr.msk.f32.gmra.mrb[4].mxu1 %vm4269_vm3, %v20795_v14 }
 0x3b3   : > { %17438 = vmatprep.mubr.msk.f32.mxu1 %vm4269_vm3, %v20813_v30 }
 0x3b6   : > { %17439 = vmatmul.mubr.msk.f32.gmra.mrb[6].mxu1 %vm4269_vm3, %v20821_v33 }
 0x3b7   : > { %17441 = vmatprep.mubr.msk.f32.mxu1 %vm4269_vm3, %v20839_v37 }
 0x3ba   : > { %17442 = vmatmul.mubr.msk.f32.gmra.mrb[8].mxu1 %vm4269_vm3, %v20847_v47 }
 0x3bb   : > { %17444 = vmatprep.mubr.msk.f32.mxu1 %vm4269_vm3, %v20865_v23 }
 0x3be   : > { %17445 = vmatmul.mubr.msk.f32.gmra.mrb[10].mxu1 %vm4269_vm3, %v20873_v49 }
 0x3bf   : > { %17447 = vmatprep.mubr.msk.f32.mxu1 %vm4269_vm3, %v20895_v6 }
 0x3c2   : > { %17448 = vmatmul.mubr.msk.f32.gmra.mrb[12].mxu1 %vm4269_vm3, %v20897_v12 }
 0x3c3   : > { %17450 = vmatprep.mubr.msk.f32.mxu1 %vm4269_vm3, %v20917_v32 }
 0x3c6   : > { %17451 = vmatmul.mubr.msk.f32.gmra.mrb[14].mxu1 %vm4269_vm3, %v20919_v3 }
 0x3c7   : > { %17453 = vmatprep.mubr.msk.f32.mxu1 %vm4269_vm3, %v21043_v55 }
 0x3ca   : > { %17454 = vmatmul.mubr.msk.f32.gmra.mrb[16].mxu1 %vm4269_vm3, %v21047_v31 }
 0x3cb   : > { %17456 = vmatprep.mubr.msk.f32.mxu1 %vm4269_vm3, %v21051_v19 }
 0x3ce   : > { %17457 = vmatmul.mubr.msk.f32.gmra.mrb[18].mxu1 %vm4269_vm3, %v21055_v62 }
 0x3cf   : > { %17459 = vmatprep.mubr.msk.f32.mxu1 %vm4269_vm3, %v21059_v40 }
 0x3d2   : > { %17460 = vmatmul.mubr.msk.f32.gmra.mrb[20].mxu1 %vm4269_vm3, %v21063_v41 }
 0x3d3   : > { %17462 = vmatprep.mubr.msk.f32.mxu1 %vm4269_vm3, %v21067_v29 }
 0x3d6   : > { %17463 = vmatmul.mubr.msk.f32.gmra.mrb[22].mxu1 %vm4269_vm3, %v21071_v0 }
 0x3d7   : > { %17465 = vmatprep.mubr.msk.f32.mxu1 %vm4269_vm3, %v21075_v27 }
 0x3da   : > { %17466 = vmatmul.mubr.msk.f32.gmra.mrb[24].mxu1 %vm4269_vm3, %v21079_v5 }
 0x3db   : > { %17468 = vmatprep.mubr.msk.f32.mxu1 %vm4269_vm3, %v21083_v63 }
 0x3de   : > { %17469 = vmatmul.mubr.msk.f32.gmra.mrb[26].mxu1 %vm4269_vm3, %v21087_v43 }
 0x3df   : > { %17473 = vmatprep.mubr.msk.f32.mxu1 %vm4269_vm3, %v20690_v42  ;;  %v21105_v42 = vld [vmem:[#allocation2 + $0x3a] sm:$0xff] }
 0x3e0   : > { %23799 = vst [vmem:[#allocation56_spill] sm:$0xff] %v21105_v42 }
 0x3e2   : > { %17474 = vmatmul.mubr.msk.f32.vlgmr.msra.gmra.mrb[28].mxu1 %vm4269_vm3, %v5067_v36  ;;  %v21111_v36 = vld [vmem:[#allocation2 + $0x52] sm:$0xff] }
 0x3e3   : > { %17522 = vmatpush3.msra.mxu1 %v15600_v10  ;;  %17476 = vmatprep.mubr.msk.f32.mxu1 %vm4269_vm3, %v20714_v61  ;;  %23800 = vst [vmem:[#allocation50_spill] sm:$0xff] %v21111_v36  ;;  %v21117_v10 = vld [vmem:[#allocation2 + $0x6a] sm:$0xff] }
 0x3e4   : > { %17571 = vmatprep.subr.mxu1 %v15633_v13  ;;  %23801 = vst [vmem:[#allocation51_spill] sm:$0xff] %v21117_v10 }
 0x3e6   : > { %17477 = vmatmul.mubr.msk.f32.gmra.mrb[30].mxu1 %vm4269_vm3, %v21099_v26 }
 0x3e7   : > { %17479 = vmatprep.mubr.msk.f32.mxu1 %vm4269_vm3, %v20743_v24 }
 0x3ea   : > { %17480 = vmatmul.mubr.msk.f32.gmra.mrb[0].mxu1 %vm4269_vm3, %v21105_v42  ;;  %v21123_v42 = vld [vmem:[#allocation2 + $0x82] sm:$0xff] }
 0x3eb   : > { %17482 = vmatprep.mubr.msk.f32.mxu1 %vm4269_vm3, %v20771_v25  ;;  %23802 = vst [vmem:[#allocation52_spill] sm:$0xff] %v21123_v42 }
 0x3ee   : > { %17483 = vmatmul.mubr.msk.f32.gmra.mrb[2].mxu1 %vm4269_vm3, %v21111_v36  ;;  %v21129_v36 = vld [vmem:[#allocation2 + $0x9a] sm:$0xff] }
 0x3ef   : > { %17485 = vmatprep.mubr.msk.f32.mxu1 %vm4269_vm3, %v20797_v15  ;;  %23803 = vst [vmem:[#allocation53_spill] sm:$0xff] %v21129_v36 }
 0x3f2   : > { %17486 = vmatmul.mubr.msk.f32.gmra.mrb[4].mxu1 %vm4269_vm3, %v21117_v10  ;;  %v21135_v10 = vld [vmem:[#allocation2 + $0xb2] sm:$0xff] }
 0x3f3   : > { %17488 = vmatprep.mubr.msk.f32.mxu1 %vm4269_vm3, %v20823_v48  ;;  %23804 = vst [vmem:[#allocation30_spill] sm:$0xff] %v21135_v10 }
 0x3f6   : > { %17489 = vmatmul.mubr.msk.f32.gmra.mrb[6].mxu1 %vm4269_vm3, %v21123_v42  ;;  %v21141_v42 = vld [vmem:[#allocation2 + $0xca] sm:$0xff] }
 0x3f7   : > { %17491 = vmatprep.mubr.msk.f32.mxu1 %vm4269_vm3, %v20849_v56  ;;  %23805 = vst [vmem:[#allocation43_spill] sm:$0xff] %v21141_v42 }
 0x3fa   : > { %17492 = vmatmul.mubr.msk.f32.gmra.mrb[8].mxu1 %vm4269_vm3, %v21129_v36  ;;  %v21147_v36 = vld [vmem:[#allocation2 + $0xe2] sm:$0xff] }
 0x3fb   : > { %17494 = vmatprep.mubr.msk.f32.mxu1 %vm4269_vm3, %v20875_v46  ;;  %23806 = vst [vmem:[#allocation57_spill] sm:$0xff] %v21147_v36  ;;  %v21151_v46 = vld [vmem:[#allocation2 + $0xf2] sm:$0xff] }
 0x3fc   : > { %23807 = vst [vmem:[#allocation58_spill] sm:$0xff] %v21151_v46 }
 0x3fe   : > { %17495 = vmatmul.mubr.msk.f32.gmra.mrb[10].mxu1 %vm4269_vm3, %v21135_v10  ;;  %v21155_v10 = vld [vmem:[#allocation2 + $0xfa] sm:$0xff] }
 0x3ff   : > { %17497 = vmatprep.mubr.msk.f32.mxu1 %vm4269_vm3, %v20899_v9  ;;  %23808 = vst [vmem:[#allocation59_spill] sm:$0xff] %v21155_v10  ;;  %v21159_v9 = vld [vmem:[#allocation2 + $0x10a] sm:$0xff] }
 0x400   : > { %23809 = vst [vmem:[#allocation60_spill] sm:$0xff] %v21159_v9 }
 0x402   : > { %17498 = vmatmul.mubr.msk.f32.gmra.mrb[12].mxu1 %vm4269_vm3, %v21141_v42 }
 0x403   : > { %17500 = vmatprep.mubr.msk.f32.mxu1 %vm4269_vm3, %v20921_v38  ;;  %v21163_v38 = vld [vmem:[#allocation2 + $0x112] sm:$0xff] }
 0x404   : > { %23810 = vst [vmem:[#allocation61_spill] sm:$0xff] %v21163_v38 }
 0x406   : > { %17501 = vmatmul.mubr.msk.f32.gmra.mrb[14].mxu1 %vm4269_vm3, %v21147_v36  ;;  %v21167_v36 = vld [vmem:[#allocation2 + $0x122] sm:$0xff] }
 0x407   : > { %17503 = vmatprep.mubr.msk.f32.mxu1 %vm4269_vm3, %v21151_v46  ;;  %23811 = vst [vmem:[#allocation62_spill] sm:$0xff] %v21167_v36  ;;  %v21171_v46 = vld [vmem:[#allocation2 + $0x12a] sm:$0xff] }
 0x408   : > { %23812 = vst [vmem:[#allocation63_spill] sm:$0xff] %v21171_v46 }
 0x40a   : > { %17504 = vmatmul.mubr.msk.f32.gmra.mrb[16].mxu1 %vm4269_vm3, %v21155_v10  ;;  %v21175_v10 = vld [vmem:[#allocation2 + $0x13a] sm:$0xff] }
 0x40b   : > { %17506 = vmatprep.mubr.msk.f32.mxu1 %vm4269_vm3, %v21159_v9  ;;  %23813 = vst [vmem:[#allocation64_spill] sm:$0xff] %v21175_v10  ;;  %v21179_v9 = vld [vmem:[#allocation2 + $0x142] sm:$0xff] }
 0x40e   : > { %17507 = vmatmul.mubr.msk.f32.gmra.mrb[18].mxu1 %vm4269_vm3, %v21163_v38  ;;  %v21183_v38 = vld [vmem:[#allocation2 + $0x152] sm:$0xff] }
 0x40f   : > { %17509 = vmatprep.mubr.msk.f32.mxu1 %vm4269_vm3, %v21167_v36  ;;  %23814 = vst [vmem:[#allocation65_spill] sm:$0xff] %v21183_v38  ;;  %v21187_v36 = vld [vmem:[#allocation2 + $0x15a] sm:$0xff] }
 0x412   : > { %17510 = vmatmul.mubr.msk.f32.gmra.mrb[20].mxu1 %vm4269_vm3, %v21171_v46  ;;  %v21191_v46 = vld [vmem:[#allocation2 + $0x16a] sm:$0xff] }
 0x413   : > { %17512 = vmatprep.mubr.msk.f32.mxu1 %vm4269_vm3, %v21175_v10  ;;  %23815 = vst [vmem:[#allocation66_spill] sm:$0xff] %v21191_v46  ;;  %v21195_v10 = vld [vmem:[#allocation2 + $0x172] sm:$0xff] }
 0x416   : > { %17513 = vmatmul.mubr.msk.f32.gmra.mrb[22].mxu1 %vm4269_vm3, %v21179_v9 }
 0x417   : > { %17515 = vmatprep.mubr.msk.f32.mxu1 %vm4269_vm3, %v21183_v38  ;;  %v15666_v38 = vld [vmem:[%s23766_s28 + $0x28] sm:$0xff] }
 0x41a   : > { %17516 = vmatmul.mubr.msk.f32.gmra.mrb[24].mxu1 %vm4269_vm3, %v21187_v36 }
 0x41b   : > { %17518 = vmatprep.mubr.msk.f32.mxu1 %vm4269_vm3, %v21191_v46 }
 0x41e   : > { %17519 = vmatmul.mubr.msk.f32.gmra.mrb[26].mxu1 %vm4269_vm3, %v21195_v10 }
 0x41f   : > { %17523 = vmatprep.mubr.msk.f32.mxu1 %vm4269_vm3, %v20710_v53 }
 0x422   : > { %17524 = vmatmul.mubr.msk.f32.vlgmr.msra.gmra.mrb[28].mxu1 %vm4269_vm3, %v20712_v60 }
 0x423   : > { %17572 = vmatpush3.msra.mxu1 %v15633_v13  ;;  %17526 = vmatprep.mubr.msk.f32.mxu1 %vm4269_vm3, %v20733_v18  ;;  %v21266_v13 = vld [vmem:[#allocation2 + $0x180] sm:$0xff] }
 0x424   : > { %17621 = vmatprep.subr.mxu1 %v15666_v38 }
 0x426   : > { %17527 = vmatmul.mubr.msk.f32.gmra.mrb[30].mxu1 %vm4269_vm3, %v20741_v22 }
 0x427   : > { %17529 = vmatprep.mubr.msk.f32.mxu1 %vm4269_vm3, %v20761_v57 }
 0x42a   : > { %17530 = vmatmul.mubr.msk.f32.gmra.mrb[0].mxu1 %vm4269_vm3, %v20769_v34 }
 0x42b   : > { %17532 = vmatprep.mubr.msk.f32.mxu1 %vm4269_vm3, %v20787_v8 }
 0x42e   : > { %17533 = vmatmul.mubr.msk.f32.gmra.mrb[2].mxu1 %vm4269_vm3, %v20795_v14 }
 0x42f   : > { %17535 = vmatprep.mubr.msk.f32.mxu1 %vm4269_vm3, %v20813_v30 }
 0x432   : > { %17536 = vmatmul.mubr.msk.f32.gmra.mrb[4].mxu1 %vm4269_vm3, %v20821_v33 }
 0x433   : > { %17538 = vmatprep.mubr.msk.f32.mxu1 %vm4269_vm3, %v20839_v37 }
 0x436   : > { %17539 = vmatmul.mubr.msk.f32.gmra.mrb[6].mxu1 %vm4269_vm3, %v20847_v47  ;;  %v21228_v53 = vpop.f32.mrb[34].mxu0 }
 0x437   : > { %17541 = vmatprep.mubr.msk.f32.mxu1 %vm4269_vm3, %v20865_v23  ;;  %23816 = vst [vmem:[#allocation67_spill] sm:$0xff] %v21228_v53  ;;  %v21230_v60 = vpop.f32.mrb[35].mxu0  ;;  %v15699_v53 = vld [vmem:[%s23766_s28 + $0x30] sm:$0xff] }
 0x438   : > { %23817 = vst [vmem:[#allocation68_spill] sm:$0xff] %v21230_v60  ;;  %v21270_v60 = vld [vmem:[#allocation2 + $0x188] sm:$0xff] }
 0x43a   : > { %17542 = vmatmul.mubr.msk.f32.gmra.mrb[8].mxu1 %vm4269_vm3, %v20873_v49 }
 0x43b   : > { %17544 = vmatprep.mubr.msk.f32.mxu1 %vm4269_vm3, %v20895_v6 }
 0x43e   : > { %17545 = vmatmul.mubr.msk.f32.gmra.mrb[10].mxu1 %vm4269_vm3, %v20897_v12 }
 0x43f   : > { %17547 = vmatprep.mubr.msk.f32.mxu1 %vm4269_vm3, %v20917_v32 }
 0x442   : > { %17548 = vmatmul.mubr.msk.f32.gmra.mrb[12].mxu1 %vm4269_vm3, %v20919_v3 }
 0x443   : > { %17550 = vmatprep.mubr.msk.f32.mxu1 %vm4269_vm3, %v21043_v55 }
 0x446   : > { %17551 = vmatmul.mubr.msk.f32.gmra.mrb[14].mxu1 %vm4269_vm3, %v21047_v31 }
 0x447   : > { %17553 = vmatprep.mubr.msk.f32.mxu1 %vm4269_vm3, %v21051_v19 }
 0x44a   : > { %17554 = vmatmul.mubr.msk.f32.gmra.mrb[16].mxu1 %vm4269_vm3, %v21055_v62 }
 0x44b   : > { %17556 = vmatprep.mubr.msk.f32.mxu1 %vm4269_vm3, %v21059_v40 }
 0x44e   : > { %17557 = vmatmul.mubr.msk.f32.gmra.mrb[18].mxu1 %vm4269_vm3, %v21063_v41 }
 0x44f   : > { %17559 = vmatprep.mubr.msk.f32.mxu1 %vm4269_vm3, %v21067_v29 }
 0x452   : > { %17560 = vmatmul.mubr.msk.f32.gmra.mrb[20].mxu1 %vm4269_vm3, %v21071_v0 }
 0x453   : > { %17562 = vmatprep.mubr.msk.f32.mxu1 %vm4269_vm3, %v21075_v27 }
 0x456   : > { %17563 = vmatmul.mubr.msk.f32.gmra.mrb[22].mxu1 %vm4269_vm3, %v21079_v5 }
 0x457   : > { %17565 = vmatprep.mubr.msk.f32.mxu1 %vm4269_vm3, %v21083_v63 }
 0x45a   : > { %17566 = vmatmul.mubr.msk.f32.gmra.mrb[24].mxu1 %vm4269_vm3, %v21087_v43 }
 0x45b   : > { %17568 = vmatprep.mubr.msk.f32.mxu1 %vm4269_vm3, %v21266_v13 }
 0x45e   : > { %17569 = vmatmul.mubr.msk.f32.gmra.mrb[26].mxu1 %vm4269_vm3, %v21270_v60 }
 0x45f   : > { %17573 = vmatprep.mubr.msk.f32.mxu1 %vm4269_vm3, %v20702_v50  ;;  %v23818_v50 = vld [vmem:[#allocation29_spill] sm:$0xff] }
 0x462   : > { %17574 = vmatmul.mubr.msk.f32.vlgmr.msra.gmra.mrb[28].mxu1 %vm4269_vm3, %v20704_v51  ;;  %v23819_v51 = vld [vmem:[#allocation31_spill] sm:$0xff] }
 0x463   : > { %17622 = vmatpush3.msra.mxu1 %v15666_v38  ;;  %17576 = vmatprep.mubr.msk.f32.mxu1 %vm4269_vm3, %v20731_v16  ;;  %v23821_v16 = vld [vmem:[#allocation33_spill] sm:$0xff]  ;;  %v21337_v38 = vld [vmem:[#allocation2 + $0x181] sm:$0xff] }
 0x464   : > { %17671 = vmatprep.subr.mxu1 %v15699_v53 }
 0x466   : > { %17577 = vmatmul.mubr.msk.f32.gmra.mrb[30].mxu1 %vm4269_vm3, %v20722_v2  ;;  %v23820_v2 = vld [vmem:[#allocation32_spill] sm:$0xff] }
 0x467   : > { %17579 = vmatprep.mubr.msk.f32.mxu1 %vm4269_vm3, %v20758_v58  ;;  %v23823_v58 = vld [vmem:[#allocation35_spill] sm:$0xff] }
 0x46a   : > { %17580 = vmatmul.mubr.msk.f32.gmra.mrb[0].mxu1 %vm4269_vm3, %v20754_v44  ;;  %v23822_v44 = vld [vmem:[#allocation34_spill] sm:$0xff] }
 0x46b   : > { %17582 = vmatprep.mubr.msk.f32.mxu1 %vm4269_vm3, %v20785_v7  ;;  %v23825_v7 = vld [vmem:[#allocation44_spill] sm:$0xff] }
 0x46e   : > { %17583 = vmatmul.mubr.msk.f32.gmra.mrb[2].mxu1 %vm4269_vm3, %v20781_v54  ;;  %v23824_v54 = vld [vmem:[#allocation39_spill] sm:$0xff] }
 0x46f   : > { %17585 = vmatprep.mubr.msk.f32.mxu1 %vm4269_vm3, %v20811_v28  ;;  %v23827_v28 = vld [vmem:[#allocation48_spill] sm:$0xff] }
 0x472   : > { %17586 = vmatmul.mubr.msk.f32.gmra.mrb[4].mxu1 %vm4269_vm3, %v20807_v45  ;;  %v23826_v45 = vld [vmem:[#allocation46_spill] sm:$0xff] }
 0x473   : > { %17588 = vmatprep.mubr.msk.f32.mxu1 %vm4269_vm3, %v20837_v21  ;;  %v15732_v21 = vld [vmem:[%s23766_s28 + $0x38] sm:$0xff] }
 0x476   : > { %17589 = vmatmul.mubr.msk.f32.gmra.mrb[6].mxu1 %vm4269_vm3, %v20833_v1  ;;  %v21341_v1 = vld [vmem:[#allocation2 + $0x189] sm:$0xff] }
 0x477   : > { %17591 = vmatprep.mubr.msk.f32.mxu1 %vm4269_vm3, %v20863_v20  ;;  %v23829_v20 = vld [vmem:[#allocation50_spill] sm:$0xff] }
 0x47a   : > { %17592 = vmatmul.mubr.msk.f32.gmra.mrb[8].mxu1 %vm4269_vm3, %v20859_v4  ;;  %v23828_v4 = vld [vmem:[#allocation56_spill] sm:$0xff] }
 0x47b   : > { %17594 = vmatprep.mubr.msk.f32.mxu1 %vm4269_vm3, %v20887_v35 }
 0x47e   : > { %17595 = vmatmul.mubr.msk.f32.gmra.mrb[10].mxu1 %vm4269_vm3, %v20889_v59 }
 0x47f   : > { %17597 = vmatprep.mubr.msk.f32.mxu1 %vm4269_vm3, %v20909_v52 }
 0x482   : > { %17598 = vmatmul.mubr.msk.f32.gmra.mrb[12].mxu1 %vm4269_vm3, %v20911_v39 }
 0x483   : > { %17600 = vmatprep.mubr.msk.f32.mxu1 %vm4269_vm3, %v20931_v11 }
 0x486   : > { %17601 = vmatmul.mubr.msk.f32.gmra.mrb[14].mxu1 %vm4269_vm3, %v20937_v17 }
 0x487   : > { %17603 = vmatprep.mubr.msk.f32.mxu1 %vm4269_vm3, %v23818_v50 }
 0x48a   : > { %17604 = vmatmul.mubr.msk.f32.gmra.mrb[16].mxu1 %vm4269_vm3, %v23819_v51 }
 0x48b   : > { %17606 = vmatprep.mubr.msk.f32.mxu1 %vm4269_vm3, %v23820_v2 }
 0x48e   : > { %17607 = vmatmul.mubr.msk.f32.gmra.mrb[18].mxu1 %vm4269_vm3, %v23821_v16 }
 0x48f   : > { %17609 = vmatprep.mubr.msk.f32.mxu1 %vm4269_vm3, %v23822_v44 }
 0x492   : > { %17610 = vmatmul.mubr.msk.f32.gmra.mrb[20].mxu1 %vm4269_vm3, %v23823_v58 }
 0x493   : > { %17612 = vmatprep.mubr.msk.f32.mxu1 %vm4269_vm3, %v23824_v54 }
 0x496   : > { %17613 = vmatmul.mubr.msk.f32.gmra.mrb[22].mxu1 %vm4269_vm3, %v23825_v7 }
 0x497   : > { %17615 = vmatprep.mubr.msk.f32.mxu1 %vm4269_vm3, %v23826_v45 }
 0x49a   : > { %17616 = vmatmul.mubr.msk.f32.gmra.mrb[24].mxu1 %vm4269_vm3, %v23827_v28 }
 0x49b   : > { %17618 = vmatprep.mubr.msk.f32.mxu1 %vm4269_vm3, %v21337_v38 }
 0x49e   : > { %17619 = vmatmul.mubr.msk.f32.gmra.mrb[26].mxu1 %vm4269_vm3, %v21341_v1 }
 0x49f   : > { %17623 = vmatprep.mubr.msk.f32.mxu1 %vm4269_vm3, %v20714_v61  ;;  %v23830_v61 = vld [vmem:[#allocation51_spill] sm:$0xff] }
 0x4a2   : > { %17624 = vmatmul.mubr.msk.f32.vlgmr.msra.gmra.mrb[28].mxu1 %vm4269_vm3, %v21099_v26  ;;  %v23831_v26 = vld [vmem:[#allocation52_spill] sm:$0xff] }
 0x4a3   : > { %17672 = vmatpush3.msra.mxu1 %v15699_v53  ;;  %17626 = vmatprep.mubr.msk.f32.mxu1 %vm4269_vm3, %v20743_v24  ;;  %v23832_v53 = vld [vmem:[#allocation53_spill] sm:$0xff] }
 0x4a4   : > { %17721 = vmatprep.subr.mxu1 %v15732_v21 }
 0x4a6   : > { %17627 = vmatmul.mubr.msk.f32.gmra.mrb[30].mxu1 %vm4269_vm3, %v23828_v4 }
 0x4a7   : > { %17629 = vmatprep.mubr.msk.f32.mxu1 %vm4269_vm3, %v20771_v25  ;;  %v23833_v25 = vld [vmem:[#allocation24_spill] sm:$0xff] }
 0x4aa   : > { %17630 = vmatmul.mubr.msk.f32.gmra.mrb[0].mxu1 %vm4269_vm3, %v23829_v20  ;;  %v23834_v20 = vld [vmem:[#allocation30_spill] sm:$0xff] }
 0x4ab   : > { %17632 = vmatprep.mubr.msk.f32.mxu1 %vm4269_vm3, %v20797_v15  ;;  %v23835_v15 = vld [vmem:[#allocation26_spill] sm:$0xff] }
 0x4ae   : > { %17633 = vmatmul.mubr.msk.f32.gmra.mrb[2].mxu1 %vm4269_vm3, %v23830_v61 }
 0x4af   : > { %17635 = vmatprep.mubr.msk.f32.mxu1 %vm4269_vm3, %v20823_v48  ;;  %v23836_v48 = vld [vmem:[#allocation27_spill] sm:$0xff] }
 0x4b2   : > { %17636 = vmatmul.mubr.msk.f32.gmra.mrb[4].mxu1 %vm4269_vm3, %v23831_v26  ;;  %v23837_v26 = vld [vmem:[#allocation57_spill] sm:$0xff] }
 0x4b3   : > { %17638 = vmatprep.mubr.msk.f32.mxu1 %vm4269_vm3, %v20849_v56  ;;  %v23838_v56 = vld [vmem:[#allocation58_spill] sm:$0xff] }
 0x4b6   : > { %17639 = vmatmul.mubr.msk.f32.gmra.mrb[6].mxu1 %vm4269_vm3, %v23832_v53  ;;  %v23839_v53 = vld [vmem:[#allocation59_spill] sm:$0xff] }
 0x4b7   : > { %17641 = vmatprep.mubr.msk.f32.mxu1 %vm4269_vm3, %v23833_v25  ;;  %v23840_v25 = vld [vmem:[#allocation60_spill] sm:$0xff] }
 0x4ba   : > { %17642 = vmatmul.mubr.msk.f32.gmra.mrb[8].mxu1 %vm4269_vm3, %v23834_v20  ;;  %v23841_v20 = vld [vmem:[#allocation61_spill] sm:$0xff] }
 0x4bb   : > { %17644 = vmatprep.mubr.msk.f32.mxu1 %vm4269_vm3, %v23835_v15  ;;  %v23842_v15 = vld [vmem:[#allocation62_spill] sm:$0xff] }
 0x4be   : > { %17645 = vmatmul.mubr.msk.f32.gmra.mrb[10].mxu1 %vm4269_vm3, %v21141_v42  ;;  %v23843_v42 = vld [vmem:[#allocation63_spill] sm:$0xff] }
 0x4bf   : > { %17647 = vmatprep.mubr.msk.f32.mxu1 %vm4269_vm3, %v23836_v48  ;;  %v23844_v48 = vld [vmem:[#allocation64_spill] sm:$0xff] }
 0x4c2   : > { %17648 = vmatmul.mubr.msk.f32.gmra.mrb[12].mxu1 %vm4269_vm3, %v23837_v26 }
 0x4c3   : > { %17650 = vmatprep.mubr.msk.f32.mxu1 %vm4269_vm3, %v23838_v56  ;;  %v23845_v56 = vld [vmem:[#allocation65_spill] sm:$0xff] }
 0x4c6   : > { %17651 = vmatmul.mubr.msk.f32.gmra.mrb[14].mxu1 %vm4269_vm3, %v23839_v53 }
 0x4c7   : > { %17653 = vmatprep.mubr.msk.f32.mxu1 %vm4269_vm3, %v23840_v25 }
 0x4ca   : > { %17654 = vmatmul.mubr.msk.f32.gmra.mrb[16].mxu1 %vm4269_vm3, %v23841_v20 }
 0x4cb   : > { %17656 = vmatprep.mubr.msk.f32.mxu1 %vm4269_vm3, %v23842_v15  ;;  %v21408_v15 = vld [vmem:[#allocation2 + $0x182] sm:$0xff] }
 0x4ce   : > { %17657 = vmatmul.mubr.msk.f32.gmra.mrb[18].mxu1 %vm4269_vm3, %v23843_v42 }
 0x4cf   : > { %17659 = vmatprep.mubr.msk.f32.mxu1 %vm4269_vm3, %v23844_v48  ;;  %v21412_v48 = vld [vmem:[#allocation2 + $0x18a] sm:$0xff] }
 0x4d2   : > { %17660 = vmatmul.mubr.msk.f32.gmra.mrb[20].mxu1 %vm4269_vm3, %v21179_v9 }
 0x4d3   : > { %17662 = vmatprep.mubr.msk.f32.mxu1 %vm4269_vm3, %v23845_v56 }
 0x4d6   : > { %17663 = vmatmul.mubr.msk.f32.gmra.mrb[22].mxu1 %vm4269_vm3, %v21187_v36 }
 0x4d7   : > { %17665 = vmatprep.mubr.msk.f32.mxu1 %vm4269_vm3, %v21191_v46  ;;  %v15765_v46 = vld [vmem:[%s23766_s28 + $0x40] sm:$0xff] }
 0x4da   : > { %17666 = vmatmul.mubr.msk.f32.gmra.mrb[24].mxu1 %vm4269_vm3, %v21195_v10 }
 0x4db   : > { %17668 = vmatprep.mubr.msk.f32.mxu1 %vm4269_vm3, %v21408_v15 }
 0x4de   : > { %17669 = vmatmul.mubr.msk.f32.gmra.mrb[26].mxu1 %vm4269_vm3, %v21412_v48 }
 0x4df   : > { %17673 = vmatprep.mubr.msk.f32.mxu1 %vm4269_vm3, %v20733_v18  ;;  %v6644_v18 = vld [vmem:[#allocation2 + $0x198] sm:$0xff] }
 0x4e2   : > { %17674 = vmatmul.mubr.msk.f32.vlgmr.msra.gmra.mrb[28].mxu1 %vm4269_vm3, %v20741_v22  ;;  %v6645_v22 = vld [vmem:[#allocation2 + $0x1a0] sm:$0xff] }
 0x4e3   : > { %17722 = vmatpush3.msra.mxu1 %v15732_v21  ;;  %17676 = vmatprep.mubr.msk.f32.mxu1 %vm4269_vm3, %v20761_v57  ;;  %v23846_v57 = vld [vmem:[#allocation20_spill] sm:$0xff] }
 0x4e4   : > { %17771 = vmatprep.subr.mxu1 %v15765_v46 }
 0x4e6   : > { %17677 = vmatmul.mubr.msk.f32.gmra.mrb[30].mxu1 %vm4269_vm3, %v20769_v34  ;;  %v23847_v34 = vld [vmem:[#allocation19_spill] sm:$0xff] }
 0x4e7   : > { %17679 = vmatprep.mubr.msk.f32.mxu1 %vm4269_vm3, %v20787_v8  ;;  %v23848_v8 = vld [vmem:[#allocation36_spill] sm:$0xff] }
 0x4ea   : > { %17680 = vmatmul.mubr.msk.f32.gmra.mrb[0].mxu1 %vm4269_vm3, %v20795_v14  ;;  %v23849_v14 = vld [vmem:[#allocation21_spill] sm:$0xff] }
 0x4eb   : > { %17682 = vmatprep.mubr.msk.f32.mxu1 %vm4269_vm3, %v20813_v30  ;;  %v23850_v30 = vld [vmem:[#allocation28_spill] sm:$0xff] }
 0x4ee   : > { %17683 = vmatmul.mubr.msk.f32.gmra.mrb[2].mxu1 %vm4269_vm3, %v20821_v33  ;;  %v23851_v33 = vld [vmem:[#allocation37_spill] sm:$0xff] }
 0x4ef   : > { %17685 = vmatprep.mubr.msk.f32.mxu1 %vm4269_vm3, %v20839_v37  ;;  %v23852_v37 = vld [vmem:[#allocation42_spill] sm:$0xff] }
 0x4f2   : > { %17686 = vmatmul.mubr.msk.f32.gmra.mrb[4].mxu1 %vm4269_vm3, %v20847_v47  ;;  %v23853_v47 = vld [vmem:[#allocation38_spill] sm:$0xff] }
 0x4f3   : > { %17688 = vmatprep.mubr.msk.f32.mxu1 %vm4269_vm3, %v20865_v23  ;;  %v23855_v23 = vld [vmem:[#allocation45_spill] sm:$0xff] }
 0x4f6   : > { %17689 = vmatmul.mubr.msk.f32.gmra.mrb[6].mxu1 %vm4269_vm3, %v20873_v49  ;;  %v23856_v49 = vld [vmem:[#allocation25_spill] sm:$0xff] }
 0x4f7   : > { %17691 = vmatprep.mubr.msk.f32.mxu1 %vm4269_vm3, %v20895_v6  ;;  %v23862_v6 = vld [vmem:[#allocation52_spill] sm:$0xff] }
 0x4fa   : > { %17692 = vmatmul.mubr.msk.f32.gmra.mrb[8].mxu1 %vm4269_vm3, %v20897_v12  ;;  %v23864_v12 = vld [vmem:[#allocation53_spill] sm:$0xff] }
 0x4fb   : > { %17694 = vmatprep.mubr.msk.f32.mxu1 %vm4269_vm3, %v20917_v32  ;;  %v23854_v32 = vld [vmem:[#allocation54_spill] sm:$0xff] }
 0x4fe   : > { %17695 = vmatmul.mubr.msk.f32.gmra.mrb[10].mxu1 %vm4269_vm3, %v20919_v3  ;;  %v23865_v3 = vld [vmem:[#allocation24_spill] sm:$0xff] }
 0x4ff   : > { %17697 = vmatprep.mubr.msk.f32.mxu1 %vm4269_vm3, %v21043_v55  ;;  %v7418_v55 = vld [vmem:[#allocation2 + $0x19a] sm:$0xff] }
 0x502   : > { %17698 = vmatmul.mubr.msk.f32.gmra.mrb[12].mxu1 %vm4269_vm3, %v21047_v31 }
 0x503   : > { %17700 = vmatprep.mubr.msk.f32.mxu1 %vm4269_vm3, %v21051_v19  ;;  %v7882_v19 = vlaneseq }
 0x506   : > { %17701 = vmatmul.mubr.msk.f32.gmra.mrb[14].mxu1 %vm4269_vm3, %v21055_v62 }
 0x507   : > { %17703 = vmatprep.mubr.msk.f32.mxu1 %vm4269_vm3, %v21059_v40  ;;  %v7883_v40 = vshrl.u32 %v7882_v19, 7 }
 0x50a   : > { %17704 = vmatmul.mubr.msk.f32.gmra.mrb[16].mxu1 %vm4269_vm3, %v21063_v41  ;;  %v23872_v41 = vld [vmem:[#allocation64_spill] sm:$0xff] }
 0x50b   : > { %17706 = vmatprep.mubr.msk.f32.mxu1 %vm4269_vm3, %v21067_v29  ;;  %v23871_v29 = vld [vmem:[#allocation62_spill] sm:$0xff] }
 0x50e   : > { %17707 = vmatmul.mubr.msk.f32.gmra.mrb[18].mxu1 %vm4269_vm3, %v21071_v0  ;;  %v23870_v0 = vld [vmem:[#allocation58_spill] sm:$0xff] }
 0x50f   : > { %17709 = vmatprep.mubr.msk.f32.mxu1 %vm4269_vm3, %v21075_v27  ;;  %v23869_v27 = vld [vmem:[#allocation27_spill] sm:$0xff] }
 0x512   : > { %17710 = vmatmul.mubr.msk.f32.gmra.mrb[20].mxu1 %vm4269_vm3, %v21079_v5  ;;  %v23868_v5 = vld [vmem:[#allocation43_spill] sm:$0xff] }
 0x513   : > { %17712 = vmatprep.mubr.msk.f32.mxu1 %vm4269_vm3, %v21083_v63  ;;  %v23867_v63 = vld [vmem:[#allocation26_spill] sm:$0xff] }
 0x516   : > { %17713 = vmatmul.mubr.msk.f32.gmra.mrb[22].mxu1 %vm4269_vm3, %v21087_v43  ;;  %v23866_v43 = vld [vmem:[#allocation30_spill] sm:$0xff] }
 0x517   : > { %17715 = vmatprep.mubr.msk.f32.mxu1 %vm4269_vm3, %v21266_v13 }
 0x51a   : > { %17716 = vmatmul.mubr.msk.f32.gmra.mrb[24].mxu1 %vm4269_vm3, %v21270_v60 }
 0x51b   : > { %17718 = vmatprep.mubr.msk.f32.mxu1 %vm4269_vm3, %v6644_v18 }
 0x51e   : > { %17719 = vmatmul.mubr.msk.f32.gmra.mrb[26].mxu1 %vm4269_vm3, %v6645_v22 }
 0x51f   : > { %17723 = vmatprep.mubr.msk.f32.mxu1 %vm4269_vm3, %v23846_v57 }
 0x522   : > { %17724 = vmatmul.mubr.msk.f32.vlgmr.msra.gmra.mrb[28].mxu1 %vm4269_vm3, %v23847_v34 }
 0x523   : > { %17772 = vmatpush3.msra.mxu1 %v15765_v46  ;;  %17726 = vmatprep.mubr.msk.f32.mxu1 %vm4269_vm3, %v23848_v8  ;;  %v23857_v46 = vld [vmem:[#allocation23_spill] sm:$0xff] }
 0x526   : > { %17727 = vmatmul.mubr.msk.f32.gmra.mrb[30].mxu1 %vm4269_vm3, %v23849_v14 }
 0x527   : > { %17729 = vmatprep.mubr.msk.f32.mxu1 %vm4269_vm3, %v23850_v30 }
 0x52a   : > { %17730 = vmatmul.mubr.msk.f32.gmra.mrb[0].mxu1 %vm4269_vm3, %v23851_v33 }
 0x52b   : > { %17732 = vmatprep.mubr.msk.f32.mxu1 %vm4269_vm3, %v23852_v37 }
 0x52e   : > { %17733 = vmatmul.mubr.msk.f32.gmra.mrb[2].mxu1 %vm4269_vm3, %v23853_v47 }
 0x52f   : > { %17735 = vmatprep.mubr.msk.f32.mxu1 %vm4269_vm3, %v23854_v32 }
 0x532   : > { %17736 = vmatmul.mubr.msk.f32.gmra.mrb[4].mxu1 %vm4269_vm3, %v23855_v23 }
 0x533   : > { %17738 = vmatprep.mubr.msk.f32.mxu1 %vm4269_vm3, %v23856_v49 }
 0x536   : > { %17739 = vmatmul.mubr.msk.f32.gmra.mrb[6].mxu1 %vm4269_vm3, %v23857_v46 }
 0x537   : > { %17741 = vmatprep.mubr.msk.f32.mxu1 %vm4269_vm3, %v20887_v35  ;;  %v23860_v35 = vld [vmem:[#allocation41_spill] sm:$0xff] }
 0x53a   : > { %17742 = vmatmul.mubr.msk.f32.gmra.mrb[8].mxu1 %vm4269_vm3, %v20889_v59  ;;  %v23861_v59 = vld [vmem:[#allocation40_spill] sm:$0xff] }
 0x53b   : > { %17744 = vmatprep.mubr.msk.f32.mxu1 %vm4269_vm3, %v20909_v52  ;;  %v23859_v52 = vld [vmem:[#allocation50_spill] sm:$0xff] }
 0x53e   : > { %17745 = vmatmul.mubr.msk.f32.gmra.mrb[10].mxu1 %vm4269_vm3, %v20911_v39  ;;  %v23858_v39 = vld [vmem:[#allocation22_spill] sm:$0xff] }
 0x53f   : > { %17747 = vmatprep.mubr.msk.f32.mxu1 %vm4269_vm3, %v20931_v11  ;;  %v7031_v11 = vld [vmem:[#allocation2 + $0x199] sm:$0xff] }
 0x542   : > { %17748 = vmatmul.mubr.msk.f32.gmra.mrb[12].mxu1 %vm4269_vm3, %v20937_v17  ;;  %v7032_v17 = vld [vmem:[#allocation2 + $0x1a1] sm:$0xff] }
 0x543   : > { %17750 = vmatprep.mubr.msk.f32.mxu1 %vm4269_vm3, %v23818_v50 }
 0x546   : > { %17751 = vmatmul.mubr.msk.f32.gmra.mrb[14].mxu1 %vm4269_vm3, %v23819_v51 }
 0x547   : > { %17753 = vmatprep.mubr.msk.f32.mxu1 %vm4269_vm3, %v23820_v2 }
 0x54a   : > { %17754 = vmatmul.mubr.msk.f32.gmra.mrb[16].mxu1 %vm4269_vm3, %v23821_v16 }
 0x54b   : > { %17756 = vmatprep.mubr.msk.f32.mxu1 %vm4269_vm3, %v23822_v44 }
 0x54e   : > { %17757 = vmatmul.mubr.msk.f32.gmra.mrb[18].mxu1 %vm4269_vm3, %v23823_v58  ;;  %v23876_v58 = vld [vmem:[#allocation67_spill] sm:$0xff] }
 0x54f   : > { %17759 = vmatprep.mubr.msk.f32.mxu1 %vm4269_vm3, %v23824_v54 }
 0x552   : > { %17760 = vmatmul.mubr.msk.f32.gmra.mrb[20].mxu1 %vm4269_vm3, %v23825_v7 }
 0x553   : > { %17762 = vmatprep.mubr.msk.f32.mxu1 %vm4269_vm3, %v23826_v45 }
 0x556   : > { %17763 = vmatmul.mubr.msk.f32.gmra.mrb[22].mxu1 %vm4269_vm3, %v23827_v28  ;;  %v23877_v28 = vld [vmem:[#allocation68_spill] sm:$0xff] }
 0x557   : > { %17765 = vmatprep.mubr.msk.f32.mxu1 %vm4269_vm3, %v21337_v38 }
 0x55a   : > { %17766 = vmatmul.mubr.msk.f32.gmra.mrb[24].mxu1 %vm4269_vm3, %v21341_v1 }
 0x55b   : > { %17768 = vmatprep.mubr.msk.f32.mxu1 %vm4269_vm3, %v7031_v11 }
 0x55e   : > { %17769 = vmatmul.mubr.msk.f32.gmra.mrb[26].mxu1 %vm4269_vm3, %v7032_v17 }
 0x55f   : > { %17773 = vmatprep.mubr.msk.f32.mxu1 %vm4269_vm3, %v20743_v24  ;;  %v23863_v24 = vld [vmem:[#allocation47_spill] sm:$0xff] }
 0x562   : > { %17774 = vmatmul.mubr.msk.f32.vlgmr.msra.gmra.mrb[28].mxu1 %vm4269_vm3, %v23828_v4 }
 0x563   : > { %17776 = vmatprep.mubr.msk.f32.mxu1 %vm4269_vm3, %v23858_v39 }
 0x566   : > { %17777 = vmatmul.mubr.msk.f32.gmra.mrb[30].mxu1 %vm4269_vm3, %v23859_v52 }
 0x567   : > { %17779 = vmatprep.mubr.msk.f32.mxu1 %vm4269_vm3, %v23860_v35 }
 0x56a   : > { %17780 = vmatmul.mubr.msk.f32.gmra.mrb[0].mxu1 %vm4269_vm3, %v23830_v61 }
 0x56b   : > { %17782 = vmatprep.mubr.msk.f32.mxu1 %vm4269_vm3, %v23861_v59 }
 0x56e   : > { %17783 = vmatmul.mubr.msk.f32.gmra.mrb[2].mxu1 %vm4269_vm3, %v23862_v6 }
 0x56f   : > { %17785 = vmatprep.mubr.msk.f32.mxu1 %vm4269_vm3, %v23863_v24 }
 0x572   : > { %17786 = vmatmul.mubr.msk.f32.gmra.mrb[4].mxu1 %vm4269_vm3, %v23864_v12 }
 0x573   : > { %17788 = vmatprep.mubr.msk.f32.mxu1 %vm4269_vm3, %v23865_v3 }
 0x576   : > { %17789 = vmatmul.mubr.msk.f32.gmra.mrb[6].mxu1 %vm4269_vm3, %v23866_v43 }
 0x577   : > { %17791 = vmatprep.mubr.msk.f32.mxu1 %vm4269_vm3, %v23867_v63 }
 0x57a   : > { %17792 = vmatmul.mubr.msk.f32.gmra.mrb[8].mxu1 %vm4269_vm3, %v23868_v5 }
 0x57b   : > { %17794 = vmatprep.mubr.msk.f32.mxu1 %vm4269_vm3, %v23869_v27 }
 0x57e   : > { %17795 = vmatmul.mubr.msk.f32.gmra.mrb[10].mxu1 %vm4269_vm3, %v23837_v26 }
 0x57f   : > { %17797 = vmatprep.mubr.msk.f32.mxu1 %vm4269_vm3, %v23870_v0 }
 0x582   : > { %17798 = vmatmul.mubr.msk.f32.gmra.mrb[12].mxu1 %vm4269_vm3, %v23839_v53 }
 0x583   : > { %17800 = vmatprep.mubr.msk.f32.mxu1 %vm4269_vm3, %v23840_v25  ;;  %v23873_v25 = vld [vmem:[#allocation66_spill] sm:$0xff] }
 0x586   : > { %17801 = vmatmul.mubr.msk.f32.gmra.mrb[14].mxu1 %vm4269_vm3, %v23841_v20 }
 0x587   : > { %17803 = vmatprep.mubr.msk.f32.mxu1 %vm4269_vm3, %v23871_v29 }
 0x58a   : > { %17804 = vmatmul.mubr.msk.f32.gmra.mrb[16].mxu1 %vm4269_vm3, %v23843_v42 }
 0x58b   : > { %17806 = vmatprep.mubr.msk.f32.mxu1 %vm4269_vm3, %v23872_v41 }
 0x58e   : > { %17807 = vmatmul.mubr.msk.f32.gmra.mrb[18].mxu1 %vm4269_vm3, %v21179_v9  ;;  %v7419_v9 = vld [vmem:[#allocation2 + $0x1a2] sm:$0xff] }
 0x58f   : > { %17809 = vmatprep.mubr.msk.f32.mxu1 %vm4269_vm3, %v23845_v56  ;;  %v19339_v56 = vmov 1983009808  }
 0x590   : > { %v7880_v31 = vunpack.c.l.s4 %v19339_v56 }
 0x592   : > { %17810 = vmatmul.mubr.msk.f32.gmra.mrb[20].mxu1 %vm4269_vm3, %v21187_v36  ;;  %v7881_v62 = vunpack.c.0.s8 %v7880_v31  ;;  %v21608_v36 = vld [vmem:[%s23489_s4] ss:$0 sm:$0xff] }
 0x593   : > { %17812 = vmatprep.mubr.msk.f32.mxu1 %vm4269_vm3, %v23873_v25 }
 0x594   : > { %v21613_v51 = vsub.s32 %v7881_v62, %v7883_v40 }
 0x596   : > { %17813 = vmatmul.mubr.msk.f32.gmra.mrb[22].mxu1 %vm4269_vm3, %v21195_v10 }
 0x597   : > { %17815 = vmatprep.mubr.msk.f32.mxu1 %vm4269_vm3, %v21408_v15  ;;  %v23874_v15 = vld [vmem:[#allocation49_spill] sm:$0xff] }
 0x59a   : > { %17816 = vmatmul.mubr.msk.f32.gmra.mrb[24].mxu1 %vm4269_vm3, %v21412_v48  ;;  %v23875_v48 = vld [vmem:[#allocation55_spill] sm:$0xff] }
 0x59b   : > { %17818 = vmatprep.mubr.msk.f32.mxu1 %vm4269_vm3, %v7418_v55 }
 0x59e   : > { %17819 = vmatmul.mubr.msk.f32.gmra.mrb[26].mxu1 %vm4269_vm3, %v7419_v9 }
 0x635   : > { %v17775_v42 = vpop.f32.mrb[28].mxu1 }
 0x636   : > { %v18426_v10 = vadd.f32 %v17775_v42, %v23874_v15  ;;  %v7584_v60 = vpop.f32.mrb[29].mxu1 }
 0x637   : > { %v18427_v13 = vadd.f32 %v7584_v60, %v23875_v48 }
 0x638   : > { %v7783_v50 = vadd.f32 %v18426_v10, %v21608_v36 }
 0x639   : > { %v7782_v2 = vadd.f32 %v18427_v13, %v21608_v36  ;;  %v17778_v16 = vpop.f32.mrb[30].mxu1 }
 0x63a   : > { %v7815_v44 = vmax.f32 %v7783_v50, 0.0  ;;  %v18428_v54 = vadd.f32 %v17778_v16, %v23876_v58  ;;  %v7594_v7 = vpop.f32.mrb[31].mxu1 }
 0x63b   : > { %v7814_v45 = vmax.f32 %v7782_v2, 0.0  ;;  %v18429_v38 = vadd.f32 %v7594_v7, %v23877_v28 }
 0x63c   : > { %v7895_v1 = vcombine.high %v7815_v44, %v7815_v44  ;;  %v7902_v21 = vrot.slane %v7815_v44, %v21613_v51  ;;  %v7785_v4 = vadd.f32 %v18428_v54, %v21608_v36 }
 0x63d   : > { %v7878_v20 = vcombine.high %v7814_v45, %v7814_v45  ;;  %v7885_v61 = vrot.slane %v7814_v45, %v21613_v51  ;;  %v21622_v26 = vadd.f32 %v18429_v38, %v21608_v36  ;;  %v21624_v53 = vpop.f32.mrb[0].mxu1 }
 0x63e   : > { %v7909_v18 = vrot.slane %v7895_v1, %v21613_v51  ;;  %v7910_v22 = vcombine.high %v7902_v21, %v7902_v21  ;;  %v8578_v57 = vsel %vm4272_vm4, %v7902_v21, -inf  ;;  %v21628_v34 = vmax.f32 %v7785_v4, 0.0  ;;  %v21630_v8 = vpop.f32.mrb[1].mxu1 }
 0x63f   : > { %v8579_v14 = vrot.slane %v8578_v57, 4  ;;  %v7892_v30 = vrot.slane %v7878_v20, %v21613_v51  ;;  %v7893_v33 = vcombine.high %v7885_v61, %v7885_v61  ;;  %v8550_v37 = vsel %vm4272_vm4, %v7885_v61, -inf }
 0x640   : > { %v7911_v47 = vcombine.high %v7909_v18, %v7909_v18  ;;  %v8585_v32 = vsel %vm4272_vm4, %v7910_v22, -inf  ;;  %v8592_v23 = vsel %vm4272_vm4, %v7909_v18, -inf  ;;  %v8551_v49 = vrot.slane %v8550_v37, 4 }
 0x641   : > { %v8580_v46 = vmax.f32 %v8578_v57, %v8579_v14  ;;  %v8586_v11 = vrot.slane %v8585_v32, 4  ;;  %v8593_v17 = vrot.slane %v8592_v23, 4  ;;  %v7894_v39 = vcombine.high %v7892_v30, %v7892_v30  ;;  %v21636_v52 = vpop.f32.mrb[2].mxu1 }
 0x642   : > { %v8599_v35 = vsel %vm4272_vm4, %v7911_v47, -inf  ;;  %v8552_v59 = vmax.f32 %v8550_v37, %v8551_v49  ;;  %v8557_v6 = vsel %vm4272_vm4, %v7893_v33, -inf  ;;  %v8564_v24 = vsel %vm4272_vm4, %v7892_v30, -inf  ;;  %v21641_v12 = vpop.f32.mrb[3].mxu1 }
 0x643   : > { %v8581_v3 = vrot.slane %v8580_v46, 2  ;;  %v8587_v43 = vmax.f32 %v8585_v32, %v8586_v11  ;;  %v8594_v63 = vmax.f32 %v8592_v23, %v8593_v17  ;;  %v8600_v5 = vrot.slane %v8599_v35, 4 }
 0x644   : > { %v8553_v27 = vrot.slane %v8552_v59, 2  ;;  %v8558_v0 = vrot.slane %v8557_v6, 4  ;;  %v8565_v29 = vrot.slane %v8564_v24, 4  ;;  %v8571_v41 = vsel %vm4272_vm4, %v7894_v39, -inf }
 0x645   : > { %v8582_v25 = vmax.f32 %v8580_v46, %v8581_v3  ;;  %v8588_v55 = vrot.slane %v8587_v43, 2  ;;  %v8595_v9 = vrot.slane %v8594_v63, 2  ;;  %v8601_v56 = vmax.f32 %v8599_v35, %v8600_v5  ;;  %v21644_v31 = vpop.f32.mrb[4].mxu1 }
 0x646   : > { %v8554_v19 = vmax.f32 %v8552_v59, %v8553_v27  ;;  %v8559_v62 = vmax.f32 %v8557_v6, %v8558_v0  ;;  %v8566_v40 = vmax.f32 %v8564_v24, %v8565_v29  ;;  %v8572_v42 = vrot.slane %v8571_v41, 4  ;;  %v21646_v15 = vpop.f32.mrb[5].mxu1 }
 0x647   : > { %v8583_v10 = vrot.slane %v8582_v25, 1  ;;  %v8589_v60 = vmax.f32 %v8587_v43, %v8588_v55  ;;  %v8596_v48 = vmax.f32 %v8594_v63, %v8595_v9  ;;  %v8602_v13 = vrot.slane %v8601_v56, 2 }
 0x648   : > { %v8555_v50 = vrot.slane %v8554_v19, 1  ;;  %v8560_v2 = vrot.slane %v8559_v62, 2  ;;  %v8567_v16 = vrot.slane %v8566_v40, 2  ;;  %v8573_v44 = vmax.f32 %v8571_v41, %v8572_v42 }
 0x649   : > { %v8584_v58 = vmax.f32 %v8582_v25, %v8583_v10  ;;  %v8590_v54 = vrot.slane %v8589_v60, 1  ;;  %v8597_v7 = vrot.slane %v8596_v48, 1  ;;  %v8603_v45 = vmax.f32 %v8601_v56, %v8602_v13  ;;  %v21648_v28 = vpop.f32.mrb[6].mxu1 }
 0x64a   : > { %v8556_v38 = vmax.f32 %v8554_v19, %v8555_v50  ;;  %v8561_v1 = vmax.f32 %v8559_v62, %v8560_v2  ;;  %v8568_v21 = vmax.f32 %v8566_v40, %v8567_v16  ;;  %v8574_v4 = vrot.slane %v8573_v44, 2  ;;  %v21650_v20 = vpop.f32.mrb[7].mxu1 }
 0x64b   : > { %v8591_v61 = vmax.f32 %v8589_v60, %v8590_v54  ;;  %v8598_v18 = vmax.f32 %v8596_v48, %v8597_v7  ;;  %v8604_v22 = vrot.slane %v8603_v45, 1  ;;  %v21653_v57 = vsel %vm4269_vm3, %v8584_v58, -inf }
 0x64c   : > { %v8562_v14 = vrot.slane %v8561_v1, 1  ;;  %v8569_v30 = vrot.slane %v8568_v21, 1  ;;  %v8575_v33 = vmax.f32 %v8573_v44, %v8574_v4  ;;  %v21656_v37 = vsel %vm4269_vm3, %v8556_v38, -inf }
 0x64d   : > { %v8605_v47 = vmax.f32 %v8603_v45, %v8604_v22  ;;  %v21659_v32 = vsel %vm4269_vm3, %v8591_v61, -inf  ;;  %v21662_v23 = vsel %vm4269_vm3, %v8598_v18, -inf  ;;  %v7929_v49 = vcombine.high %v21628_v34, %v21628_v34  ;;  %v21666_v46 = vpop.f32.mrb[8].mxu1 }
 0x64e   : > { %v8563_v11 = vmax.f32 %v8561_v1, %v8562_v14  ;;  %v8570_v17 = vmax.f32 %v8568_v21, %v8569_v30  ;;  %v8576_v39 = vrot.slane %v8575_v33, 1  ;;  %v7936_v35 = vrot.slane %v21628_v34, %v21613_v51  ;;  %v21670_v59 = vpop.f32.mrb[9].mxu1 }
 0x64f   : > { %v21673_v6 = vsel %vm4269_vm3, %v8605_v47, -inf  ;;  %v7943_v24 = vrot.slane %v7929_v49, %v21613_v51  ;;  %v7816_v3 = vmax.f32 %v21622_v26, 0.0  ;;  %v7787_v43 = vadd.f32 %v21624_v53, %v21608_v36 }
 0x650   : > { %v8577_v63 = vmax.f32 %v8575_v33, %v8576_v39  ;;  %v21680_v5 = vsel %vm4269_vm3, %v8563_v11, -inf  ;;  %v21683_v27 = vsel %vm4269_vm3, %v8570_v17, -inf  ;;  %v7944_v34 = vcombine.high %v7936_v35, %v7936_v35 }
 0x651   : > { %v7945_v0 = vcombine.high %v7943_v24, %v7943_v24  ;;  %v8634_v29 = vsel %vm4272_vm4, %v7936_v35, -inf  ;;  %v8648_v41 = vsel %vm4272_vm4, %v7943_v24, -inf  ;;  %v7912_v25 = vcombine.high %v7816_v3, %v7816_v3  ;;  %v21687_v55 = vpop.f32.mrb[10].mxu1 }
 0x652   : > { %v21690_v26 = vsel %vm4269_vm3, %v8577_v63, -inf  ;;  %v8635_v53 = vrot.slane %v8634_v29, 4  ;;  %v8641_v9 = vsel %vm4272_vm4, %v7944_v34, -inf  ;;  %v8649_v56 = vrot.slane %v8648_v41, 4  ;;  %v21693_v19 = vpop.f32.mrb[11].mxu1 }
 0x653   : > { %v8642_v62 = vrot.slane %v8641_v9, 4  ;;  %v8655_v40 = vsel %vm4272_vm4, %v7945_v0, -inf  ;;  %v7919_v42 = vrot.slane %v7816_v3, %v21613_v51  ;;  %v7926_v10 = vrot.slane %v7912_v25, %v21613_v51 }
 0x654   : > { %v8636_v60 = vmax.f32 %v8634_v29, %v8635_v53  ;;  %v8650_v48 = vmax.f32 %v8648_v41, %v8649_v56  ;;  %v8656_v13 = vrot.slane %v8655_v40, 4  ;;  %v21698_v50 = vmax.f32 %v7787_v43, 0.0 }
 0x655   : > { %v8643_v2 = vmax.f32 %v8641_v9, %v8642_v62  ;;  %v7927_v16 = vcombine.high %v7919_v42, %v7919_v42  ;;  %v7928_v44 = vcombine.high %v7926_v10, %v7926_v10  ;;  %v8606_v58 = vsel %vm4272_vm4, %v7919_v42, -inf  ;;  %v21704_v18 = vpop.f32.mrb[12].mxu1 }
 0x656   : > { %v8637_v54 = vrot.slane %v8636_v60, 2  ;;  %v8651_v7 = vrot.slane %v8650_v48, 2  ;;  %v8657_v45 = vmax.f32 %v8655_v40, %v8656_v13  ;;  %v8607_v38 = vrot.slane %v8606_v58, 4  ;;  %v21706_v29 = vpop.f32.mrb[13].mxu1 }
 0x657   : > { %v8644_v1 = vrot.slane %v8643_v2, 2  ;;  %v8613_v21 = vsel %vm4272_vm4, %v7927_v16, -inf  ;;  %v8620_v4 = vsel %vm4272_vm4, %v7926_v10, -inf  ;;  %v8627_v61 = vsel %vm4272_vm4, %v7928_v44, -inf }
 0x658   : > { %v8638_v22 = vmax.f32 %v8636_v60, %v8637_v54  ;;  %v8652_v14 = vmax.f32 %v8650_v48, %v8651_v7  ;;  %v8658_v30 = vrot.slane %v8657_v45, 2  ;;  %v8608_v33 = vmax.f32 %v8606_v58, %v8607_v38 }
 0x659   : > { %v8645_v47 = vmax.f32 %v8643_v2, %v8644_v1  ;;  %v8614_v49 = vrot.slane %v8613_v21, 4  ;;  %v8621_v11 = vrot.slane %v8620_v4, 4  ;;  %v8628_v17 = vrot.slane %v8627_v61, 4 }
 0x65a   : > { %v8639_v39 = vrot.slane %v8638_v22, 1  ;;  %v8653_v35 = vrot.slane %v8652_v14, 1  ;;  %v8659_v24 = vmax.f32 %v8657_v45, %v8658_v30  ;;  %v8609_v3 = vrot.slane %v8608_v33, 2 }
 0x65b   : > { %v8646_v43 = vrot.slane %v8645_v47, 1  ;;  %v8615_v63 = vmax.f32 %v8613_v21, %v8614_v49  ;;  %v8622_v34 = vmax.f32 %v8620_v4, %v8621_v11  ;;  %v8629_v0 = vmax.f32 %v8627_v61, %v8628_v17 }
 0x65c   : > { %v8640_v41 = vmax.f32 %v8638_v22, %v8639_v39  ;;  %v8654_v25 = vmax.f32 %v8652_v14, %v8653_v35  ;;  %v8660_v53 = vrot.slane %v8659_v24, 1  ;;  %v8610_v9 = vmax.f32 %v8608_v33, %v8609_v3 }
 0x65d   : > { %v8647_v56 = vmax.f32 %v8645_v47, %v8646_v43  ;;  %v8616_v62 = vrot.slane %v8615_v63, 2  ;;  %v8623_v40 = vrot.slane %v8622_v34, 2  ;;  %v8630_v42 = vrot.slane %v8629_v0, 2 }
 0x65e   : > { %v8661_v10 = vmax.f32 %v8659_v24, %v8660_v53  ;;  %v9459_v60 = vsel %vm4269_vm3, %v8640_v41, -inf  ;;  %v21710_v48 = vsel %vm4269_vm3, %v8654_v25, -inf  ;;  %v8611_v13 = vrot.slane %v8610_v9, 1 }
 0x65f   : > { %v9460_v2 = vmax.f32 %v21653_v57, %v9459_v60  ;;  %v9462_v16 = vsel %vm4269_vm3, %v8647_v56, -inf  ;;  %v9466_v44 = vmax.f32 %v21662_v23, %v21710_v48  ;;  %v8617_v58 = vmax.f32 %v8615_v63, %v8616_v62 }
 0x660   : > { %v9463_v54 = vmax.f32 %v21659_v32, %v9462_v16  ;;  %v9468_v7 = vsel %vm4269_vm3, %v8661_v10, -inf  ;;  %v8612_v45 = vmax.f32 %v8610_v9, %v8611_v13  ;;  %v8624_v38 = vmax.f32 %v8622_v34, %v8623_v40 }
 0x661   : > { %v9469_v1 = vmax.f32 %v21673_v6, %v9468_v7  ;;  %v8618_v21 = vrot.slane %v8617_v58, 1  ;;  %v8631_v4 = vmax.f32 %v8629_v0, %v8630_v42  ;;  %v7963_v57 = vcombine.high %v21698_v50, %v21698_v50 }
 0x662   : > { %v8625_v61 = vrot.slane %v8624_v38, 1  ;;  %v9447_v23 = vsel %vm4269_vm3, %v8612_v45, -inf  ;;  %v7970_v32 = vrot.slane %v21698_v50, %v21613_v51  ;;  %v7786_v22 = vadd.f32 %v21608_v36, %v21630_v8 }
 0x663   : > { %v8619_v14 = vmax.f32 %v8617_v58, %v8618_v21  ;;  %v8632_v30 = vrot.slane %v8631_v4, 1  ;;  %v9448_v6 = vmax.f32 %v21656_v37, %v9447_v23  ;;  %v7977_v33 = vrot.slane %v7963_v57, %v21613_v51 }
 0x664   : > { %v8626_v47 = vmax.f32 %v8624_v38, %v8625_v61  ;;  %v7978_v49 = vcombine.high %v7970_v32, %v7970_v32  ;;  %v8690_v11 = vsel %vm4272_vm4, %v7970_v32, -inf  ;;  %v7818_v17 = vmax.f32 %v7786_v22, 0.0 }
 0x665   : > { %v8633_v39 = vmax.f32 %v8631_v4, %v8632_v30  ;;  %v9450_v35 = vsel %vm4269_vm3, %v8619_v14, -inf  ;;  %v7979_v24 = vcombine.high %v7977_v33, %v7977_v33  ;;  %v8691_v50 = vrot.slane %v8690_v11, 4 }
 0x666   : > { %v9451_v3 = vmax.f32 %v21680_v5, %v9450_v35  ;;  %v9453_v8 = vsel %vm4269_vm3, %v8626_v47, -inf  ;;  %v8697_v43 = vsel %vm4272_vm4, %v7978_v49, -inf  ;;  %v8704_v37 = vsel %vm4272_vm4, %v7977_v33, -inf  ;;  %v21749_v47 = vpop.f32.mrb[14].mxu1 }
 0x667   : > { %v9454_v63 = vmax.f32 %v21683_v27, %v9453_v8  ;;  %v9456_v34 = vsel %vm4269_vm3, %v8633_v39, -inf  ;;  %v8692_v0 = vmax.f32 %v8690_v11, %v8691_v50  ;;  %v8698_v41 = vrot.slane %v8697_v43, 4 }
 0x668   : > { %v9457_v25 = vmax.f32 %v21690_v26, %v9456_v34  ;;  %v9723_v53 = vsel %vm9722_vm5, %v9451_v3, %v9448_v6  ;;  %v8705_v9 = vrot.slane %v8704_v37, 4  ;;  %v8711_v56 = vsel %vm4272_vm4, %v7979_v24, -inf }
 0x669   : > { %v9725_v5 = vsel %vm9724_vm6, %v9454_v63, %v9723_v53  ;;  %v8693_v62 = vrot.slane %v8692_v0, 2  ;;  %v8699_v40 = vmax.f32 %v8697_v43, %v8698_v41  ;;  %v8712_v42 = vrot.slane %v8711_v56, 4 }
 0x66a   : > { %v9727_v10 = vsel %vm9726_vm7, %v9457_v25, %v9725_v5  ;;  %v8706_v60 = vmax.f32 %v8704_v37, %v8705_v9  ;;  %v7946_v27 = vcombine.high %v7818_v17, %v7818_v17  ;;  %v7953_v48 = vrot.slane %v7818_v17, %v21613_v51 }
 0x66b   : > { %v9729_v13 = vsel %vm9728_vm8, %v9460_v2, %v9727_v10  ;;  %v8694_v16 = vmax.f32 %v8692_v0, %v8693_v62  ;;  %v8700_v26 = vrot.slane %v8699_v40, 2  ;;  %v8713_v58 = vmax.f32 %v8711_v56, %v8712_v42 }
 0x66c   : > { %v9731_v7 = vsel %vm9730_vm9, %v9463_v54, %v9729_v13  ;;  %v8707_v45 = vrot.slane %v8706_v60, 2  ;;  %v7960_v38 = vrot.slane %v7946_v27, %v21613_v51  ;;  %v7961_v21 = vcombine.high %v7953_v48, %v7953_v48 }
 0x66d   : > { %v9733_v4 = vsel %vm9732_vm10, %v9466_v44, %v9731_v7  ;;  %v8695_v57 = vrot.slane %v8694_v16, 1  ;;  %v8701_v61 = vmax.f32 %v8699_v40, %v8700_v26  ;;  %v8714_v23 = vrot.slane %v8713_v58, 2 }
 0x66e   : > { %v9735_v32 = vsel %vm9734_vm11, %v9469_v1, %v9733_v4  ;;  %v8708_v22 = vmax.f32 %v8706_v60, %v8707_v45  ;;  %v7962_v14 = vcombine.high %v7960_v38, %v7960_v38  ;;  %v8662_v2 = vsel %vm4272_vm4, %v7953_v48, -inf  ;;  %v21754_v1 = vpop.f32.mrb[15].mxu1 }
 0x66f   : > { %9793 = vst.msk [vmem:[#allocation2 + $0x19] sm:$0xff] %vm4269_vm3, %v9735_v32  ;;  %v8696_v30 = vmax.f32 %v8694_v16, %v8695_v57  ;;  %v8702_v6 = vrot.slane %v8701_v61, 1  ;;  %v8715_v54 = vmax.f32 %v8713_v58, %v8714_v23  ;;  %v8663_v33 = vrot.slane %v8662_v2, 4 }
 0x670   : > { %v8709_v49 = vrot.slane %v8708_v22, 1  ;;  %v8669_v44 = vsel %vm4272_vm4, %v7961_v21, -inf  ;;  %v8676_v11 = vsel %vm4272_vm4, %v7960_v38, -inf  ;;  %v8683_v17 = vsel %vm4272_vm4, %v7962_v14, -inf }
 0x671   : > { %v8703_v39 = vmax.f32 %v8701_v61, %v8702_v6  ;;  %v8716_v35 = vrot.slane %v8715_v54, 1  ;;  %v21757_v24 = vsel %vm4269_vm3, %v8696_v30, -inf  ;;  %v8664_v50 = vmax.f32 %v8662_v2, %v8663_v33 }
 0x672   : > { %v8710_v3 = vmax.f32 %v8708_v22, %v8709_v49  ;;  %v8670_v8 = vrot.slane %v8669_v44, 4  ;;  %v8677_v43 = vrot.slane %v8676_v11, 4  ;;  %v8684_v37 = vrot.slane %v8683_v17, 4 }
 0x673   : > { %v8717_v63 = vmax.f32 %v8715_v54, %v8716_v35  ;;  %v21760_v34 = vsel %vm4269_vm3, %v8703_v39, -inf  ;;  %v8665_v0 = vrot.slane %v8664_v50, 2  ;;  %v7789_v41 = vadd.f32 %v21636_v52, %v21608_v36 }
 0x674   : > { %v21765_v25 = vsel %vm4269_vm3, %v8710_v3, -inf  ;;  %v8671_v53 = vmax.f32 %v8669_v44, %v8670_v8  ;;  %v8678_v9 = vmax.f32 %v8676_v11, %v8677_v43  ;;  %v8685_v56 = vmax.f32 %v8683_v17, %v8684_v37 }
 0x675   : > { %v21768_v5 = vsel %vm4269_vm3, %v8717_v63, -inf  ;;  %v8666_v62 = vmax.f32 %v8664_v50, %v8665_v0  ;;  %v7821_v40 = vmax.f32 %v7789_v41, 0.0  ;;  %v7788_v42 = vadd.f32 %v21608_v36, %v21641_v12 }
 0x676   : > { %v8672_v10 = vrot.slane %v8671_v53, 2  ;;  %v8679_v60 = vrot.slane %v8678_v9, 2  ;;  %v8686_v27 = vrot.slane %v8685_v56, 2  ;;  %v7791_v52 = vadd.f32 %v21644_v31, %v21608_v36 }
 0x677   : > { %v8667_v48 = vrot.slane %v8666_v62, 1  ;;  %v7997_v13 = vcombine.high %v7821_v40, %v7821_v40  ;;  %v8004_v16 = vrot.slane %v7821_v40, %v21613_v51  ;;  %v7820_v26 = vmax.f32 %v7788_v42, 0.0 }
 0x678   : > { %v8673_v58 = vmax.f32 %v8671_v53, %v8672_v10  ;;  %v8680_v7 = vmax.f32 %v8678_v9, %v8679_v60  ;;  %v8687_v45 = vmax.f32 %v8685_v56, %v8686_v27  ;;  %v21775_v38 = vmax.f32 %v7791_v52, 0.0  ;;  %v21800_v60 = vpop.f32.mrb[16].mxu1 }
 0x679   : > { %v8668_v21 = vmax.f32 %v8666_v62, %v8667_v48  ;;  %v8011_v4 = vrot.slane %v7997_v13, %v21613_v51  ;;  %v8012_v12 = vcombine.high %v8004_v16, %v8004_v16  ;;  %v8746_v57 = vsel %vm4272_vm4, %v8004_v16, -inf }
 0x67a   : > { %v8674_v61 = vrot.slane %v8673_v58, 1  ;;  %v8681_v23 = vrot.slane %v8680_v7, 1  ;;  %v8688_v32 = vrot.slane %v8687_v45, 1  ;;  %v8747_v31 = vrot.slane %v8746_v57, 4 }
 0x67b   : > { %v21780_v22 = vsel %vm4269_vm3, %v8668_v21, -inf  ;;  %v8013_v14 = vcombine.high %v8011_v4, %v8011_v4  ;;  %v8753_v2 = vsel %vm4272_vm4, %v8012_v12, -inf  ;;  %v8760_v30 = vsel %vm4272_vm4, %v8011_v4, -inf }
 0x67c   : > { %v8675_v6 = vmax.f32 %v8673_v58, %v8674_v61  ;;  %v8682_v54 = vmax.f32 %v8680_v7, %v8681_v23  ;;  %v8689_v33 = vmax.f32 %v8687_v45, %v8688_v32  ;;  %v8748_v49 = vmax.f32 %v8746_v57, %v8747_v31 }
 0x67d   : > { %v8754_v44 = vrot.slane %v8753_v2, 4  ;;  %v8761_v11 = vrot.slane %v8760_v30, 4  ;;  %v8767_v17 = vsel %vm4272_vm4, %v8013_v14, -inf  ;;  %v7980_v39 = vcombine.high %v7820_v26, %v7820_v26 }
 0x67e   : > { %v21786_v35 = vsel %vm4269_vm3, %v8675_v6, -inf  ;;  %v21789_v50 = vsel %vm4269_vm3, %v8682_v54, -inf  ;;  %v21792_v3 = vsel %vm4269_vm3, %v8689_v33, -inf  ;;  %v8749_v8 = vrot.slane %v8748_v49, 2 }
 0x67f   : > { %v8755_v43 = vmax.f32 %v8753_v2, %v8754_v44  ;;  %v8762_v37 = vmax.f32 %v8760_v30, %v8761_v11  ;;  %v8768_v63 = vrot.slane %v8767_v17, 4  ;;  %v7987_v0 = vrot.slane %v7820_v26, %v21613_v51 }
 0x680   : > { %v8750_v41 = vmax.f32 %v8748_v49, %v8749_v8  ;;  %v7994_v53 = vrot.slane %v7980_v39, %v21613_v51  ;;  %v8031_v9 = vcombine.high %v21775_v38, %v21775_v38  ;;  %v8038_v56 = vrot.slane %v21775_v38, %v21613_v51 }
 0x681   : > { %v8756_v62 = vrot.slane %v8755_v43, 2  ;;  %v8763_v40 = vrot.slane %v8762_v37, 2  ;;  %v8769_v42 = vmax.f32 %v8767_v17, %v8768_v63  ;;  %v7995_v10 = vcombine.high %v7987_v0, %v7987_v0 }
 0x682   : > { %v8751_v27 = vrot.slane %v8750_v41, 1  ;;  %v7996_v52 = vcombine.high %v7994_v53, %v7994_v53  ;;  %v8718_v48 = vsel %vm4272_vm4, %v7987_v0, -inf  ;;  %v8732_v13 = vsel %vm4272_vm4, %v7994_v53, -inf }
 0x683   : > { %v8757_v16 = vmax.f32 %v8755_v43, %v8756_v62  ;;  %v8764_v26 = vmax.f32 %v8762_v37, %v8763_v40  ;;  %v8770_v58 = vrot.slane %v8769_v42, 2  ;;  %v8719_v7 = vrot.slane %v8718_v48, 4 }
 0x684   : > { %v8752_v45 = vmax.f32 %v8750_v41, %v8751_v27  ;;  %v8725_v21 = vsel %vm4272_vm4, %v7995_v10, -inf  ;;  %v8733_v38 = vrot.slane %v8732_v13, 4  ;;  %v8739_v4 = vsel %vm4272_vm4, %v7996_v52, -inf  ;;  %v21825_v27 = vpop.f32.mrb[17].mxu1 }
 0x685   : > { %v8758_v12 = vrot.slane %v8757_v16, 1  ;;  %v8765_v57 = vrot.slane %v8764_v26, 1  ;;  %v8771_v61 = vmax.f32 %v8769_v42, %v8770_v58  ;;  %v8720_v23 = vmax.f32 %v8718_v48, %v8719_v7 }
 0x686   : > { %v21807_v32 = vsel %vm4269_vm3, %v8752_v45, -inf  ;;  %v8726_v31 = vrot.slane %v8725_v21, 4  ;;  %v8734_v14 = vmax.f32 %v8732_v13, %v8733_v38  ;;  %v8740_v2 = vrot.slane %v8739_v4, 4 }
 0x687   : > { %v8759_v30 = vmax.f32 %v8757_v16, %v8758_v12  ;;  %v8766_v6 = vmax.f32 %v8764_v26, %v8765_v57  ;;  %v8772_v54 = vrot.slane %v8771_v61, 1  ;;  %v9484_v33 = vmax.f32 %v21757_v24, %v21807_v32 }
 0x688   : > { %v8721_v49 = vrot.slane %v8720_v23, 2  ;;  %v8727_v44 = vmax.f32 %v8725_v21, %v8726_v31  ;;  %v8735_v11 = vrot.slane %v8734_v14, 2  ;;  %v8741_v17 = vmax.f32 %v8739_v4, %v8740_v2 }
 0x689   : > { %v8773_v39 = vmax.f32 %v8771_v61, %v8772_v54  ;;  %v21812_v8 = vsel %vm4269_vm3, %v8759_v30, -inf  ;;  %v21815_v43 = vsel %vm4269_vm3, %v8766_v6, -inf  ;;  %v8045_v37 = vrot.slane %v8031_v9, %v21613_v51 }
 0x68a   : > { %v9487_v63 = vmax.f32 %v21760_v34, %v21812_v8  ;;  %v9490_v0 = vmax.f32 %v21765_v25, %v21815_v43  ;;  %v8722_v41 = vmax.f32 %v8720_v23, %v8721_v49  ;;  %v8728_v53 = vrot.slane %v8727_v44, 2 }
 0x68b   : > { %v21823_v62 = vsel %vm4269_vm3, %v8773_v39, -inf  ;;  %v8736_v40 = vmax.f32 %v8734_v14, %v8735_v11  ;;  %v8742_v42 = vrot.slane %v8741_v17, 2  ;;  %v8046_v10 = vcombine.high %v8038_v56, %v8038_v56 }
 0x68c   : > { %v9493_v52 = vmax.f32 %v21768_v5, %v21823_v62  ;;  %v8723_v9 = vrot.slane %v8722_v41, 1  ;;  %v8729_v48 = vmax.f32 %v8727_v44, %v8728_v53  ;;  %v8047_v13 = vcombine.high %v8045_v37, %v8045_v37 }
 0x68d   : > { %v8737_v16 = vrot.slane %v8736_v40, 1  ;;  %v8743_v26 = vmax.f32 %v8741_v17, %v8742_v42  ;;  %v8802_v58 = vsel %vm4272_vm4, %v8038_v56, -inf  ;;  %v8809_v7 = vsel %vm4272_vm4, %v8046_v10, -inf }
 0x68e   : > { %v8724_v45 = vmax.f32 %v8722_v41, %v8723_v9  ;;  %v8730_v21 = vrot.slane %v8729_v48, 1  ;;  %v8803_v38 = vrot.slane %v8802_v58, 4  ;;  %v8810_v4 = vrot.slane %v8809_v7, 4 }
 0x68f   : > { %v8738_v12 = vmax.f32 %v8736_v40, %v8737_v16  ;;  %v8744_v57 = vrot.slane %v8743_v26, 1  ;;  %v8816_v61 = vsel %vm4272_vm4, %v8045_v37, -inf  ;;  %v8823_v23 = vsel %vm4272_vm4, %v8047_v13, -inf }
 0x690   : > { %v8731_v5 = vmax.f32 %v8729_v48, %v8730_v21  ;;  %v9471_v31 = vsel %vm4269_vm3, %v8724_v45, -inf  ;;  %v8804_v14 = vmax.f32 %v8802_v58, %v8803_v38  ;;  %v8811_v2 = vmax.f32 %v8809_v7, %v8810_v4  ;;  %v21848_v21 = vpop.f32.mrb[18].mxu1 }
 0x691   : > { %v8745_v30 = vmax.f32 %v8743_v26, %v8744_v57  ;;  %v9472_v56 = vmax.f32 %v21780_v22, %v9471_v31  ;;  %v9477_v6 = vsel %vm4269_vm3, %v8738_v12, -inf  ;;  %v8817_v54 = vrot.slane %v8816_v61, 4 }
 0x692   : > { %v9474_v49 = vsel %vm4269_vm3, %v8731_v5, -inf  ;;  %v9478_v44 = vmax.f32 %v21789_v50, %v9477_v6  ;;  %v8805_v11 = vrot.slane %v8804_v14, 2  ;;  %v8812_v17 = vrot.slane %v8811_v2, 2 }
 0x693   : > { %v9475_v39 = vmax.f32 %v21786_v35, %v9474_v49  ;;  %v9480_v37 = vsel %vm4269_vm3, %v8745_v30, -inf  ;;  %v8818_v41 = vmax.f32 %v8816_v61, %v8817_v54  ;;  %v8824_v53 = vrot.slane %v8823_v23, 4  ;;  %v21878_v54 = vpop.f32.mrb[19].mxu1 }
 0x694   : > { %v9481_v62 = vmax.f32 %v21792_v3, %v9480_v37  ;;  %v8806_v40 = vmax.f32 %v8804_v14, %v8805_v11  ;;  %v8813_v42 = vmax.f32 %v8811_v2, %v8812_v17  ;;  %v7790_v22 = vadd.f32 %v21608_v36, %v21646_v15 }
 0x695   : > { %v9736_v10 = vsel %vm9722_vm5, %v9475_v39, %v9472_v56  ;;  %v8819_v9 = vrot.slane %v8818_v41, 2  ;;  %v8825_v48 = vmax.f32 %v8823_v23, %v8824_v53  ;;  %v7793_v50 = vadd.f32 %v21648_v28, %v21608_v36 }
 0x696   : > { %v9737_v35 = vsel %vm9724_vm6, %v9478_v44, %v9736_v10  ;;  %v8807_v13 = vrot.slane %v8806_v40, 1  ;;  %v8814_v16 = vrot.slane %v8813_v42, 1  ;;  %v7822_v26 = vmax.f32 %v7790_v22, 0.0 }
 0x697   : > { %v9738_v58 = vsel %vm9726_vm7, %v9481_v62, %v9737_v35  ;;  %v8820_v3 = vmax.f32 %v8818_v41, %v8819_v9  ;;  %v8826_v7 = vrot.slane %v8825_v48, 2  ;;  %v7825_v45 = vmax.f32 %v7793_v50, 0.0 }
 0x698   : > { %v9739_v15 = vsel %vm9728_vm8, %v9484_v33, %v9738_v58  ;;  %v8808_v38 = vmax.f32 %v8806_v40, %v8807_v13  ;;  %v8815_v4 = vmax.f32 %v8813_v42, %v8814_v16  ;;  %v8014_v28 = vcombine.high %v7822_v26, %v7822_v26 }
 0x699   : > { %v9740_v12 = vsel %vm9730_vm9, %v9487_v63, %v9739_v15  ;;  %v8821_v57 = vrot.slane %v8820_v3, 1  ;;  %v8827_v61 = vmax.f32 %v8825_v48, %v8826_v7  ;;  %v8021_v23 = vrot.slane %v7822_v26, %v21613_v51 }
 0x69a   : > { %v9741_v5 = vsel %vm9732_vm10, %v9490_v0, %v9740_v12  ;;  %v21864_v24 = vsel %vm4269_vm3, %v8808_v38, -inf  ;;  %v21867_v32 = vsel %vm4269_vm3, %v8815_v4, -inf  ;;  %v8028_v33 = vrot.slane %v8014_v28, %v21613_v51 }
 0x69b   : > { %v9742_v34 = vsel %vm9734_vm11, %v9493_v52, %v9741_v5  ;;  %v8822_v8 = vmax.f32 %v8820_v3, %v8821_v57  ;;  %v8828_v63 = vrot.slane %v8827_v61, 1  ;;  %v8029_v31 = vcombine.high %v8021_v23, %v8021_v23 }
 0x69c   : > { %9794 = vst.msk [vmem:[#allocation2 + $0x31] sm:$0xff] %vm4269_vm3, %v9742_v34  ;;  %v8030_v14 = vcombine.high %v8028_v33, %v8028_v33  ;;  %v8774_v25 = vsel %vm4272_vm4, %v8021_v23, -inf  ;;  %v8788_v43 = vsel %vm4272_vm4, %v8028_v33, -inf  ;;  %v8065_v0 = vcombine.high %v7825_v45, %v7825_v45 }
 0x69d   : > { %v8829_v2 = vmax.f32 %v8827_v61, %v8828_v63  ;;  %v21875_v30 = vsel %vm4269_vm3, %v8822_v8, -inf  ;;  %v8775_v56 = vrot.slane %v8774_v25, 4  ;;  %v8781_v6 = vsel %vm4272_vm4, %v8029_v31, -inf  ;;  %v9819_v8 = vld [vmem:[#allocation6 + $0x8] sm:$0xff] }
 0x69e   : > { %v8782_v52 = vrot.slane %v8781_v6, 4  ;;  %v8789_v49 = vrot.slane %v8788_v43, 4  ;;  %v8795_v44 = vsel %vm4272_vm4, %v8030_v14, -inf  ;;  %v8072_v11 = vrot.slane %v7825_v45, %v21613_v51  ;;  %17821 = vmatprep.subr.mxu0 %v9819_v8 }
 0x69f   : > { %v21883_v17 = vsel %vm4269_vm3, %v8829_v2, -inf  ;;  %v8776_v39 = vmax.f32 %v8774_v25, %v8775_v56  ;;  %v8796_v37 = vrot.slane %v8795_v44, 4  ;;  %v8079_v41 = vrot.slane %v8065_v0, %v21613_v51  ;;  %17822 = vmatpush3.msra.mxu0 %v9819_v8 }
 0x6a0   : > { %v8783_v53 = vmax.f32 %v8781_v6, %v8782_v52  ;;  %v8790_v62 = vmax.f32 %v8788_v43, %v8789_v49  ;;  %v8080_v40 = vcombine.high %v8072_v11, %v8072_v11  ;;  %v8858_v42 = vsel %vm4272_vm4, %v8072_v11, -inf  ;;  %v9810_v43 = vld [vmem:[#allocation2 + $0x1] sm:$0xff]  ;;  %v21891_v52 = vld [vmem:[#allocation2 + $0x19] sm:$0xff] }
 0x6a1   : > { %v8777_v22 = vrot.slane %v8776_v39, 2  ;;  %v8797_v10 = vmax.f32 %v8795_v44, %v8796_v37  ;;  %v8081_v9 = vcombine.high %v8079_v41, %v8079_v41  ;;  %v8859_v48 = vrot.slane %v8858_v42, 4  ;;  %17823 = vmatprep.mubr.msk.f32.mxu0 %vm4269_vm3, %v9810_v43 }
 0x6a2   : > { %v8784_v50 = vrot.slane %v8783_v53, 2  ;;  %v8791_v35 = vrot.slane %v8790_v62, 2  ;;  %v8865_v13 = vsel %vm4272_vm4, %v8080_v40, -inf  ;;  %v8872_v16 = vsel %vm4272_vm4, %v8079_v41, -inf  ;;  %17824 = vmatmul.mubr.msk.f32.vlgmr.msra.gmra.mrb[36].mxu0 %vm4269_vm3, %v21891_v52  ;;  %v21904_v40 = vpop.f32.mrb[20].mxu1 }
 0x6a3   : > { %v8778_v26 = vmax.f32 %v8776_v39, %v8777_v22  ;;  %v8798_v58 = vrot.slane %v8797_v10, 2  ;;  %v8860_v3 = vmax.f32 %v8858_v42, %v8859_v48  ;;  %v8866_v7 = vrot.slane %v8865_v13, 4 }
 0x6a4   : > { %v8785_v45 = vmax.f32 %v8783_v53, %v8784_v50  ;;  %v8792_v15 = vmax.f32 %v8790_v62, %v8791_v35  ;;  %v8873_v38 = vrot.slane %v8872_v16, 4  ;;  %v8879_v4 = vsel %vm4272_vm4, %v8081_v9, -inf }
 0x6a5   : > { %v8779_v28 = vrot.slane %v8778_v26, 1  ;;  %v8799_v12 = vmax.f32 %v8797_v10, %v8798_v58  ;;  %v8861_v57 = vrot.slane %v8860_v3, 2  ;;  %v8867_v61 = vmax.f32 %v8865_v13, %v8866_v7 }
 0x6a6   : > { %v8786_v23 = vrot.slane %v8785_v45, 1  ;;  %v8793_v5 = vrot.slane %v8792_v15, 1  ;;  %v8874_v33 = vmax.f32 %v8872_v16, %v8873_v38  ;;  %v8880_v34 = vrot.slane %v8879_v4, 4 }
 0x6a7   : > { %v8780_v63 = vmax.f32 %v8778_v26, %v8779_v28  ;;  %v8800_v31 = vrot.slane %v8799_v12, 1  ;;  %v8862_v14 = vmax.f32 %v8860_v3, %v8861_v57  ;;  %v8868_v25 = vrot.slane %v8867_v61, 2 }
 0x6a8   : > { %v8787_v0 = vmax.f32 %v8785_v45, %v8786_v23  ;;  %v8794_v2 = vmax.f32 %v8792_v15, %v8793_v5  ;;  %v8875_v56 = vrot.slane %v8874_v33, 2  ;;  %v8881_v6 = vmax.f32 %v8879_v4, %v8880_v34 }
 0x6a9   : > { %v8801_v49 = vmax.f32 %v8799_v12, %v8800_v31  ;;  %v21894_v44 = vsel %vm4269_vm3, %v8780_v63, -inf  ;;  %v8863_v11 = vrot.slane %v8862_v14, 1  ;;  %v8869_v39 = vmax.f32 %v8867_v61, %v8868_v25 }
 0x6aa   : > { %v21899_v37 = vsel %vm4269_vm3, %v8787_v0, -inf  ;;  %v21902_v41 = vsel %vm4269_vm3, %v8794_v2, -inf  ;;  %v8876_v53 = vmax.f32 %v8874_v33, %v8875_v56  ;;  %v8882_v62 = vrot.slane %v8881_v6, 2 }
 0x6ab   : > { %v21907_v42 = vsel %vm4269_vm3, %v8801_v49, -inf  ;;  %v8864_v22 = vmax.f32 %v8862_v14, %v8863_v11  ;;  %v8870_v10 = vrot.slane %v8869_v39, 1  ;;  %v7792_v9 = vadd.f32 %v21608_v36, %v21650_v20  ;;  %v21948_v49 = vpop.f32.mrb[21].mxu1 }
 0x6ac   : > { %v8877_v48 = vrot.slane %v8876_v53, 1  ;;  %v8883_v50 = vmax.f32 %v8881_v6, %v8882_v62  ;;  %v7795_v35 = vadd.f32 %v21666_v46, %v21608_v36  ;;  %v7794_v13 = vadd.f32 %v21608_v36, %v21670_v59 }
 0x6ad   : > { %v8871_v16 = vmax.f32 %v8869_v39, %v8870_v10  ;;  %v21916_v26 = vsel %vm4269_vm3, %v8864_v22, -inf  ;;  %v7824_v58 = vmax.f32 %v7792_v9, 0.0  ;;  %v21920_v3 = vadd.f32 %v21687_v55, %v21608_v36 }
 0x6ae   : > { %v8878_v7 = vmax.f32 %v8876_v53, %v8877_v48  ;;  %v8884_v45 = vrot.slane %v8883_v50, 1  ;;  %v9508_v20 = vmax.f32 %v21864_v24, %v21916_v26  ;;  %v7827_v15 = vmax.f32 %v7795_v35, 0.0 }
 0x6af   : > { %v21925_v46 = vsel %vm4269_vm3, %v8871_v16, -inf  ;;  %v8048_v38 = vcombine.high %v7824_v58, %v7824_v58  ;;  %v8055_v59 = vrot.slane %v7824_v58, %v21613_v51  ;;  %v21928_v4 = vmax.f32 %v7794_v13, 0.0 }
 0x6b0   : > { %v8885_v28 = vmax.f32 %v8883_v50, %v8884_v45  ;;  %v9511_v12 = vmax.f32 %v21867_v32, %v21925_v46  ;;  %v21933_v36 = vsel %vm4269_vm3, %v8878_v7, -inf  ;;  %v8099_v55 = vcombine.high %v7827_v15, %v7827_v15 }
 0x6b1   : > { %v9514_v57 = vmax.f32 %v21875_v30, %v21933_v36  ;;  %v8062_v61 = vrot.slane %v8048_v38, %v21613_v51  ;;  %v8063_v23 = vcombine.high %v8055_v59, %v8055_v59  ;;  %v8830_v5 = vsel %vm4272_vm4, %v8055_v59, -inf }
 0x6b2   : > { %v21940_v33 = vsel %vm4269_vm3, %v8885_v28, -inf  ;;  %v8831_v34 = vrot.slane %v8830_v5, 4  ;;  %v8106_v8 = vrot.slane %v7827_v15, %v21613_v51  ;;  %v8113_v63 = vrot.slane %v8099_v55, %v21613_v51 }
 0x6b3   : > { %v9517_v31 = vmax.f32 %v21883_v17, %v21940_v33  ;;  %v8064_v14 = vcombine.high %v8062_v61, %v8062_v61  ;;  %v8837_v25 = vsel %vm4272_vm4, %v8063_v23, -inf  ;;  %v8844_v43 = vsel %vm4272_vm4, %v8062_v61, -inf  ;;  %v22014_v17 = vld [vmem:[%s23489_s4] ss:$0 sm:$0xff] }
 0x6b4   : > { %v8832_v0 = vmax.f32 %v8830_v5, %v8831_v34  ;;  %v8838_v2 = vrot.slane %v8837_v25, 4  ;;  %v8845_v56 = vrot.slane %v8844_v43, 4  ;;  %v8114_v6 = vcombine.high %v8106_v8, %v8106_v8 }
 0x6b5   : > { %v8851_v11 = vsel %vm4272_vm4, %v8064_v14, -inf  ;;  %v8115_v39 = vcombine.high %v8113_v63, %v8113_v63  ;;  %v8914_v53 = vsel %vm4272_vm4, %v8106_v8, -inf  ;;  %v8928_v62 = vsel %vm4272_vm4, %v8113_v63, -inf }
 0x6b6   : > { %v8833_v22 = vrot.slane %v8832_v0, 2  ;;  %v8839_v10 = vmax.f32 %v8837_v25, %v8838_v2  ;;  %v8846_v9 = vmax.f32 %v8844_v43, %v8845_v56  ;;  %v8852_v48 = vrot.slane %v8851_v11, 4 }
 0x6b7   : > { %v8915_v50 = vrot.slane %v8914_v53, 4  ;;  %v8921_v35 = vsel %vm4272_vm4, %v8114_v6, -inf  ;;  %v8929_v13 = vrot.slane %v8928_v62, 4  ;;  %v8935_v16 = vsel %vm4272_vm4, %v8115_v39, -inf }
 0x6b8   : > { %v8834_v58 = vmax.f32 %v8832_v0, %v8833_v22  ;;  %v8840_v7 = vrot.slane %v8839_v10, 2  ;;  %v8847_v45 = vrot.slane %v8846_v9, 2  ;;  %v8853_v15 = vmax.f32 %v8851_v11, %v8852_v48 }
 0x6b9   : > { %v8916_v38 = vmax.f32 %v8914_v53, %v8915_v50  ;;  %v8922_v59 = vrot.slane %v8921_v35, 4  ;;  %v8930_v28 = vmax.f32 %v8928_v62, %v8929_v13  ;;  %v8936_v55 = vrot.slane %v8935_v16, 4 }
 0x6ba   : > { %v8835_v61 = vrot.slane %v8834_v58, 1  ;;  %v8841_v23 = vmax.f32 %v8839_v10, %v8840_v7  ;;  %v8848_v5 = vmax.f32 %v8846_v9, %v8847_v45  ;;  %v8854_v34 = vrot.slane %v8853_v15, 2 }
 0x6bb   : > { %v8917_v8 = vrot.slane %v8916_v38, 2  ;;  %v8923_v63 = vmax.f32 %v8921_v35, %v8922_v59  ;;  %v8931_v14 = vrot.slane %v8930_v28, 2  ;;  %v8937_v25 = vmax.f32 %v8935_v16, %v8936_v55  ;;  %v21961_v55 = vpop.f32.mrb[22].mxu1 }
 0x6bc   : > { %v8836_v43 = vmax.f32 %v8834_v58, %v8835_v61  ;;  %v8842_v2 = vrot.slane %v8841_v23, 1  ;;  %v8849_v56 = vrot.slane %v8848_v5, 1  ;;  %v8855_v6 = vmax.f32 %v8853_v15, %v8854_v34 }
 0x6bd   : > { %v8918_v0 = vmax.f32 %v8916_v38, %v8917_v8  ;;  %v8924_v39 = vrot.slane %v8923_v63, 2  ;;  %v8932_v22 = vmax.f32 %v8930_v28, %v8931_v14  ;;  %v8938_v11 = vrot.slane %v8937_v25, 2 }
 0x6be   : > { %v8843_v53 = vmax.f32 %v8841_v23, %v8842_v2  ;;  %v8850_v48 = vmax.f32 %v8848_v5, %v8849_v56  ;;  %v8856_v62 = vrot.slane %v8855_v6, 1  ;;  %v9495_v50 = vsel %vm4269_vm3, %v8836_v43, -inf }
 0x6bf   : > { %v9496_v10 = vmax.f32 %v21894_v44, %v9495_v50  ;;  %v8919_v9 = vrot.slane %v8918_v0, 1  ;;  %v8925_v13 = vmax.f32 %v8923_v63, %v8924_v39  ;;  %v8933_v35 = vrot.slane %v8932_v22, 1  ;;  %v22001_v50 = vpop.f32.mrb[23].mxu1 }
 0x6c0   : > { %v8857_v7 = vmax.f32 %v8855_v6, %v8856_v62  ;;  %v9498_v16 = vsel %vm4269_vm3, %v8843_v53, -inf  ;;  %v9501_v58 = vsel %vm4269_vm3, %v8850_v48, -inf  ;;  %v8939_v45 = vmax.f32 %v8937_v25, %v8938_v11 }
 0x6c1   : > { %v9499_v15 = vmax.f32 %v21899_v37, %v9498_v16  ;;  %v9502_v38 = vmax.f32 %v21902_v41, %v9501_v58  ;;  %v8920_v59 = vmax.f32 %v8918_v0, %v8919_v9  ;;  %v8926_v28 = vrot.slane %v8925_v13, 1 }
 0x6c2   : > { %v9504_v61 = vsel %vm4269_vm3, %v8857_v7, -inf  ;;  %v8934_v44 = vmax.f32 %v8932_v22, %v8933_v35  ;;  %v8940_v23 = vrot.slane %v8939_v45, 1  ;;  %v8082_v5 = vcombine.high %v21928_v4, %v21928_v4 }
 0x6c3   : > { %v9505_v34 = vmax.f32 %v21907_v42, %v9504_v61  ;;  %v9743_v8 = vsel %vm9722_vm5, %v9499_v15, %v9496_v10  ;;  %v8927_v63 = vmax.f32 %v8925_v13, %v8926_v28  ;;  %v21969_v37 = vsel %vm4269_vm3, %v8920_v59, -inf }
 0x6c4   : > { %v9744_v41 = vsel %vm9724_vm6, %v9502_v38, %v9743_v8  ;;  %v8941_v14 = vmax.f32 %v8939_v45, %v8940_v23  ;;  %v21973_v25 = vsel %vm4269_vm3, %v8934_v44, -inf  ;;  %v8089_v43 = vrot.slane %v21928_v4, %v21613_v51 }
 0x6c5   : > { %v9745_v2 = vsel %vm9726_vm7, %v9505_v34, %v9744_v41  ;;  %v21979_v56 = vsel %vm4269_vm3, %v8927_v63, -inf  ;;  %v8096_v42 = vrot.slane %v8082_v5, %v21613_v51  ;;  %v7829_v6 = vmax.f32 %v21920_v3, 0.0 }
 0x6c6   : > { %v9746_v0 = vsel %vm9728_vm8, %v9508_v20, %v9745_v2  ;;  %v21988_v39 = vsel %vm4269_vm3, %v8941_v14, -inf  ;;  %v8097_v22 = vcombine.high %v8089_v43, %v8089_v43  ;;  %v8886_v4 = vsel %vm4272_vm4, %v8089_v43, -inf }
 0x6c7   : > { %v9747_v11 = vsel %vm9730_vm9, %v9511_v12, %v9746_v0  ;;  %v8098_v53 = vcombine.high %v8096_v42, %v8096_v42  ;;  %v8887_v48 = vrot.slane %v8886_v4, 4  ;;  %v8900_v3 = vsel %vm4272_vm4, %v8096_v42, -inf }
 0x6c8   : > { %v9748_v24 = vsel %vm9732_vm10, %v9514_v57, %v9747_v11  ;;  %v8893_v26 = vsel %vm4272_vm4, %v8097_v22, -inf  ;;  %v8901_v20 = vrot.slane %v8900_v3, 4  ;;  %v8133_v62 = vcombine.high %v7829_v6, %v7829_v6  ;;  %v22024_v22 = vld [vmem:[#allocation2 + $0x31] sm:$0xff] }
 0x6c9   : > { %v9749_v32 = vsel %vm9734_vm11, %v9517_v31, %v9748_v24  ;;  %v8888_v46 = vmax.f32 %v8886_v4, %v8887_v48  ;;  %v8894_v12 = vrot.slane %v8893_v26, 4  ;;  %v8907_v10 = vsel %vm4272_vm4, %v8098_v53, -inf  ;;  %17826 = vmatprep.mubr.msk.f32.mxu0 %vm4269_vm3, %v22024_v22 }
 0x6ca   : > { %9795 = vst.msk [vmem:[#allocation2 + $0x49] sm:$0xff] %vm4269_vm3, %v9749_v32  ;;  %v8902_v30 = vmax.f32 %v8900_v3, %v8901_v20  ;;  %v8908_v36 = vrot.slane %v8907_v10, 4  ;;  %v8140_v57 = vrot.slane %v7829_v6, %v21613_v51  ;;  %v8147_v9 = vrot.slane %v8133_v62, %v21613_v51 }
 0x6cb   : > { %v8889_v13 = vrot.slane %v8888_v46, 2  ;;  %v8895_v35 = vmax.f32 %v8893_v26, %v8894_v12  ;;  %v7796_v33 = vadd.f32 %v22014_v17, %v21693_v19  ;;  %v7799_v31 = vadd.f32 %v22014_v17, %v21704_v18 }
 0x6cc   : > { %v8903_v7 = vrot.slane %v8902_v30, 2  ;;  %v8909_v16 = vmax.f32 %v8907_v10, %v8908_v36  ;;  %v8148_v58 = vcombine.high %v8140_v57, %v8140_v57  ;;  %v8149_v45 = vcombine.high %v8147_v9, %v8147_v9 }
 0x6cd   : > { %v8890_v15 = vmax.f32 %v8888_v46, %v8889_v13  ;;  %v8896_v38 = vrot.slane %v8895_v35, 2  ;;  %v8970_v59 = vsel %vm4272_vm4, %v8140_v57, -inf  ;;  %v8984_v28 = vsel %vm4272_vm4, %v8147_v9, -inf  ;;  %v22037_v9 = vpop.f32.mrb[24].mxu1 }
 0x6ce   : > { %v8904_v61 = vmax.f32 %v8902_v30, %v8903_v7  ;;  %v8910_v44 = vrot.slane %v8909_v16, 2  ;;  %v8971_v23 = vrot.slane %v8970_v59, 4  ;;  %v8977_v5 = vsel %vm4272_vm4, %v8148_v58, -inf }
 0x6cf   : > { %v8891_v34 = vrot.slane %v8890_v15, 1  ;;  %v8897_v19 = vmax.f32 %v8895_v35, %v8896_v38  ;;  %v8978_v8 = vrot.slane %v8977_v5, 4  ;;  %v8985_v63 = vrot.slane %v8984_v28, 4 }
 0x6d0   : > { %v8905_v18 = vrot.slane %v8904_v61, 1  ;;  %v8911_v41 = vmax.f32 %v8909_v16, %v8910_v44  ;;  %v8972_v14 = vmax.f32 %v8970_v59, %v8971_v23  ;;  %v8991_v43 = vsel %vm4272_vm4, %v8149_v45, -inf }
 0x6d1   : > { %v8892_v2 = vmax.f32 %v8890_v15, %v8891_v34  ;;  %v8898_v42 = vrot.slane %v8897_v19, 1  ;;  %v8979_v6 = vmax.f32 %v8977_v5, %v8978_v8  ;;  %v8986_v0 = vmax.f32 %v8984_v28, %v8985_v63 }
 0x6d2   : > { %v8906_v4 = vmax.f32 %v8904_v61, %v8905_v18  ;;  %v8912_v11 = vrot.slane %v8911_v41, 1  ;;  %v8973_v53 = vrot.slane %v8972_v14, 2  ;;  %v8992_v48 = vrot.slane %v8991_v43, 4 }
 0x6d3   : > { %v8899_v3 = vmax.f32 %v8897_v19, %v8898_v42  ;;  %v22029_v24 = vsel %vm4269_vm3, %v8892_v2, -inf  ;;  %v8980_v26 = vrot.slane %v8979_v6, 2  ;;  %v8987_v20 = vrot.slane %v8986_v0, 2 }
 0x6d4   : > { %v8913_v62 = vmax.f32 %v8911_v41, %v8912_v11  ;;  %v22032_v32 = vsel %vm4269_vm3, %v8906_v4, -inf  ;;  %v8974_v46 = vmax.f32 %v8972_v14, %v8973_v53  ;;  %v8993_v12 = vmax.f32 %v8991_v43, %v8992_v48 }
 0x6d5   : > { %v22035_v10 = vsel %vm4269_vm3, %v8899_v3, -inf  ;;  %v8981_v30 = vmax.f32 %v8979_v6, %v8980_v26  ;;  %v8988_v36 = vmax.f32 %v8986_v0, %v8987_v20  ;;  %v7828_v57 = vmax.f32 %v7796_v33, 0.0 }
 0x6d6   : > { %v22040_v13 = vsel %vm4269_vm3, %v8913_v62, -inf  ;;  %v8975_v35 = vrot.slane %v8974_v46, 1  ;;  %v8994_v7 = vrot.slane %v8993_v12, 2  ;;  %v7831_v16 = vmax.f32 %v7799_v31, 0.0 }
 0x6d7   : > { %v8982_v58 = vrot.slane %v8981_v30, 1  ;;  %v8989_v45 = vrot.slane %v8988_v36, 1  ;;  %v8116_v15 = vcombine.high %v7828_v57, %v7828_v57  ;;  %v8123_v38 = vrot.slane %v7828_v57, %v21613_v51 }
 0x6d8   : > { %v8976_v59 = vmax.f32 %v8974_v46, %v8975_v35  ;;  %v8995_v28 = vmax.f32 %v8993_v12, %v8994_v7  ;;  %v8167_v61 = vcombine.high %v7831_v16, %v7831_v16  ;;  %v8174_v44 = vrot.slane %v7831_v16, %v21613_v51  ;;  %v22068_v46 = vpop.f32.mrb[25].mxu1 }
 0x6d9   : > { %v8983_v23 = vmax.f32 %v8981_v30, %v8982_v58  ;;  %v8990_v33 = vmax.f32 %v8988_v36, %v8989_v45  ;;  %v8130_v5 = vrot.slane %v8116_v15, %v21613_v51  ;;  %v8131_v34 = vcombine.high %v8123_v38, %v8123_v38 }
 0x6da   : > { %v8996_v19 = vrot.slane %v8995_v28, 1  ;;  %v22046_v8 = vsel %vm4269_vm3, %v8976_v59, -inf  ;;  %v8942_v31 = vsel %vm4272_vm4, %v8123_v38, -inf  ;;  %v8181_v63 = vrot.slane %v8167_v61, %v21613_v51 }
 0x6db   : > { %v9532_v18 = vmax.f32 %v21969_v37, %v22046_v8  ;;  %v22053_v41 = vsel %vm4269_vm3, %v8983_v23, -inf  ;;  %v22056_v14 = vsel %vm4269_vm3, %v8990_v33, -inf  ;;  %v8132_v43 = vcombine.high %v8130_v5, %v8130_v5 }
 0x6dc   : > { %v8997_v2 = vmax.f32 %v8995_v28, %v8996_v19  ;;  %v8943_v0 = vrot.slane %v8942_v31, 4  ;;  %v8949_v4 = vsel %vm4272_vm4, %v8131_v34, -inf  ;;  %v8956_v11 = vsel %vm4272_vm4, %v8130_v5, -inf }
 0x6dd   : > { %v8963_v53 = vsel %vm4272_vm4, %v8132_v43, -inf  ;;  %v8182_v48 = vcombine.high %v8174_v44, %v8174_v44  ;;  %v8950_v20 = vrot.slane %v8949_v4, 4  ;;  %v8957_v62 = vrot.slane %v8956_v11, 4 }
 0x6de   : > { %v22066_v3 = vsel %vm4269_vm3, %v8997_v2, -inf  ;;  %v8944_v26 = vmax.f32 %v8942_v31, %v8943_v0  ;;  %v8964_v30 = vrot.slane %v8963_v53, 4  ;;  %v8183_v36 = vcombine.high %v8181_v63, %v8181_v63 }
 0x6df   : > { %v9026_v57 = vsel %vm4272_vm4, %v8174_v44, -inf  ;;  %v8951_v7 = vmax.f32 %v8949_v4, %v8950_v20  ;;  %v8958_v16 = vmax.f32 %v8956_v11, %v8957_v62  ;;  %v9033_v15 = vsel %vm4272_vm4, %v8182_v48, -inf }
 0x6e0   : > { %v8945_v35 = vrot.slane %v8944_v26, 2  ;;  %v9027_v58 = vrot.slane %v9026_v57, 4  ;;  %v8965_v45 = vmax.f32 %v8963_v53, %v8964_v30  ;;  %v9040_v38 = vsel %vm4272_vm4, %v8181_v63, -inf }
 0x6e1   : > { %v9047_v59 = vsel %vm4272_vm4, %v8183_v36, -inf  ;;  %v8952_v61 = vrot.slane %v8951_v7, 2  ;;  %v8959_v23 = vrot.slane %v8958_v16, 2  ;;  %v9034_v34 = vrot.slane %v9033_v15, 4 }
 0x6e2   : > { %v8946_v28 = vmax.f32 %v8944_v26, %v8945_v35  ;;  %v9028_v33 = vmax.f32 %v9026_v57, %v9027_v58  ;;  %v8966_v5 = vrot.slane %v8965_v45, 2  ;;  %v9041_v19 = vrot.slane %v9040_v38, 4 }
 0x6e3   : > { %v9048_v31 = vrot.slane %v9047_v59, 4  ;;  %v8953_v43 = vmax.f32 %v8951_v7, %v8952_v61  ;;  %v8960_v2 = vmax.f32 %v8958_v16, %v8959_v23  ;;  %v9035_v11 = vmax.f32 %v9033_v15, %v9034_v34 }
 0x6e4   : > { %v8947_v44 = vrot.slane %v8946_v28, 1  ;;  %v9029_v0 = vrot.slane %v9028_v33, 2  ;;  %v8967_v4 = vmax.f32 %v8965_v45, %v8966_v5  ;;  %v9042_v53 = vmax.f32 %v9040_v38, %v9041_v19 }
 0x6e5   : > { %v9049_v48 = vmax.f32 %v9047_v59, %v9048_v31  ;;  %v8954_v63 = vrot.slane %v8953_v43, 1  ;;  %v8961_v62 = vrot.slane %v8960_v2, 1  ;;  %v9036_v36 = vrot.slane %v9035_v11, 2 }
 0x6e6   : > { %v8948_v20 = vmax.f32 %v8946_v28, %v8947_v44  ;;  %v9030_v30 = vmax.f32 %v9028_v33, %v9029_v0  ;;  %v8968_v26 = vrot.slane %v8967_v4, 1  ;;  %v9043_v35 = vrot.slane %v9042_v53, 2 }
 0x6e7   : > { %v9050_v57 = vrot.slane %v9049_v48, 2  ;;  %v8955_v58 = vmax.f32 %v8953_v43, %v8954_v63  ;;  %v8962_v12 = vmax.f32 %v8960_v2, %v8961_v62  ;;  %v9037_v45 = vmax.f32 %v9035_v11, %v9036_v36 }
 0x6e8   : > { %v9519_v6 = vsel %vm4269_vm3, %v8948_v20, -inf  ;;  %v9031_v42 = vrot.slane %v9030_v30, 1  ;;  %v8969_v7 = vmax.f32 %v8967_v4, %v8968_v26  ;;  %v9044_v15 = vmax.f32 %v9042_v53, %v9043_v35 }
 0x6e9   : > { %v9520_v16 = vmax.f32 %v22029_v24, %v9519_v6  ;;  %v9522_v38 = vsel %vm4269_vm3, %v8955_v58, -inf  ;;  %v9525_v59 = vsel %vm4269_vm3, %v8962_v12, -inf  ;;  %v9051_v61 = vmax.f32 %v9049_v48, %v9050_v57 }
 0x6ea   : > { %v9032_v28 = vmax.f32 %v9030_v30, %v9031_v42  ;;  %v9523_v23 = vmax.f32 %v22035_v10, %v9522_v38  ;;  %v9526_v33 = vmax.f32 %v22032_v32, %v9525_v59  ;;  %v9528_v5 = vsel %vm4269_vm3, %v8969_v7, -inf  ;;  %v22092_v32 = vpop.f32.mrb[26].mxu1 }
 0x6eb   : > { %v9038_v34 = vrot.slane %v9037_v45, 1  ;;  %v9529_v19 = vmax.f32 %v22040_v13, %v9528_v5  ;;  %v9045_v31 = vrot.slane %v9044_v15, 1  ;;  %v9052_v44 = vrot.slane %v9051_v61, 1 }
 0x6ec   : > { %v22085_v24 = vsel %vm4269_vm3, %v9032_v28, -inf  ;;  %v9750_v6 = vsel %vm9722_vm5, %v9523_v23, %v9520_v16  ;;  %v7798_v42 = vadd.f32 %v22014_v17, %v21706_v29  ;;  %v7801_v10 = vadd.f32 %v22014_v17, %v21749_v47 }
 0x6ed   : > { %v9039_v43 = vmax.f32 %v9037_v45, %v9038_v34  ;;  %v9751_v12 = vsel %vm9724_vm6, %v9526_v33, %v9750_v6  ;;  %v9046_v2 = vmax.f32 %v9044_v15, %v9045_v31  ;;  %v9053_v13 = vmax.f32 %v9051_v61, %v9052_v44 }
 0x6ee   : > { %v7800_v0 = vadd.f32 %v22014_v17, %v21754_v1  ;;  %v9752_v4 = vsel %vm9726_vm7, %v9529_v19, %v9751_v12  ;;  %v7830_v53 = vmax.f32 %v7798_v42, 0.0  ;;  %v7833_v48 = vmax.f32 %v7801_v10, 0.0 }
 0x6ef   : > { %v22099_v11 = vsel %vm4269_vm3, %v9039_v43, -inf  ;;  %v9753_v29 = vsel %vm9728_vm8, %v9532_v18, %v9752_v4  ;;  %v22106_v47 = vsel %vm4269_vm3, %v9046_v2, -inf  ;;  %v22109_v20 = vsel %vm4269_vm3, %v9053_v13, -inf }
 0x6f0   : > { %v22111_v63 = vmax.f32 %v7800_v0, 0.0  ;;  %v23878_v1 = vmax.f32 %v21979_v56, %v22053_v41  ;;  %v8150_v30 = vcombine.high %v7830_v53, %v7830_v53  ;;  %v8157_v26 = vrot.slane %v7830_v53, %v21613_v51  ;;  %v22129_v56 = vpop.f32.mrb[27].mxu1 }
 0x6f1   : > { %v8201_v36 = vcombine.high %v7833_v48, %v7833_v48  ;;  %v23879_v37 = vmax.f32 %v21973_v25, %v22056_v14  ;;  %v8208_v18 = vrot.slane %v7833_v48, %v21613_v51  ;;  %v23880_v41 = vmax.f32 %v21988_v39, %v22066_v3 }
 0x6f2   : > { %v9754_v62 = vsel %vm9730_vm9, %v23878_v1, %v9753_v29  ;;  %v8184_v35 = vcombine.high %v22111_v63, %v22111_v63  ;;  %v22127_v57 = vrot.slane %v22111_v63, %v21613_v51  ;;  %v8164_v25 = vrot.slane %v8150_v30, %v21613_v51 }
 0x6f3   : > { %v9755_v8 = vsel %vm9732_vm10, %v23879_v37, %v9754_v62  ;;  %v8165_v14 = vcombine.high %v8157_v26, %v8157_v26  ;;  %v8998_v7 = vsel %vm4272_vm4, %v8157_v26, -inf  ;;  %v8215_v45 = vrot.slane %v8201_v36, %v21613_v51 }
 0x6f4   : > { %v9756_v58 = vsel %vm9734_vm11, %v23880_v41, %v9755_v8  ;;  %v8999_v16 = vrot.slane %v8998_v7, 4  ;;  %v8216_v15 = vcombine.high %v8208_v18, %v8208_v18  ;;  %v9082_v38 = vsel %vm4272_vm4, %v8208_v18, -inf  ;;  %v22146_v41 = vld [vmem:[#allocation2 + $0x49] sm:$0xff] }
 0x6f5   : > { %9796 = vst.msk [vmem:[#allocation2 + $0x61] sm:$0xff] %vm4269_vm3, %v9756_v58  ;;  %v8166_v59 = vcombine.high %v8164_v25, %v8164_v25  ;;  %v9005_v28 = vsel %vm4272_vm4, %v8165_v14, -inf  ;;  %v9012_v39 = vsel %vm4272_vm4, %v8164_v25, -inf  ;;  %v9083_v3 = vrot.slane %v9082_v38, 4  ;;  %17827 = vmatmul.mubr.msk.f32.gmra.mrb[38].mxu0 %vm4269_vm3, %v22146_v41 }
 0x6f6   : > { %v9000_v61 = vmax.f32 %v8998_v7, %v8999_v16  ;;  %v9006_v23 = vrot.slane %v9005_v28, 4  ;;  %v9013_v33 = vrot.slane %v9012_v39, 4  ;;  %v8217_v5 = vcombine.high %v8215_v45, %v8215_v45 }
 0x6f7   : > { %v9019_v34 = vsel %vm4272_vm4, %v8166_v59, -inf  ;;  %v9084_v19 = vmax.f32 %v9082_v38, %v9083_v3  ;;  %v9089_v31 = vsel %vm4272_vm4, %v8216_v15, -inf  ;;  %v9096_v44 = vsel %vm4272_vm4, %v8215_v45, -inf }
 0x6f8   : > { %v9001_v6 = vrot.slane %v9000_v61, 2  ;;  %v9007_v43 = vmax.f32 %v9005_v28, %v9006_v23  ;;  %v9014_v42 = vmax.f32 %v9012_v39, %v9013_v33  ;;  %v9020_v10 = vrot.slane %v9019_v34, 4 }
 0x6f9   : > { %v9085_v12 = vrot.slane %v9084_v19, 2  ;;  %v9090_v2 = vrot.slane %v9089_v31, 4  ;;  %v9097_v13 = vrot.slane %v9096_v44, 4  ;;  %v9103_v0 = vsel %vm4272_vm4, %v8217_v5, -inf }
 0x6fa   : > { %v9002_v4 = vmax.f32 %v9000_v61, %v9001_v6  ;;  %v9008_v53 = vrot.slane %v9007_v43, 2  ;;  %v9015_v48 = vrot.slane %v9014_v42, 2  ;;  %v9021_v29 = vmax.f32 %v9019_v34, %v9020_v10 }
 0x6fb   : > { %v9086_v1 = vmax.f32 %v9084_v19, %v9085_v12  ;;  %v9091_v62 = vmax.f32 %v9089_v31, %v9090_v2  ;;  %v9098_v30 = vmax.f32 %v9096_v44, %v9097_v13  ;;  %v9104_v26 = vrot.slane %v9103_v0, 4 }
 0x6fc   : > { %v9003_v36 = vrot.slane %v9002_v4, 1  ;;  %v9009_v37 = vmax.f32 %v9007_v43, %v9008_v53  ;;  %v9016_v8 = vmax.f32 %v9014_v42, %v9015_v48  ;;  %v9022_v18 = vrot.slane %v9021_v29, 2 }
 0x6fd   : > { %v9087_v58 = vrot.slane %v9086_v1, 1  ;;  %v9092_v25 = vrot.slane %v9091_v62, 2  ;;  %v9099_v14 = vrot.slane %v9098_v30, 2  ;;  %v9105_v7 = vmax.f32 %v9103_v0, %v9104_v26 }
 0x6fe   : > { %v9004_v16 = vmax.f32 %v9002_v4, %v9003_v36  ;;  %v9010_v45 = vrot.slane %v9009_v37, 1  ;;  %v9017_v15 = vrot.slane %v9016_v8, 1  ;;  %v9023_v38 = vmax.f32 %v9021_v29, %v9022_v18 }
 0x6ff   : > { %v9088_v59 = vmax.f32 %v9086_v1, %v9087_v58  ;;  %v9093_v28 = vmax.f32 %v9091_v62, %v9092_v25  ;;  %v9100_v39 = vmax.f32 %v9098_v30, %v9099_v14  ;;  %v9106_v3 = vrot.slane %v9105_v7, 2  ;;  %v22177_v1 = vld [vmem:[#allocation2 + $0x61] sm:$0xff] }
 0x700   : > { %v9011_v61 = vmax.f32 %v9009_v37, %v9010_v45  ;;  %v9018_v23 = vmax.f32 %v9016_v8, %v9017_v15  ;;  %v9024_v33 = vrot.slane %v9023_v38, 1  ;;  %v22151_v5 = vsel %vm4269_vm3, %v9004_v16, -inf  ;;  %17829 = vmatprep.mubr.msk.f32.mxu0 %vm4269_vm3, %v22177_v1 }
 0x701   : > { %v9094_v34 = vrot.slane %v9093_v28, 1  ;;  %v9101_v19 = vrot.slane %v9100_v39, 1  ;;  %v9107_v31 = vmax.f32 %v9105_v7, %v9106_v3  ;;  %v22154_v44 = vsel %vm4269_vm3, %v9088_v59, -inf }
 0x702   : > { %v9025_v6 = vmax.f32 %v9023_v38, %v9024_v33  ;;  %v22157_v43 = vsel %vm4269_vm3, %v9011_v61, -inf  ;;  %v22160_v42 = vsel %vm4269_vm3, %v9018_v23, -inf  ;;  %v9556_v10 = vmax.f32 %v22085_v24, %v22154_v44 }
 0x703   : > { %v9095_v12 = vmax.f32 %v9093_v28, %v9094_v34  ;;  %v9102_v2 = vmax.f32 %v9100_v39, %v9101_v19  ;;  %v9108_v13 = vrot.slane %v9107_v31, 1  ;;  %v8198_v0 = vrot.slane %v8184_v35, %v21613_v51 }
 0x704   : > { %v22169_v4 = vsel %vm4269_vm3, %v9025_v6, -inf  ;;  %v8199_v53 = vcombine.high %v22127_v57, %v22127_v57  ;;  %v9054_v48 = vsel %vm4272_vm4, %v22127_v57, -inf  ;;  %v7803_v29 = vadd.f32 %v22014_v17, %v21800_v60 }
 0x705   : > { %v9109_v62 = vmax.f32 %v9107_v31, %v9108_v13  ;;  %v22180_v30 = vsel %vm4269_vm3, %v9095_v12, -inf  ;;  %v22183_v63 = vsel %vm4269_vm3, %v9102_v2, -inf  ;;  %v8200_v35 = vcombine.high %v8198_v0, %v8198_v0 }
 0x706   : > { %v9559_v26 = vmax.f32 %v22099_v11, %v22180_v30  ;;  %v9562_v57 = vmax.f32 %v22106_v47, %v22183_v63  ;;  %v9055_v60 = vrot.slane %v9054_v48, 4  ;;  %v9061_v36 = vsel %vm4272_vm4, %v8199_v53, -inf }
 0x707   : > { %v22193_v37 = vsel %vm4269_vm3, %v9109_v62, -inf  ;;  %v9062_v8 = vrot.slane %v9061_v36, 4  ;;  %v9068_v18 = vsel %vm4272_vm4, %v8198_v0, -inf  ;;  %v9075_v58 = vsel %vm4272_vm4, %v8200_v35, -inf }
 0x708   : > { %v9565_v25 = vmax.f32 %v22109_v20, %v22193_v37  ;;  %v9056_v14 = vmax.f32 %v9054_v48, %v9055_v60  ;;  %v9069_v7 = vrot.slane %v9068_v18, 4  ;;  %v9076_v16 = vrot.slane %v9075_v58, 4 }
 0x709   : > { %v9063_v45 = vmax.f32 %v9061_v36, %v9062_v8  ;;  %v7835_v15 = vmax.f32 %v7803_v29, 0.0  ;;  %v7802_v38 = vadd.f32 %v22014_v17, %v21825_v27  ;;  %v7805_v59 = vadd.f32 %v22014_v17, %v21848_v21 }
 0x70a   : > { %v9057_v28 = vrot.slane %v9056_v14, 2  ;;  %v9070_v39 = vmax.f32 %v9068_v18, %v9069_v7  ;;  %v9077_v3 = vmax.f32 %v9075_v58, %v9076_v16  ;;  %v22205_v61 = vadd.f32 %v22014_v17, %v21878_v54 }
 0x70b   : > { %v9064_v23 = vrot.slane %v9063_v45, 2  ;;  %v8235_v33 = vcombine.high %v7835_v15, %v7835_v15  ;;  %v8242_v34 = vrot.slane %v7835_v15, %v21613_v51  ;;  %v7834_v19 = vmax.f32 %v7802_v38, 0.0 }
 0x70c   : > { %v9058_v31 = vmax.f32 %v9056_v14, %v9057_v28  ;;  %v9071_v6 = vrot.slane %v9070_v39, 2  ;;  %v9078_v12 = vrot.slane %v9077_v3, 2  ;;  %v22208_v2 = vmax.f32 %v7805_v59, 0.0 }
 0x70d   : > { %v9065_v27 = vmax.f32 %v9063_v45, %v9064_v23  ;;  %v8249_v21 = vrot.slane %v8235_v33, %v21613_v51  ;;  %v8250_v13 = vcombine.high %v8242_v34, %v8242_v34  ;;  %v9138_v0 = vsel %vm4272_vm4, %v8242_v34, -inf }
 0x70e   : > { %v9059_v53 = vrot.slane %v9058_v31, 1  ;;  %v9072_v48 = vmax.f32 %v9070_v39, %v9071_v6  ;;  %v9079_v54 = vmax.f32 %v9077_v3, %v9078_v12  ;;  %v9139_v29 = vrot.slane %v9138_v0, 4 }
 0x70f   : > { %v9066_v62 = vrot.slane %v9065_v27, 1  ;;  %v8251_v35 = vcombine.high %v8249_v21, %v8249_v21  ;;  %v9145_v60 = vsel %vm4272_vm4, %v8250_v13, -inf  ;;  %v9152_v36 = vsel %vm4272_vm4, %v8249_v21, -inf }
 0x710   : > { %v9060_v8 = vmax.f32 %v9058_v31, %v9059_v53  ;;  %v9073_v18 = vrot.slane %v9072_v48, 1  ;;  %v9080_v58 = vrot.slane %v9079_v54, 1  ;;  %v9140_v14 = vmax.f32 %v9138_v0, %v9139_v29 }
 0x711   : > { %v9067_v7 = vmax.f32 %v9065_v27, %v9066_v62  ;;  %v9146_v16 = vrot.slane %v9145_v60, 4  ;;  %v9153_v45 = vrot.slane %v9152_v36, 4  ;;  %v9159_v15 = vsel %vm4272_vm4, %v8251_v35, -inf }
 0x712   : > { %v9074_v38 = vmax.f32 %v9072_v48, %v9073_v18  ;;  %v9081_v59 = vmax.f32 %v9079_v54, %v9080_v58  ;;  %v9543_v28 = vsel %vm4269_vm3, %v9060_v8, -inf  ;;  %v9141_v39 = vrot.slane %v9140_v14, 2 }
 0x713   : > { %v9544_v3 = vmax.f32 %v22151_v5, %v9543_v28  ;;  %v9546_v23 = vsel %vm4269_vm3, %v9067_v7, -inf  ;;  %v9147_v33 = vmax.f32 %v9145_v60, %v9146_v16  ;;  %v9154_v34 = vmax.f32 %v9152_v36, %v9153_v45 }
 0x714   : > { %v9547_v31 = vmax.f32 %v22157_v43, %v9546_v23  ;;  %v9549_v6 = vsel %vm4269_vm3, %v9074_v38, -inf  ;;  %v9552_v12 = vsel %vm4269_vm3, %v9081_v59, -inf  ;;  %v9142_v27 = vmax.f32 %v9140_v14, %v9141_v39  ;;  %v9809_v39 = vld [vmem:[#allocation6] sm:$0xff]  ;;  %v22258_v23 = vld [vmem:[#allocation6 + $0x10] sm:$0xff] }
 0x715   : > { %v9550_v21 = vmax.f32 %v22160_v42, %v9549_v6  ;;  %v9553_v13 = vmax.f32 %v22169_v4, %v9552_v12  ;;  %v9148_v0 = vrot.slane %v9147_v33, 2  ;;  %v9155_v53 = vrot.slane %v9154_v34, 2  ;;  %17835 = vmatprep.subr.mxu0 %v9809_v39 }
 0x716   : > { %v9757_v48 = vsel %vm9722_vm5, %v9547_v31, %v9544_v3  ;;  %v9143_v5 = vrot.slane %v9142_v27, 1  ;;  %v9160_v54 = vrot.slane %v9159_v15, 4  ;;  %v8218_v29 = vcombine.high %v7834_v19, %v7834_v19  ;;  %17836 = vmatpush3.msra.mxu0 %v9809_v39 }
 0x717   : > { %v9758_v62 = vsel %vm9724_vm6, %v9550_v21, %v9757_v48  ;;  %v9149_v35 = vmax.f32 %v9147_v33, %v9148_v0  ;;  %v9156_v43 = vmax.f32 %v9154_v34, %v9155_v53  ;;  %v8225_v60 = vrot.slane %v7834_v19, %v21613_v51  ;;  %17849 = vmatprep.subr.mxu0 %v22258_v23 }
 0x718   : > { %v9759_v36 = vsel %vm9726_vm7, %v9553_v13, %v9758_v62  ;;  %v9144_v8 = vmax.f32 %v9142_v27, %v9143_v5  ;;  %v9161_v18 = vmax.f32 %v9159_v15, %v9160_v54  ;;  %v8232_v42 = vrot.slane %v8218_v29, %v21613_v51 }
 0x719   : > { %v9760_v4 = vsel %vm9728_vm8, %v9556_v10, %v9759_v36  ;;  %v9150_v58 = vrot.slane %v9149_v35, 1  ;;  %v9157_v14 = vrot.slane %v9156_v43, 1  ;;  %v8233_v7 = vcombine.high %v8225_v60, %v8225_v60 }
 0x71a   : > { %v9761_v16 = vsel %vm9730_vm9, %v9559_v26, %v9760_v4  ;;  %v9162_v19 = vrot.slane %v9161_v18, 2  ;;  %v22237_v45 = vsel %vm4269_vm3, %v9144_v8, -inf  ;;  %v8234_v15 = vcombine.high %v8232_v42, %v8232_v42 }
 0x71b   : > { %v9762_v24 = vsel %vm9732_vm10, %v9562_v57, %v9761_v16  ;;  %v9151_v44 = vmax.f32 %v9149_v35, %v9150_v58  ;;  %v9158_v10 = vmax.f32 %v9156_v43, %v9157_v14  ;;  %v9110_v38 = vsel %vm4272_vm4, %v8225_v60, -inf }
 0x71c   : > { %v9763_v11 = vsel %vm9734_vm11, %v9565_v25, %v9762_v24  ;;  %v9163_v30 = vmax.f32 %v9161_v18, %v9162_v19  ;;  %v9111_v26 = vrot.slane %v9110_v38, 4  ;;  %v9117_v59 = vsel %vm4272_vm4, %v8233_v7, -inf }
 0x71d   : > { %9797 = vst.msk [vmem:[#allocation2 + $0x79] sm:$0xff] %vm4269_vm3, %v9763_v11  ;;  %v22251_v28 = vsel %vm4269_vm3, %v9151_v44, -inf  ;;  %v22254_v47 = vsel %vm4269_vm3, %v9158_v10, -inf  ;;  %v9118_v63 = vrot.slane %v9117_v59, 4  ;;  %v9124_v57 = vsel %vm4272_vm4, %v8232_v42, -inf }
 0x71e   : > { %v9164_v3 = vrot.slane %v9163_v30, 1  ;;  %v9112_v20 = vmax.f32 %v9110_v38, %v9111_v26  ;;  %v9125_v37 = vrot.slane %v9124_v57, 4  ;;  %v9131_v25 = vsel %vm4272_vm4, %v8234_v15, -inf }
 0x71f   : > { %v9119_v33 = vmax.f32 %v9117_v59, %v9118_v63  ;;  %v9132_v34 = vrot.slane %v9131_v25, 4  ;;  %v8269_v31 = vcombine.high %v22208_v2, %v22208_v2  ;;  %v8276_v6 = vrot.slane %v22208_v2, %v21613_v51 }
 0x720   : > { %v9165_v12 = vmax.f32 %v9163_v30, %v9164_v3  ;;  %v9113_v27 = vrot.slane %v9112_v20, 2  ;;  %v9126_v21 = vmax.f32 %v9124_v57, %v9125_v37  ;;  %v7836_v13 = vmax.f32 %v22205_v61, 0.0 }
 0x721   : > { %v9120_v0 = vrot.slane %v9119_v33, 2  ;;  %v9133_v53 = vmax.f32 %v9131_v25, %v9132_v34  ;;  %v8283_v48 = vrot.slane %v8269_v31, %v21613_v51  ;;  %v8284_v5 = vcombine.high %v8276_v6, %v8276_v6 }
 0x722   : > { %v22268_v54 = vsel %vm4269_vm3, %v9165_v12, -inf  ;;  %v9114_v29 = vmax.f32 %v9112_v20, %v9113_v27  ;;  %v9127_v62 = vrot.slane %v9126_v21, 2  ;;  %v9194_v2 = vsel %vm4272_vm4, %v8276_v6, -inf }
 0x723   : > { %v9121_v35 = vmax.f32 %v9119_v33, %v9120_v0  ;;  %v9134_v43 = vrot.slane %v9133_v53, 2  ;;  %v8285_v60 = vcombine.high %v8283_v48, %v8283_v48  ;;  %v9195_v36 = vrot.slane %v9194_v2, 4 }
 0x724   : > { %v9115_v8 = vrot.slane %v9114_v29, 1  ;;  %v9128_v61 = vmax.f32 %v9126_v21, %v9127_v62  ;;  %v9201_v18 = vsel %vm4272_vm4, %v8284_v5, -inf  ;;  %v9208_v42 = vsel %vm4272_vm4, %v8283_v48, -inf  ;;  %v22273_v4 = vld [vmem:[#allocation2 + $0x79] sm:$0xff] }
 0x725   : > { %v9122_v58 = vrot.slane %v9121_v35, 1  ;;  %v9135_v14 = vmax.f32 %v9133_v53, %v9134_v43  ;;  %v9196_v7 = vmax.f32 %v9194_v2, %v9195_v36  ;;  %v9202_v16 = vrot.slane %v9201_v18, 4  ;;  %17830 = vmatmul.mubr.msk.f32.gmra.mrb[40].mxu0 %vm4269_vm3, %v22273_v4 }
 0x726   : > { %v9116_v19 = vmax.f32 %v9114_v29, %v9115_v8  ;;  %v9129_v15 = vrot.slane %v9128_v61, 1  ;;  %v9209_v24 = vrot.slane %v9208_v42, 4  ;;  %v9215_v44 = vsel %vm4272_vm4, %v8285_v60, -inf }
 0x727   : > { %v9123_v10 = vmax.f32 %v9121_v35, %v9122_v58  ;;  %v9136_v38 = vrot.slane %v9135_v14, 1  ;;  %v9197_v11 = vrot.slane %v9196_v7, 2  ;;  %v9203_v30 = vmax.f32 %v9201_v18, %v9202_v16 }
 0x728   : > { %v9130_v26 = vmax.f32 %v9128_v61, %v9129_v15  ;;  %v22279_v59 = vsel %vm4269_vm3, %v9116_v19, -inf  ;;  %v9210_v63 = vmax.f32 %v9208_v42, %v9209_v24  ;;  %v9216_v57 = vrot.slane %v9215_v44, 4 }
 0x729   : > { %v9137_v39 = vmax.f32 %v9135_v14, %v9136_v38  ;;  %v22282_v3 = vsel %vm4269_vm3, %v9123_v10, -inf  ;;  %v9198_v20 = vmax.f32 %v9196_v7, %v9197_v11  ;;  %v9204_v37 = vrot.slane %v9203_v30, 2 }
 0x72a   : > { %v22285_v25 = vsel %vm4269_vm3, %v9130_v26, -inf  ;;  %v9211_v33 = vrot.slane %v9210_v63, 2  ;;  %v9217_v34 = vmax.f32 %v9215_v44, %v9216_v57  ;;  %v8252_v31 = vcombine.high %v7836_v13, %v7836_v13 }
 0x72b   : > { %v22288_v6 = vsel %vm4269_vm3, %v9137_v39, -inf  ;;  %v9199_v12 = vrot.slane %v9198_v20, 1  ;;  %v9205_v27 = vmax.f32 %v9203_v30, %v9204_v37  ;;  %v8259_v21 = vrot.slane %v7836_v13, %v21613_v51 }
 0x72c   : > { %v9212_v0 = vmax.f32 %v9210_v63, %v9211_v33  ;;  %v9218_v53 = vrot.slane %v9217_v34, 2  ;;  %v8266_v48 = vrot.slane %v8252_v31, %v21613_v51  ;;  %v7807_v5 = vadd.f32 %v22014_v17, %v21904_v40 }
 0x72d   : > { %v9200_v29 = vmax.f32 %v9198_v20, %v9199_v12  ;;  %v9206_v62 = vrot.slane %v9205_v27, 1  ;;  %v8267_v2 = vcombine.high %v8259_v21, %v8259_v21  ;;  %v9166_v35 = vsel %vm4272_vm4, %v8259_v21, -inf }
 0x72e   : > { %v9213_v43 = vrot.slane %v9212_v0, 1  ;;  %v9219_v60 = vmax.f32 %v9217_v34, %v9218_v53  ;;  %v8268_v36 = vcombine.high %v8266_v48, %v8266_v48  ;;  %v9167_v8 = vrot.slane %v9166_v35, 4 }
 0x72f   : > { %v9207_v61 = vmax.f32 %v9205_v27, %v9206_v62  ;;  %v22296_v18 = vsel %vm4269_vm3, %v9200_v29, -inf  ;;  %v9173_v13 = vsel %vm4272_vm4, %v8267_v2, -inf  ;;  %v9180_v42 = vsel %vm4272_vm4, %v8266_v48, -inf }
 0x730   : > { %v9214_v58 = vmax.f32 %v9212_v0, %v9213_v43  ;;  %v9220_v14 = vrot.slane %v9219_v60, 1  ;;  %v9580_v40 = vmax.f32 %v22237_v45, %v22296_v18  ;;  %v9168_v7 = vmax.f32 %v9166_v35, %v9167_v8 }
 0x731   : > { %v22303_v16 = vsel %vm4269_vm3, %v9207_v61, -inf  ;;  %v9174_v19 = vrot.slane %v9173_v13, 4  ;;  %v9181_v15 = vrot.slane %v9180_v42, 4  ;;  %v9187_v24 = vsel %vm4272_vm4, %v8268_v36, -inf }
 0x732   : > { %v9221_v44 = vmax.f32 %v9219_v60, %v9220_v14  ;;  %v9583_v10 = vmax.f32 %v22251_v28, %v22303_v16  ;;  %v22309_v38 = vsel %vm4269_vm3, %v9214_v58, -inf  ;;  %v9169_v11 = vrot.slane %v9168_v7, 2 }
 0x733   : > { %v9586_v30 = vmax.f32 %v22254_v47, %v22309_v38  ;;  %v9175_v26 = vmax.f32 %v9173_v13, %v9174_v19  ;;  %v9182_v63 = vmax.f32 %v9180_v42, %v9181_v15  ;;  %v9188_v57 = vrot.slane %v9187_v24, 4 }
 0x734   : > { %v22314_v39 = vsel %vm4269_vm3, %v9221_v44, -inf  ;;  %v9170_v20 = vmax.f32 %v9168_v7, %v9169_v11  ;;  %v7839_v37 = vmax.f32 %v7807_v5, 0.0  ;;  %v7806_v33 = vadd.f32 %v22014_v17, %v21948_v49 }
 0x735   : > { %v9589_v34 = vmax.f32 %v22268_v54, %v22314_v39  ;;  %v9176_v31 = vrot.slane %v9175_v26, 2  ;;  %v9183_v12 = vrot.slane %v9182_v63, 2  ;;  %v9189_v27 = vmax.f32 %v9187_v24, %v9188_v57 }
 0x736   : > { %v9171_v21 = vrot.slane %v9170_v20, 1  ;;  %v8303_v0 = vcombine.high %v7839_v37, %v7839_v37  ;;  %v8310_v53 = vrot.slane %v7839_v37, %v21613_v51  ;;  %v7838_v48 = vmax.f32 %v7806_v33, 0.0 }
 0x737   : > { %v9177_v29 = vmax.f32 %v9175_v26, %v9176_v31  ;;  %v9184_v62 = vmax.f32 %v9182_v63, %v9183_v12  ;;  %v9190_v2 = vrot.slane %v9189_v27, 2  ;;  %v22323_v5 = vadd.f32 %v22014_v17, %v21961_v55 }
 0x738   : > { %v9172_v35 = vmax.f32 %v9170_v20, %v9171_v21  ;;  %v8317_v49 = vrot.slane %v8303_v0, %v21613_v51  ;;  %v8318_v43 = vcombine.high %v8310_v53, %v8310_v53  ;;  %v9250_v60 = vsel %vm4272_vm4, %v8310_v53, -inf }
 0x739   : > { %v9178_v36 = vrot.slane %v9177_v29, 1  ;;  %v9185_v8 = vrot.slane %v9184_v62, 1  ;;  %v9191_v61 = vmax.f32 %v9189_v27, %v9190_v2  ;;  %v9251_v13 = vrot.slane %v9250_v60, 4 }
 0x73a   : > { %v9567_v42 = vsel %vm4269_vm3, %v9172_v35, -inf  ;;  %v8319_v58 = vcombine.high %v8317_v49, %v8317_v49  ;;  %v9257_v14 = vsel %vm4272_vm4, %v8318_v43, -inf  ;;  %v9264_v7 = vsel %vm4272_vm4, %v8317_v49, -inf }
 0x73b   : > { %v9179_v19 = vmax.f32 %v9177_v29, %v9178_v36  ;;  %v9186_v55 = vmax.f32 %v9184_v62, %v9185_v8  ;;  %v9192_v17 = vrot.slane %v9191_v61, 1  ;;  %v9568_v15 = vmax.f32 %v22279_v59, %v9567_v42 }
 0x73c   : > { %v9252_v24 = vmax.f32 %v9250_v60, %v9251_v13  ;;  %v9258_v44 = vrot.slane %v9257_v14, 4  ;;  %v9265_v11 = vrot.slane %v9264_v7, 4  ;;  %v9271_v26 = vsel %vm4272_vm4, %v8319_v58, -inf }
 0x73d   : > { %v9193_v63 = vmax.f32 %v9191_v61, %v9192_v17  ;;  %v9570_v57 = vsel %vm4269_vm3, %v9179_v19, -inf  ;;  %v9573_v20 = vsel %vm4269_vm3, %v9186_v55, -inf  ;;  %v9272_v37 = vrot.slane %v9271_v26, 4 }
 0x73e   : > { %v9571_v33 = vmax.f32 %v22282_v3, %v9570_v57  ;;  %v9574_v31 = vmax.f32 %v22285_v25, %v9573_v20  ;;  %v9253_v12 = vrot.slane %v9252_v24, 2  ;;  %v9259_v27 = vmax.f32 %v9257_v14, %v9258_v44 }
 0x73f   : > { %v9576_v21 = vsel %vm4269_vm3, %v9193_v63, -inf  ;;  %v9266_v59 = vmax.f32 %v9264_v7, %v9265_v11  ;;  %v9273_v0 = vmax.f32 %v9271_v26, %v9272_v37  ;;  %v8286_v53 = vcombine.high %v7838_v48, %v7838_v48 }
 0x740   : > { %v9577_v29 = vmax.f32 %v22288_v6, %v9576_v21  ;;  %v9764_v62 = vsel %vm9722_vm5, %v9571_v33, %v9568_v15  ;;  %v9254_v2 = vmax.f32 %v9252_v24, %v9253_v12  ;;  %v9260_v35 = vrot.slane %v9259_v27, 2 }
 0x741   : > { %v9765_v49 = vsel %vm9724_vm6, %v9574_v31, %v9764_v62  ;;  %v9267_v43 = vrot.slane %v9266_v59, 2  ;;  %v9274_v60 = vrot.slane %v9273_v0, 2  ;;  %v8293_v3 = vrot.slane %v7838_v48, %v21613_v51 }
 0x742   : > { %v9766_v25 = vsel %vm9726_vm7, %v9577_v29, %v9765_v49  ;;  %v9255_v36 = vrot.slane %v9254_v2, 1  ;;  %v9261_v8 = vmax.f32 %v9259_v27, %v9260_v35  ;;  %v8300_v61 = vrot.slane %v8286_v53, %v21613_v51  ;;  %v22381_v27 = vld [vmem:[%s23489_s4] ss:$0 sm:$0xff] }
 0x743   : > { %v9767_v6 = vsel %vm9728_vm8, %v9580_v40, %v9766_v25  ;;  %v9268_v13 = vmax.f32 %v9266_v59, %v9267_v43  ;;  %v9275_v42 = vmax.f32 %v9273_v0, %v9274_v60  ;;  %v8301_v58 = vcombine.high %v8293_v3, %v8293_v3 }
 0x744   : > { %v9768_v14 = vsel %vm9730_vm9, %v9583_v10, %v9767_v6  ;;  %v9256_v48 = vmax.f32 %v9254_v2, %v9255_v36  ;;  %v9262_v7 = vrot.slane %v9261_v8, 1  ;;  %v8302_v19 = vcombine.high %v8300_v61, %v8300_v61 }
 0x745   : > { %v9769_v55 = vsel %vm9732_vm10, %v9586_v30, %v9768_v14  ;;  %v9269_v17 = vrot.slane %v9268_v13, 1  ;;  %v9276_v45 = vrot.slane %v9275_v42, 1  ;;  %v9222_v18 = vsel %vm4272_vm4, %v8293_v3, -inf }
 0x746   : > { %v9770_v40 = vsel %vm9734_vm11, %v9589_v34, %v9769_v55  ;;  %v9263_v28 = vmax.f32 %v9261_v8, %v9262_v7  ;;  %v9223_v16 = vrot.slane %v9222_v18, 4  ;;  %v9229_v24 = vsel %vm4272_vm4, %v8301_v58, -inf }
 0x747   : > { %9798 = vst.msk [vmem:[#allocation2 + $0x91] sm:$0xff] %vm4269_vm3, %v9770_v40  ;;  %v9270_v10 = vmax.f32 %v9268_v13, %v9269_v17  ;;  %v9277_v15 = vmax.f32 %v9275_v42, %v9276_v45  ;;  %v9236_v47 = vsel %vm4272_vm4, %v8300_v61, -inf  ;;  %v22364_v38 = vsel %vm4269_vm3, %v9256_v48, -inf }
 0x748   : > { %v9224_v30 = vmax.f32 %v9222_v18, %v9223_v16  ;;  %v9230_v44 = vrot.slane %v9229_v24, 4  ;;  %v9237_v11 = vrot.slane %v9236_v47, 4  ;;  %v22367_v54 = vsel %vm4269_vm3, %v9263_v28, -inf }
 0x749   : > { %v22370_v39 = vsel %vm4269_vm3, %v9270_v10, -inf  ;;  %v9243_v34 = vsel %vm4272_vm4, %v8302_v19, -inf  ;;  %v7841_v26 = vmax.f32 %v22323_v5, 0.0  ;;  %v22375_v33 = vsel %vm4269_vm3, %v9277_v15, -inf }
 0x74a   : > { %v9225_v63 = vrot.slane %v9224_v30, 2  ;;  %v9231_v57 = vmax.f32 %v9229_v24, %v9230_v44  ;;  %v9238_v20 = vmax.f32 %v9236_v47, %v9237_v11  ;;  %v9244_v37 = vrot.slane %v9243_v34, 4 }
 0x74b   : > { %v8337_v31 = vcombine.high %v7841_v26, %v7841_v26  ;;  %v8344_v12 = vrot.slane %v7841_v26, %v21613_v51  ;;  %v7808_v21 = vadd.f32 %v22381_v27, %v22001_v50  ;;  %v7811_v18 = vadd.f32 %v22381_v27, %v22037_v9 }
 0x74c   : > { %v9226_v59 = vmax.f32 %v9224_v30, %v9225_v63  ;;  %v9232_v5 = vrot.slane %v9231_v57, 2  ;;  %v9239_v0 = vrot.slane %v9238_v20, 2  ;;  %v9245_v53 = vmax.f32 %v9243_v34, %v9244_v37 }
 0x74d   : > { %v8351_v29 = vrot.slane %v8337_v31, %v21613_v51  ;;  %v8352_v62 = vcombine.high %v8344_v12, %v8344_v12  ;;  %v9306_v2 = vsel %vm4272_vm4, %v8344_v12, -inf  ;;  %v7840_v35 = vmax.f32 %v7808_v21, 0.0 }
 0x74e   : > { %v9227_v49 = vrot.slane %v9226_v59, 1  ;;  %v9233_v43 = vmax.f32 %v9231_v57, %v9232_v5  ;;  %v9240_v60 = vmax.f32 %v9238_v20, %v9239_v0  ;;  %v9246_v3 = vrot.slane %v9245_v53, 2  ;;  %v22387_v25 = vld [vmem:[#allocation2 + $0x91] sm:$0xff] }
 0x74f   : > { %v8353_v36 = vcombine.high %v8351_v29, %v8351_v29  ;;  %v9307_v8 = vrot.slane %v9306_v2, 4  ;;  %v9313_v50 = vsel %vm4272_vm4, %v8352_v62, -inf  ;;  %v9320_v61 = vsel %vm4272_vm4, %v8351_v29, -inf  ;;  %17832 = vmatprep.mubr.msk.f32.mxu0 %vm4269_vm3, %v22387_v25 }
 0x750   : > { %v9228_v6 = vmax.f32 %v9226_v59, %v9227_v49  ;;  %v9234_v13 = vrot.slane %v9233_v43, 1  ;;  %v9241_v42 = vrot.slane %v9240_v60, 1  ;;  %v9247_v58 = vmax.f32 %v9245_v53, %v9246_v3 }
 0x751   : > { %v9308_v14 = vmax.f32 %v9306_v2, %v9307_v8  ;;  %v9314_v48 = vrot.slane %v9313_v50, 4  ;;  %v9321_v7 = vrot.slane %v9320_v61, 4  ;;  %v9327_v19 = vsel %vm4272_vm4, %v8353_v36, -inf }
 0x752   : > { %v9235_v55 = vmax.f32 %v9233_v43, %v9234_v13  ;;  %v9242_v17 = vmax.f32 %v9240_v60, %v9241_v42  ;;  %v9248_v45 = vrot.slane %v9247_v58, 1  ;;  %v9328_v10 = vrot.slane %v9327_v19, 4 }
 0x753   : > { %v9309_v40 = vrot.slane %v9308_v14, 2  ;;  %v9315_v28 = vmax.f32 %v9313_v50, %v9314_v48  ;;  %v9322_v16 = vmax.f32 %v9320_v61, %v9321_v7  ;;  %v22399_v24 = vsel %vm4269_vm3, %v9228_v6, -inf }
 0x754   : > { %v22396_v15 = vmax.f32 %v9247_v58, %v9248_v45  ;;  %v22402_v47 = vsel %vm4269_vm3, %v9235_v55, -inf  ;;  %v8320_v30 = vcombine.high %v7840_v35, %v7840_v35  ;;  %v9329_v26 = vmax.f32 %v9327_v19, %v9328_v10 }
 0x755   : > { %v9310_v44 = vmax.f32 %v9308_v14, %v9309_v40  ;;  %v9316_v11 = vrot.slane %v9315_v28, 2  ;;  %v9323_v34 = vrot.slane %v9322_v16, 2  ;;  %v22405_v63 = vsel %vm4269_vm3, %v9242_v17, -inf }
 0x756   : > { %v8327_v9 = vrot.slane %v7840_v35, %v21613_v51  ;;  %v8334_v57 = vrot.slane %v8320_v30, %v21613_v51  ;;  %v7843_v20 = vmax.f32 %v7811_v18, 0.0  ;;  %v9330_v21 = vrot.slane %v9329_v26, 2 }
 0x757   : > { %v9311_v37 = vrot.slane %v9310_v44, 1  ;;  %v9317_v31 = vmax.f32 %v9315_v28, %v9316_v11  ;;  %v9324_v12 = vmax.f32 %v9322_v16, %v9323_v34 }
 0x758   : > { %v8335_v59 = vcombine.high %v8327_v9, %v8327_v9  ;;  %v8336_v5 = vcombine.high %v8334_v57, %v8334_v57  ;;  %v9278_v0 = vsel %vm4272_vm4, %v8327_v9, -inf  ;;  %v9292_v53 = vsel %vm4272_vm4, %v8334_v57, -inf }
 0x759   : > { %v9312_v29 = vmax.f32 %v9310_v44, %v9311_v37  ;;  %v9318_v62 = vrot.slane %v9317_v31, 1  ;;  %v9325_v2 = vrot.slane %v9324_v12, 1  ;;  %v9331_v49 = vmax.f32 %v9329_v26, %v9330_v21 }
 0x75a   : > { %v9279_v43 = vrot.slane %v9278_v0, 4  ;;  %v9285_v35 = vsel %vm4272_vm4, %v8335_v59, -inf  ;;  %v9293_v60 = vrot.slane %v9292_v53, 4  ;;  %v9299_v3 = vsel %vm4272_vm4, %v8336_v5, -inf }
 0x75b   : > { %v9319_v36 = vmax.f32 %v9317_v31, %v9318_v62  ;;  %v9326_v8 = vmax.f32 %v9324_v12, %v9325_v2  ;;  %v9332_v50 = vrot.slane %v9331_v49, 1  ;;  %v22414_v61 = vsel %vm4269_vm3, %v9312_v29, -inf }
 0x75c   : > { %v9604_v6 = vmax.f32 %v22364_v38, %v22414_v61  ;;  %v9280_v13 = vmax.f32 %v9278_v0, %v9279_v43  ;;  %v9286_v42 = vrot.slane %v9285_v35, 4  ;;  %v9294_v58 = vmax.f32 %v9292_v53, %v9293_v60 }
 0x75d   : > { %v9333_v14 = vmax.f32 %v9331_v49, %v9332_v50  ;;  %v22419_v48 = vsel %vm4269_vm3, %v9319_v36, -inf  ;;  %v22422_v7 = vsel %vm4269_vm3, %v9326_v8, -inf  ;;  %v9300_v19 = vrot.slane %v9299_v3, 4 }
 0x75e   : > { %v9607_v55 = vmax.f32 %v22367_v54, %v22419_v48  ;;  %v9610_v17 = vmax.f32 %v22370_v39, %v22422_v7  ;;  %v9281_v45 = vrot.slane %v9280_v13, 2  ;;  %v9287_v18 = vmax.f32 %v9285_v35, %v9286_v42 }
 0x75f   : > { %v22429_v40 = vsel %vm4269_vm3, %v9333_v14, -inf  ;;  %v9295_v28 = vrot.slane %v9294_v58, 2  ;;  %v9301_v16 = vmax.f32 %v9299_v3, %v9300_v19  ;;  %v8371_v10 = vcombine.high %v7843_v20, %v7843_v20 }
 0x760   : > { %v9613_v30 = vmax.f32 %v22375_v33, %v22429_v40  ;;  %v9282_v44 = vmax.f32 %v9280_v13, %v9281_v45  ;;  %v9288_v11 = vrot.slane %v9287_v18, 2  ;;  %v8378_v34 = vrot.slane %v7843_v20, %v21613_v51 }
 0x761   : > { %v9296_v26 = vmax.f32 %v9294_v58, %v9295_v28  ;;  %v9302_v9 = vrot.slane %v9301_v16, 2  ;;  %v8385_v57 = vrot.slane %v8371_v10, %v21613_v51  ;;  %v7810_v37 = vadd.f32 %v22381_v27, %v22068_v46 }
 0x762   : > { %v9283_v31 = vrot.slane %v9282_v44, 1  ;;  %v9289_v12 = vmax.f32 %v9287_v18, %v9288_v11  ;;  %v8386_v21 = vcombine.high %v8378_v34, %v8378_v34  ;;  %v9362_v59 = vsel %vm4272_vm4, %v8378_v34, -inf }
 0x763   : > { %v9297_v5 = vrot.slane %v9296_v26, 1  ;;  %v9303_v0 = vmax.f32 %v9301_v16, %v9302_v9  ;;  %v8387_v53 = vcombine.high %v8385_v57, %v8385_v57  ;;  %v9363_v33 = vrot.slane %v9362_v59, 4 }
 0x764   : > { %v9284_v29 = vmax.f32 %v9282_v44, %v9283_v31  ;;  %v9290_v62 = vrot.slane %v9289_v12, 1  ;;  %v9369_v20 = vsel %vm4272_vm4, %v8386_v21, -inf  ;;  %v9376_v2 = vsel %vm4272_vm4, %v8385_v57, -inf }
 0x765   : > { %v9298_v49 = vmax.f32 %v9296_v26, %v9297_v5  ;;  %v9304_v43 = vrot.slane %v9303_v0, 1  ;;  %v9364_v35 = vmax.f32 %v9362_v59, %v9363_v33  ;;  %v9370_v60 = vrot.slane %v9369_v20, 4 }
 0x766   : > { %v9291_v46 = vmax.f32 %v9289_v12, %v9290_v62  ;;  %v9591_v3 = vsel %vm4269_vm3, %v9284_v29, -inf  ;;  %v9377_v36 = vrot.slane %v9376_v2, 4  ;;  %v9383_v8 = vsel %vm4272_vm4, %v8387_v53, -inf }
 0x767   : > { %v9305_v50 = vmax.f32 %v9303_v0, %v9304_v43  ;;  %v9592_v13 = vmax.f32 %v22399_v24, %v9591_v3  ;;  %v9597_v42 = vsel %vm4269_vm3, %v9298_v49, -inf  ;;  %v9365_v58 = vrot.slane %v9364_v35, 2 }
 0x768   : > { %v9599_v14 = vsel %vm4269_vm3, %v22396_v15, -inf  ;;  %v9594_v19 = vsel %vm4269_vm3, %v9291_v46, -inf  ;;  %v9598_v45 = vmax.f32 %v22405_v63, %v9597_v42  ;;  %v9371_v18 = vmax.f32 %v9369_v20, %v9370_v60 }
 0x769   : > { %v9595_v40 = vmax.f32 %v22402_v47, %v9594_v19  ;;  %v9600_v28 = vsel %vm4269_vm3, %v9305_v50, -inf  ;;  %v9378_v16 = vmax.f32 %v9376_v2, %v9377_v36  ;;  %v9384_v10 = vrot.slane %v9383_v8, 4 }
 0x76a   : > { %v9601_v44 = vmax.f32 %v9599_v14, %v9600_v28  ;;  %v9366_v11 = vmax.f32 %v9364_v35, %v9365_v58  ;;  %v7842_v24 = vmax.f32 %v7810_v37, 0.0  ;;  %v9372_v26 = vrot.slane %v9371_v18, 2  ;;  %v9801_v28 = vld [vmem:[#allocation2] sm:$0xff] }
 0x76b   : > { %v9771_v34 = vsel %vm9722_vm5, %v9595_v40, %v9592_v13  ;;  %v9385_v9 = vmax.f32 %v9383_v8, %v9384_v10  ;;  %v9379_v63 = vrot.slane %v9378_v16, 2  ;;  %v7813_v33 = vadd.f32 %v22381_v27, %v22092_v32 }
 0x76c   : > { %v9772_v15 = vsel %vm9724_vm6, %v9598_v45, %v9771_v34  ;;  %v8354_v57 = vcombine.high %v7842_v24, %v7842_v24  ;;  %v8361_v12 = vrot.slane %v7842_v24, %v21613_v51  ;;  %v9367_v21 = vrot.slane %v9366_v11, 1 }
 0x76d   : > { %v9773_v31 = vsel %vm9726_vm7, %v9601_v44, %v9772_v15  ;;  %v9386_v59 = vrot.slane %v9385_v9, 2  ;;  %v9373_v0 = vmax.f32 %v9371_v18, %v9372_v26  ;;  %v9380_v29 = vmax.f32 %v9378_v16, %v9379_v63 }
 0x76e   : > { %v9774_v47 = vsel %vm9728_vm8, %v9604_v6, %v9773_v31  ;;  %v8368_v37 = vrot.slane %v8354_v57, %v21613_v51  ;;  %v8369_v53 = vcombine.high %v8361_v12, %v8361_v12  ;;  %v9334_v62 = vsel %vm4272_vm4, %v8361_v12, -inf }
 0x76f   : > { %v9775_v5 = vsel %vm9730_vm9, %v9607_v55, %v9774_v47  ;;  %v9368_v48 = vmax.f32 %v9366_v11, %v9367_v21  ;;  %v9387_v55 = vmax.f32 %v9385_v9, %v9386_v59  ;;  %v9335_v20 = vrot.slane %v9334_v62, 4 }
 0x770   : > { %v9776_v38 = vsel %vm9732_vm10, %v9610_v17, %v9775_v5  ;;  %v8370_v61 = vcombine.high %v8368_v37, %v8368_v37  ;;  %v9341_v54 = vsel %vm4272_vm4, %v8369_v53, -inf  ;;  %v9374_v32 = vrot.slane %v9373_v0, 1  ;;  %v22498_v53 = vld [vmem:[#allocation2 + $0x18] sm:$0xff] }
 0x771   : > { %v9777_v6 = vsel %vm9734_vm11, %v9613_v30, %v9776_v38  ;;  %v9342_v2 = vrot.slane %v9341_v54, 4  ;;  %v9348_v49 = vsel %vm4272_vm4, %v8368_v37, -inf  ;;  %v7845_v7 = vmax.f32 %v7813_v33, 0.0  ;;  %v22500_v33 = vld [vmem:[#allocation6 + $0x18] sm:$0xff] }
 0x772   : > { %9799 = vst.msk [vmem:[#allocation2 + $0xa9] sm:$0xff] %vm4269_vm3, %v9777_v6  ;;  %v9355_v39 = vsel %vm4272_vm4, %v8370_v61, -inf  ;;  %v9336_v17 = vmax.f32 %v9334_v62, %v9335_v20  ;;  %v9349_v30 = vrot.slane %v9348_v49, 4  ;;  %v9381_v3 = vrot.slane %v9380_v29, 1  ;;  %v22512_v62 = vld [vmem:[#allocation2 + $0x30] sm:$0xff] }
 0x773   : > { %v9343_v43 = vmax.f32 %v9341_v54, %v9342_v2  ;;  %v9356_v35 = vrot.slane %v9355_v39, 4  ;;  %v8405_v60 = vcombine.high %v7845_v7, %v7845_v7  ;;  %v8412_v46 = vrot.slane %v7845_v7, %v21613_v51  ;;  %v22517_v2 = vld [vmem:[#allocation2 + $0x48] sm:$0xff] }
 0x774   : > { %v9388_v36 = vrot.slane %v9387_v55, 1  ;;  %v9337_v8 = vrot.slane %v9336_v17, 2  ;;  %v22477_v13 = vsel %vm4269_vm3, %v9368_v48, -inf  ;;  %v9375_v19 = vmax.f32 %v9373_v0, %v9374_v32 }
 0x775   : > { %v9344_v50 = vrot.slane %v9343_v43, 2  ;;  %v8419_v42 = vrot.slane %v8405_v60, %v21613_v51  ;;  %v8420_v58 = vcombine.high %v8412_v46, %v8412_v46  ;;  %v9418_v14 = vsel %vm4272_vm4, %v8412_v46, -inf  ;;  %v22535_v60 = vld [vmem:[#allocation2 + $0x32] sm:$0xff]  ;;  %v22537_v46 = vld [vmem:[#allocation2 + $0x4a] sm:$0xff] }
 0x776   : > { %v9350_v45 = vmax.f32 %v9348_v49, %v9349_v30  ;;  %v9357_v18 = vmax.f32 %v9355_v39, %v9356_v35  ;;  %v7812_v40 = vadd.f32 %v22381_v27, %v22129_v56  ;;  %v9419_v10 = vrot.slane %v9418_v14, 4  ;;  %v22528_v30 = vld [vmem:[#allocation2 + $0x90] sm:$0xff]  ;;  %v22530_v35 = vld [vmem:[#allocation2 + $0x2] sm:$0xff] }
 0x777   : > { %v8421_v16 = vcombine.high %v8419_v42, %v8419_v42  ;;  %v9425_v44 = vsel %vm4272_vm4, %v8420_v58, -inf  ;;  %v9432_v11 = vsel %vm4272_vm4, %v8419_v42, -inf  ;;  %v9382_v34 = vmax.f32 %v9380_v29, %v9381_v3  ;;  %v22539_v3 = vld [vmem:[#allocation2 + $0x62] sm:$0xff] }
 0x778   : > { %v9389_v26 = vmax.f32 %v9387_v55, %v9388_v36  ;;  %v22487_v9 = vmax.f32 %v9336_v17, %v9337_v8  ;;  %v22489_v15 = vmax.f32 %v9343_v43, %v9344_v50  ;;  %v9420_v57 = vmax.f32 %v9418_v14, %v9419_v10  ;;  %v22524_v17 = vld [vmem:[#allocation2 + $0x60] sm:$0xff]  ;;  %v22526_v43 = vld [vmem:[#allocation2 + $0x78] sm:$0xff] }
 0x779   : > { %v22485_v24 = vld [vmem:[#allocation2 + $0xa9] sm:$0xff]  ;;  %v9426_v56 = vrot.slane %v9425_v44, 4  ;;  %v9433_v27 = vrot.slane %v9432_v11, 4  ;;  %v9439_v31 = vsel %vm4272_vm4, %v8421_v16, -inf  ;;  %v22496_v63 = vsel %vm4269_vm3, %v9375_v19, -inf  ;;  %v22541_v36 = vld [vmem:[#allocation2 + $0x7a] sm:$0xff] }
 0x77a   : > { %17833 = vmatmul.mubr.msk.f32.gmra.mrb[42].mxu0 %vm4269_vm3, %v22485_v24  ;;  %v9351_v12 = vrot.slane %v9350_v45, 2  ;;  %v9358_v47 = vrot.slane %v9357_v18, 2  ;;  %v7844_v21 = vmax.f32 %v7812_v40, 0.0  ;;  %v9421_v59 = vrot.slane %v9420_v57, 2  ;;  %v22543_v14 = vld [vmem:[#allocation2 + $0x92] sm:$0xff]  ;;  %v22553_v16 = vld [vmem:[#allocation2 + $0xa8] sm:$0xff] }
 0x77b   : > { %17837 = vmatprep.mubr.msk.f32.mxu0 %vm4269_vm3, %v9801_v28  ;;  %v9427_v37 = vmax.f32 %v9425_v44, %v9426_v56  ;;  %v9434_v5 = vmax.f32 %v9432_v11, %v9433_v27  ;;  %v9440_v0 = vrot.slane %v9439_v31, 4  ;;  %v22503_v38 = vsel %vm4269_vm3, %v9382_v34, -inf  ;;  %v22545_v19 = vld [vmem:[#allocation2 + $0xd8] sm:$0xff]  ;;  %v22555_v10 = vld [vmem:[#allocation2 + $0xaa] sm:$0xff] }
 0x77c   : > { %v22506_v61 = vsel %vm4269_vm3, %v9389_v26, -inf  ;;  %v9339_v6 = vrot.slane %v22487_v9, 1  ;;  %v9346_v29 = vrot.slane %v22489_v15, 1  ;;  %v9422_v54 = vmax.f32 %v9420_v57, %v9421_v59  ;;  %v22557_v44 = vld [vmem:[#allocation2 + $0xda] sm:$0xff] }
 0x77d   : > { %v9428_v48 = vrot.slane %v9427_v37, 2  ;;  %v9435_v55 = vrot.slane %v9434_v5, 2  ;;  %v9441_v20 = vmax.f32 %v9439_v31, %v9440_v0  ;;  %v22519_v32 = vmax.f32 %v9350_v45, %v9351_v12  ;;  %v22547_v45 = vld [vmem:[#allocation2 + $0xd9] sm:$0xff] }
 0x77e   : > { %17838 = vmatmul.mubr.msk.f32.vlgmr.msra.gmra.mrb[36].mxu0 %vm4269_vm3, %v22498_v53  ;;  %v22521_v49 = vmax.f32 %v9357_v18, %v9358_v47  ;;  %v8388_v39 = vcombine.high %v7844_v21, %v7844_v21  ;;  %v8395_v7 = vrot.slane %v7844_v21, %v21613_v51  ;;  %v9423_v8 = vrot.slane %v9422_v54, 1 }
 0x77f   : > { %17850 = vmatpush3.msra.mxu0 %v22258_v23  ;;  %17840 = vmatprep.mubr.msk.f32.mxu0 %vm4269_vm3, %v22512_v62  ;;  %v22533_v23 = vld [vmem:[#allocation2 + $0x1a] sm:$0xff]  ;;  %v9429_v50 = vmax.f32 %v9427_v37, %v9428_v48  ;;  %v9436_v42 = vmax.f32 %v9434_v5, %v9435_v55  ;;  %v9442_v58 = vrot.slane %v9441_v20, 2  ;;  %v23881_v56 = vmov 0.0  }
 0x780   : > { %17863 = vmatprep.subr.mxu0 %v22500_v33  ;;  %v8402_v18 = vrot.slane %v8388_v39, %v21613_v51  ;;  %v8403_v40 = vcombine.high %v8395_v7, %v8395_v7  ;;  %v9390_v28 = vsel %vm4272_vm4, %v8395_v7, -inf  ;;  %v9424_v11 = vmax.f32 %v9422_v54, %v9423_v8  ;;  %11134 = vst.msk [vmem:[#allocation2 + $0x18] sm:$0xff] %vm11130_vm12, %v23881_v56 }
 0x781   : > { %v9430_v34 = vrot.slane %v9429_v50, 1  ;;  %v9437_v26 = vrot.slane %v9436_v42, 1  ;;  %v9443_v57 = vmax.f32 %v9441_v20, %v9442_v58  ;;  %11131 = vst.msk [vmem:[#allocation2] sm:$0xff] %vm11130_vm12, %v23881_v56  ;;  %11136 = vst.msk [vmem:[#allocation2 + $0x30] sm:$0xff] %vm11130_vm12, %v23881_v56  ;;  %v9391_v31 = vrot.slane %v9390_v28, 4 }
 0x782   : > { %17841 = vmatmul.mubr.msk.f32.gmra.mrb[38].mxu0 %vm4269_vm3, %v22517_v2  ;;  %11138 = vst.msk [vmem:[#allocation2 + $0x48] sm:$0xff] %vm11130_vm12, %v23881_v56  ;;  %11140 = vst.msk [vmem:[#allocation2 + $0x60] sm:$0xff] %vm11130_vm12, %v23881_v56  ;;  %v8404_v27 = vcombine.high %v8402_v18, %v8402_v18  ;;  %v9397_v12 = vsel %vm4272_vm4, %v8403_v40, -inf  ;;  %v9404_v47 = vsel %vm4272_vm4, %v8402_v18, -inf  ;;  %v22582_v5 = vsel %vm4269_vm3, %v9424_v11, -inf }
 0x783   : > { %17843 = vmatprep.mubr.msk.f32.mxu0 %vm4269_vm3, %v22524_v17  ;;  %11142 = vst.msk [vmem:[#allocation2 + $0x78] sm:$0xff] %vm11130_vm12, %v23881_v56  ;;  %11144 = vst.msk [vmem:[#allocation2 + $0x90] sm:$0xff] %vm11130_vm12, %v23881_v56  ;;  %v9431_v21 = vmax.f32 %v9429_v50, %v9430_v34  ;;  %v9438_v59 = vmax.f32 %v9436_v42, %v9437_v26  ;;  %v9444_v37 = vrot.slane %v9443_v57, 1  ;;  %v9398_v48 = vrot.slane %v9397_v12, 4  ;;  %v15872_v50 = vld [vmem:[%s23492_s7 + $0x10] sm:$0xff]  ;;  %v15873_v42 = vld [vmem:[%s23492_s7 + $0x18] sm:$0xff] }
 0x784   : > { %11146 = vst.msk [vmem:[#allocation2 + $0xa8] sm:$0xff] %vm11130_vm12, %v23881_v56  ;;  %11150 = vst.msk [vmem:[#allocation2 + $0xd8] sm:$0xff] %vm11130_vm12, %v23881_v56  ;;  %v9628_v0 = vmax.f32 %v22477_v13, %v22582_v5  ;;  %v9392_v54 = vmax.f32 %v9390_v28, %v9391_v31  ;;  %v9405_v55 = vrot.slane %v9404_v47, 4  ;;  %v9411_v8 = vsel %vm4272_vm4, %v8404_v27, -inf }
 0x785   : > { %v9445_v20 = vmax.f32 %v9443_v57, %v9444_v37  ;;  %v22589_v39 = vsel %vm4269_vm3, %v9431_v21, -inf  ;;  %v22592_v7 = vsel %vm4269_vm3, %v9438_v59, -inf  ;;  %v9399_v28 = vmax.f32 %v9397_v12, %v9398_v48  ;;  %11135 = vst.msk [vmem:[#allocation2 + $0x20] sm:$0x3] %vm11132_vm13, %v23881_v56  ;;  %11133 = vst.msk [vmem:[#allocation2 + $0x8] sm:$0x3] %vm11132_vm13, %v23881_v56 }
 0x786   : > { %17844 = vmatmul.mubr.msk.f32.gmra.mrb[40].mxu0 %vm4269_vm3, %v22526_v43  ;;  %v9631_v58 = vmax.f32 %v22496_v63, %v22589_v39  ;;  %v9634_v18 = vmax.f32 %v22503_v38, %v22592_v7  ;;  %v9393_v40 = vrot.slane %v9392_v54, 2  ;;  %v9406_v34 = vmax.f32 %v9404_v47, %v9405_v55  ;;  %11137 = vst.msk [vmem:[#allocation2 + $0x38] sm:$0x3] %vm11132_vm13, %v23881_v56  ;;  %v10381_v57 = vld [vmem:[#allocation6 + $0x20] sm:$0xff]  ;;  %v10528_v63 = vld [vmem:[#allocation6 + $0x28] sm:$0xff] }
 0x787   : > { %17846 = vmatprep.mubr.msk.f32.mxu0 %vm4269_vm3, %v22528_v30  ;;  %v22608_v11 = vsel %vm4269_vm3, %v9445_v20, -inf  ;;  %v9412_v26 = vrot.slane %v9411_v8, 4  ;;  %v9400_v31 = vrot.slane %v9399_v28, 2  ;;  %11139 = vst.msk [vmem:[#allocation2 + $0x50] sm:$0x3] %vm11132_vm13, %v23881_v56  ;;  %v18274_v12 = vpack.c.bf16 %v15873_v42, %v15872_v50  ;;  %v15890_v7 = vld [vmem:[%s23492_s7 + $0x20] sm:$0xff] }
 0x788   : > { %v9394_v27 = vmax.f32 %v9392_v54, %v9393_v40  ;;  %11141 = vst.msk [vmem:[#allocation2 + $0x68] sm:$0x3] %vm11132_vm13, %v23881_v56  ;;  %11143 = vst.msk [vmem:[#allocation2 + $0x80] sm:$0x3] %vm11132_vm13, %v23881_v56  ;;  %v9353_v47 = vrot.slane %v22519_v32, 1  ;;  %v9407_v21 = vrot.slane %v9406_v34, 2  ;;  %v9340_v37 = vmax.f32 %v22487_v9, %v9339_v6 }
 0x789   : > { %11145 = vst.msk [vmem:[#allocation2 + $0x98] sm:$0x3] %vm11132_vm13, %v23881_v56  ;;  %11147 = vst.msk [vmem:[#allocation2 + $0xb0] sm:$0x3] %vm11132_vm13, %v23881_v56  ;;  %v9413_v59 = vmax.f32 %v9411_v8, %v9412_v26  ;;  %v9401_v48 = vmax.f32 %v9399_v28, %v9400_v31  ;;  %18275 = vmatprep.subr.bf16.mxu1 %v18274_v12  ;;  %v9360_v55 = vrot.slane %v22521_v49, 1  ;;  %vm13883_vm4 = vcmask 261120  }
 0x78a   : > { %17847 = vmatmul.mubr.msk.f32.gmra.mrb[42].mxu0 %vm4269_vm3, %v22553_v16  ;;  %11151 = vst.msk [vmem:[#allocation2 + $0xe0] sm:$0x3] %vm11132_vm13, %v23881_v56  ;;  %v9395_v54 = vrot.slane %v9394_v27, 1  ;;  %v9408_v20 = vmax.f32 %v9406_v34, %v9407_v21  ;;  %18277 = vmatpush3.bf16.msra.mxu1 %v18274_v12  ;;  %v9347_v8 = vmax.f32 %v22489_v15, %v9346_v29  ;;  %v9614_v28 = vsel %vm4269_vm3, %v9340_v37, -inf }
 0x78b   : > { %17851 = vmatprep.mubr.msk.f32.mxu0 %vm4269_vm3, %v22530_v35  ;;  %v9414_v40 = vrot.slane %v9413_v59, 2  ;;  %v9402_v42 = vrot.slane %v9401_v48, 1  ;;  %v9354_v9 = vmax.f32 %v22519_v32, %v9353_v47  ;;  %v9361_v15 = vmax.f32 %v22521_v49, %v9360_v55 }
 0x78c   : > { %v9396_v50 = vmax.f32 %v9394_v27, %v9395_v54  ;;  %v9409_v6 = vrot.slane %v9408_v20, 1  ;;  %v9617_v32 = vsel %vm4269_vm3, %v9347_v8, -inf  ;;  %v23882_v13 = vmax.f32 %v22506_v61, %v22608_v11 }
 0x78d   : > { %v9415_v35 = vmax.f32 %v9413_v59, %v9414_v40  ;;  %v9403_v34 = vmax.f32 %v9401_v48, %v9402_v42  ;;  %v9623_v37 = vsel %vm4269_vm3, %v9361_v15, -inf }
 0x78e   : > { %17852 = vmatmul.mubr.msk.f32.vlgmr.msra.gmra.mrb[36].mxu0 %vm4269_vm3, %v22533_v23  ;;  %v9615_v26 = vsel %vm4269_vm3, %v9396_v50, -inf  ;;  %v9410_v29 = vmax.f32 %v9408_v20, %v9409_v6 }
 0x78f   : > { %17864 = vmatpush3.msra.mxu0 %v22500_v33  ;;  %17854 = vmatprep.mubr.msk.f32.mxu0 %vm4269_vm3, %v22535_v60  ;;  %v9416_v27 = vrot.slane %v9415_v35, 1  ;;  %v9616_v31 = vmax.f32 %v9614_v28, %v9615_v26  ;;  %v9618_v12 = vsel %vm4269_vm3, %v9403_v34, -inf  ;;  %v9620_v33 = vsel %vm4269_vm3, %v9354_v9, -inf }
 0x790   : > { %17877 = vmatprep.subr.mxu0 %v10381_v57  ;;  %v9619_v21 = vmax.f32 %v9617_v32, %v9618_v12  ;;  %v9621_v59 = vsel %vm4269_vm3, %v9410_v29, -inf }
 0x791   : > { %v9417_v47 = vmax.f32 %v9415_v35, %v9416_v27  ;;  %v9622_v49 = vmax.f32 %v9620_v33, %v9621_v59 }
 0x792   : > { %17855 = vmatmul.mubr.msk.f32.gmra.mrb[38].mxu0 %vm4269_vm3, %v22537_v46  ;;  %v9778_v48 = vsel %vm9722_vm5, %v9619_v21, %v9616_v31 }
 0x793   : > { %17857 = vmatprep.mubr.msk.f32.mxu0 %vm4269_vm3, %v22539_v3  ;;  %v9624_v54 = vsel %vm4269_vm3, %v9417_v47, -inf  ;;  %v9779_v20 = vsel %vm9724_vm6, %v9622_v49, %v9778_v48 }
 0x794   : > { %v9625_v55 = vmax.f32 %v9623_v37, %v9624_v54 }
 0x796   : > { %17858 = vmatmul.mubr.msk.f32.gmra.mrb[40].mxu0 %vm4269_vm3, %v22541_v36  ;;  %v9780_v40 = vsel %vm9726_vm7, %v9625_v55, %v9779_v20 }
 0x797   : > { %17860 = vmatprep.mubr.msk.f32.mxu0 %vm4269_vm3, %v22543_v14  ;;  %v9781_v8 = vsel %vm9728_vm8, %v9628_v0, %v9780_v40  ;;  %v10675_v0 = vld [vmem:[#allocation6 + $0x30] sm:$0xff]  ;;  %vm19341_vm8 = vmmov 0  }
 0x798   : > { %v9782_v50 = vsel %vm9730_vm9, %v9631_v58, %v9781_v8  ;;  %v15891_v58 = vld [vmem:[%s23492_s7 + $0x28] sm:$0xff]  ;;  %vm14775_vm9 = vcmask 254976  }
 0x799   : > { %v9783_v42 = vsel %vm9732_vm10, %v9634_v18, %v9782_v50  ;;  %v18282_v35 = vpack.c.bf16 %v15891_v58, %v15890_v7  ;;  %v15900_v50 = vld [vmem:[%s23492_s7 + $0x30] sm:$0xff]  ;;  %v23050_v58 = vld [vmem:[%s23493_s8] ss:$0 sm:$0xff] }
 0x79a   : > { %17861 = vmatmul.mubr.msk.f32.gmra.mrb[42].mxu0 %vm4269_vm3, %v22555_v10  ;;  %v9784_v5 = vsel %vm9734_vm11, %v23882_v13, %v9783_v42  ;;  %v15901_v42 = vld [vmem:[%s23492_s7 + $0x38] sm:$0xff] }
 0x79b   : > { %17865 = vmatprep.mubr.msk.f32.mxu0 %vm4269_vm3, %v22498_v53  ;;  %9800 = vst.msk [vmem:[#allocation2 + $0xc1] sm:$0xff] %vm4269_vm3, %v9784_v5  ;;  %v18286_v13 = vpack.c.bf16 %v15901_v42, %v15900_v50 }
 0x79e   : > { %17866 = vmatmul.mubr.msk.f32.vlgmr.msra.gmra.mrb[36].mxu0 %vm4269_vm3, %v22512_v62 }
 0x79f   : > { %17878 = vmatpush3.msra.mxu0 %v10381_v57  ;;  %17868 = vmatprep.mubr.msk.f32.mxu0 %vm4269_vm3, %v22517_v2 }
 0x7a0   : > { %17891 = vmatprep.subr.mxu0 %v10528_v63 }
 0x7a2   : > { %17869 = vmatmul.mubr.msk.f32.gmra.mrb[38].mxu0 %vm4269_vm3, %v22524_v17  ;;  %v10232_v53 = vld [vmem:[#allocation2 + $0xc0] sm:$0xff] }
 0x7a3   : > { %17871 = vmatprep.mubr.msk.f32.mxu0 %vm4269_vm3, %v22526_v43  ;;  %v10379_v38 = vld [vmem:[#allocation2 + $0xc1] sm:$0xff] }
 0x7a4   : > { %v10526_v61 = vld [vmem:[#allocation2 + $0xc2] sm:$0xff] }
 0x7a5   : > { %11149 = vst.msk [vmem:[#allocation2 + $0xc8] sm:$0x3] %vm11132_vm13, %v23881_v56 }
 0x7a6   : > { %11148 = vst.msk [vmem:[#allocation2 + $0xc0] sm:$0xff] %vm11130_vm12, %v23881_v56  ;;  %17872 = vmatmul.mubr.msk.f32.gmra.mrb[40].mxu0 %vm4269_vm3, %v22528_v30 }
 0x7a7   : > { %17874 = vmatprep.mubr.msk.f32.mxu0 %vm4269_vm3, %v22553_v16 }
 0x7aa   : > { %17875 = vmatmul.mubr.msk.f32.gmra.mrb[42].mxu0 %vm4269_vm3, %v10232_v53 }
 0x7ab   : > { %17879 = vmatprep.mubr.msk.f32.mxu0 %vm4269_vm3, %v21891_v52  ;;  %v10822_v52 = vld [vmem:[#allocation6 + $0x38] sm:$0xff] }
 0x7ae   : > { %17880 = vmatmul.mubr.msk.f32.vlgmr.msra.gmra.mrb[36].mxu0 %vm4269_vm3, %v22024_v22 }
 0x7af   : > { %17892 = vmatpush3.msra.mxu0 %v10528_v63  ;;  %17882 = vmatprep.mubr.msk.f32.mxu0 %vm4269_vm3, %v22146_v41 }
 0x7b0   : > { %17905 = vmatprep.subr.mxu0 %v10675_v0 }
 0x7b2   : > { %17883 = vmatmul.mubr.msk.f32.gmra.mrb[38].mxu0 %vm4269_vm3, %v22177_v1 }
 0x7b3   : > { %17885 = vmatprep.mubr.msk.f32.mxu0 %vm4269_vm3, %v22273_v4 }
 0x7b6   : > { %17886 = vmatmul.mubr.msk.f32.gmra.mrb[40].mxu0 %vm4269_vm3, %v22387_v25 }
 0x7b7   : > { %17888 = vmatprep.mubr.msk.f32.mxu0 %vm4269_vm3, %v22485_v24 }
 0x7ba   : > { %17889 = vmatmul.mubr.msk.f32.gmra.mrb[42].mxu0 %vm4269_vm3, %v10379_v38 }
 0x7bb   : > { %17893 = vmatprep.mubr.msk.f32.mxu0 %vm4269_vm3, %v22533_v23  ;;  %v10969_v23 = vld [vmem:[#allocation6 + $0x40] sm:$0xff] }
 0x7be   : > { %17894 = vmatmul.mubr.msk.f32.vlgmr.msra.gmra.mrb[36].mxu0 %vm4269_vm3, %v22535_v60 }
 0x7bf   : > { %17906 = vmatpush3.msra.mxu0 %v10675_v0  ;;  %17896 = vmatprep.mubr.msk.f32.mxu0 %vm4269_vm3, %v22537_v46 }
 0x7c0   : > { %17919 = vmatprep.subr.mxu0 %v10822_v52 }
 0x7c2   : > { %17897 = vmatmul.mubr.msk.f32.gmra.mrb[38].mxu0 %vm4269_vm3, %v22539_v3 }
 0x7c3   : > { %17899 = vmatprep.mubr.msk.f32.mxu0 %vm4269_vm3, %v22541_v36 }
 0x7c6   : > { %17900 = vmatmul.mubr.msk.f32.gmra.mrb[40].mxu0 %vm4269_vm3, %v22543_v14 }
 0x7c7   : > { %17902 = vmatprep.mubr.msk.f32.mxu0 %vm4269_vm3, %v22555_v10 }
 0x7ca   : > { %17903 = vmatmul.mubr.msk.f32.gmra.mrb[42].mxu0 %vm4269_vm3, %v10526_v61 }
 0x7cb   : > { %17907 = vmatprep.mubr.msk.f32.mxu0 %vm4269_vm3, %v22512_v62  ;;  %v15871_v62 = vld [vmem:[%s23491_s6] ss:$0 sm:$0xff] }
 0x7ce   : > { %17908 = vmatmul.mubr.msk.f32.vlgmr.msra.gmra.mrb[36].mxu0 %vm4269_vm3, %v22517_v2 }
 0x7cf   : > { %17920 = vmatpush3.msra.mxu0 %v10822_v52  ;;  %17910 = vmatprep.mubr.msk.f32.mxu0 %vm4269_vm3, %v22524_v17 }
 0x7d0   : > { %17933 = vmatprep.subr.mxu0 %v10969_v23 }
 0x7d2   : > { %17911 = vmatmul.mubr.msk.f32.gmra.mrb[38].mxu0 %vm4269_vm3, %v22526_v43 }
 0x7d3   : > { %17913 = vmatprep.mubr.msk.f32.mxu0 %vm4269_vm3, %v22528_v30 }
 0x7d6   : > { %17914 = vmatmul.mubr.msk.f32.gmra.mrb[40].mxu0 %vm4269_vm3, %v22553_v16 }
 0x7d7   : > { %17916 = vmatprep.mubr.msk.f32.mxu0 %vm4269_vm3, %v10232_v53  ;;  %v15910_v53 = vld [vmem:[%s23492_s7 + $0x40] sm:$0xff] }
 0x7da   : > { %17917 = vmatmul.mubr.msk.f32.gmra.mrb[42].mxu0 %vm4269_vm3, %v22545_v19 }
 0x7db   : > { %17921 = vmatprep.mubr.msk.f32.mxu0 %vm4269_vm3, %v22024_v22  ;;  %v11170_v22 = vld [vmem:[#allocation2 + $0x1] sm:$0xff] }
 0x7dc   : > { %17951 = vmatprep.mubr.msk.f32.mxu1 %vm11130_vm12, %v11170_v22  ;;  %v15921_v22 = vld [vmem:[%s23492_s7 + $0x58] sm:$0xff] }
 0x7de   : > { %17922 = vmatmul.mubr.msk.f32.vlgmr.msra.gmra.mrb[36].mxu0 %vm4269_vm3, %v22146_v41  ;;  %v11168_v41 = vld [vmem:[%s23492_s7] sm:$0xff] }
 0x7df   : > { %17934 = vmatpush3.msra.mxu0 %v10969_v23  ;;  %17924 = vmatprep.mubr.msk.f32.mxu0 %vm4269_vm3, %v22177_v1  ;;  %v11169_v1 = vld [vmem:[%s23492_s7 + $0x8] sm:$0xff]  ;;  %v15920_v23 = vld [vmem:[%s23492_s7 + $0x50] sm:$0xff] }
 0x7e2   : > { %17925 = vmatmul.mubr.msk.f32.gmra.mrb[38].mxu0 %vm4269_vm3, %v22273_v4  ;;  %v18278_v4 = vpack.c.bf16 %v11169_v1, %v11168_v41  ;;  %v18294_v41 = vpack.c.bf16 %v15921_v22, %v15920_v23 }
 0x7e3   : > { %17927 = vmatprep.mubr.msk.f32.mxu0 %vm4269_vm3, %v22387_v25  ;;  %v22788_v25 = vld [vmem:[#allocation2] sm:$0xff] }
 0x7e4   : > { %18279 = vmatprep.subr.bf16.mxu1 %v18278_v4 }
 0x7e6   : > { %17928 = vmatmul.mubr.msk.f32.gmra.mrb[40].mxu0 %vm4269_vm3, %v22485_v24  ;;  %v22790_v24 = vld [vmem:[#allocation2 + $0x2] sm:$0xff] }
 0x7e7   : > { %17930 = vmatprep.mubr.msk.f32.mxu0 %vm4269_vm3, %v10379_v38  ;;  %12947 = vst.msk [vmem:[#allocation2] sm:$0x3f] %vm12946_vm14, %v23881_v56  ;;  %v15911_v38 = vld [vmem:[%s23492_s7 + $0x48] sm:$0xff] }
 0x7ea   : > { %17931 = vmatmul.mubr.msk.f32.gmra.mrb[42].mxu0 %vm4269_vm3, %v22547_v45 }
 0x7eb   : > { %17935 = vmatprep.mubr.msk.f32.mxu0 %vm4269_vm3, %v22535_v60 }
 0x7ee   : > { %17936 = vmatmul.mubr.msk.f32.vlgmr.msra.gmra.mrb[36].mxu0 %vm4269_vm3, %v22537_v46 }
 0x7ef   : > { %17938 = vmatprep.mubr.msk.f32.mxu0 %vm4269_vm3, %v22539_v3 }
 0x7f2   : > { %17939 = vmatmul.mubr.msk.f32.gmra.mrb[38].mxu0 %vm4269_vm3, %v22541_v36 }
 0x7f3   : > { %17941 = vmatprep.mubr.msk.f32.mxu0 %vm4269_vm3, %v22543_v14 }
 0x7f6   : > { %17942 = vmatmul.mubr.msk.f32.gmra.mrb[40].mxu0 %vm4269_vm3, %v22555_v10 }
 0x7f7   : > { %17944 = vmatprep.mubr.msk.f32.mxu0 %vm4269_vm3, %v10526_v61  ;;  %v18290_v61 = vpack.c.bf16 %v15911_v38, %v15910_v53 }
 0x7fa   : > { %17945 = vmatmul.mubr.msk.f32.gmra.mrb[42].mxu0 %vm4269_vm3, %v22557_v44  ;;  %vm13855_vm3 = vcmask 257024  }
 0x8c1   : > { %v17937_v2 = vpop.f32.mrb[36].mxu0 }
 0x8c2   : > { %v11115_v17 = vadd.f32 %v17937_v2, %v15871_v62  ;;  %v11060_v43 = vpop.f32.mrb[37].mxu0  ;;  %v15940_v2 = vld [vmem:[%s23492_s7 + $0x70] sm:$0xff] }
 0x8c3   : > { %v11114_v30 = vadd.f32 %v15871_v62, %v11060_v43 }
 0x8c4   : > { %v11123_v60 = vmax.f32 %v11115_v17, 0.0  ;;  %v15941_v17 = vld [vmem:[%s23492_s7 + $0x78] sm:$0xff] }
 0x8c5   : > { %v11122_v46 = vmax.f32 %v11114_v30, 0.0  ;;  %v17940_v3 = vpop.f32.mrb[38].mxu0  ;;  %v18302_v43 = vpack.c.bf16 %v15941_v17, %v15940_v2 }
 0x8c6   : > { %11153 = vst.msk [vmem:[#allocation2 + $0x31] sm:$0xff] %vm11130_vm12, %v11123_v60  ;;  %v11117_v36 = vadd.f32 %v17940_v3, %v15871_v62  ;;  %v11070_v14 = vpop.f32.mrb[39].mxu0  ;;  %v15950_v60 = vld [vmem:[%s23492_s7 + $0x80] sm:$0xff] }
 0x8c7   : > { %11152 = vst.msk [vmem:[#allocation2 + $0x19] sm:$0xff] %vm11130_vm12, %v11122_v46  ;;  %v11116_v19 = vadd.f32 %v15871_v62, %v11070_v14  ;;  %v15951_v46 = vld [vmem:[%s23492_s7 + $0x88] sm:$0xff]  ;;  %v12186_v14 = vld [vmem:[#allocation2 + $0xd9] sm:$0xff] }
 0x8c8   : > { %v11125_v45 = vmax.f32 %v11117_v36, 0.0  ;;  %v18306_v3 = vpack.c.bf16 %v15951_v46, %v15950_v60  ;;  %v12038_v36 = vld [vmem:[#allocation2 + $0xd8] sm:$0xff] }
 0x8c9   : > { %v11124_v16 = vmax.f32 %v11116_v19, 0.0  ;;  %v17943_v10 = vpop.f32.mrb[40].mxu0  ;;  %v12334_v19 = vld [vmem:[#allocation2 + $0xda] sm:$0xff] }
 0x8ca   : > { %11155 = vst.msk [vmem:[#allocation2 + $0x61] sm:$0xff] %vm11130_vm12, %v11125_v45  ;;  %v11119_v44 = vadd.f32 %v17943_v10, %v15871_v62  ;;  %v11080_v39 = vpop.f32.mrb[41].mxu0  ;;  %v15961_v45 = vld [vmem:[%s23494_s9 + $0x10] sm:$0xff] }
 0x8cb   : > { %11154 = vst.msk [vmem:[#allocation2 + $0x49] sm:$0xff] %vm11130_vm12, %v11124_v16  ;;  %v11118_v18 = vadd.f32 %v15871_v62, %v11080_v39  ;;  %v15962_v16 = vld [vmem:[%s23494_s9 + $0x18] sm:$0xff]  ;;  %v12995_v39 = vld [vmem:[%s23494_s9 + $0x8] sm:$0xff] }
 0x8cc   : > { %v11127_v11 = vmax.f32 %v11119_v44, 0.0  ;;  %v18310_v10 = vpack.c.bf16 %v15962_v16, %v15961_v45  ;;  %v12994_v44 = vld [vmem:[%s23494_s9] sm:$0xff] }
 0x8cd   : > { %v11126_v57 = vmax.f32 %v11118_v18, 0.0  ;;  %v17946_v9 = vpop.f32.mrb[42].mxu0  ;;  %v22807_v6 = vld [vmem:[#allocation2 + $0x31] sm:$0xff]  ;;  %v23044_v7 = vpack.c.bf16 %v12995_v39, %v12994_v44 }
 0x8ce   : > { %v22809_v28 = vld [vmem:[#allocation2 + $0x30] sm:$0xff]  ;;  %11157 = vst.msk [vmem:[#allocation2 + $0x91] sm:$0xff] %vm11130_vm12, %v11127_v11  ;;  %v11121_v26 = vadd.f32 %v17946_v9, %v15871_v62  ;;  %v11090_v15 = vpop.f32.mrb[43].mxu0  ;;  %v22814_v29 = vld [vmem:[#allocation2 + $0x19] sm:$0xff]  ;;  %18311 = vmatprep.subr.bf16.mxu0 %v18310_v10 }
 0x8cf   : > { %v22811_v34 = vld [vmem:[#allocation2 + $0x32] sm:$0xff]  ;;  %v22818_v31 = vld [vmem:[#allocation2 + $0x1a] sm:$0xff]  ;;  %11156 = vst.msk [vmem:[#allocation2 + $0x79] sm:$0xff] %vm11130_vm12, %v11126_v57  ;;  %v11120_v32 = vadd.f32 %v15871_v62, %v11090_v15  ;;  %17952 = vmatmul.mubr.msk.f32.vlgmr.msra.gmra.mrb[32].mxu1 %vm11130_vm12, %v22814_v29  ;;  %18313 = vmatpush3.bf16.msra.mxu0 %v18310_v10 }
 0x8d0   : > { %v22816_v27 = vld [vmem:[#allocation2 + $0x18] sm:$0xff]  ;;  %12949 = vst.msk [vmem:[#allocation2 + $0x30] sm:$0x3f] %vm12946_vm14, %v23881_v56  ;;  %v11129_v12 = vmax.f32 %v11121_v26, 0.0  ;;  %18281 = vmatpush3.bf16.msra.mxu1 %v18278_v4  ;;  %17954 = vmatprep.mubr.msk.f32.mxu1 %vm11130_vm12, %v22807_v6  ;;  %v15930_v4 = vld [vmem:[%s23492_s7 + $0x60] sm:$0xff] }
 0x8d1   : > { %12948 = vst.msk [vmem:[#allocation2 + $0x18] sm:$0x3f] %vm12946_vm14, %v23881_v56  ;;  %v11128_v33 = vmax.f32 %v11120_v32, 0.0  ;;  %v22829_v47 = vld [vmem:[#allocation2 + $0x61] sm:$0xff]  ;;  %18283 = vmatprep.subr.bf16.mxu1 %v18282_v35  ;;  %18315 = vmatprep.subr.bf16.mxu0 %v23044_v7 }
 0x8d2   : > { %v22831_v21 = vld [vmem:[#allocation2 + $0x60] sm:$0xff]  ;;  %11159 = vst.msk [vmem:[#allocation2 + $0xc1] sm:$0xff] %vm11130_vm12, %v11129_v12  ;;  %v22836_v49 = vld [vmem:[#allocation2 + $0x49] sm:$0xff] }
 0x8d3   : > { %v22833_v59 = vld [vmem:[#allocation2 + $0x62] sm:$0xff]  ;;  %v22840_v54 = vld [vmem:[#allocation2 + $0x4a] sm:$0xff]  ;;  %11158 = vst.msk [vmem:[#allocation2 + $0xa9] sm:$0xff] %vm11130_vm12, %v11128_v33  ;;  %17955 = vmatmul.mubr.msk.f32.gmra.mrb[34].mxu1 %vm11130_vm12, %v22836_v49 }
 0x8d4   : > { %v22838_v37 = vld [vmem:[#allocation2 + $0x48] sm:$0xff]  ;;  %12951 = vst.msk [vmem:[#allocation2 + $0x60] sm:$0x3f] %vm12946_vm14, %v23881_v56  ;;  %17957 = vmatprep.mubr.msk.f32.mxu1 %vm11130_vm12, %v22829_v47 }
 0x8d5   : > { %12950 = vst.msk [vmem:[#allocation2 + $0x48] sm:$0x3f] %vm12946_vm14, %v23881_v56  ;;  %v22859_v40 = vld [vmem:[#allocation2 + $0x91] sm:$0xff] }
 0x8d6   : > { %v22851_v48 = vld [vmem:[#allocation2 + $0x79] sm:$0xff]  ;;  %v22887_v5 = vld [vmem:[#allocation2 + $0x90] sm:$0xff] }
 0x8d7   : > { %v22853_v55 = vld [vmem:[#allocation2 + $0x78] sm:$0xff]  ;;  %17958 = vmatmul.mubr.msk.f32.gmra.mrb[36].mxu1 %vm11130_vm12, %v22851_v48 }
 0x8d8   : > { %v22855_v20 = vld [vmem:[#allocation2 + $0x7a] sm:$0xff]  ;;  %17960 = vmatprep.mubr.msk.f32.mxu1 %vm11130_vm12, %v22859_v40  ;;  %v22913_v0 = vld [vmem:[#allocation2 + $0x92] sm:$0xff] }
 0x8d9   : > { %12952 = vst.msk [vmem:[#allocation2 + $0x78] sm:$0x3f] %vm12946_vm14, %v23881_v56  ;;  %v11594_v1 = vld [vmem:[#allocation2 + $0xc0] sm:$0xff] }
 0x8da   : > { %v22865_v8 = vld [vmem:[#allocation2 + $0xa9] sm:$0xff]  ;;  %v11742_v62 = vld [vmem:[#allocation2 + $0xc1] sm:$0xff] }
 0x8db   : > { %17961 = vmatmul.mubr.msk.f32.gmra.mrb[38].mxu1 %vm11130_vm12, %v22865_v8  ;;  %v22891_v63 = vld [vmem:[#allocation2 + $0xa8] sm:$0xff] }
 0x8dc   : > { %17967 = vmatprep.mubr.msk.f32.mxu1 %vm11130_vm12, %v22788_v25  ;;  %v22917_v52 = vld [vmem:[#allocation2 + $0xaa] sm:$0xff]  ;;  %v11890_v30 = vld [vmem:[#allocation2 + $0xc2] sm:$0xff] }
 0x8dd   : > { %v15931_v25 = vld [vmem:[%s23492_s7 + $0x68] sm:$0xff] }
 0x8df   : > { %17968 = vmatmul.mubr.msk.f32.vlgmr.msra.gmra.mrb[32].mxu1 %vm11130_vm12, %v22816_v27 }
 0x8e0   : > { %18285 = vmatpush3.bf16.msra.mxu1 %v18282_v35  ;;  %17970 = vmatprep.mubr.msk.f32.mxu1 %vm11130_vm12, %v22809_v28 }
 0x8e1   : > { %18287 = vmatprep.subr.bf16.mxu1 %v18286_v13 }
 0x8e3   : > { %17971 = vmatmul.mubr.msk.f32.gmra.mrb[34].mxu1 %vm11130_vm12, %v22838_v37 }
 0x8e4   : > { %17973 = vmatprep.mubr.msk.f32.mxu1 %vm11130_vm12, %v22831_v21 }
 0x8e7   : > { %17974 = vmatmul.mubr.msk.f32.gmra.mrb[36].mxu1 %vm11130_vm12, %v22853_v55 }
 0x8e8   : > { %17976 = vmatprep.mubr.msk.f32.mxu1 %vm11130_vm12, %v22887_v5 }
 0x8eb   : > { %17977 = vmatmul.mubr.msk.f32.gmra.mrb[38].mxu1 %vm11130_vm12, %v22891_v63 }
 0x8ec   : > { %17983 = vmatprep.mubr.msk.f32.mxu1 %vm11130_vm12, %v22790_v24  ;;  %v18298_v24 = vpack.c.bf16 %v15931_v25, %v15930_v4 }
 0x8ef   : > { %17984 = vmatmul.mubr.msk.f32.vlgmr.msra.gmra.mrb[32].mxu1 %vm11130_vm12, %v22818_v31 }
 0x8f0   : > { %18289 = vmatpush3.bf16.msra.mxu1 %v18286_v13  ;;  %17986 = vmatprep.mubr.msk.f32.mxu1 %vm11130_vm12, %v22811_v34 }
 0x8f1   : > { %18291 = vmatprep.subr.bf16.mxu1 %v18290_v61 }
 0x8f3   : > { %17987 = vmatmul.mubr.msk.f32.gmra.mrb[34].mxu1 %vm11130_vm12, %v22840_v54 }
 0x8f4   : > { %17989 = vmatprep.mubr.msk.f32.mxu1 %vm11130_vm12, %v22833_v59 }
 0x8f7   : > { %17990 = vmatmul.mubr.msk.f32.gmra.mrb[36].mxu1 %vm11130_vm12, %v22855_v20 }
 0x8f8   : > { %17992 = vmatprep.mubr.msk.f32.mxu1 %vm11130_vm12, %v22913_v0 }
 0x8fb   : > { %17993 = vmatmul.mubr.msk.f32.gmra.mrb[38].mxu1 %vm11130_vm12, %v22917_v52 }
 0x8fc   : > { %17999 = vmatprep.mubr.msk.f32.mxu1 %vm11130_vm12, %v22816_v27 }
 0x8ff   : > { %18000 = vmatmul.mubr.msk.f32.vlgmr.msra.gmra.mrb[32].mxu1 %vm11130_vm12, %v22809_v28 }
 0x900   : > { %18293 = vmatpush3.bf16.msra.mxu1 %v18290_v61  ;;  %18002 = vmatprep.mubr.msk.f32.mxu1 %vm11130_vm12, %v22838_v37 }
 0x901   : > { %18295 = vmatprep.subr.bf16.mxu1 %v18294_v41 }
 0x903   : > { %18003 = vmatmul.mubr.msk.f32.gmra.mrb[34].mxu1 %vm11130_vm12, %v22831_v21 }
 0x904   : > { %18005 = vmatprep.mubr.msk.f32.mxu1 %vm11130_vm12, %v22853_v55 }
 0x907   : > { %18006 = vmatmul.mubr.msk.f32.gmra.mrb[36].mxu1 %vm11130_vm12, %v22887_v5 }
 0x908   : > { %18008 = vmatprep.mubr.msk.f32.mxu1 %vm11130_vm12, %v22891_v63 }
 0x90b   : > { %18009 = vmatmul.mubr.msk.f32.gmra.mrb[38].mxu1 %vm11130_vm12, %v11594_v1 }
 0x90c   : > { %18015 = vmatprep.mubr.msk.f32.mxu1 %vm11130_vm12, %v22814_v29 }
 0x90f   : > { %18016 = vmatmul.mubr.msk.f32.vlgmr.msra.gmra.mrb[32].mxu1 %vm11130_vm12, %v22807_v6 }
 0x910   : > { %18297 = vmatpush3.bf16.msra.mxu1 %v18294_v41  ;;  %18018 = vmatprep.mubr.msk.f32.mxu1 %vm11130_vm12, %v22836_v49 }
 0x911   : > { %18299 = vmatprep.subr.bf16.mxu1 %v18298_v24 }
 0x913   : > { %18019 = vmatmul.mubr.msk.f32.gmra.mrb[34].mxu1 %vm11130_vm12, %v22829_v47 }
 0x914   : > { %18021 = vmatprep.mubr.msk.f32.mxu1 %vm11130_vm12, %v22851_v48 }
 0x917   : > { %18022 = vmatmul.mubr.msk.f32.gmra.mrb[36].mxu1 %vm11130_vm12, %v22859_v40 }
 0x918   : > { %18024 = vmatprep.mubr.msk.f32.mxu1 %vm11130_vm12, %v22865_v8 }
 0x91b   : > { %18025 = vmatmul.mubr.msk.f32.gmra.mrb[38].mxu1 %vm11130_vm12, %v11742_v62 }
 0x91c   : > { %18031 = vmatprep.mubr.msk.f32.mxu1 %vm11130_vm12, %v22818_v31 }
 0x91f   : > { %18032 = vmatmul.mubr.msk.f32.vlgmr.msra.gmra.mrb[32].mxu1 %vm11130_vm12, %v22811_v34 }
 0x920   : > { %18301 = vmatpush3.bf16.msra.mxu1 %v18298_v24  ;;  %18034 = vmatprep.mubr.msk.f32.mxu1 %vm11130_vm12, %v22840_v54 }
 0x921   : > { %18303 = vmatprep.subr.bf16.mxu1 %v18302_v43 }
 0x923   : > { %18035 = vmatmul.mubr.msk.f32.gmra.mrb[34].mxu1 %vm11130_vm12, %v22833_v59 }
 0x924   : > { %18037 = vmatprep.mubr.msk.f32.mxu1 %vm11130_vm12, %v22855_v20 }
 0x927   : > { %18038 = vmatmul.mubr.msk.f32.gmra.mrb[36].mxu1 %vm11130_vm12, %v22913_v0 }
 0x928   : > { %18040 = vmatprep.mubr.msk.f32.mxu1 %vm11130_vm12, %v22917_v52 }
 0x92b   : > { %18041 = vmatmul.mubr.msk.f32.gmra.mrb[38].mxu1 %vm11130_vm12, %v11890_v30 }
 0x92c   : > { %18047 = vmatprep.mubr.msk.f32.mxu1 %vm11130_vm12, %v22809_v28 }
 0x92f   : > { %18048 = vmatmul.mubr.msk.f32.vlgmr.msra.gmra.mrb[32].mxu1 %vm11130_vm12, %v22838_v37 }
 0x930   : > { %18305 = vmatpush3.bf16.msra.mxu1 %v18302_v43  ;;  %18050 = vmatprep.mubr.msk.f32.mxu1 %vm11130_vm12, %v22831_v21 }
 0x931   : > { %18307 = vmatprep.subr.bf16.mxu1 %v18306_v3 }
 0x933   : > { %18051 = vmatmul.mubr.msk.f32.gmra.mrb[34].mxu1 %vm11130_vm12, %v22853_v55 }
 0x934   : > { %18053 = vmatprep.mubr.msk.f32.mxu1 %vm11130_vm12, %v22887_v5 }
 0x937   : > { %18054 = vmatmul.mubr.msk.f32.gmra.mrb[36].mxu1 %vm11130_vm12, %v22891_v63 }
 0x938   : > { %18056 = vmatprep.mubr.msk.f32.mxu1 %vm11130_vm12, %v11594_v1 }
 0x93b   : > { %18057 = vmatmul.mubr.msk.f32.gmra.mrb[38].mxu1 %vm11130_vm12, %v12038_v36 }
 0x93c   : > { %18063 = vmatprep.mubr.msk.f32.mxu1 %vm11130_vm12, %v22807_v6 }
 0x93f   : > { %18064 = vmatmul.mubr.msk.f32.vlgmr.msra.gmra.mrb[32].mxu1 %vm11130_vm12, %v22836_v49 }
 0x940   : > { %18309 = vmatpush3.bf16.msra.mxu1 %v18306_v3  ;;  %18066 = vmatprep.mubr.msk.f32.mxu1 %vm11130_vm12, %v22829_v47 }
 0x943   : > { %18067 = vmatmul.mubr.msk.f32.gmra.mrb[34].mxu1 %vm11130_vm12, %v22851_v48 }
 0x944   : > { %18069 = vmatprep.mubr.msk.f32.mxu1 %vm11130_vm12, %v22859_v40 }
 0x947   : > { %18070 = vmatmul.mubr.msk.f32.gmra.mrb[36].mxu1 %vm11130_vm12, %v22865_v8 }
 0x948   : > { %18072 = vmatprep.mubr.msk.f32.mxu1 %vm11130_vm12, %v11742_v62 }
 0x94b   : > { %18073 = vmatmul.mubr.msk.f32.gmra.mrb[38].mxu1 %vm11130_vm12, %v12186_v14 }
 0x94c   : > { %18079 = vmatprep.mubr.msk.f32.mxu1 %vm11130_vm12, %v22811_v34 }
 0x94f   : > { %18080 = vmatmul.mubr.msk.f32.vlgmr.msra.gmra.mrb[32].mxu1 %vm11130_vm12, %v22840_v54 }
 0x950   : > { %18082 = vmatprep.mubr.msk.f32.mxu1 %vm11130_vm12, %v22833_v59 }
 0x953   : > { %18083 = vmatmul.mubr.msk.f32.gmra.mrb[34].mxu1 %vm11130_vm12, %v22855_v20 }
 0x954   : > { %18085 = vmatprep.mubr.msk.f32.mxu1 %vm11130_vm12, %v22913_v0 }
 0x957   : > { %18086 = vmatmul.mubr.msk.f32.gmra.mrb[36].mxu1 %vm11130_vm12, %v22917_v52 }
 0x958   : > { %18088 = vmatprep.mubr.msk.f32.mxu1 %vm11130_vm12, %v11890_v30 }
 0x95b   : > { %18089 = vmatmul.mubr.msk.f32.gmra.mrb[38].mxu1 %vm11130_vm12, %v12334_v19 }
 0xa22   : > { %v18081_v18 = vpop.f32.mrb[32].mxu1 }
 0xa23   : > { %v12483_v11 = vadd.f32 %v18081_v18, %v23050_v58  ;;  %v12428_v57 = vpop.f32.mrb[33].mxu1 }
 0xa24   : > { %v12482_v9 = vadd.f32 %v23050_v58, %v12428_v57 }
 0xa25   : > { %v12491_v6 = vmax.f32 %v12483_v11, 0.0 }
 0xa26   : > { %v12490_v35 = vmax.f32 %v12482_v9, 0.0  ;;  %v18084_v28 = vpop.f32.mrb[34].mxu1 }
 0xa27   : > { %v12523_v34 = vcombine.high %v12491_v6, %v12491_v6  ;;  %v12530_v26 = vrot.slane %v12491_v6, %v21613_v51  ;;  %v12485_v15 = vadd.f32 %v18084_v28, %v23050_v58  ;;  %v12438_v29 = vpop.f32.mrb[35].mxu1 }
 0xa28   : > { %v12506_v27 = vcombine.high %v12490_v35, %v12490_v35  ;;  %v12513_v31 = vrot.slane %v12490_v35, %v21613_v51  ;;  %v23058_v32 = vadd.f32 %v23050_v58, %v12438_v29 }
 0xa29   : > { %v12537_v12 = vrot.slane %v12523_v34, %v21613_v51  ;;  %v12538_v33 = vcombine.high %v12530_v26, %v12530_v26  ;;  %v12702_v47 = vsel %vm11132_vm13, %v12530_v26, -inf  ;;  %v23062_v21 = vmax.f32 %v12485_v15, 0.0 }
 0xa2a   : > { %v12703_v59 = vrot.slane %v12702_v47, 4  ;;  %v12520_v49 = vrot.slane %v12506_v27, %v21613_v51  ;;  %v12521_v37 = vcombine.high %v12513_v31, %v12513_v31  ;;  %v12674_v54 = vsel %vm11132_vm13, %v12513_v31, -inf  ;;  %v23066_v48 = vpop.f32.mrb[36].mxu1 }
 0xa2b   : > { %v12539_v55 = vcombine.high %v12537_v12, %v12537_v12  ;;  %v12709_v20 = vsel %vm11132_vm13, %v12538_v33, -inf  ;;  %v12716_v40 = vsel %vm11132_vm13, %v12537_v12, -inf  ;;  %v12675_v8 = vrot.slane %v12674_v54, 4  ;;  %v23070_v50 = vpop.f32.mrb[37].mxu1 }
 0xa2c   : > { %v12704_v42 = vmax.f32 %v12702_v47, %v12703_v59  ;;  %v12710_v13 = vrot.slane %v12709_v20, 4  ;;  %v12717_v5 = vrot.slane %v12716_v40, 4  ;;  %v12522_v63 = vcombine.high %v12520_v49, %v12520_v49 }
 0xa2d   : > { %v12723_v53 = vsel %vm11132_vm13, %v12539_v55, -inf  ;;  %v12676_v38 = vmax.f32 %v12674_v54, %v12675_v8  ;;  %v12681_v61 = vsel %vm11132_vm13, %v12521_v37, -inf  ;;  %v12688_v0 = vsel %vm11132_vm13, %v12520_v49, -inf }
 0xa2e   : > { %v12705_v52 = vrot.slane %v12704_v42, 2  ;;  %v12711_v23 = vmax.f32 %v12709_v20, %v12710_v13  ;;  %v12718_v22 = vmax.f32 %v12716_v40, %v12717_v5  ;;  %v12724_v41 = vrot.slane %v12723_v53, 4  ;;  %v23075_v1 = vpop.f32.mrb[38].mxu1 }
 0xa2f   : > { %v12677_v4 = vrot.slane %v12676_v38, 2  ;;  %v12682_v25 = vrot.slane %v12681_v61, 4  ;;  %v12689_v24 = vrot.slane %v12688_v0, 4  ;;  %v12695_v62 = vsel %vm11132_vm13, %v12522_v63, -inf  ;;  %v23078_v2 = vpop.f32.mrb[39].mxu1 }
 0xa30   : > { %v12706_v17 = vmax.f32 %v12704_v42, %v12705_v52  ;;  %v12712_v43 = vrot.slane %v12711_v23, 2  ;;  %v12719_v30 = vrot.slane %v12718_v22, 2  ;;  %v12725_v60 = vmax.f32 %v12723_v53, %v12724_v41 }
 0xa31   : > { %v12678_v46 = vmax.f32 %v12676_v38, %v12677_v4  ;;  %v12683_v3 = vmax.f32 %v12681_v61, %v12682_v25  ;;  %v12690_v36 = vmax.f32 %v12688_v0, %v12689_v24  ;;  %v12696_v14 = vrot.slane %v12695_v62, 4 }
 0xa32   : > { %v12707_v19 = vrot.slane %v12706_v17, 1  ;;  %v12713_v45 = vmax.f32 %v12711_v23, %v12712_v43  ;;  %v12720_v16 = vmax.f32 %v12718_v22, %v12719_v30  ;;  %v12726_v10 = vrot.slane %v12725_v60, 2 }
 0xa33   : > { %v12679_v44 = vrot.slane %v12678_v46, 1  ;;  %v12684_v39 = vrot.slane %v12683_v3, 2  ;;  %v12691_v18 = vrot.slane %v12690_v36, 2  ;;  %v12697_v11 = vmax.f32 %v12695_v62, %v12696_v14 }
 0xa34   : > { %v12708_v57 = vmax.f32 %v12706_v17, %v12707_v19  ;;  %v12714_v9 = vrot.slane %v12713_v45, 1  ;;  %v12721_v6 = vrot.slane %v12720_v16, 1  ;;  %v12727_v35 = vmax.f32 %v12725_v60, %v12726_v10 }
 0xa35   : > { %v12680_v28 = vmax.f32 %v12678_v46, %v12679_v44  ;;  %v12685_v34 = vmax.f32 %v12683_v3, %v12684_v39  ;;  %v12692_v26 = vmax.f32 %v12690_v36, %v12691_v18  ;;  %v12698_v15 = vrot.slane %v12697_v11, 2 }
 0xa36   : > { %v12715_v29 = vmax.f32 %v12713_v45, %v12714_v9  ;;  %v12722_v27 = vmax.f32 %v12720_v16, %v12721_v6  ;;  %v12728_v31 = vrot.slane %v12727_v35, 1  ;;  %v12899_v12 = vsel %vm11130_vm12, %v12708_v57, -inf }
 0xa37   : > { %v12686_v33 = vrot.slane %v12685_v34, 1  ;;  %v12693_v47 = vrot.slane %v12692_v26, 1  ;;  %v12699_v59 = vmax.f32 %v12697_v11, %v12698_v15  ;;  %v12898_v49 = vsel %vm11130_vm12, %v12680_v28, -inf }
 0xa38   : > { %v12729_v37 = vmax.f32 %v12727_v35, %v12728_v31  ;;  %v12902_v54 = vsel %vm11130_vm12, %v12715_v29, -inf  ;;  %v12905_v55 = vsel %vm11130_vm12, %v12722_v27, -inf  ;;  %v12900_v20 = vmax.f32 %v12898_v49, %v12899_v12 }
 0xa39   : > { %v12687_v40 = vmax.f32 %v12685_v34, %v12686_v33  ;;  %v12694_v8 = vmax.f32 %v12692_v26, %v12693_v47  ;;  %v12700_v42 = vrot.slane %v12699_v59, 1  ;;  %v12557_v13 = vcombine.high %v23062_v21, %v23062_v21 }
 0xa3a   : > { %v12908_v5 = vsel %vm11130_vm12, %v12729_v37, -inf  ;;  %v12564_v63 = vrot.slane %v23062_v21, %v21613_v51  ;;  %v12492_v53 = vmax.f32 %v23058_v32, 0.0  ;;  %v12487_v38 = vadd.f32 %v23066_v48, %v23050_v58 }
 0xa3b   : > { %v12701_v61 = vmax.f32 %v12699_v59, %v12700_v42  ;;  %v12901_v0 = vsel %vm11130_vm12, %v12687_v40, -inf  ;;  %v12904_v52 = vsel %vm11130_vm12, %v12694_v8, -inf  ;;  %v12571_v23 = vrot.slane %v12557_v13, %v21613_v51 }
 0xa3c   : > { %v12903_v22 = vmax.f32 %v12901_v0, %v12902_v54  ;;  %v12906_v41 = vmax.f32 %v12904_v52, %v12905_v55  ;;  %v12572_v4 = vcombine.high %v12564_v63, %v12564_v63  ;;  %v12758_v25 = vsel %vm11132_vm13, %v12564_v63, -inf }
 0xa3d   : > { %v12907_v24 = vsel %vm11130_vm12, %v12701_v61, -inf  ;;  %v12573_v21 = vcombine.high %v12571_v23, %v12571_v23  ;;  %v12759_v62 = vrot.slane %v12758_v25, 4  ;;  %v12772_v32 = vsel %vm11132_vm13, %v12571_v23, -inf }
 0xa3e   : > { %v12909_v17 = vmax.f32 %v12907_v24, %v12908_v5  ;;  %v12969_v48 = vsel %vm9722_vm5, %v12903_v22, %v12900_v20  ;;  %v12765_v43 = vsel %vm11132_vm13, %v12572_v4, -inf  ;;  %v12773_v30 = vrot.slane %v12772_v32, 4 }
 0xa3f   : > { %v12970_v60 = vsel %vm9724_vm6, %v12906_v41, %v12969_v48  ;;  %v12760_v46 = vmax.f32 %v12758_v25, %v12759_v62  ;;  %v12766_v3 = vrot.slane %v12765_v43, 4  ;;  %v12779_v36 = vsel %vm11132_vm13, %v12573_v21, -inf }
 0xa40   : > { %v12971_v14 = vsel %vm9726_vm7, %v12909_v17, %v12970_v60  ;;  %v12774_v19 = vmax.f32 %v12772_v32, %v12773_v30  ;;  %v12780_v45 = vrot.slane %v12779_v36, 4  ;;  %v12540_v16 = vcombine.high %v12492_v53, %v12492_v53 }
 0xa41   : > { %v12761_v10 = vrot.slane %v12760_v46, 2  ;;  %v12767_v44 = vmax.f32 %v12765_v43, %v12766_v3  ;;  %v12547_v39 = vrot.slane %v12492_v53, %v21613_v51  ;;  %v12495_v18 = vmax.f32 %v12487_v38, 0.0  ;;  %12986 = vst.msk [vmem:[#allocation2 + $0x19] sm:$0xf] %vm12985_vm15, %v12971_v14 }
 0xa42   : > { %v12775_v11 = vrot.slane %v12774_v19, 2  ;;  %v12781_v57 = vmax.f32 %v12779_v36, %v12780_v45  ;;  %v12554_v9 = vrot.slane %v12540_v16, %v21613_v51  ;;  %v12486_v6 = vadd.f32 %v23050_v58, %v23070_v50 }
 0xa43   : > { %v12762_v35 = vmax.f32 %v12760_v46, %v12761_v10  ;;  %v12768_v28 = vrot.slane %v12767_v44, 2  ;;  %v12555_v34 = vcombine.high %v12547_v39, %v12547_v39  ;;  %v12730_v26 = vsel %vm11132_vm13, %v12547_v39, -inf }
 0xa44   : > { %v12776_v15 = vmax.f32 %v12774_v19, %v12775_v11  ;;  %v12782_v29 = vrot.slane %v12781_v57, 2  ;;  %v12556_v27 = vcombine.high %v12554_v9, %v12554_v9  ;;  %v12731_v31 = vrot.slane %v12730_v26, 4 }
 0xa45   : > { %v12763_v12 = vrot.slane %v12762_v35, 1  ;;  %v12769_v33 = vmax.f32 %v12767_v44, %v12768_v28  ;;  %v12737_v47 = vsel %vm11132_vm13, %v12555_v34, -inf  ;;  %v12744_v59 = vsel %vm11132_vm13, %v12554_v9, -inf }
 0xa46   : > { %v12777_v49 = vrot.slane %v12776_v15, 1  ;;  %v12783_v37 = vmax.f32 %v12781_v57, %v12782_v29  ;;  %v12732_v54 = vmax.f32 %v12730_v26, %v12731_v31  ;;  %v12738_v55 = vrot.slane %v12737_v47, 4 }
 0xa47   : > { %v12764_v50 = vmax.f32 %v12762_v35, %v12763_v12  ;;  %v12770_v20 = vrot.slane %v12769_v33, 1  ;;  %v12745_v40 = vrot.slane %v12744_v59, 4  ;;  %v12751_v8 = vsel %vm11132_vm13, %v12556_v27, -inf }
 0xa48   : > { %v12778_v42 = vmax.f32 %v12776_v15, %v12777_v49  ;;  %v12784_v13 = vrot.slane %v12783_v37, 1  ;;  %v12733_v5 = vrot.slane %v12732_v54, 2  ;;  %v12739_v63 = vmax.f32 %v12737_v47, %v12738_v55  ;;  %v19166_v53 = vld [vmem:[#allocation2 + $0x1] ss:$24 sps:$4 sm:$0xff]  }
 0xa49   : > { %v12771_v38 = vmax.f32 %v12769_v33, %v12770_v20  ;;  %v12911_v61 = vsel %vm11130_vm12, %v12764_v50, -inf  ;;  %v12746_v0 = vmax.f32 %v12744_v59, %v12745_v40  ;;  %v12752_v52 = vrot.slane %v12751_v8, 4  ;;  %18095 = vmatprep.mubr.msk.f32.mxu0 %vm11130_vm12, %v19166_v53 }
 0xa4a   : > { %v12785_v23 = vmax.f32 %v12783_v37, %v12784_v13  ;;  %v12917_v22 = vsel %vm11130_vm12, %v12778_v42, -inf  ;;  %v12734_v41 = vmax.f32 %v12732_v54, %v12733_v5  ;;  %v12740_v4 = vrot.slane %v12739_v63, 2 }
 0xa4b   : > { %v12914_v25 = vsel %vm11130_vm12, %v12771_v38, -inf  ;;  %v12747_v24 = vrot.slane %v12746_v0, 2  ;;  %v12753_v21 = vmax.f32 %v12751_v8, %v12752_v52  ;;  %v12591_v62 = vcombine.high %v12495_v18, %v12495_v18 }
 0xa4c   : > { %v12920_v32 = vsel %vm11130_vm12, %v12785_v23, -inf  ;;  %v12735_v17 = vrot.slane %v12734_v41, 1  ;;  %v12741_v48 = vmax.f32 %v12739_v63, %v12740_v4  ;;  %v12598_v43 = vrot.slane %v12495_v18, %v21613_v51 }
 0xa4d   : > { %v12748_v30 = vmax.f32 %v12746_v0, %v12747_v24  ;;  %v12754_v60 = vrot.slane %v12753_v21, 2  ;;  %v12605_v46 = vrot.slane %v12591_v62, %v21613_v51  ;;  %v12494_v3 = vmax.f32 %v12486_v6, 0.0 }
 0xa4e   : > { %v12736_v36 = vmax.f32 %v12734_v41, %v12735_v17  ;;  %v12742_v14 = vrot.slane %v12741_v48, 1  ;;  %v12606_v19 = vcombine.high %v12598_v43, %v12598_v43  ;;  %v12814_v45 = vsel %vm11132_vm13, %v12598_v43, -inf }
 0xa4f   : > { %v12749_v16 = vrot.slane %v12748_v30, 1  ;;  %v12755_v10 = vmax.f32 %v12753_v21, %v12754_v60  ;;  %v12607_v44 = vcombine.high %v12605_v46, %v12605_v46  ;;  %v12815_v39 = vrot.slane %v12814_v45, 4 }
 0xa50   : > { %v12743_v11 = vmax.f32 %v12741_v48, %v12742_v14  ;;  %v12910_v57 = vsel %vm11130_vm12, %v12736_v36, -inf  ;;  %v12821_v9 = vsel %vm11132_vm13, %v12606_v19, -inf  ;;  %v12828_v18 = vsel %vm11132_vm13, %v12605_v46, -inf }
 0xa51   : > { %v12750_v35 = vmax.f32 %v12748_v30, %v12749_v16  ;;  %v12756_v28 = vrot.slane %v12755_v10, 1  ;;  %v12912_v34 = vmax.f32 %v12910_v57, %v12911_v61  ;;  %v12816_v6 = vmax.f32 %v12814_v45, %v12815_v39 }
 0xa52   : > { %v12913_v26 = vsel %vm11130_vm12, %v12743_v11, -inf  ;;  %v12822_v15 = vrot.slane %v12821_v9, 4  ;;  %v12829_v29 = vrot.slane %v12828_v18, 4  ;;  %v12835_v27 = vsel %vm11132_vm13, %v12607_v44, -inf }
 0xa53   : > { %v12757_v31 = vmax.f32 %v12755_v10, %v12756_v28  ;;  %v12915_v12 = vmax.f32 %v12913_v26, %v12914_v25  ;;  %v12916_v33 = vsel %vm11130_vm12, %v12750_v35, -inf  ;;  %v12817_v47 = vrot.slane %v12816_v6, 2 }
 0xa54   : > { %v12918_v59 = vmax.f32 %v12916_v33, %v12917_v22  ;;  %v12823_v49 = vmax.f32 %v12821_v9, %v12822_v15  ;;  %v12830_v37 = vmax.f32 %v12828_v18, %v12829_v29  ;;  %v12836_v54 = vrot.slane %v12835_v27, 4 }
 0xa55   : > { %v12919_v55 = vsel %vm11130_vm12, %v12757_v31, -inf  ;;  %v12972_v50 = vsel %vm9722_vm5, %v12915_v12, %v12912_v34  ;;  %v12818_v20 = vmax.f32 %v12816_v6, %v12817_v47  ;;  %v12574_v40 = vcombine.high %v12494_v3, %v12494_v3 }
 0xa56   : > { %v12921_v8 = vmax.f32 %v12919_v55, %v12920_v32  ;;  %v12973_v42 = vsel %vm9724_vm6, %v12918_v59, %v12972_v50  ;;  %v12824_v13 = vrot.slane %v12823_v49, 2  ;;  %v12831_v5 = vrot.slane %v12830_v37, 2 }
 0xa57   : > { %v12819_v63 = vrot.slane %v12818_v20, 1  ;;  %v12837_v53 = vmax.f32 %v12835_v27, %v12836_v54  ;;  %v12581_v38 = vrot.slane %v12494_v3, %v21613_v51  ;;  %v12588_v61 = vrot.slane %v12574_v40, %v21613_v51 }
 0xa58   : > { %v12974_v0 = vsel %vm9726_vm7, %v12921_v8, %v12973_v42  ;;  %v12825_v52 = vmax.f32 %v12823_v49, %v12824_v13  ;;  %v12832_v23 = vmax.f32 %v12830_v37, %v12831_v5  ;;  %v12489_v22 = vadd.f32 %v23075_v1, %v23050_v58 }
 0xa59   : > { %v12820_v41 = vmax.f32 %v12818_v20, %v12819_v63  ;;  %v12838_v4 = vrot.slane %v12837_v53, 2  ;;  %v12589_v25 = vcombine.high %v12581_v38, %v12581_v38  ;;  %v12590_v24 = vcombine.high %v12588_v61, %v12588_v61  ;;  %12987 = vst.msk [vmem:[#allocation2 + $0x31] sm:$0xf] %vm12985_vm15, %v12974_v0 }
 0xa5a   : > { %v12826_v21 = vrot.slane %v12825_v52, 1  ;;  %v12833_v62 = vrot.slane %v12832_v23, 1  ;;  %v12786_v32 = vsel %vm11132_vm13, %v12581_v38, -inf  ;;  %v12800_v17 = vsel %vm11132_vm13, %v12588_v61, -inf }
 0xa5b   : > { %v12839_v48 = vmax.f32 %v12837_v53, %v12838_v4  ;;  %v12787_v43 = vrot.slane %v12786_v32, 4  ;;  %v12793_v30 = vsel %vm11132_vm13, %v12589_v25, -inf  ;;  %v12801_v3 = vrot.slane %v12800_v17, 4 }
 0xa5c   : > { %v12827_v60 = vmax.f32 %v12825_v52, %v12826_v21  ;;  %v12794_v46 = vrot.slane %v12793_v30, 4  ;;  %v12807_v14 = vsel %vm11132_vm13, %v12590_v24, -inf  ;;  %v12497_v19 = vmax.f32 %v12489_v22, 0.0 }
 0xa5d   : > { %v12840_v1 = vrot.slane %v12839_v48, 1  ;;  %v12788_v36 = vmax.f32 %v12786_v32, %v12787_v43  ;;  %v12834_v45 = vmax.f32 %v12832_v23, %v12833_v62  ;;  %v12923_v16 = vsel %vm11130_vm12, %v12820_v41, -inf }
 0xa5e   : > { %v12795_v10 = vmax.f32 %v12793_v30, %v12794_v46  ;;  %v12802_v44 = vmax.f32 %v12800_v17, %v12801_v3  ;;  %v12926_v39 = vsel %vm11130_vm12, %v12827_v60, -inf  ;;  %v12808_v57 = vrot.slane %v12807_v14, 4 }
 0xa5f   : > { %v12789_v11 = vrot.slane %v12788_v36, 2  ;;  %v12625_v9 = vcombine.high %v12497_v19, %v12497_v19  ;;  %v12632_v28 = vrot.slane %v12497_v19, %v21613_v51  ;;  %v12488_v34 = vadd.f32 %v23050_v58, %v23078_v2 }
 0xa60   : > { %v12796_v18 = vrot.slane %v12795_v10, 2  ;;  %v12803_v35 = vrot.slane %v12802_v44, 2  ;;  %v12841_v6 = vmax.f32 %v12839_v48, %v12840_v1  ;;  %v12809_v15 = vmax.f32 %v12807_v14, %v12808_v57 }
 0xa61   : > { %v12790_v26 = vmax.f32 %v12788_v36, %v12789_v11  ;;  %v12639_v29 = vrot.slane %v12625_v9, %v21613_v51  ;;  %v12640_v12 = vcombine.high %v12632_v28, %v12632_v28  ;;  %v12870_v33 = vsel %vm11132_vm13, %v12632_v28, -inf }
 0xa62   : > { %v12797_v27 = vmax.f32 %v12795_v10, %v12796_v18  ;;  %v12804_v31 = vmax.f32 %v12802_v44, %v12803_v35  ;;  %v12810_v59 = vrot.slane %v12809_v15, 2  ;;  %v12871_v37 = vrot.slane %v12870_v33, 4 }
 0xa63   : > { %v12791_v47 = vrot.slane %v12790_v26, 1  ;;  %v12641_v49 = vcombine.high %v12639_v29, %v12639_v29  ;;  %v12877_v50 = vsel %vm11132_vm13, %v12640_v12, -inf  ;;  %v12884_v58 = vsel %vm11132_vm13, %v12639_v29, -inf  ;;  %v15968_v12 = vld [vmem:[%s23494_s9 + $0x28] sm:$0xff] }
 0xa64   : > { %v12798_v54 = vrot.slane %v12797_v27, 1  ;;  %v12805_v55 = vrot.slane %v12804_v31, 1  ;;  %v12929_v2 = vsel %vm11130_vm12, %v12834_v45, -inf  ;;  %v12811_v40 = vmax.f32 %v12809_v15, %v12810_v59 }
 0xa65   : > { %v12792_v20 = vmax.f32 %v12790_v26, %v12791_v47  ;;  %v12878_v8 = vrot.slane %v12877_v50, 4  ;;  %v12932_v42 = vsel %vm11130_vm12, %v12841_v6, -inf  ;;  %v12885_v63 = vrot.slane %v12884_v58, 4 }
 0xa66   : > { %v12799_v13 = vmax.f32 %v12797_v27, %v12798_v54  ;;  %v12806_v5 = vmax.f32 %v12804_v31, %v12805_v55  ;;  %v12812_v53 = vrot.slane %v12811_v40, 1  ;;  %v12872_v61 = vmax.f32 %v12870_v33, %v12871_v37  ;;  %v15967_v31 = vld [vmem:[%s23494_s9 + $0x20] sm:$0xff] }
 0xa67   : > { %v12922_v38 = vsel %vm11130_vm12, %v12792_v20, -inf  ;;  %v12891_v0 = vsel %vm11132_vm13, %v12641_v49, -inf  ;;  %v12879_v41 = vmax.f32 %v12877_v50, %v12878_v8  ;;  %v12886_v21 = vmax.f32 %v12884_v58, %v12885_v63 }
 0xa68   : > { %v12924_v52 = vmax.f32 %v12922_v38, %v12923_v16  ;;  %v12925_v23 = vsel %vm11130_vm12, %v12799_v13, -inf  ;;  %v12928_v22 = vsel %vm11130_vm12, %v12806_v5, -inf  ;;  %v12813_v4 = vmax.f32 %v12811_v40, %v12812_v53  ;;  %v19168_v13 = vld [vmem:[#allocation2] ss:$24 sps:$4 sm:$0xff]  }
 0xa69   : > { %v12927_v25 = vmax.f32 %v12925_v23, %v12926_v39  ;;  %v12930_v24 = vmax.f32 %v12928_v22, %v12929_v2  ;;  %v12892_v62 = vrot.slane %v12891_v0, 4  ;;  %v12496_v32 = vmax.f32 %v12488_v34, 0.0 }
 0xa6a   : > { %v12931_v17 = vsel %vm11130_vm12, %v12813_v4, -inf  ;;  %v12873_v43 = vrot.slane %v12872_v61, 2  ;;  %v12880_v46 = vrot.slane %v12879_v41, 2  ;;  %v12887_v3 = vrot.slane %v12886_v21, 2  ;;  %v15972_v4 = vld [vmem:[%s23494_s9 + $0x38] sm:$0xff] }
 0xa6b   : > { %v12975_v48 = vsel %vm9722_vm5, %v12927_v25, %v12924_v52  ;;  %v12933_v30 = vmax.f32 %v12931_v17, %v12932_v42  ;;  %v12893_v1 = vmax.f32 %v12891_v0, %v12892_v62  ;;  %v12608_v36 = vcombine.high %v12496_v32, %v12496_v32  ;;  %v15971_v52 = vld [vmem:[%s23494_s9 + $0x30] sm:$0xff] }
 0xa6c   : > { %v12976_v60 = vsel %vm9724_vm6, %v12930_v24, %v12975_v48  ;;  %v12615_v14 = vrot.slane %v12496_v32, %v21613_v51  ;;  %v12874_v45 = vmax.f32 %v12872_v61, %v12873_v43  ;;  %v12881_v39 = vmax.f32 %v12879_v41, %v12880_v46 }
 0xa6d   : > { %v12977_v19 = vsel %vm9726_vm7, %v12933_v30, %v12976_v60  ;;  %v12894_v16 = vrot.slane %v12893_v1, 2  ;;  %v12622_v10 = vrot.slane %v12608_v36, %v21613_v51  ;;  %v12888_v57 = vmax.f32 %v12886_v21, %v12887_v3 }
 0xa6e   : > { %v12623_v44 = vcombine.high %v12615_v14, %v12615_v14  ;;  %12988 = vst.msk [vmem:[#allocation2 + $0x49] sm:$0xf] %vm12985_vm15, %v12977_v19  ;;  %v12842_v11 = vsel %vm11132_vm13, %v12615_v14, -inf  ;;  %v12875_v26 = vrot.slane %v12874_v45, 1  ;;  %v12882_v33 = vrot.slane %v12881_v39, 1 }
 0xa6f   : > { %v12624_v9 = vcombine.high %v12622_v10, %v12622_v10  ;;  %v12843_v18 = vrot.slane %v12842_v11, 4  ;;  %v12895_v28 = vmax.f32 %v12893_v1, %v12894_v16  ;;  %v12856_v6 = vsel %vm11132_vm13, %v12622_v10, -inf }
 0xa70   : > { %v12849_v35 = vsel %vm11132_vm13, %v12623_v44, -inf  ;;  %v12857_v29 = vrot.slane %v12856_v6, 4  ;;  %v12889_v49 = vrot.slane %v12888_v57, 1  ;;  %v18318_v20 = vpack.c.bf16 %v15968_v12, %v15967_v31  ;;  %v15983_v31 = vld [vmem:[%s23494_s9 + $0x60] sm:$0xff]  ;;  %v15984_v12 = vld [vmem:[%s23494_s9 + $0x68] sm:$0xff] }
 0xa71   : > { %v12850_v34 = vrot.slane %v12849_v35, 4  ;;  %v12844_v15 = vmax.f32 %v12842_v11, %v12843_v18  ;;  %v12863_v27 = vsel %vm11132_vm13, %v12624_v9, -inf  ;;  %v12896_v55 = vrot.slane %v12895_v28, 1  ;;  %v15975_v9 = vld [vmem:[%s23494_s9 + $0x40] sm:$0xff]  ;;  %v15976_v18 = vld [vmem:[%s23494_s9 + $0x48] sm:$0xff] }
 0xa72   : > { %v12864_v59 = vrot.slane %v12863_v27, 4  ;;  %v12858_v54 = vmax.f32 %v12856_v6, %v12857_v29  ;;  %v12876_v40 = vmax.f32 %v12874_v45, %v12875_v26  ;;  %v12883_v5 = vmax.f32 %v12881_v39, %v12882_v33  ;;  %v19170_v45 = vld [vmem:[#allocation2 + $0x2] ss:$24 sps:$4 sm:$0xff]   ;;  %v15979_v6 = vld [vmem:[%s23494_s9 + $0x50] sm:$0xff] }
 0xa73   : > { %v12851_v47 = vmax.f32 %v12849_v35, %v12850_v34  ;;  %v12845_v37 = vrot.slane %v12844_v15, 2  ;;  %v12890_v38 = vmax.f32 %v12888_v57, %v12889_v49  ;;  %v12897_v23 = vmax.f32 %v12895_v28, %v12896_v55  ;;  %v19172_v34 = vld [vmem:[#allocation2 + $0x18] ss:$24 sps:$4 sm:$0xff]   ;;  %13849 = vst.msk [vmem:[#allocation2] sm:$0x3f] %vm13848_vm1, %v23881_v56 }
 0xa74   : > { %v12865_v58 = vmax.f32 %v12863_v27, %v12864_v59  ;;  %v12859_v42 = vrot.slane %v12858_v54, 2  ;;  %v12935_v25 = vsel %vm11130_vm12, %v12876_v40, -inf  ;;  %v18322_v30 = vpack.c.bf16 %v15972_v4, %v15971_v52  ;;  %v15980_v26 = vld [vmem:[%s23494_s9 + $0x58] sm:$0xff]  ;;  %v15987_v49 = vld [vmem:[%s23494_s9 + $0x70] sm:$0xff]  ;;  %v15995_v4 = vld [vmem:[%s23495_s10] ss:$0 sm:$0xff] }
 0xa75   : > { %v12852_v50 = vrot.slane %v12851_v47, 2  ;;  %v19167_v2 = vld [vmem:[#allocation2 + $0x31] ss:$24 sps:$4 sm:$0xff]   ;;  %v12846_v8 = vmax.f32 %v12844_v15, %v12845_v37  ;;  %v12941_v17 = vsel %vm11130_vm12, %v12890_v38, -inf  ;;  %v12944_v60 = vsel %vm11130_vm12, %v12897_v23, -inf  ;;  %v15988_v37 = vld [vmem:[%s23494_s9 + $0x78] sm:$0xff] }
 0xa76   : > { %v12866_v53 = vrot.slane %v12865_v58, 2  ;;  %18096 = vmatmul.mubr.msk.f32.vlgmr.msra.gmra.mrb[44].mxu0 %vm11130_vm12, %v19167_v2  ;;  %v12860_v0 = vmax.f32 %v12858_v54, %v12859_v42  ;;  %v19169_v36 = vld [vmem:[#allocation2 + $0x30] ss:$24 sps:$4 sm:$0xff]   ;;  %v18326_v28 = vpack.c.bf16 %v15976_v18, %v15975_v9  ;;  %v18330_v29 = vpack.c.bf16 %v15980_v26, %v15979_v6  ;;  %v13864_v23 = vld [vmem:[%s23496_s11] sm:$0xff] }
 0xa77   : > { %v12853_v63 = vmax.f32 %v12851_v47, %v12852_v50  ;;  %v12847_v61 = vrot.slane %v12846_v8, 1  ;;  %18317 = vmatpush3.bf16.msra.mxu0 %v23044_v7  ;;  %18102 = vmatprep.mubr.msk.f32.mxu0 %vm11130_vm12, %v19168_v13  ;;  %v12938_v7 = vsel %vm11130_vm12, %v12883_v5, -inf  ;;  %v19171_v35 = vld [vmem:[#allocation2 + $0x32] ss:$24 sps:$4 sm:$0xff]   ;;  %v18334_v47 = vpack.c.bf16 %v15984_v12, %v15983_v31  ;;  %v16016_v26 = vld [vmem:[%s23496_s11 + $0x80] sm:$0xff]  ;;  %v16019_v31 = vld [vmem:[%s23496_s11 + $0x98] sm:$0xff] }
 0xa78   : > { %v12867_v41 = vmax.f32 %v12865_v58, %v12866_v53  ;;  %18319 = vmatprep.subr.bf16.mxu0 %v18318_v20  ;;  %v12861_v21 = vrot.slane %v12860_v0, 1  ;;  %v19174_v27 = vld [vmem:[#allocation2 + $0x19] ss:$24 sps:$4 sm:$0xff]   ;;  %v18338_v55 = vpack.c.bf16 %v15988_v37, %v15987_v49  ;;  %v15991_v58 = vld [vmem:[%s23494_s9 + $0x80] sm:$0xff]  ;;  %v15992_v2 = vld [vmem:[%s23494_s9 + $0x88] sm:$0xff] }
 0xa79   : > { %v12854_v22 = vrot.slane %v12853_v63, 1  ;;  %v12848_v24 = vmax.f32 %v12846_v8, %v12847_v61  ;;  %v19176_v59 = vld [vmem:[#allocation2 + $0x1a] ss:$24 sps:$4 sm:$0xff]   ;;  %v18342_v40 = vpack.c.bf16 %v15992_v2, %v15991_v58  ;;  %v15997_v53 = vld [vmem:[%s23496_s11 + $0x28] sm:$0xff] }
 0xa7a   : > { %v12868_v32 = vrot.slane %v12867_v41, 1  ;;  %v12862_v48 = vmax.f32 %v12860_v0, %v12861_v21  ;;  %v19178_v50 = vld [vmem:[#allocation2 + $0x30] ss:$24 sps:$4 sm:$0xff]   ;;  %v15999_v0 = vld [vmem:[%s23496_s11 + $0x38] sm:$0xff]  ;;  %13850 = vst.msk [vmem:[#allocation2 + $0x18] sm:$0x3f] %vm13848_vm1, %v23881_v56 }
 0xa7b   : > { %v12855_v62 = vmax.f32 %v12853_v63, %v12854_v22  ;;  %v12934_v43 = vsel %vm11130_vm12, %v12848_v24, -inf  ;;  %v19180_v8 = vld [vmem:[#allocation2 + $0x31] ss:$24 sps:$4 sm:$0xff]   ;;  %v15996_v63 = vld [vmem:[%s23496_s11 + $0x20] sm:$0xff] }
 0xa7c   : > { %v12869_v46 = vmax.f32 %v12867_v41, %v12868_v32  ;;  %v12936_v3 = vmax.f32 %v12934_v43, %v12935_v25  ;;  %v12940_v19 = vsel %vm11130_vm12, %v12862_v48, -inf  ;;  %v19182_v13 = vld [vmem:[#allocation2 + $0x32] ss:$24 sps:$4 sm:$0xff]   ;;  %v18346_v61 = vpack.c.bf16 %v15997_v53, %v15996_v63 }
 0xa7d   : > { %v12937_v1 = vsel %vm11130_vm12, %v12855_v62, -inf  ;;  %v12942_v16 = vmax.f32 %v12940_v19, %v12941_v17  ;;  %v15998_v38 = vld [vmem:[%s23496_s11 + $0x30] sm:$0xff]  ;;  %13851 = vst.msk [vmem:[#allocation2 + $0x30] sm:$0x3f] %vm13848_vm1, %v23881_v56  ;;  %v13865_v22 = vld [vmem:[%s23496_s11 + $0x8] sm:$0xff] }
 0xa7e   : > { %v12939_v14 = vmax.f32 %v12937_v1, %v12938_v7  ;;  %v12943_v10 = vsel %vm11130_vm12, %v12869_v46, -inf  ;;  %18103 = vmatmul.mubr.msk.f32.vlgmr.msra.gmra.mrb[44].mxu0 %vm11130_vm12, %v19169_v36  ;;  %v18350_v52 = vpack.c.bf16 %v15999_v0, %v15998_v38  ;;  %18347 = vmatprep.subr.bf16.mxu1 %v18346_v61  ;;  %v18354_v41 = vpack.c.bf16 %v13865_v22, %v13864_v23  ;;  %v13866_v43 = vld [vmem:[%s23496_s11 + $0x10] sm:$0xff]  ;;  %v16004_v46 = vld [vmem:[%s23496_s11 + $0x40] sm:$0xff]  ;;  %v16023_v49 = vld [vmem:[%s23496_s11 + $0xa8] sm:$0xff] }
 0xa7f   : > { %v12945_v44 = vmax.f32 %v12943_v10, %v12944_v60  ;;  %18321 = vmatpush3.bf16.msra.mxu0 %v18318_v20  ;;  %18109 = vmatprep.mubr.msk.f32.mxu0 %vm11130_vm12, %v19170_v45  ;;  %v16006_v45 = vld [vmem:[%s23496_s11 + $0x50] sm:$0xff]  ;;  %v16010_v10 = vld [vmem:[%s23496_s11 + $0x60] sm:$0xff]  ;;  %v16037_v23 = vld [vmem:[%s23496_s11 + $0xf8] sm:$0xff] }
 0xa80   : > { %v12978_v39 = vsel %vm9722_vm5, %v12939_v14, %v12936_v3  ;;  %18323 = vmatprep.subr.bf16.mxu0 %v18322_v30  ;;  %18349 = vmatpush3.bf16.msra.mxu1 %v18346_v61  ;;  %v16005_v14 = vld [vmem:[%s23496_s11 + $0x48] sm:$0xff]  ;;  %v16012_v18 = vld [vmem:[%s23496_s11 + $0x70] sm:$0xff]  ;;  %v16034_v38 = vld [vmem:[%s23496_s11 + $0xe0] sm:$0xff] }
 0xa81   : > { %v12979_v11 = vsel %vm9724_vm6, %v12942_v16, %v12978_v39  ;;  %18351 = vmatprep.subr.bf16.mxu1 %v18350_v52  ;;  %v18362_v19 = vpack.c.bf16 %v16005_v14, %v16004_v46  ;;  %v16007_v16 = vld [vmem:[%s23496_s11 + $0x58] sm:$0xff]  ;;  %v16035_v61 = vld [vmem:[%s23496_s11 + $0xe8] sm:$0xff]  ;;  %v14846_v46 = vld [vmem:[%s23498_s13 + $0x10] sm:$0xff] }
 0xa82   : > { %v12980_v57 = vsel %vm9726_vm7, %v12945_v44, %v12979_v11  ;;  %v16011_v44 = vld [vmem:[%s23496_s11 + $0x68] sm:$0xff]  ;;  %v18366_v11 = vpack.c.bf16 %v16007_v16, %v16006_v45  ;;  %v18402_v0 = vpack.c.bf16 %v16035_v61, %v16034_v38 }
 0xa83   : > { %12989 = vst.msk [vmem:[#allocation2 + $0x61] sm:$0xf] %vm12985_vm15, %v12980_v57  ;;  %v18370_v9 = vpack.c.bf16 %v16011_v44, %v16010_v10 }
 0xa84   : > { %18353 = vmatpush3.bf16.msra.mxu1 %v18350_v52  ;;  %v16036_v52 = vld [vmem:[%s23496_s11 + $0xf0] sm:$0xff] }
 0xa85   : > { %18355 = vmatprep.subr.bf16.mxu1 %v18354_v41 }
 0xa86   : > { %18110 = vmatmul.mubr.msk.f32.vlgmr.msra.gmra.mrb[44].mxu0 %vm11130_vm12, %v19171_v35  ;;  %v16013_v35 = vld [vmem:[%s23496_s11 + $0x78] sm:$0xff] }
 0xa87   : > { %18325 = vmatpush3.bf16.msra.mxu0 %v18322_v30  ;;  %18116 = vmatprep.mubr.msk.f32.mxu0 %vm11130_vm12, %v19172_v34  ;;  %v13867_v30 = vld [vmem:[%s23496_s11 + $0x18] sm:$0xff]  ;;  %v18374_v34 = vpack.c.bf16 %v16013_v35, %v16012_v18 }
 0xa88   : > { %18327 = vmatprep.subr.bf16.mxu0 %v18326_v28  ;;  %v18358_v1 = vpack.c.bf16 %v13867_v30, %v13866_v43  ;;  %v14844_v30 = vld [vmem:[%s23498_s13] sm:$0xff] }
 0xa8a   : > { %v19173_v15 = vld [vmem:[#allocation2 + $0x48] ss:$24 sps:$4 sm:$0xff]  }
 0xa8b   : > { %v19175_v33 = vld [vmem:[#allocation2 + $0x49] ss:$24 sps:$4 sm:$0xff]  }
 0xa8c   : > { %v19177_v54 = vld [vmem:[#allocation2 + $0x4a] ss:$24 sps:$4 sm:$0xff]  }
 0xa8d   : > { %v19179_v20 = vld [vmem:[#allocation2 + $0x60] ss:$24 sps:$4 sm:$0xff]   ;;  %13852 = vst.msk [vmem:[#allocation2 + $0x48] sm:$0x3f] %vm13848_vm1, %v23881_v56 }
 0xa8e   : > { %18117 = vmatmul.mubr.msk.f32.vlgmr.msra.gmra.mrb[44].mxu0 %vm11130_vm12, %v19173_v15  ;;  %v19181_v42 = vld [vmem:[#allocation2 + $0x61] ss:$24 sps:$4 sm:$0xff]   ;;  %v16017_v15 = vld [vmem:[%s23496_s11 + $0x88] sm:$0xff] }
 0xa8f   : > { %18329 = vmatpush3.bf16.msra.mxu0 %v18326_v28  ;;  %18123 = vmatprep.mubr.msk.f32.mxu0 %vm11130_vm12, %v19174_v27  ;;  %v19183_v5 = vld [vmem:[#allocation2 + $0x62] ss:$24 sps:$4 sm:$0xff]   ;;  %v16018_v27 = vld [vmem:[%s23496_s11 + $0x90] sm:$0xff] }
 0xa90   : > { %18331 = vmatprep.subr.bf16.mxu0 %v18330_v29  ;;  %13853 = vst.msk [vmem:[#allocation2 + $0x60] sm:$0x3f] %vm13848_vm1, %v23881_v56  ;;  %13854 = vst.msk [vmem:[#allocation2 + $0x78] sm:$0x3f] %vm13848_vm1, %v23881_v56 }
 0xa96   : > { %18124 = vmatmul.mubr.msk.f32.vlgmr.msra.gmra.mrb[44].mxu0 %vm11130_vm12, %v19175_v33  ;;  %v18382_v33 = vpack.c.bf16 %v16019_v31, %v16018_v27 }
 0xa97   : > { %18333 = vmatpush3.bf16.msra.mxu0 %v18330_v29  ;;  %18130 = vmatprep.mubr.msk.f32.mxu0 %vm11130_vm12, %v19176_v59  ;;  %v18378_v29 = vpack.c.bf16 %v16017_v15, %v16016_v26  ;;  %v16022_v59 = vld [vmem:[%s23496_s11 + $0xa0] sm:$0xff] }
 0xa98   : > { %18335 = vmatprep.subr.bf16.mxu0 %v18334_v47  ;;  %v18386_v37 = vpack.c.bf16 %v16023_v49, %v16022_v59 }
 0xa9e   : > { %18131 = vmatmul.mubr.msk.f32.vlgmr.msra.gmra.mrb[44].mxu0 %vm11130_vm12, %v19177_v54  ;;  %v16024_v54 = vld [vmem:[%s23496_s11 + $0xb0] sm:$0xff] }
 0xa9f   : > { %18337 = vmatpush3.bf16.msra.mxu0 %v18334_v47  ;;  %18137 = vmatprep.mubr.msk.f32.mxu0 %vm11130_vm12, %v19178_v50 }
 0xaa0   : > { %18339 = vmatprep.subr.bf16.mxu0 %v18338_v55 }
 0xaa6   : > { %18138 = vmatmul.mubr.msk.f32.vlgmr.msra.gmra.mrb[44].mxu0 %vm11130_vm12, %v19179_v20  ;;  %v16028_v20 = vld [vmem:[%s23496_s11 + $0xc0] sm:$0xff] }
 0xaa7   : > { %18341 = vmatpush3.bf16.msra.mxu0 %v18338_v55  ;;  %18144 = vmatprep.mubr.msk.f32.mxu0 %vm11130_vm12, %v19180_v8  ;;  %v16025_v55 = vld [vmem:[%s23496_s11 + $0xb8] sm:$0xff] }
 0xaa8   : > { %18343 = vmatprep.subr.bf16.mxu0 %v18342_v40  ;;  %v18390_v58 = vpack.c.bf16 %v16025_v55, %v16024_v54 }
 0xaae   : > { %18145 = vmatmul.mubr.msk.f32.vlgmr.msra.gmra.mrb[44].mxu0 %vm11130_vm12, %v19181_v42  ;;  %v16030_v42 = vld [vmem:[%s23496_s11 + $0xd0] sm:$0xff] }
 0xaaf   : > { %18345 = vmatpush3.bf16.msra.mxu0 %v18342_v40  ;;  %18151 = vmatprep.mubr.msk.f32.mxu0 %vm11130_vm12, %v19182_v13  ;;  %v16029_v40 = vld [vmem:[%s23496_s11 + $0xc8] sm:$0xff]  ;;  %v16031_v13 = vld [vmem:[%s23496_s11 + $0xd8] sm:$0xff] }
 0xab0   : > { %v18394_v8 = vpack.c.bf16 %v16029_v40, %v16028_v20  ;;  %v18398_v63 = vpack.c.bf16 %v16031_v13, %v16030_v42 }
 0xab6   : > { %18152 = vmatmul.mubr.msk.f32.vlgmr.msra.gmra.mrb[44].mxu0 %vm11130_vm12, %v19183_v5 }
 0xab7   : > { %18261 = vmatprep.mubr.msk.f32.mxu0 %vm19341_vm8, %v23881_v56 }
 0xb89   : > { %v18153_v25 = vpop.f32.mrb[44].mxu0 }
 0xb8a   : > { %v13839_v24 = vadd.f32 %v18153_v25, %v15995_v4  ;;  %v13820_v21 = vpop.f32.mrb[45].mxu0  ;;  %v16040_v25 = vld [vmem:[%s23496_s11 + $0x100] sm:$0xff] }
 0xb8b   : > { %v13838_v7 = vadd.f32 %v15995_v4, %v13820_v21 }
 0xb8c   : > { %v13841_v62 = vmax.f32 %v13839_v24, 0.0  ;;  %v16041_v24 = vld [vmem:[%s23496_s11 + $0x108] sm:$0xff] }
 0xb8d   : > { %v13840_v32 = vmax.f32 %v13838_v7, 0.0  ;;  %v18410_v21 = vpack.c.bf16 %v16041_v24, %v16040_v25  ;;  %v16042_v7 = vld [vmem:[%s23496_s11 + $0x110] sm:$0xff] }
 0xb8e   : > { %v13845_v17 = vcombine.high %v13841_v62, %v13841_v62  ;;  %13858 = vst.msk [vmem:[#allocation2 + $0x49] sm:$0xf] %vm13855_vm3, %v13841_v62  ;;  %v16043_v62 = vld [vmem:[%s23496_s11 + $0x118] sm:$0xff] }
 0xb8f   : > { %v13844_v48 = vcombine.high %v13840_v32, %v13840_v32  ;;  %13856 = vst.msk [vmem:[#allocation2 + $0x19] sm:$0xf] %vm13855_vm3, %v13840_v32 }
 0xb90   : > { %13859 = vst.msk [vmem:[#allocation2 + $0x61] sm:$0xf] %vm13855_vm3, %v13845_v17  ;;  %v18414_v17 = vpack.c.bf16 %v16043_v62, %v16042_v7 }
 0xb91   : > { %13857 = vst.msk [vmem:[#allocation2 + $0x31] sm:$0xf] %vm13855_vm3, %v13844_v48 }
 0xb96   : > { %v19184_v60 = vld [vmem:[#allocation2 + $0x1] ss:$24 sps:$4 sm:$0xff]  }
 0xb97   : > { %18162 = vmatprep.mubr.msk.f32.mxu1 %vm13883_vm4, %v19184_v60  ;;  %v19186_v36 = vld [vmem:[#allocation2] ss:$24 sps:$4 sm:$0xff]   ;;  %v14845_v60 = vld [vmem:[%s23498_s13 + $0x8] sm:$0xff] }
 0xb98   : > { %v19185_v3 = vld [vmem:[#allocation2 + $0x31] ss:$24 sps:$4 sm:$0xff]   ;;  %v19188_v57 = vld [vmem:[#allocation2 + $0x2] ss:$24 sps:$4 sm:$0xff]  }
 0xb99   : > { %18163 = vmatmul.mubr.msk.f32.vlgmr.msra.gmra.mrb[40].mxu1 %vm13883_vm4, %v19185_v3  ;;  %v19187_v39 = vld [vmem:[#allocation2 + $0x30] ss:$24 sps:$4 sm:$0xff]   ;;  %v19197_v22 = vld [vmem:[#allocation2 + $0x60] ss:$24 sps:$4 sm:$0xff]   ;;  %v19340_v3 = vmov 0.0|0.0  }
 0xb9a   : > { %18357 = vmatpush3.bf16.msra.mxu1 %v18354_v41  ;;  %18173 = vmatprep.mubr.msk.f32.mxu1 %vm13883_vm4, %v19186_v36  ;;  %v19189_v28 = vld [vmem:[#allocation2 + $0x32] ss:$24 sps:$4 sm:$0xff]   ;;  %v18406_v41 = vpack.c.bf16 %v16037_v23, %v16036_v52  ;;  %v19199_v32 = vld [vmem:[#allocation2 + $0x61] ss:$24 sps:$4 sm:$0xff]  }
 0xb9b   : > { %18359 = vmatprep.subr.bf16.mxu1 %v18358_v1  ;;  %v19190_v6 = vld [vmem:[#allocation2 + $0x18] ss:$24 sps:$4 sm:$0xff]   ;;  %v19191_v12 = vld [vmem:[#allocation2 + $0x48] ss:$24 sps:$4 sm:$0xff]   ;;  %18418 = vmatprep.subr.bf16.mxu0 %v19340_v3 }
 0xb9c   : > { %v19192_v47 = vld [vmem:[#allocation2 + $0x19] ss:$24 sps:$4 sm:$0xff]   ;;  %v19193_v50 = vld [vmem:[#allocation2 + $0x49] ss:$24 sps:$4 sm:$0xff]  }
 0xb9d   : > { %v19194_v2 = vld [vmem:[#allocation2 + $0x1a] ss:$24 sps:$4 sm:$0xff]   ;;  %v19195_v5 = vld [vmem:[#allocation2 + $0x4a] ss:$24 sps:$4 sm:$0xff]  }
 0xb9e   : > { %18361 = vmatpush3.bf16.msra.mxu1 %v18358_v1  ;;  %v19196_v53 = vld [vmem:[#allocation2 + $0x30] ss:$24 sps:$4 sm:$0xff]   ;;  %v19201_v43 = vld [vmem:[#allocation2 + $0x62] ss:$24 sps:$4 sm:$0xff]   ;;  %v18419_v1 = vpack.c.bf16 %v14845_v60, %v14844_v30 }
 0xb9f   : > { %18363 = vmatprep.subr.bf16.mxu1 %v18362_v19  ;;  %v19198_v4 = vld [vmem:[#allocation2 + $0x31] ss:$24 sps:$4 sm:$0xff]   ;;  %v14847_v36 = vld [vmem:[%s23498_s13 + $0x18] sm:$0xff] }
 0xba0   : > { %v19200_v48 = vld [vmem:[#allocation2 + $0x32] ss:$24 sps:$4 sm:$0xff]   ;;  %18420 = vmatpush3.bf16.msra.mxu0 %v18419_v1  ;;  %v18422_v14 = vpack.c.bf16 %v14847_v36, %v14846_v46 }
 0xba1   : > { %18174 = vmatmul.mubr.msk.f32.vlgmr.msra.gmra.mrb[40].mxu1 %vm13883_vm4, %v19187_v39  ;;  %18421 = vmatprep.subr.bf16.mxu0 %v19340_v3 }
 0xba2   : > { %18365 = vmatpush3.bf16.msra.mxu1 %v18362_v19  ;;  %18184 = vmatprep.mubr.msk.f32.mxu1 %vm13883_vm4, %v19188_v57  ;;  %v16046_v19 = vld [vmem:[%s23497_s12] ss:$0 sm:$0xff] }
 0xba3   : > { %18367 = vmatprep.subr.bf16.mxu1 %v18366_v11 }
 0xba4   : > { %18423 = vmatpush3.bf16.msra.mxu0 %v18422_v14 }
 0xba5   : > { %18264 = vmatprep.subr.mxu0 %v23881_v56 }
 0xba6   : > { %18369 = vmatpush3.bf16.msra.mxu1 %v18366_v11 }
 0xba7   : > { %18371 = vmatprep.subr.bf16.mxu1 %v18370_v9 }
 0xba9   : > { %18185 = vmatmul.mubr.msk.f32.vlgmr.msra.gmra.mrb[40].mxu1 %vm13883_vm4, %v19189_v28 }
 0xbaa   : > { %18373 = vmatpush3.bf16.msra.mxu1 %v18370_v9  ;;  %18195 = vmatprep.mubr.msk.f32.mxu1 %vm13883_vm4, %v19190_v6 }
 0xbab   : > { %18375 = vmatprep.subr.bf16.mxu1 %v18374_v34 }
 0xbae   : > { %18377 = vmatpush3.bf16.msra.mxu1 %v18374_v34 }
 0xbaf   : > { %18379 = vmatprep.subr.bf16.mxu1 %v18378_v29 }
 0xbb1   : > { %18196 = vmatmul.mubr.msk.f32.vlgmr.msra.gmra.mrb[40].mxu1 %vm13883_vm4, %v19191_v12 }
 0xbb2   : > { %18381 = vmatpush3.bf16.msra.mxu1 %v18378_v29  ;;  %18206 = vmatprep.mubr.msk.f32.mxu1 %vm13883_vm4, %v19192_v47 }
 0xbb3   : > { %18383 = vmatprep.subr.bf16.mxu1 %v18382_v33 }
 0xbb6   : > { %18385 = vmatpush3.bf16.msra.mxu1 %v18382_v33 }
 0xbb7   : > { %18387 = vmatprep.subr.bf16.mxu1 %v18386_v37 }
 0xbb9   : > { %18207 = vmatmul.mubr.msk.f32.vlgmr.msra.gmra.mrb[40].mxu1 %vm13883_vm4, %v19193_v50 }
 0xbba   : > { %18389 = vmatpush3.bf16.msra.mxu1 %v18386_v37  ;;  %18217 = vmatprep.mubr.msk.f32.mxu1 %vm13883_vm4, %v19194_v2 }
 0xbbb   : > { %18391 = vmatprep.subr.bf16.mxu1 %v18390_v58 }
 0xbbe   : > { %18393 = vmatpush3.bf16.msra.mxu1 %v18390_v58 }
 0xbbf   : > { %18395 = vmatprep.subr.bf16.mxu1 %v18394_v8 }
 0xbc1   : > { %18218 = vmatmul.mubr.msk.f32.vlgmr.msra.gmra.mrb[40].mxu1 %vm13883_vm4, %v19195_v5 }
 0xbc2   : > { %18397 = vmatpush3.bf16.msra.mxu1 %v18394_v8  ;;  %18228 = vmatprep.mubr.msk.f32.mxu1 %vm13883_vm4, %v19196_v53 }
 0xbc3   : > { %18399 = vmatprep.subr.bf16.mxu1 %v18398_v63 }
 0xbc6   : > { %18401 = vmatpush3.bf16.msra.mxu1 %v18398_v63 }
 0xbc7   : > { %18403 = vmatprep.subr.bf16.mxu1 %v18402_v0 }
 0xbc9   : > { %18229 = vmatmul.mubr.msk.f32.vlgmr.msra.gmra.mrb[40].mxu1 %vm13883_vm4, %v19197_v22 }
 0xbca   : > { %18405 = vmatpush3.bf16.msra.mxu1 %v18402_v0  ;;  %18239 = vmatprep.mubr.msk.f32.mxu1 %vm13883_vm4, %v19198_v4 }
 0xbcb   : > { %18407 = vmatprep.subr.bf16.mxu1 %v18406_v41 }
 0xbce   : > { %18409 = vmatpush3.bf16.msra.mxu1 %v18406_v41 }
 0xbcf   : > { %18411 = vmatprep.subr.bf16.mxu1 %v18410_v21 }
 0xbd1   : > { %18240 = vmatmul.mubr.msk.f32.vlgmr.msra.gmra.mrb[40].mxu1 %vm13883_vm4, %v19199_v32 }
 0xbd2   : > { %18413 = vmatpush3.bf16.msra.mxu1 %v18410_v21  ;;  %18250 = vmatprep.mubr.msk.f32.mxu1 %vm13883_vm4, %v19200_v48 }
 0xbd3   : > { %18415 = vmatprep.subr.bf16.mxu1 %v18414_v17 }
 0xbd6   : > { %18417 = vmatpush3.bf16.msra.mxu1 %v18414_v17 }
 0xbd9   : > { %18251 = vmatmul.mubr.msk.f32.vlgmr.msra.gmra.mrb[40].mxu1 %vm13883_vm4, %v19201_v43 }
 0xcac   : > { %v18252_v45 = vpop.f32.mrb[40].mxu1 }
 0xcad   : > { %v14728_v16 = vadd.f32 %v18252_v45, %v16046_v19  ;;  %v14709_v10 = vpop.f32.mrb[41].mxu1 }
 0xcae   : > { %v14727_v44 = vadd.f32 %v16046_v19, %v14709_v10 }
 0xcaf   : > { %v14730_v39 = vmax.f32 %v14728_v16, 0.0 }
 0xcb0   : > { %v14729_v11 = vmax.f32 %v14727_v44, 0.0 }
 0xcb1   : > { %v14750_v57 = vcombine.high %v14730_v39, %v14730_v39  ;;  %v14757_v9 = vrot.slane %v14730_v39, %v21613_v51 }
 0xcb2   : > { %v14733_v18 = vcombine.high %v14729_v11, %v14729_v11  ;;  %v14740_v35 = vrot.slane %v14729_v11, %v21613_v51 }
 0xcb3   : > { %v14764_v28 = vrot.slane %v14750_v57, %v21613_v51  ;;  %v14765_v34 = vcombine.high %v14757_v9, %v14757_v9  ;;  %v14804_v6 = vsel %vm14775_vm9, %v14757_v9, -inf }
 0xcb4   : > { %v14805_v26 = vrot.slane %v14804_v6, 4  ;;  %v14747_v15 = vrot.slane %v14733_v18, %v21613_v51  ;;  %v14748_v29 = vcombine.high %v14740_v35, %v14740_v35  ;;  %v14776_v27 = vsel %vm14775_vm9, %v14740_v35, -inf }
 0xcb5   : > { %v14766_v31 = vcombine.high %v14764_v28, %v14764_v28  ;;  %v14811_v12 = vsel %vm14775_vm9, %v14765_v34, -inf  ;;  %v14818_v33 = vsel %vm14775_vm9, %v14764_v28, -inf  ;;  %v14777_v47 = vrot.slane %v14776_v27, 4 }
 0xcb6   : > { %v14806_v59 = vmax.f32 %v14804_v6, %v14805_v26  ;;  %v14812_v49 = vrot.slane %v14811_v12, 4  ;;  %v14819_v37 = vrot.slane %v14818_v33, 4  ;;  %v14749_v54 = vcombine.high %v14747_v15, %v14747_v15 }
 0xcb7   : > { %v14825_v55 = vsel %vm14775_vm9, %v14766_v31, -inf  ;;  %v14778_v50 = vmax.f32 %v14776_v27, %v14777_v47  ;;  %v14783_v58 = vsel %vm14775_vm9, %v14748_v29, -inf  ;;  %v14790_v51 = vsel %vm14775_vm9, %v14747_v15, -inf }
 0xcb8   : > { %v14807_v2 = vrot.slane %v14806_v59, 2  ;;  %v14813_v20 = vmax.f32 %v14811_v12, %v14812_v49  ;;  %v14820_v40 = vmax.f32 %v14818_v33, %v14819_v37  ;;  %v14826_v8 = vrot.slane %v14825_v55, 4 }
 0xcb9   : > { %v14779_v42 = vrot.slane %v14778_v50, 2  ;;  %v14784_v13 = vrot.slane %v14783_v58, 4  ;;  %v14791_v5 = vrot.slane %v14790_v51, 4  ;;  %v14797_v63 = vsel %vm14775_vm9, %v14749_v54, -inf  ;;  %v14944_v54 = vld [vmem:[%s23500_s15] sm:$0xf] }
 0xcba   : > { %v14814_v53 = vrot.slane %v14813_v20, 2  ;;  %v14821_v38 = vrot.slane %v14820_v40, 2  ;;  %v14827_v61 = vmax.f32 %v14825_v55, %v14826_v8  ;;  %v14798_v22 = vrot.slane %v14797_v63, 4  ;;  %v16047_v55 = vld [vmem:[%s23499_s14] ss:$0 sm:$0xff] }
 0xcbb   : > { %v14780_v0 = vmax.f32 %v14778_v50, %v14779_v42  ;;  %v14785_v52 = vmax.f32 %v14783_v58, %v14784_v13  ;;  %v14792_v23 = vmax.f32 %v14790_v51, %v14791_v5  ;;  %v14808_v41 = vmax.f32 %v14806_v59, %v14807_v2 }
 0xcbc   : > { %v14822_v4 = vmax.f32 %v14820_v40, %v14821_v38  ;;  %v14828_v25 = vrot.slane %v14827_v61, 2  ;;  %v14815_v24 = vmax.f32 %v14813_v20, %v14814_v53  ;;  %v14799_v62 = vmax.f32 %v14797_v63, %v14798_v22  ;;  %v15023_v38 = vld [vmem:[%s23502_s17] sm:$0xf] }
 0xcbd   : > { %v14786_v21 = vrot.slane %v14785_v52, 2  ;;  %v14793_v7 = vrot.slane %v14792_v23, 2  ;;  %v14781_v48 = vrot.slane %v14780_v0, 1  ;;  %v14809_v46 = vrot.slane %v14808_v41, 1 }
 0xcbe   : > { %v14823_v32 = vrot.slane %v14822_v4, 1  ;;  %v14829_v17 = vmax.f32 %v14827_v61, %v14828_v25  ;;  %v14800_v60 = vrot.slane %v14799_v62, 2  ;;  %v14816_v1 = vrot.slane %v14815_v24, 1  ;;  %v14945_v61 = vld [vmem:[%s23883_s21] sm:$0x1]  ;;  %s19260_s21 = scalar_lea.vmem %s23445_s0, 16 }
 0xcbf   : > { %v14787_v43 = vmax.f32 %v14785_v52, %v14786_v21  ;;  %v14794_v30 = vmax.f32 %v14792_v23, %v14793_v7  ;;  %v14782_v16 = vmax.f32 %v14780_v0, %v14781_v48  ;;  %v14810_v57 = vmax.f32 %v14808_v41, %v14809_v46  ;;  %p19261_p10 = scmp.ne.s32.totalorder %s23445_s0, %s19260_s21  ;;  %p19268_p7 = scmp.lt.s32.totalorder %s19266_s23, %s19260_s21 }
 0xcc0   : > { %v14830_v3 = vrot.slane %v14829_v17, 1  ;;  %v14801_v19 = vmax.f32 %v14799_v62, %v14800_v60  ;;  %v14824_v45 = vmax.f32 %v14822_v4, %v14823_v32  ;;  %v14817_v9 = vmax.f32 %v14815_v24, %v14816_v1 }
 0xcc1   : > { %v14788_v36 = vrot.slane %v14787_v43, 1  ;;  %v14795_v14 = vrot.slane %v14794_v30, 1  ;;  %v14832_v34 = vsel %vm13883_vm4, %v14782_v16, -inf  ;;  %v14838_v29 = vsel %vm13883_vm4, %v14810_v57, -inf  ;;  %p19262_p2 = pnand %p19261_p10, %p23887_p1  ;;  %p19269_p8 = por %p19268_p7, %p19267_p4 }
 0xcc2   : > { %v14802_v39 = vrot.slane %v14801_v19, 1  ;;  %v14831_v11 = vmax.f32 %v14829_v17, %v14830_v3  ;;  %v14839_v28 = vsel %vm13883_vm4, %v14824_v45, -inf  ;;  %v14841_v33 = vsel %vm13883_vm4, %v14817_v9, -inf }
 0xcc3   : > { %v14789_v10 = vmax.f32 %v14787_v43, %v14788_v36  ;;  %v14796_v44 = vmax.f32 %v14794_v30, %v14795_v14  ;;  %v14840_v12 = vmax.f32 %v14838_v29, %v14839_v28  ;;  %p19263_p3 = pneg %p19262_p2 }
 0xcc4   : > { %v14803_v18 = vmax.f32 %v14801_v19, %v14802_v39  ;;  %v14842_v15 = vsel %vm13883_vm4, %v14831_v11, -inf }
 0xcc5   : > { %v14833_v35 = vsel %vm13883_vm4, %v14796_v44, -inf  ;;  %v14835_v6 = vsel %vm13883_vm4, %v14789_v10, -inf  ;;  %v14843_v47 = vmax.f32 %v14841_v33, %v14842_v15  ;;  %p19270_p11 = pnand %p19269_p8, %p19263_p3 }
 0xcc6   : > { %v14836_v26 = vsel %vm13883_vm4, %v14803_v18, -inf  ;;  %v14834_v27 = vmax.f32 %v14832_v34, %v14833_v35 }
 0xcc7   : > { %v14837_v31 = vmax.f32 %v14835_v6, %v14836_v26 }
 0xcc9   : > { %v14859_v59 = vsel %vm9722_vm5, %v14837_v31, %v14834_v27  ;;  %vm14935_vm5 = vcmask 27648  }
 0xcca   : > { %v14860_v49 = vsel %vm9724_vm6, %v14840_v12, %v14859_v59 }
 0xccb   : > { %v14861_v37 = vsel %vm9726_vm7, %v14843_v47, %v14860_v49 }
 0xccc   : > { %18262 = vmatmul.mubr.msk.f32.vlgmr.msra.gmra.mrb[46].mxu0 %vm13883_vm4, %v14861_v37 }
 0xccd   : > { %18266 = vmatprep.mubr.msk.f32.mxu0 %vm19341_vm8, %v23881_v56  ;;  %18265 = vmatpush3.msk.msra.mxu0 %vm914_vm2, %v14944_v54 }
 0xcce   : > { %18269 = vmatprep.subr.mxu0 %v23881_v56 }
 0xd9f   : > { %v14930_v50 = vpop.f32.mrb[46].mxu0 }
 0xda0   : > { %v14931_v58 = vadd.f32 %v16047_v55, %v14930_v50  ;;  %v18263_v51 = vpop.f32.mrb[47].mxu0 }
 0xda2   : > { %v14934_v2 = vmax.f32 %v14931_v58, 0.0 }
 0xda4   : > { %v14936_v20 = vsel %vm14935_vm5, %v14934_v2, 0.0 }
 0xda5   : > { %v14937_v40 = vrot.slane %v14936_v20, 4 }
 0xda7   : > { %v14938_v8 = vadd.f32 %v14937_v40, %v14936_v20 }
 0xda9   : > { %v14939_v42 = vrot.slane %v14938_v8, 2 }
 0xdab   : > { %v14940_v13 = vadd.f32 %v14939_v42, %v14938_v8 }
 0xdad   : > { %v14941_v5 = vrot.slane %v14940_v13, 1 }
 0xdaf   : > { %v14942_v63 = vadd.f32 %v14941_v5, %v14940_v13 }
 0xdb1   : > { %v14943_v53 = vmul.f32 0.25, %v14942_v63 }
 0xdb3   : > { %18267 = vmatmul.mubr.msk.f32.vlgmr.msra.gmra.mrb[48].mxu0 %vm662_vm0, %v14943_v53 }
 0xdb4   : > { %18271 = vmatprep.mubr.msk.f32.mxu0 %vm19341_vm8, %v23881_v56  ;;  %18270 = vmatpush3.msk.msra.mxu0 %vm914_vm2, %v15023_v38  ;;  %v15024_v56 = vld [vmem:[%s23884_s29] sm:$0x1]  ;;  %vm15102_vm2 = vcmask 24576  }
 0xe86   : > { %v15018_v0 = vpop.f32.mrb[48].mxu0 }
 0xe87   : > { %v15019_v52 = vadd.f32 %v15018_v0, %v14945_v61  ;;  %v18268_v23 = vpop.f32.mrb[49].mxu0 }
 0xe89   : > { %v15022_v22 = vmax.f32 %v15019_v52, 0.0 }
 0xe8b   : > { %18272 = vmatmul.mubr.msk.f32.vlgmr.msra.gmra.mrb[50].mxu0 %vm662_vm0, %v15022_v22 }
 0xf5e   : > { %v15097_v41 = vpop.f32.mrb[50].mxu0 }
 0xf5f   : > { %v15098_v4 = vadd.f32 %v15097_v41, %v15024_v56  ;;  %v18273_v25 = vpop.f32.mrb[51].mxu0 }
 0xf61   : > { %v15101_v24 = vmax.f32 %v15098_v4, 0.0 }
 0xf63   : > { %15103 = vst.msk [vmem:[%s624_s3] sm:$0x1] %vm15102_vm2, %v15101_v24 }
 0xf64   : > { %19273 = shalt.err (!%p19270_p11)
}
 0xf65   : > { %s19274_s25 = scalar_lea.hbm %s23443_s20, 16  ;;  %s19278_s3 = scalar_lea.hbm %s23886_s24, 32 }
 0xf66   : > { %p19275_p13 = scmp.ne.s32.totalorder %s23443_s20, %s19274_s25  ;;  %p19279_p6 = scmp.lt.u32.totalorder %s23443_s20, %s23886_s24 }
 0xf67   : > { %p19280_p9 = scmp.lt.u32.totalorder %s19278_s3, %s19274_s25  ;;  %p19282_p10 = scmp.lt.u32.totalorder %s19274_s25, %s23443_s20 }
 0xf68   : > { %p19276_p0 = pnand %p19275_p13, %p23887_p1 }
 0xf69   : > { %p19281_p12 = por %p19280_p9, %p19279_p6 }
 0xf6a   : > { %p19277_p5 = pneg %p19276_p0 }
 0xf6b   : > { %p19283_p2 = por %p19282_p10, %p19281_p12 }
 0xf6d   : > { %p19284_p3 = pnand %p19283_p2, %p19277_p5 }
 0xf6f   : > { %19287 = shalt.err (!%p19284_p3)
}
 0xf70   : > { %19106 = dma.vmem_to_hbm [thread:$0]  (%p23887_p1), %s23445_s0, 16, %s23443_s20, %s15105_s19  }
 0xf71 PF: > { %s23888_s21 = sld [smem:[#allocation14_spill]]  ;;  %s23889_s1 = sld [smem:[#allocation12_spill]] }
 0xf72   : > { %s23890_s26 = sld [smem:[#allocation18_spill]] }
 0xf77   : > { %p19123_p4 = scmp.ge.s32.totalorder %s23888_s21, 2  ;;  %s15129_s23 = sand.u32 1, %s23889_s1  }
 0xf78   : > { %p23891_p7 = scmp.ne.s32.totalorder %s23890_s26, 0  ;;  %s15130_s29 = scalar_lea.sflag [#allocation5], %s15129_s23 }
 0xf7a   : > { %p19116_p8 = pnand %p19123_p4, %p23891_p7 }
 0xf7c   : > { %19313 = dma.done.wait (!%p19116_p8), %s15130_s29, 16  }
 0xf7d   : > { %19315 = vsyncadd (!%p19116_p8), %s15130_s29, 4294967280  ;;  %s23892_s21 = sld [smem:[#allocation15_spill]]  ;;  %s23893_s25 = sld [smem:[#allocation13_spill]] }
 0xf7e   : > { %s23894_s20 = sld [smem:[#allocation16_spill]]  ;;  %s23895_s0 = smov %s19322_s30 }
 0xf83   : > { %p31_p11 = scmp.ge.s32.totalorder %s23892_s21, 4   ;;  %s23896_s30 = smov %s23893_s25 }
 0xf85   :  { %33 = sbr.rel (!%p31_p11) target bundleno = 13 (0xd), region = 190 }
 0xf8c   :  { %15134 = vsyncpa [#allocation4], 1 }
 0xf8d   :  { %15136 = vsyncpa [#allocation4 + $0x1], 1 }
 0xf8e   :  { %15137 = vsyncpa [#allocation7], 1 }
 0xf8f   :  { %15138 = vsyncpa [#allocation5], 1 }
 0xf90   :  { %15140 = vsyncpa [#allocation5 + $0x1], 1 }

</bundles_post_ra>
